<compile_context>
chip_gen: v7x
topology: tpu7x:2x2x1
jax: 0.10.0
libtpu: 0.0.40
codegen_flags: <defaults>
</compile_context>

<pallas_src>
import functools
import numpy as np
import jax
import jax.numpy as jnp
from jax.experimental import pallas as pl
from jax.experimental.pallas import tpu as pltpu

NODE_DIM = 32
HIDDEN = 132    # logical FCBlock hidden width in the reference model
HPAD = 256      # zero-padded hidden width (MXU/lane aligned; padding is exact)
OUT_PAD = 128   # lane-dense padded width of the final rgb output (sliced to 3 in wrapper)


# ----------------------------- Pallas kernels ------------------------------

def _fused_mlp_kernel(*refs, relu_flags):
    """Chain of Linear (+bias)(+ReLU) layers over one row tile.

    refs = (x_ref, W0, b0, W1, b1, ..., out_ref).  Weights are bf16 and fully
    VMEM-resident; matmuls accumulate in f32 on the MXU; bias/ReLU in f32;
    activations are carried in bf16 between layers (single cast per layer) so
    intermediate VMEM ld/st traffic and vreg pressure are halved.
    """
    x_ref, o_ref = refs[0], refs[-1]
    w_refs = refs[1:-1]
    h = x_ref[...]
    if h.dtype != jnp.bfloat16:
        h = h.astype(jnp.bfloat16)
    n_layers = len(relu_flags)
    for li, relu in enumerate(relu_flags):
        w = w_refs[2 * li][...]                      # bf16 (K, N)
        b = w_refs[2 * li + 1][...]                  # f32  (1, N)
        acc = jnp.dot(h, w, preferred_element_type=jnp.float32) + b
        if relu:
            acc = jnp.maximum(acc, 0.0)
        h = acc.astype(jnp.bfloat16) if li + 1 < n_layers else acc
    o_ref[...] = h.astype(o_ref.dtype)


def fused_mlp_pallas(x, layers, out_dim, tm):
    """Apply a list of (W_bf16, b_f32, relu) layers as ONE pallas_call.

    Grid tiles rows only; every weight is a full-extent VMEM block with a constant
    index_map (DMA elided on revisits), so all inter-layer activations stay on-chip.
    """
    M, K = x.shape
    relu_flags = tuple(r for _, _, r in layers)
    weight_args = []
    for w, b, _ in layers:
        weight_args += [w, b]

    in_specs = [pl.BlockSpec((tm, K), lambda i: (i, 0))]
    for arr in weight_args:
        in_specs.append(pl.BlockSpec(arr.shape, lambda i: (0, 0)))

    return pl.pallas_call(
        functools.partial(_fused_mlp_kernel, relu_flags=relu_flags),
        out_shape=jax.ShapeDtypeStruct((M, out_dim), jnp.float32),
        grid_spec=pltpu.PrefetchScalarGridSpec(
            num_scalar_prefetch=0,
            grid=(pl.cdiv(M, tm),),
            in_specs=in_specs,
            out_specs=pl.BlockSpec((tm, out_dim), lambda i: (i, 0))),
        compiler_params=pltpu.CompilerParams(
            dimension_semantics=("parallel",)),
    )(x, *weight_args)


def _edge_norm_kernel(a_ref, b_ref, o_ref):
    d = a_ref[...] - b_ref[...]                                     # (K, te)
    o_ref[...] = jnp.sqrt(jnp.sum(d * d, axis=0, keepdims=True))    # (1, te)


def edge_norm_pallas(a_t, b_t, te):
    """Per-edge L2 norm of (a - b). Feature axis lives in SUBLANES, edges in LANES,
    so the output is a lane-dense (1, E) row (no width-1 masked stores)."""
    K, Ep = a_t.shape
    out = pl.pallas_call(
        _edge_norm_kernel,
        out_shape=jax.ShapeDtypeStruct((1, Ep), jnp.float32),
        grid_spec=pltpu.PrefetchScalarGridSpec(
            num_scalar_prefetch=0,
            grid=(Ep // te,),
            in_specs=[pl.BlockSpec((K, te), lambda i: (0, i)),
                      pl.BlockSpec((K, te), lambda i: (0, i))],
            out_specs=pl.BlockSpec((1, te), lambda i: (0, i))),
        compiler_params=pltpu.CompilerParams(
            dimension_semantics=("parallel",)),
    )(a_t, b_t)
    return out[0]


# ----------------------------- tiling helpers -------------------------------

def _choose_row_tile(M, cap=512):
    """Row tile that divides M exactly (no ragged last block).
    Single-core v5e/v6e: largest tile (grid=1 at small M -> fewer ~0.35us steps).
    Dual-TensorCore parts (v7x, megacore v4/v5p): keep an EVEN block count so both
    cores receive whole blocks on the 'parallel' grid axis."""
    kind = ""
    try:
        kind = jax.devices()[0].device_kind.lower()
    except Exception:
        pass
    single_core = any(s in kind for s in ("v5 lite", "v5e", "v6 lite", "v6e"))
    best = None
    for t in range(8, min(M, cap) + 1, 8):
        if M % t != 0:
            continue
        if not single_core and (M // t) % 2 != 0:
            continue
        best = t
    if best is None:
        best = min(M, 256)   # ragged fallback; Pallas masks the partial last block
    return best


def _round_up(x, m):
    return ((x + m - 1) // m) * m


# ----------------------------- parameter setup ------------------------------

def _torch_linear(key, fan_in, fan_out):
    """PyTorch nn.Linear default init (logical, unpadded, f32)."""
    kw, kb = jax.random.split(key)
    lim = 1.0 / np.sqrt(fan_in)
    w = jax.random.uniform(kw, (fan_in, fan_out), jnp.float32, -lim, lim)
    b = jax.random.uniform(kb, (fan_out,), jnp.float32, -lim, lim)
    return w, b


def _fcblock_logical(key, in_f, hidden, n_hidden, out_f):
    # FCBlock(hidden_ch, num_hidden_layers, in_features, features):
    # Linear+ReLU input layer, n_hidden Linear+ReLU hidden layers, linear output.
    dims = ([(in_f, hidden, True)] + [(hidden, hidden, True)] * n_hidden
            + [(hidden, out_f, False)])
    keys = jax.random.split(key, len(dims))
    return [(_torch_linear(k, fi, fo) + (relu,)) for k, (fi, fo, relu) in zip(keys, dims)]


def _pad_cast_layer(w, b, pad_in, pad_out):
    """Zero-pad to (pad_in, pad_out) and cast W to bf16 (exact through bias/ReLU)."""
    fi, fo = w.shape
    wp = jnp.pad(w, ((0, pad_in - fi), (0, pad_out - fo))).astype(jnp.bfloat16)
    bp = jnp.pad(b, ((0, pad_out - fo),)).reshape(1, pad_out).astype(jnp.float32)
    return wp, bp


def init_params(key):
    k = jax.random.split(key, 5)
    params = {}

    # TODO(synk): `self.rdn = []` in the source is undefined/uncallable; substituted a
    # pointwise conv (3 -> NODE_DIM-2 = 30 channels) + ReLU as the image feature
    # extractor.  Kept in plain f32 XLA: it is tiny, and its output (plus the raw
    # pixel coordinates) feeds the discrete affinity/clustering decisions, which
    # therefore stay bit-comparable to an f32 reference.
    params["rdn_w"], params["rdn_b"] = _torch_linear(k[0], 3, NODE_DIM - 2)

    # ---- node-feature chain: GraphConv -> transf FCBlock -> to_rgb FCBlock ----
    # GraphConv(32, 32): lin_rel(sum_j x_j) + lin_root(x); lin_root has no bias.
    # Stacked into one (64, 32) matrix applied to [x | agg].
    w_rel, b_rel = _torch_linear(k[1], NODE_DIM, NODE_DIM)
    w_root, _ = _torch_linear(k[2], NODE_DIM, NODE_DIM)
    gc_w = jnp.concatenate([w_root, w_rel], axis=0)                   # (64, 32)
    gc_b = b_rel

    transf = _fcblock_logical(k[3], NODE_DIM, HIDDEN, 2, NODE_DIM)    # FCBlock(132,2,32,32)
    to_rgb = _fcblock_logical(k[4], NODE_DIM, HIDDEN, 4, 3)           # FCBlock(132,4,32,3)

    # Fold the bias-only linear junctions (no ReLU between them) in f32:
    #   GraphConv (64->32)       into transf input layer (32->132)  => one 64->132 layer
    #   transf output (132->32)  into to_rgb input layer (32->132)  => one 132->132 layer
    t_in_w, t_in_b, _ = transf[0]
    l_gt_w = gc_w @ t_in_w                                            # (64, 132)
    l_gt_b = gc_b @ t_in_w + t_in_b
    t_out_w, t_out_b, _ = transf[-1]
    r_in_w, r_in_b, _ = to_rgb[0]
    l_tr_w = t_out_w @ r_in_w                                         # (132, 132)
    l_tr_b = t_out_b @ r_in_w + r_in_b

    logical = ([(l_gt_w, l_gt_b, True)] + transf[1:-1]
               + [(l_tr_w, l_tr_b, True)] + to_rgb[1:-1]
               + [to_rgb[-1]])                                        # 9 matmuls total

    node_layers = []
    for li, (w, b, relu) in enumerate(logical):
        pad_in = w.shape[0] if li == 0 else HPAD            # layer 0 input is the raw 64-wide [cx|agg]
        pad_out = OUT_PAD if li == len(logical) - 1 else HPAD  # lane-dense final output
        node_layers.append(_pad_cast_layer(w, b, pad_in, pad_out) + (relu,))
    params["node_layers"] = node_layers
    return params


# ----------------------------- graph construction ---------------------------

@functools.lru_cache(maxsize=None)
def make_grid_graph(H, W):
    # Approximates torch_geometric.utils.grid: 8-neighbourhood (+ self loop) edges and
    # per-node position [col, H-1-row].
    rows, cols = [], []
    for r in range(H):
        for c in range(W):
            i = r * W + c
            for dr in (-1, 0, 1):
                for dc in (-1, 0, 1):
                    rr, cc = r + dr, c + dc
                    if 0 <= rr < H and 0 <= cc < W:
                        rows.append(i)
                        cols.append(rr * W + cc)
    rr_idx, cc_idx = np.meshgrid(np.arange(H), np.arange(W), indexing="ij")
    pos = np.stack([cc_idx.reshape(-1), (H - 1 - rr_idx).reshape(-1)],
                   axis=1).astype(np.float32)
    return np.asarray(rows, np.int32), np.asarray(cols, np.int32), pos


# ----------------------------- forward pass ---------------------------------

def psgnet_lite_forward(img, params):
    B, H, W, _ = img.shape
    N = H * W
    BN = B * N

    # Batch.from_data_list: offset per-image edge indices, batch vector, tiled coords.
    # All host-side numpy (constants under jit) -> no extra XLA ops.
    row_np, col_np, pos_np = make_grid_graph(H, W)
    row_all = np.concatenate([row_np + b * N for b in range(B)]).astype(np.int32)
    col_all = np.concatenate([col_np + b * N for b in range(B)]).astype(np.int32)
    E = row_all.shape[0]
    # Edge tile: lane-dense and big enough to amortize the ~0.35us/step grid overhead.
    if E <= 8192:
        Ep = _round_up(E, 512)
        te = Ep                                  # single grid step
    else:
        Ep = _round_up(E, 4096)
        te = 4096
    row_pad = np.pad(row_all, (0, Ep - E))       # pad with node 0; sliced off after kernel
    col_pad = np.pad(col_all, (0, Ep - E))

    row = jnp.asarray(row_all)
    col = jnp.asarray(col_all)
    batch = jnp.asarray(np.repeat(np.arange(B, dtype=np.int32), N))
    coords = jnp.asarray(np.tile(pos_np, (B, 1)))                     # (BN, 2)

    # --- image features + coords concat (plain f32 XLA: tiny dot+ReLU; keeping the
    # affinity path in f32 keeps edge keep/drop decisions and coordinates exact) ---
    feats = jnp.maximum(img.reshape(BN, 3) @ params["rdn_w"] + params["rdn_b"], 0.0)
    x = jnp.concatenate([coords, feats], axis=1)                      # (BN, 32) f32

    # ==================== level 1: P1AffinityAggregation =====================
    # Major-axis (row) gathers + one transpose feed the lane-dense L2 kernel:
    # features in sublanes, edges in lanes -> (1, Ep) dense output.
    a_t = x[jnp.asarray(row_pad)].T                                   # (32, Ep)
    b_t = x[jnp.asarray(col_pad)].T
    aff = edge_norm_pallas(a_t, b_t, te=te)[:E]                       # ||x[row] - x[col]||

    ones = jnp.ones_like(aff)
    cnt = jnp.maximum(jax.ops.segment_sum(ones, row, num_segments=BN), 1.0)
    mean_aff = jax.ops.segment_sum(aff, row, num_segments=BN) / cnt
    # 1/scatter_mean: inf for an all-identical neighbourhood (matches torch 1/0=inf);
    # it only feeds the comparison below, so no NaNs propagate.
    inv_mean = 1.0 / mean_aff
    thresh = jnp.minimum(inv_mean[row], inv_mean[col])
    keep = aff > thresh                              # reference: `affinities > threshold`

    # filtered edges + add_self_loops, as a fixed-size edge list with a validity mask.
    f_row = jnp.concatenate([row, jnp.arange(BN, dtype=row.dtype)])
    f_col = jnp.concatenate([col, jnp.arange(BN, dtype=col.dtype)])
    f_valid = jnp.concatenate([keep, jnp.ones((BN,), bool)])

    # TODO(synk): PropModel/LabelPropagation + .unique() is ill-formed in the source;
    # approximated by 10 iterations of min-label (connected-component) propagation.
    def lp_body(_, labels):
        cand = jnp.where(f_valid, labels[f_col], BN)
        prop = jax.ops.segment_min(cand, f_row, num_segments=BN)
        return jnp.minimum(labels, prop)
    cluster = jax.lax.fori_loop(0, 10, lp_body, jnp.arange(BN, dtype=jnp.int32))

    # max_pool_x with static upper bound of BN clusters (cluster id = component root node).
    counts = jax.ops.segment_sum(jnp.ones((BN,), jnp.float32), cluster, num_segments=BN)
    cx = jax.ops.segment_max(x, cluster, num_segments=BN)
    cx = jnp.where(counts[:, None] > 0, cx, 0.0)                      # padded rows -> 0

    # coalesce(cluster[filtered_edges]): dedup via sort + first-occurrence mask.
    crow = cluster[f_row]
    ccol = cluster[f_col]
    ekey = jnp.where(f_valid, crow * BN + ccol, BN * BN)
    order = jnp.argsort(ekey)
    sk = ekey[order]
    first = jnp.concatenate([jnp.array([True]), sk[1:] != sk[:-1]])
    rep = jnp.zeros((ekey.shape[0],), bool).at[order].set(first)
    e_mask = f_valid & rep

    # GraphConv sum aggregation (scatter-add glue).  Everything downstream is per-row
    # and runs as ONE fused Pallas kernel covering 9 matmuls:
    #   [GraphConv (x) transf-in] -> transf hidden -> [transf-out (x) to_rgb-in]
    #   -> to_rgb hidden -> to_rgb out (padded to 128 lanes, sliced to 3 below).
    xj = cx[ccol] * e_mask[:, None].astype(jnp.float32)
    agg = jax.ops.segment_sum(xj, crow, num_segments=BN)

    # NOTE: in the source, zip(affinity_aggregations, graph_convs, node_transforms)
    # truncates to ONE iteration (node_transforms has a single element), so the
    # P2AffinityAggregation / VAE branch is never executed in forward.
    # bf16 weights/activations in this post-pooling MLP are an accepted deviation from
    # the f32 reference (coords <= 256 are exactly representable in bf16 at this size).
    node_in = jnp.concatenate([cx, agg], axis=1).astype(jnp.bfloat16)  # (BN, 64) bf16
    tm = _choose_row_tile(BN)
    rgb = fused_mlp_pallas(node_in, params["node_layers"], OUT_PAD, tm=tm)[:, :3]

    # un-pool through the (single) cluster level, then to_dense_batch (equal-sized graphs).
    img_out = rgb[cluster]                                            # (BN, 3)
    dense = img_out.reshape(B, N, 3)
    clusters = [(cluster, batch)]
    all_losses = [{}]                                                 # P1 returns no losses
    return dense, clusters, all_losses


if __name__ == "__main__":
    B, H, W = 2, 16, 16
    img = jax.random.uniform(jax.random.PRNGKey(0), (B, H, W, 3), dtype=jnp.float32)
    params = init_params(jax.random.PRNGKey(42))
    # params closed over (not traced) so the static relu flags / weight padding stay Python-level.
    fwd = jax.jit(functools.partial(psgnet_lite_forward, params=params))
    dense, clusters, losses = fwd(img)
    jax.block_until_ready(dense)
    assert dense.shape == (B, H * W, 3)
    assert clusters[0][0].shape == (B * H * W,)
    print("KERNEL_OK")
</pallas_src>

<mosaic_0001>
module attributes {stable_mosaic.version = 11 : i64} {
  func.func private @main(%arg0: i32) attributes {dimension_semantics = [#tpu.dimension_semantics<core_parallel>], iteration_bounds = array<i64: 2>, tpu.core_type = #tpu.core_type<sc_scalar_subcore>, window_params = []} {
    return
  }
}

module attributes {stable_mosaic.version = 11 : i64} {
  func.func private @main(%arg0: i32) attributes {dimension_semantics = [#tpu.dimension_semantics<core_parallel>], iteration_bounds = array<i64: 2>, tpu.core_type = #tpu.core_type<sc_scalar_subcore>, window_params = []} {
    return
  }
}

module attributes {stable_mosaic.version = 11 : i64} {
  func.func @_edge_norm_kernel(%arg0: i32, %arg1: memref<32x4608xf32, #tpu.memory_space<vmem>>, %arg2: memref<32x4608xf32, #tpu.memory_space<vmem>>, %arg3: memref<1x4608xf32, #tpu.memory_space<vmem>>) attributes {dimension_semantics = [#tpu.dimension_semantics<parallel>], iteration_bounds = array<i64: 1>, scalar_prefetch = 0 : i64, scratch_operands = 0 : i64, tpu.core_type = #tpu.core_type<tc>, window_params = [{transform_indices = @transform_0, window_bounds = array<i64: 32, 4608>}, {transform_indices = @transform_1, window_bounds = array<i64: 32, 4608>}, {transform_indices = @transform_2, window_bounds = array<i64: 1, 4608>}]} {
    %c0 = arith.constant 0 : index
    %c0_0 = arith.constant 0 : index
    %0 = vector.load %arg1[%c0, %c0_0] : memref<32x4608xf32, #tpu.memory_space<vmem>>, vector<32x4608xf32>
    %c0_1 = arith.constant 0 : index
    %c0_2 = arith.constant 0 : index
    %1 = vector.load %arg2[%c0_1, %c0_2] : memref<32x4608xf32, #tpu.memory_space<vmem>>, vector<32x4608xf32>
    %2 = arith.subf %0, %1 : vector<32x4608xf32>
    %3 = arith.mulf %2, %2 : vector<32x4608xf32>
    %cst = arith.constant dense<0.000000e+00> : vector<4608xf32>
    %4 = vector.multi_reduction <add>, %3, %cst [0] : vector<32x4608xf32> to vector<4608xf32>
    %5 = vector.shape_cast %4 : vector<4608xf32> to vector<1x4608xf32>
    %6 = math.sqrt %5 : vector<1x4608xf32>
    %c0_3 = arith.constant 0 : index
    %c0_4 = arith.constant 0 : index
    %7 = vector.load %arg3[%c0_3, %c0_4] : memref<1x4608xf32, #tpu.memory_space<vmem>>, vector<1x4608xf32>
    tpu.vector_store %arg3[%c0_3, %c0_4], %6 {strides = array<i32>} : memref<1x4608xf32, #tpu.memory_space<vmem>>, vector<1x4608xf32>,
    return
  }
  func.func @transform_0(%arg0: i32) -> (i32, i32) {
    %c0_i32 = arith.constant 0 : i32
    %c0_i32_0 = arith.constant 0 : i32
    return %c0_i32, %arg0 : i32, i32
  }
  func.func @transform_1(%arg0: i32) -> (i32, i32) {
    %c0_i32 = arith.constant 0 : i32
    %c0_i32_0 = arith.constant 0 : i32
    return %c0_i32, %arg0 : i32, i32
  }
  func.func @transform_2(%arg0: i32) -> (i32, i32) {
    %c0_i32 = arith.constant 0 : i32
    %c0_i32_0 = arith.constant 0 : i32
    return %c0_i32, %arg0 : i32, i32
  }
}

module attributes {stable_mosaic.version = 11 : i64} {
  func.func @_fused_mlp_kernel(%arg0: i32, %arg1: memref<256x64xbf16, #tpu.memory_space<vmem>>, %arg2: memref<64x256xbf16, #tpu.memory_space<vmem>>, %arg3: memref<1x256xf32, #tpu.memory_space<vmem>>, %arg4: memref<256x256xbf16, #tpu.memory_space<vmem>>, %arg5: memref<1x256xf32, #tpu.memory_space<vmem>>, %arg6: memref<256x256xbf16, #tpu.memory_space<vmem>>, %arg7: memref<1x256xf32, #tpu.memory_space<vmem>>, %arg8: memref<256x256xbf16, #tpu.memory_space<vmem>>, %arg9: memref<1x256xf32, #tpu.memory_space<vmem>>, %arg10: memref<256x256xbf16, #tpu.memory_space<vmem>>, %arg11: memref<1x256xf32, #tpu.memory_space<vmem>>, %arg12: memref<256x256xbf16, #tpu.memory_space<vmem>>, %arg13: memref<1x256xf32, #tpu.memory_space<vmem>>, %arg14: memref<256x256xbf16, #tpu.memory_space<vmem>>, %arg15: memref<1x256xf32, #tpu.memory_space<vmem>>, %arg16: memref<256x256xbf16, #tpu.memory_space<vmem>>, %arg17: memref<1x256xf32, #tpu.memory_space<vmem>>, %arg18: memref<256x128xbf16, #tpu.memory_space<vmem>>, %arg19: memref<1x128xf32, #tpu.memory_space<vmem>>, %arg20: memref<256x128xf32, #tpu.memory_space<vmem>>) attributes {dimension_semantics = [#tpu.dimension_semantics<parallel>], iteration_bounds = array<i64: 2>, scalar_prefetch = 0 : i64, scratch_operands = 0 : i64, tpu.core_type = #tpu.core_type<tc>, window_params = [{transform_indices = @transform_0, window_bounds = array<i64: 256, 64>}, {pipeline_mode = #tpu.pipeline_mode<synchronous>, transform_indices = @transform_1, window_bounds = array<i64: 64, 256>}, {pipeline_mode = #tpu.pipeline_mode<synchronous>, transform_indices = @transform_2, window_bounds = array<i64: 1, 256>}, {pipeline_mode = #tpu.pipeline_mode<synchronous>, transform_indices = @transform_3, window_bounds = array<i64: 256, 256>}, {pipeline_mode = #tpu.pipeline_mode<synchronous>, transform_indices = @transform_4, window_bounds = array<i64: 1, 256>}, {pipeline_mode = #tpu.pipeline_mode<synchronous>, transform_indices = @transform_5, window_bounds = array<i64: 256, 256>}, {pipeline_mode = #tpu.pipeline_mode<synchronous>, transform_indices = @transform_6, window_bounds = array<i64: 1, 256>}, {pipeline_mode = #tpu.pipeline_mode<synchronous>, transform_indices = @transform_7, window_bounds = array<i64: 256, 256>}, {pipeline_mode = #tpu.pipeline_mode<synchronous>, transform_indices = @transform_8, window_bounds = array<i64: 1, 256>}, {pipeline_mode = #tpu.pipeline_mode<synchronous>, transform_indices = @transform_9, window_bounds = array<i64: 256, 256>}, {pipeline_mode = #tpu.pipeline_mode<synchronous>, transform_indices = @transform_10, window_bounds = array<i64: 1, 256>}, {pipeline_mode = #tpu.pipeline_mode<synchronous>, transform_indices = @transform_11, window_bounds = array<i64: 256, 256>}, {pipeline_mode = #tpu.pipeline_mode<synchronous>, transform_indices = @transform_12, window_bounds = array<i64: 1, 256>}, {pipeline_mode = #tpu.pipeline_mode<synchronous>, transform_indices = @transform_13, window_bounds = array<i64: 256, 256>}, {pipeline_mode = #tpu.pipeline_mode<synchronous>, transform_indices = @transform_14, window_bounds = array<i64: 1, 256>}, {pipeline_mode = #tpu.pipeline_mode<synchronous>, transform_indices = @transform_15, window_bounds = array<i64: 256, 256>}, {pipeline_mode = #tpu.pipeline_mode<synchronous>, transform_indices = @transform_16, window_bounds = array<i64: 1, 256>}, {pipeline_mode = #tpu.pipeline_mode<synchronous>, transform_indices = @transform_17, window_bounds = array<i64: 256, 128>}, {pipeline_mode = #tpu.pipeline_mode<synchronous>, transform_indices = @transform_18, window_bounds = array<i64: 1, 128>}, {transform_indices = @transform_19, window_bounds = array<i64: 256, 128>}]} {
    %c0 = arith.constant 0 : index
    %c0_0 = arith.constant 0 : index
    %0 = vector.load %arg1[%c0, %c0_0] : memref<256x64xbf16, #tpu.memory_space<vmem>>, vector<256x64xbf16>
    %c0_1 = arith.constant 0 : index
    %c0_2 = arith.constant 0 : index
    %1 = vector.load %arg2[%c0_1, %c0_2] : memref<64x256xbf16, #tpu.memory_space<vmem>>, vector<64x256xbf16>
    %c0_3 = arith.constant 0 : index
    %c0_4 = arith.constant 0 : index
    %2 = vector.load %arg3[%c0_3, %c0_4] : memref<1x256xf32, #tpu.memory_space<vmem>>, vector<1x256xf32>
    %cst = arith.constant dense<0.000000e+00> : vector<256x256xf32>
    %3 = tpu.matmul %0, %1, %cst {dimension_numbers = #tpu.dot_dimension_numbers<[1], [0], [0], [1], [0, 0, 1, 1], [], []>} : vector<256x64xbf16>, vector<64x256xbf16>, vector<256x256xf32> -> vector<256x256xf32>
    %4 = vector.broadcast %2 : vector<1x256xf32> to vector<256x256xf32>
    %5 = arith.addf %3, %4 : vector<256x256xf32>
    %cst_5 = arith.constant 0.000000e+00 : f32
    %6 = vector.broadcast %cst_5 : f32 to vector<256x256xf32>
    %7 = arith.maximumf %5, %6 : vector<256x256xf32>
    %8 = arith.truncf %7 : vector<256x256xf32> to vector<256x256xbf16>
    %c0_6 = arith.constant 0 : index
    %c0_7 = arith.constant 0 : index
    %9 = vector.load %arg4[%c0_6, %c0_7] : memref<256x256xbf16, #tpu.memory_space<vmem>>, vector<256x256xbf16>
    %c0_8 = arith.constant 0 : index
    %c0_9 = arith.constant 0 : index
    %10 = vector.load %arg5[%c0_8, %c0_9] : memref<1x256xf32, #tpu.memory_space<vmem>>, vector<1x256xf32>
    %cst_10 = arith.constant dense<0.000000e+00> : vector<256x256xf32>
    %11 = tpu.matmul %8, %9, %cst_10 {dimension_numbers = #tpu.dot_dimension_numbers<[1], [0], [0], [1], [0, 0, 1, 1], [], []>} : vector<256x256xbf16>, vector<256x256xbf16>, vector<256x256xf32> -> vector<256x256xf32>
    %12 = vector.broadcast %10 : vector<1x256xf32> to vector<256x256xf32>
    %13 = arith.addf %11, %12 : vector<256x256xf32>
    %cst_11 = arith.constant 0.000000e+00 : f32
    %14 = vector.broadcast %cst_11 : f32 to vector<256x256xf32>
    %15 = arith.maximumf %13, %14 : vector<256x256xf32>
    %16 = arith.truncf %15 : vector<256x256xf32> to vector<256x256xbf16>
    %c0_12 = arith.constant 0 : index
    %c0_13 = arith.constant 0 : index
    %17 = vector.load %arg6[%c0_12, %c0_13] : memref<256x256xbf16, #tpu.memory_space<vmem>>, vector<256x256xbf16>
    %c0_14 = arith.constant 0 : index
    %c0_15 = arith.constant 0 : index
    %18 = vector.load %arg7[%c0_14, %c0_15] : memref<1x256xf32, #tpu.memory_space<vmem>>, vector<1x256xf32>
    %cst_16 = arith.constant dense<0.000000e+00> : vector<256x256xf32>
    %19 = tpu.matmul %16, %17, %cst_16 {dimension_numbers = #tpu.dot_dimension_numbers<[1], [0], [0], [1], [0, 0, 1, 1], [], []>} : vector<256x256xbf16>, vector<256x256xbf16>, vector<256x256xf32> -> vector<256x256xf32>
    %20 = vector.broadcast %18 : vector<1x256xf32> to vector<256x256xf32>
    %21 = arith.addf %19, %20 : vector<256x256xf32>
    %cst_17 = arith.constant 0.000000e+00 : f32
    %22 = vector.broadcast %cst_17 : f32 to vector<256x256xf32>
    %23 = arith.maximumf %21, %22 : vector<256x256xf32>
    %24 = arith.truncf %23 : vector<256x256xf32> to vector<256x256xbf16>
    %c0_18 = arith.constant 0 : index
    %c0_19 = arith.constant 0 : index
    %25 = vector.load %arg8[%c0_18, %c0_19] : memref<256x256xbf16, #tpu.memory_space<vmem>>, vector<256x256xbf16>
    %c0_20 = arith.constant 0 : index
    %c0_21 = arith.constant 0 : index
    %26 = vector.load %arg9[%c0_20, %c0_21] : memref<1x256xf32, #tpu.memory_space<vmem>>, vector<1x256xf32>
    %cst_22 = arith.constant dense<0.000000e+00> : vector<256x256xf32>
    %27 = tpu.matmul %24, %25, %cst_22 {dimension_numbers = #tpu.dot_dimension_numbers<[1], [0], [0], [1], [0, 0, 1, 1], [], []>} : vector<256x256xbf16>, vector<256x256xbf16>, vector<256x256xf32> -> vector<256x256xf32>
    %28 = vector.broadcast %26 : vector<1x256xf32> to vector<256x256xf32>
    %29 = arith.addf %27, %28 : vector<256x256xf32>
    %cst_23 = arith.constant 0.000000e+00 : f32
    %30 = vector.broadcast %cst_23 : f32 to vector<256x256xf32>
    %31 = arith.maximumf %29, %30 : vector<256x256xf32>
    %32 = arith.truncf %31 : vector<256x256xf32> to vector<256x256xbf16>
    %c0_24 = arith.constant 0 : index
    %c0_25 = arith.constant 0 : index
    %33 = vector.load %arg10[%c0_24, %c0_25] : memref<256x256xbf16, #tpu.memory_space<vmem>>, vector<256x256xbf16>
    %c0_26 = arith.constant 0 : index
    %c0_27 = arith.constant 0 : index
    %34 = vector.load %arg11[%c0_26, %c0_27] : memref<1x256xf32, #tpu.memory_space<vmem>>, vector<1x256xf32>
    %cst_28 = arith.constant dense<0.000000e+00> : vector<256x256xf32>
    %35 = tpu.matmul %32, %33, %cst_28 {dimension_numbers = #tpu.dot_dimension_numbers<[1], [0], [0], [1], [0, 0, 1, 1], [], []>} : vector<256x256xbf16>, vector<256x256xbf16>, vector<256x256xf32> -> vector<256x256xf32>
    %36 = vector.broadcast %34 : vector<1x256xf32> to vector<256x256xf32>
    %37 = arith.addf %35, %36 : vector<256x256xf32>
    %cst_29 = arith.constant 0.000000e+00 : f32
    %38 = vector.broadcast %cst_29 : f32 to vector<256x256xf32>
    %39 = arith.maximumf %37, %38 : vector<256x256xf32>
    %40 = arith.truncf %39 : vector<256x256xf32> to vector<256x256xbf16>
    %c0_30 = arith.constant 0 : index
    %c0_31 = arith.constant 0 : index
    %41 = vector.load %arg12[%c0_30, %c0_31] : memref<256x256xbf16, #tpu.memory_space<vmem>>, vector<256x256xbf16>
    %c0_32 = arith.constant 0 : index
    %c0_33 = arith.constant 0 : index
    %42 = vector.load %arg13[%c0_32, %c0_33] : memref<1x256xf32, #tpu.memory_space<vmem>>, vector<1x256xf32>
    %cst_34 = arith.constant dense<0.000000e+00> : vector<256x256xf32>
    %43 = tpu.matmul %40, %41, %cst_34 {dimension_numbers = #tpu.dot_dimension_numbers<[1], [0], [0], [1], [0, 0, 1, 1], [], []>} : vector<256x256xbf16>, vector<256x256xbf16>, vector<256x256xf32> -> vector<256x256xf32>
    %44 = vector.broadcast %42 : vector<1x256xf32> to vector<256x256xf32>
    %45 = arith.addf %43, %44 : vector<256x256xf32>
    %cst_35 = arith.constant 0.000000e+00 : f32
    %46 = vector.broadcast %cst_35 : f32 to vector<256x256xf32>
    %47 = arith.maximumf %45, %46 : vector<256x256xf32>
    %48 = arith.truncf %47 : vector<256x256xf32> to vector<256x256xbf16>
    %c0_36 = arith.constant 0 : index
    %c0_37 = arith.constant 0 : index
    %49 = vector.load %arg14[%c0_36, %c0_37] : memref<256x256xbf16, #tpu.memory_space<vmem>>, vector<256x256xbf16>
    %c0_38 = arith.constant 0 : index
    %c0_39 = arith.constant 0 : index
    %50 = vector.load %arg15[%c0_38, %c0_39] : memref<1x256xf32, #tpu.memory_space<vmem>>, vector<1x256xf32>
    %cst_40 = arith.constant dense<0.000000e+00> : vector<256x256xf32>
    %51 = tpu.matmul %48, %49, %cst_40 {dimension_numbers = #tpu.dot_dimension_numbers<[1], [0], [0], [1], [0, 0, 1, 1], [], []>} : vector<256x256xbf16>, vector<256x256xbf16>, vector<256x256xf32> -> vector<256x256xf32>
    %52 = vector.broadcast %50 : vector<1x256xf32> to vector<256x256xf32>
    %53 = arith.addf %51, %52 : vector<256x256xf32>
    %cst_41 = arith.constant 0.000000e+00 : f32
    %54 = vector.broadcast %cst_41 : f32 to vector<256x256xf32>
    %55 = arith.maximumf %53, %54 : vector<256x256xf32>
    %56 = arith.truncf %55 : vector<256x256xf32> to vector<256x256xbf16>
    %c0_42 = arith.constant 0 : index
    %c0_43 = arith.constant 0 : index
    %57 = vector.load %arg16[%c0_42, %c0_43] : memref<256x256xbf16, #tpu.memory_space<vmem>>, vector<256x256xbf16>
    %c0_44 = arith.constant 0 : index
    %c0_45 = arith.constant 0 : index
    %58 = vector.load %arg17[%c0_44, %c0_45] : memref<1x256xf32, #tpu.memory_space<vmem>>, vector<1x256xf32>
    %cst_46 = arith.constant dense<0.000000e+00> : vector<256x256xf32>
    %59 = tpu.matmul %56, %57, %cst_46 {dimension_numbers = #tpu.dot_dimension_numbers<[1], [0], [0], [1], [0, 0, 1, 1], [], []>} : vector<256x256xbf16>, vector<256x256xbf16>, vector<256x256xf32> -> vector<256x256xf32>
    %60 = vector.broadcast %58 : vector<1x256xf32> to vector<256x256xf32>
    %61 = arith.addf %59, %60 : vector<256x256xf32>
    %cst_47 = arith.constant 0.000000e+00 : f32
    %62 = vector.broadcast %cst_47 : f32 to vector<256x256xf32>
    %63 = arith.maximumf %61, %62 : vector<256x256xf32>
    %64 = arith.truncf %63 : vector<256x256xf32> to vector<256x256xbf16>
    %c0_48 = arith.constant 0 : index
    %c0_49 = arith.constant 0 : index
    %65 = vector.load %arg18[%c0_48, %c0_49] : memref<256x128xbf16, #tpu.memory_space<vmem>>, vector<256x128xbf16>
    %c0_50 = arith.constant 0 : index
    %c0_51 = arith.constant 0 : index
    %66 = vector.load %arg19[%c0_50, %c0_51] : memref<1x128xf32, #tpu.memory_space<vmem>>, vector<1x128xf32>
    %cst_52 = arith.constant dense<0.000000e+00> : vector<256x128xf32>
    %67 = tpu.matmul %64, %65, %cst_52 {dimension_numbers = #tpu.dot_dimension_numbers<[1], [0], [0], [1], [0, 0, 1, 1], [], []>} : vector<256x256xbf16>, vector<256x128xbf16>, vector<256x128xf32> -> vector<256x128xf32>
    %68 = vector.broadcast %66 : vector<1x128xf32> to vector<256x128xf32>
    %69 = arith.addf %67, %68 : vector<256x128xf32>
    %c0_53 = arith.constant 0 : index
    %c0_54 = arith.constant 0 : index
    %70 = vector.load %arg20[%c0_53, %c0_54] : memref<256x128xf32, #tpu.memory_space<vmem>>, vector<256x128xf32>
    tpu.vector_store %arg20[%c0_53, %c0_54], %69 {strides = array<i32>} : memref<256x128xf32, #tpu.memory_space<vmem>>, vector<256x128xf32>,
    return
  }
  func.func @transform_0(%arg0: i32) -> (i32, i32) {
    %c0_i32 = arith.constant 0 : i32
    %c0_i32_0 = arith.constant 0 : i32
    return %arg0, %c0_i32 : i32, i32
  }
  func.func @transform_1(%arg0: i32) -> (i32, i32) {
    %c0_i32 = arith.constant 0 : i32
    %c0_i32_0 = arith.constant 0 : i32
    %c0_i32_1 = arith.constant 0 : i32
    return %c0_i32, %c0_i32_0 : i32, i32
  }
  func.func @transform_2(%arg0: i32) -> (i32, i32) {
    %c0_i32 = arith.constant 0 : i32
    %c0_i32_0 = arith.constant 0 : i32
    %c0_i32_1 = arith.constant 0 : i32
    return %c0_i32, %c0_i32_0 : i32, i32
  }
  func.func @transform_3(%arg0: i32) -> (i32, i32) {
    %c0_i32 = arith.constant 0 : i32
    %c0_i32_0 = arith.constant 0 : i32
    %c0_i32_1 = arith.constant 0 : i32
    return %c0_i32, %c0_i32_0 : i32, i32
  }
  func.func @transform_4(%arg0: i32) -> (i32, i32) {
    %c0_i32 = arith.constant 0 : i32
    %c0_i32_0 = arith.constant 0 : i32
    %c0_i32_1 = arith.constant 0 : i32
    return %c0_i32, %c0_i32_0 : i32, i32
  }
  func.func @transform_5(%arg0: i32) -> (i32, i32) {
    %c0_i32 = arith.constant 0 : i32
    %c0_i32_0 = arith.constant 0 : i32
    %c0_i32_1 = arith.constant 0 : i32
    return %c0_i32, %c0_i32_0 : i32, i32
  }
  func.func @transform_6(%arg0: i32) -> (i32, i32) {
    %c0_i32 = arith.constant 0 : i32
    %c0_i32_0 = arith.constant 0 : i32
    %c0_i32_1 = arith.constant 0 : i32
    return %c0_i32, %c0_i32_0 : i32, i32
  }
  func.func @transform_7(%arg0: i32) -> (i32, i32) {
    %c0_i32 = arith.constant 0 : i32
    %c0_i32_0 = arith.constant 0 : i32
    %c0_i32_1 = arith.constant 0 : i32
    return %c0_i32, %c0_i32_0 : i32, i32
  }
  func.func @transform_8(%arg0: i32) -> (i32, i32) {
    %c0_i32 = arith.constant 0 : i32
    %c0_i32_0 = arith.constant 0 : i32
    %c0_i32_1 = arith.constant 0 : i32
    return %c0_i32, %c0_i32_0 : i32, i32
  }
  func.func @transform_9(%arg0: i32) -> (i32, i32) {
    %c0_i32 = arith.constant 0 : i32
    %c0_i32_0 = arith.constant 0 : i32
    %c0_i32_1 = arith.constant 0 : i32
    return %c0_i32, %c0_i32_0 : i32, i32
  }
  func.func @transform_10(%arg0: i32) -> (i32, i32) {
    %c0_i32 = arith.constant 0 : i32
    %c0_i32_0 = arith.constant 0 : i32
    %c0_i32_1 = arith.constant 0 : i32
    return %c0_i32, %c0_i32_0 : i32, i32
  }
  func.func @transform_11(%arg0: i32) -> (i32, i32) {
    %c0_i32 = arith.constant 0 : i32
    %c0_i32_0 = arith.constant 0 : i32
    %c0_i32_1 = arith.constant 0 : i32
    return %c0_i32, %c0_i32_0 : i32, i32
  }
  func.func @transform_12(%arg0: i32) -> (i32, i32) {
    %c0_i32 = arith.constant 0 : i32
    %c0_i32_0 = arith.constant 0 : i32
    %c0_i32_1 = arith.constant 0 : i32
    return %c0_i32, %c0_i32_0 : i32, i32
  }
  func.func @transform_13(%arg0: i32) -> (i32, i32) {
    %c0_i32 = arith.constant 0 : i32
    %c0_i32_0 = arith.constant 0 : i32
    %c0_i32_1 = arith.constant 0 : i32
    return %c0_i32, %c0_i32_0 : i32, i32
  }
  func.func @transform_14(%arg0: i32) -> (i32, i32) {
    %c0_i32 = arith.constant 0 : i32
    %c0_i32_0 = arith.constant 0 : i32
    %c0_i32_1 = arith.constant 0 : i32
    return %c0_i32, %c0_i32_0 : i32, i32
  }
  func.func @transform_15(%arg0: i32) -> (i32, i32) {
    %c0_i32 = arith.constant 0 : i32
    %c0_i32_0 = arith.constant 0 : i32
    %c0_i32_1 = arith.constant 0 : i32
    return %c0_i32, %c0_i32_0 : i32, i32
  }
  func.func @transform_16(%arg0: i32) -> (i32, i32) {
    %c0_i32 = arith.constant 0 : i32
    %c0_i32_0 = arith.constant 0 : i32
    %c0_i32_1 = arith.constant 0 : i32
    return %c0_i32, %c0_i32_0 : i32, i32
  }
  func.func @transform_17(%arg0: i32) -> (i32, i32) {
    %c0_i32 = arith.constant 0 : i32
    %c0_i32_0 = arith.constant 0 : i32
    %c0_i32_1 = arith.constant 0 : i32
    return %c0_i32, %c0_i32_0 : i32, i32
  }
  func.func @transform_18(%arg0: i32) -> (i32, i32) {
    %c0_i32 = arith.constant 0 : i32
    %c0_i32_0 = arith.constant 0 : i32
    %c0_i32_1 = arith.constant 0 : i32
    return %c0_i32, %c0_i32_0 : i32, i32
  }
  func.func @transform_19(%arg0: i32) -> (i32, i32) {
    %c0_i32 = arith.constant 0 : i32
    %c0_i32_0 = arith.constant 0 : i32
    return %arg0, %c0_i32 : i32, i32
  }
}

</mosaic_0001>

<bundles_post_ra>
// kernel: div.3
= control target key start
LH: loop header
LB: loop body
LE: loop exit
PB: predicated region body
PF: predicated region fallthrough
CT: control target
= control target key end

     0   :  { %s37_s0 = inlined_call_operand.vmem [shape: f32[512], index: 0, kind: input, shape index: {}]   ;;  %s38_s1 = inlined_call_operand.vmem [shape: f32[512], index: 1, kind: input, shape index: {}]   ;;  %s39_s2 = inlined_call_operand.vmem [shape: f32[512], index: 2, kind: output, shape index: {}]  }
   0x1   :  { %v4_v0 = vld [vmem:[%s38_s1] sm:$0xf] }
   0x2   :  { %11 = vrcp.f32 %v4_v0  ;;  %v3_v1 = vld [vmem:[%s37_s0] sm:$0xf] }
   0xc   :  { %v12_v2 = vpop.eup %11 }
   0xd   :  { %v8_v3 = vmul.f32 %v12_v2, %v3_v1 }
   0xf   :  { %10 = vst [vmem:[%s39_s2] sm:$0xf] %v8_v3 }

// kernel: psgnet_lite_forward.2
= control target key start
LH: loop header
LB: loop body
LE: loop exit
PB: predicated region body
PF: predicated region fallthrough
CT: control target
= control target key end

     0   :  { %s3958_s0 = inlined_call_operand.vmem [shape: f32[32,4608], index: 0, kind: input, shape index: {}]   ;;  %s3959_s1 = inlined_call_operand.vmem [shape: f32[32,4608], index: 1, kind: input, shape index: {}]   ;;  %s3960_s2 = inlined_call_operand.vmem [shape: f32[1,4608], index: 2, kind: output, shape index: {}]  }
   0x1   :  { %v11_v0 = vld [vmem:[%s3958_s0] sm:$0xff]  ;;  %v12_v1 = vld [vmem:[%s3958_s0 + $0x8] sm:$0xff]  ;;  %v13_v2 = vld [vmem:[%s3958_s0 + $0x10] sm:$0xff] }
   0x2   :  { %v155_v3 = vld [vmem:[%s3959_s1] sm:$0xff]  ;;  %v14_v4 = vld [vmem:[%s3958_s0 + $0x18] sm:$0xff]  ;;  %v16_v6 = vld [vmem:[%s3958_s0 + $0x28] sm:$0xff] }
   0x3   :  { %v15_v5 = vld [vmem:[%s3958_s0 + $0x20] sm:$0xff]  ;;  %v156_v7 = vld [vmem:[%s3959_s1 + $0x8] sm:$0xff]  ;;  %v17_v8 = vld [vmem:[%s3958_s0 + $0x30] sm:$0xff]  ;;  %v299_v18 = vsub.f32 %v11_v0, %v155_v3 }
   0x4   :  { %v18_v9 = vld [vmem:[%s3958_s0 + $0x38] sm:$0xff]  ;;  %v19_v10 = vld [vmem:[%s3958_s0 + $0x40] sm:$0xff]  ;;  %v157_v11 = vld [vmem:[%s3959_s1 + $0x10] sm:$0xff]  ;;  %v300_v25 = vsub.f32 %v12_v1, %v156_v7 }
   0x5   :  { %v20_v12 = vld [vmem:[%s3958_s0 + $0x48] sm:$0xff]  ;;  %v21_v13 = vld [vmem:[%s3958_s0 + $0x50] sm:$0xff]  ;;  %v22_v14 = vld [vmem:[%s3958_s0 + $0x58] sm:$0xff]  ;;  %v301_v32 = vsub.f32 %v13_v2, %v157_v11  ;;  %v1658_v51 = vmul.f32 %v299_v18, %v299_v18 }
   0x6   :  { %v158_v15 = vld [vmem:[%s3959_s1 + $0x18] sm:$0xff]  ;;  %v159_v16 = vld [vmem:[%s3959_s1 + $0x20] sm:$0xff]  ;;  %v160_v17 = vld [vmem:[%s3959_s1 + $0x28] sm:$0xff]  ;;  %v1684_v61 = vmul.f32 %v300_v25, %v300_v25 }
   0x7   :  { %v23_v19 = vld [vmem:[%s3958_s0 + $0x60] sm:$0xff]  ;;  %v24_v20 = vld [vmem:[%s3958_s0 + $0x68] sm:$0xff]  ;;  %v25_v21 = vld [vmem:[%s3958_s0 + $0x70] sm:$0xff]  ;;  %v302_v39 = vsub.f32 %v14_v4, %v158_v15  ;;  %v303_v40 = vsub.f32 %v15_v5, %v159_v16  ;;  %v304_v41 = vsub.f32 %v16_v6, %v160_v17  ;;  %3961 = vst [vmem:[#allocation2_spill] sm:$0xff] %v1658_v51  ;;  %v1710_v7 = vmul.f32 %v301_v32, %v301_v32 }
   0x8   :  { %v161_v22 = vld [vmem:[%s3959_s1 + $0x30] sm:$0xff]  ;;  %v162_v23 = vld [vmem:[%s3959_s1 + $0x38] sm:$0xff]  ;;  %v163_v24 = vld [vmem:[%s3959_s1 + $0x40] sm:$0xff]  ;;  %3962 = vst [vmem:[#allocation3_spill] sm:$0xff] %v1684_v61 }
   0x9   :  { %v26_v26 = vld [vmem:[%s3958_s0 + $0x78] sm:$0xff]  ;;  %v27_v27 = vld [vmem:[%s3958_s0 + $0x80] sm:$0xff]  ;;  %v28_v28 = vld [vmem:[%s3958_s0 + $0x88] sm:$0xff]  ;;  %v1652_v48 = vsub.f32 %v17_v8, %v161_v22  ;;  %v1654_v49 = vsub.f32 %v18_v9, %v162_v23  ;;  %v1656_v50 = vsub.f32 %v19_v10, %v163_v24  ;;  %3963 = vst [vmem:[#allocation4_spill] sm:$0xff] %v1710_v7  ;;  %v1736_v17 = vmul.f32 %v302_v39, %v302_v39 }
   0xa   :  { %v164_v29 = vld [vmem:[%s3959_s1 + $0x48] sm:$0xff]  ;;  %v165_v30 = vld [vmem:[%s3959_s1 + $0x50] sm:$0xff]  ;;  %v166_v31 = vld [vmem:[%s3959_s1 + $0x58] sm:$0xff] }
   0xb   :  { %v29_v33 = vld [vmem:[%s3958_s0 + $0x90] sm:$0xff]  ;;  %v30_v34 = vld [vmem:[%s3958_s0 + $0x98] sm:$0xff]  ;;  %v31_v35 = vld [vmem:[%s3958_s0 + $0xa0] sm:$0xff]  ;;  %v1678_v58 = vsub.f32 %v20_v12, %v164_v29  ;;  %v1680_v59 = vsub.f32 %v21_v13, %v165_v30  ;;  %v1682_v60 = vsub.f32 %v22_v14, %v166_v31  ;;  %3964 = vst [vmem:[#allocation5_spill] sm:$0xff] %v1736_v17 }
   0xc   :  { %v167_v36 = vld [vmem:[%s3959_s1 + $0x60] sm:$0xff]  ;;  %v168_v37 = vld [vmem:[%s3959_s1 + $0x68] sm:$0xff]  ;;  %v169_v38 = vld [vmem:[%s3959_s1 + $0x70] sm:$0xff] }
   0xd   :  { %v32_v42 = vld [vmem:[%s3958_s0 + $0xa8] sm:$0xff]  ;;  %v33_v43 = vld [vmem:[%s3958_s0 + $0xb0] sm:$0xff]  ;;  %v34_v44 = vld [vmem:[%s3958_s0 + $0xb8] sm:$0xff]  ;;  %v1704_v4 = vsub.f32 %v23_v19, %v167_v36  ;;  %v1706_v5 = vsub.f32 %v24_v20, %v168_v37  ;;  %v1708_v6 = vsub.f32 %v25_v21, %v169_v38  ;;  %v1788_v37 = vmul.f32 %v304_v41, %v304_v41 }
   0xe   :  { %v170_v45 = vld [vmem:[%s3959_s1 + $0x78] sm:$0xff]  ;;  %v171_v46 = vld [vmem:[%s3959_s1 + $0x80] sm:$0xff]  ;;  %v172_v47 = vld [vmem:[%s3959_s1 + $0x88] sm:$0xff] }
   0xf   :  { %v35_v52 = vld [vmem:[%s3958_s0 + $0xc0] sm:$0xff]  ;;  %v36_v53 = vld [vmem:[%s3958_s0 + $0xc8] sm:$0xff]  ;;  %v37_v54 = vld [vmem:[%s3958_s0 + $0xd0] sm:$0xff]  ;;  %v1730_v14 = vsub.f32 %v26_v26, %v170_v45  ;;  %v1732_v15 = vsub.f32 %v27_v27, %v171_v46  ;;  %v1734_v16 = vsub.f32 %v28_v28, %v172_v47  ;;  %v1762_v27 = vmul.f32 %v303_v40, %v303_v40  ;;  %3966 = vst [vmem:[#allocation7_spill] sm:$0xff] %v1788_v37 }
  0x10   :  { %v173_v55 = vld [vmem:[%s3959_s1 + $0x90] sm:$0xff]  ;;  %v174_v56 = vld [vmem:[%s3959_s1 + $0x98] sm:$0xff]  ;;  %v175_v57 = vld [vmem:[%s3959_s1 + $0xa0] sm:$0xff]  ;;  %v1816_v47 = vmul.f32 %v1652_v48, %v1652_v48 }
  0x11   :  { %v38_v62 = vld [vmem:[%s3958_s0 + $0xd8] sm:$0xff]  ;;  %v39_v63 = vld [vmem:[%s3958_s0 + $0xe0] sm:$0xff]  ;;  %v40_v0 = vld [vmem:[%s3958_s0 + $0xe8] sm:$0xff]  ;;  %v1756_v24 = vsub.f32 %v29_v33, %v173_v55  ;;  %v1758_v25 = vsub.f32 %v30_v34, %v174_v56  ;;  %v1760_v26 = vsub.f32 %v31_v35, %v175_v57  ;;  %3965 = vst [vmem:[#allocation6_spill] sm:$0xff] %v1762_v27 }
  0x12   :  { %v176_v1 = vld [vmem:[%s3959_s1 + $0xa8] sm:$0xff]  ;;  %v177_v2 = vld [vmem:[%s3959_s1 + $0xb0] sm:$0xff]  ;;  %v178_v3 = vld [vmem:[%s3959_s1 + $0xb8] sm:$0xff]  ;;  %3967 = vst [vmem:[#allocation8_spill] sm:$0xff] %v1816_v47 }
  0x13   :  { %v41_v8 = vld [vmem:[%s3958_s0 + $0xf0] sm:$0xff]  ;;  %v42_v9 = vld [vmem:[%s3958_s0 + $0xf8] sm:$0xff]  ;;  %v43_v10 = vld [vmem:[%s3958_s0 + $0x100] sm:$0xff]  ;;  %v1782_v34 = vsub.f32 %v32_v42, %v176_v1  ;;  %v1784_v35 = vsub.f32 %v33_v43, %v177_v2  ;;  %v1786_v36 = vsub.f32 %v34_v44, %v178_v3  ;;  %v1844_v3 = vmul.f32 %v1654_v49, %v1654_v49 }
  0x14   :  { %v179_v11 = vld [vmem:[%s3959_s1 + $0xc0] sm:$0xff]  ;;  %v180_v12 = vld [vmem:[%s3959_s1 + $0xc8] sm:$0xff]  ;;  %v181_v13 = vld [vmem:[%s3959_s1 + $0xd0] sm:$0xff] }
  0x15   :  { %v44_v18 = vld [vmem:[%s3958_s0 + $0x108] sm:$0xff]  ;;  %v45_v19 = vld [vmem:[%s3958_s0 + $0x110] sm:$0xff]  ;;  %v46_v20 = vld [vmem:[%s3958_s0 + $0x118] sm:$0xff]  ;;  %v1808_v44 = vsub.f32 %v35_v52, %v179_v11  ;;  %v1810_v45 = vsub.f32 %v36_v53, %v180_v12  ;;  %v1812_v46 = vsub.f32 %v37_v54, %v181_v13  ;;  %3968 = vst [vmem:[#allocation9_spill] sm:$0xff] %v1844_v3 }
  0x16   :  { %v182_v21 = vld [vmem:[%s3959_s1 + $0xd8] sm:$0xff]  ;;  %v183_v22 = vld [vmem:[%s3959_s1 + $0xe0] sm:$0xff]  ;;  %v184_v23 = vld [vmem:[%s3959_s1 + $0xe8] sm:$0xff] }
  0x17   :  { %v47_v28 = vld [vmem:[%s3958_s0 + $0x120] sm:$0xff]  ;;  %v48_v29 = vld [vmem:[%s3958_s0 + $0x128] sm:$0xff]  ;;  %v49_v30 = vld [vmem:[%s3958_s0 + $0x130] sm:$0xff]  ;;  %v1836_v57 = vsub.f32 %v38_v62, %v182_v21  ;;  %v1838_v1 = vsub.f32 %v39_v63, %v183_v22  ;;  %v1840_v2 = vsub.f32 %v40_v0, %v184_v23  ;;  %v1872_v23 = vmul.f32 %v1656_v50, %v1656_v50 }
  0x18   :  { %v185_v31 = vld [vmem:[%s3959_s1 + $0xf0] sm:$0xff]  ;;  %v186_v32 = vld [vmem:[%s3959_s1 + $0xf8] sm:$0xff]  ;;  %v187_v33 = vld [vmem:[%s3959_s1 + $0x100] sm:$0xff] }
  0x19   :  { %v50_v38 = vld [vmem:[%s3958_s0 + $0x138] sm:$0xff]  ;;  %v51_v39 = vld [vmem:[%s3958_s0 + $0x140] sm:$0xff]  ;;  %v52_v40 = vld [vmem:[%s3958_s0 + $0x148] sm:$0xff]  ;;  %v1864_v13 = vsub.f32 %v41_v8, %v185_v31  ;;  %v1866_v21 = vsub.f32 %v42_v9, %v186_v32  ;;  %v1868_v22 = vsub.f32 %v43_v10, %v187_v33  ;;  %3969 = vst [vmem:[#allocation10_spill] sm:$0xff] %v1872_v23  ;;  %v1900_v23 = vmul.f32 %v1678_v58, %v1678_v58 }
  0x1a   :  { %v188_v42 = vld [vmem:[%s3959_s1 + $0x108] sm:$0xff]  ;;  %v189_v41 = vld [vmem:[%s3959_s1 + $0x110] sm:$0xff]  ;;  %v190_v43 = vld [vmem:[%s3959_s1 + $0x118] sm:$0xff] }
  0x1b   :  { %v53_v55 = vld [vmem:[%s3958_s0 + $0x150] sm:$0xff]  ;;  %v54_v56 = vld [vmem:[%s3958_s0 + $0x158] sm:$0xff]  ;;  %v55_v52 = vld [vmem:[%s3958_s0 + $0x160] sm:$0xff]  ;;  %v1892_v31 = vsub.f32 %v44_v18, %v188_v42  ;;  %v1894_v32 = vsub.f32 %v45_v19, %v189_v41  ;;  %v1896_v33 = vsub.f32 %v46_v20, %v190_v43  ;;  %3970 = vst [vmem:[#allocation11_spill] sm:$0xff] %v1900_v23  ;;  %v1928_v23 = vmul.f32 %v1680_v59, %v1680_v59 }
  0x1c   :  { %v191_v53 = vld [vmem:[%s3959_s1 + $0x120] sm:$0xff]  ;;  %v192_v48 = vld [vmem:[%s3959_s1 + $0x128] sm:$0xff]  ;;  %v193_v54 = vld [vmem:[%s3959_s1 + $0x130] sm:$0xff] }
  0x1d   :  { %v56_v11 = vld [vmem:[%s3958_s0 + $0x168] sm:$0xff]  ;;  %v57_v12 = vld [vmem:[%s3958_s0 + $0x170] sm:$0xff]  ;;  %v58_v62 = vld [vmem:[%s3958_s0 + $0x178] sm:$0xff]  ;;  %v1920_v42 = vsub.f32 %v47_v28, %v191_v53  ;;  %v1922_v41 = vsub.f32 %v48_v29, %v192_v48  ;;  %v1924_v43 = vsub.f32 %v49_v30, %v193_v54  ;;  %3971 = vst [vmem:[#allocation12_spill] sm:$0xff] %v1928_v23  ;;  %v1956_v23 = vmul.f32 %v1682_v60, %v1682_v60 }
  0x1e   :  { %v194_v63 = vld [vmem:[%s3959_s1 + $0x138] sm:$0xff]  ;;  %v195_v49 = vld [vmem:[%s3959_s1 + $0x140] sm:$0xff]  ;;  %v196_v0 = vld [vmem:[%s3959_s1 + $0x148] sm:$0xff] }
  0x1f   :  { %v59_v3 = vld [vmem:[%s3958_s0 + $0x180] sm:$0xff]  ;;  %v60_v47 = vld [vmem:[%s3958_s0 + $0x188] sm:$0xff]  ;;  %v61_v8 = vld [vmem:[%s3958_s0 + $0x190] sm:$0xff]  ;;  %v1948_v53 = vsub.f32 %v50_v38, %v194_v63  ;;  %v1950_v48 = vsub.f32 %v51_v39, %v195_v49  ;;  %v1952_v54 = vsub.f32 %v52_v40, %v196_v0  ;;  %3974 = vst [vmem:[#allocation15_spill] sm:$0xff] %v1956_v23  ;;  %v1984_v23 = vmul.f32 %v1704_v4, %v1704_v4 }
  0x20   :  { %v197_v9 = vld [vmem:[%s3959_s1 + $0x150] sm:$0xff]  ;;  %v198_v50 = vld [vmem:[%s3959_s1 + $0x158] sm:$0xff]  ;;  %v199_v10 = vld [vmem:[%s3959_s1 + $0x160] sm:$0xff] }
  0x21   :  { %v62_v37 = vld [vmem:[%s3958_s0 + $0x198] sm:$0xff]  ;;  %v63_v27 = vld [vmem:[%s3958_s0 + $0x1a0] sm:$0xff]  ;;  %v64_v18 = vld [vmem:[%s3958_s0 + $0x1a8] sm:$0xff]  ;;  %3972 = vst [vmem:[#allocation13_spill] sm:$0xff] %v1950_v48  ;;  %v1976_v63 = vsub.f32 %v53_v55, %v197_v9  ;;  %v1978_v49 = vsub.f32 %v54_v56, %v198_v50  ;;  %v1980_v0 = vsub.f32 %v55_v52, %v199_v10 }
  0x22   :  { %v200_v19 = vld [vmem:[%s3959_s1 + $0x168] sm:$0xff]  ;;  %v201_v58 = vld [vmem:[%s3959_s1 + $0x170] sm:$0xff]  ;;  %v202_v20 = vld [vmem:[%s3959_s1 + $0x178] sm:$0xff]  ;;  %3973 = vst [vmem:[#allocation14_spill] sm:$0xff] %v1952_v54 }
  0x23   :  { %v65_v17 = vld [vmem:[%s3958_s0 + $0x1b0] sm:$0xff]  ;;  %v66_v7 = vld [vmem:[%s3958_s0 + $0x1b8] sm:$0xff]  ;;  %v67_v28 = vld [vmem:[%s3958_s0 + $0x1c0] sm:$0xff]  ;;  %3975 = vst [vmem:[#allocation16_spill] sm:$0xff] %v1978_v49  ;;  %v2004_v9 = vsub.f32 %v56_v11, %v200_v19  ;;  %v2006_v50 = vsub.f32 %v57_v12, %v201_v58  ;;  %v2008_v10 = vsub.f32 %v58_v62, %v202_v20 }
  0x24   :  { %v203_v29 = vld [vmem:[%s3959_s1 + $0x180] sm:$0xff]  ;;  %v204_v59 = vld [vmem:[%s3959_s1 + $0x188] sm:$0xff]  ;;  %v205_v30 = vld [vmem:[%s3959_s1 + $0x190] sm:$0xff]  ;;  %3976 = vst [vmem:[#allocation17_spill] sm:$0xff] %v1980_v0 }
  0x25   :  { %v68_v61 = vld [vmem:[%s3958_s0 + $0x1c8] sm:$0xff]  ;;  %v69_v51 = vld [vmem:[%s3958_s0 + $0x1d0] sm:$0xff]  ;;  %v70_v38 = vld [vmem:[%s3958_s0 + $0x1d8] sm:$0xff]  ;;  %3977 = vst [vmem:[#allocation18_spill] sm:$0xff] %v1984_v23  ;;  %v2012_v23 = vmul.f32 %v1706_v5, %v1706_v5  ;;  %v2032_v19 = vsub.f32 %v59_v3, %v203_v29  ;;  %v2034_v58 = vsub.f32 %v60_v47, %v204_v59  ;;  %v2036_v20 = vsub.f32 %v61_v8, %v205_v30 }
  0x26   :  { %v206_v39 = vld [vmem:[%s3959_s1 + $0x198] sm:$0xff]  ;;  %v207_v60 = vld [vmem:[%s3959_s1 + $0x1a0] sm:$0xff]  ;;  %v208_v40 = vld [vmem:[%s3959_s1 + $0x1a8] sm:$0xff]  ;;  %3978 = vst [vmem:[#allocation19_spill] sm:$0xff] %v2006_v50 }
  0x27   :  { %v71_v54 = vld [vmem:[%s3958_s0 + $0x1e0] sm:$0xff]  ;;  %v72_v48 = vld [vmem:[%s3958_s0 + $0x1e8] sm:$0xff]  ;;  %v73_v55 = vld [vmem:[%s3958_s0 + $0x1f0] sm:$0xff]  ;;  %3979 = vst [vmem:[#allocation20_spill] sm:$0xff] %v2008_v10  ;;  %v2060_v29 = vsub.f32 %v62_v37, %v206_v39  ;;  %v2062_v59 = vsub.f32 %v63_v27, %v207_v60  ;;  %v2064_v30 = vsub.f32 %v64_v18, %v208_v40 }
  0x28   :  { %v209_v56 = vld [vmem:[%s3959_s1 + $0x1b0] sm:$0xff]  ;;  %v210_v4 = vld [vmem:[%s3959_s1 + $0x1b8] sm:$0xff]  ;;  %v211_v52 = vld [vmem:[%s3959_s1 + $0x1c0] sm:$0xff]  ;;  %3980 = vst [vmem:[#allocation21_spill] sm:$0xff] %v2012_v23  ;;  %v2040_v23 = vmul.f32 %v1708_v6, %v1708_v6 }
  0x29   :  { %v74_v0 = vld [vmem:[%s3958_s0 + $0x1f8] sm:$0xff]  ;;  %v75_v49 = vld [vmem:[%s3958_s0 + $0x200] sm:$0xff]  ;;  %v76_v11 = vld [vmem:[%s3958_s0 + $0x208] sm:$0xff]  ;;  %3981 = vst [vmem:[#allocation22_spill] sm:$0xff] %v2034_v58  ;;  %v2088_v39 = vsub.f32 %v65_v17, %v209_v56  ;;  %v2090_v60 = vsub.f32 %v66_v7, %v210_v4  ;;  %v2092_v40 = vsub.f32 %v67_v28, %v211_v52 }
  0x2a   :  { %v212_v12 = vld [vmem:[%s3959_s1 + $0x1c8] sm:$0xff]  ;;  %v213_v5 = vld [vmem:[%s3959_s1 + $0x1d0] sm:$0xff]  ;;  %v214_v62 = vld [vmem:[%s3959_s1 + $0x1d8] sm:$0xff]  ;;  %3982 = vst [vmem:[#allocation23_spill] sm:$0xff] %v2036_v20 }
  0x2b   :  { %3983 = vst [vmem:[#allocation24_spill] sm:$0xff] %v2040_v23  ;;  %v77_v10 = vld [vmem:[%s3958_s0 + $0x210] sm:$0xff]  ;;  %v78_v50 = vld [vmem:[%s3958_s0 + $0x218] sm:$0xff]  ;;  %v79_v3 = vld [vmem:[%s3958_s0 + $0x220] sm:$0xff]  ;;  %v2068_v23 = vmul.f32 %v1730_v14, %v1730_v14  ;;  %v2116_v56 = vsub.f32 %v68_v61, %v212_v12  ;;  %v2118_v4 = vsub.f32 %v69_v51, %v213_v5  ;;  %v2120_v52 = vsub.f32 %v70_v38, %v214_v62 }
  0x2c   :  { %v215_v47 = vld [vmem:[%s3959_s1 + $0x1e0] sm:$0xff]  ;;  %v216_v6 = vld [vmem:[%s3959_s1 + $0x1e8] sm:$0xff]  ;;  %v217_v8 = vld [vmem:[%s3959_s1 + $0x1f0] sm:$0xff]  ;;  %3984 = vst [vmem:[#allocation25_spill] sm:$0xff] %v2062_v59 }
  0x2d   :  { %3985 = vst [vmem:[#allocation26_spill] sm:$0xff] %v2064_v30  ;;  %3986 = vst [vmem:[#allocation27_spill] sm:$0xff] %v2068_v23  ;;  %v80_v20 = vld [vmem:[%s3958_s0 + $0x228] sm:$0xff]  ;;  %v81_v58 = vld [vmem:[%s3958_s0 + $0x230] sm:$0xff]  ;;  %v2096_v23 = vmul.f32 %v1732_v15, %v1732_v15  ;;  %v2144_v12 = vsub.f32 %v71_v54, %v215_v47  ;;  %v2146_v5 = vsub.f32 %v72_v48, %v216_v6 }
  0x2e   :  { %v82_v37 = vld [vmem:[%s3958_s0 + $0x238] sm:$0xff]  ;;  %v219_v14 = vld [vmem:[%s3959_s1 + $0x200] sm:$0xff]  ;;  %v220_v18 = vld [vmem:[%s3959_s1 + $0x208] sm:$0xff]  ;;  %3987 = vst [vmem:[#allocation28_spill] sm:$0xff] %v2090_v60  ;;  %v2148_v62 = vsub.f32 %v73_v55, %v217_v8 }
  0x2f   :  { %v218_v27 = vld [vmem:[%s3959_s1 + $0x1f8] sm:$0xff]  ;;  %3988 = vst [vmem:[#allocation29_spill] sm:$0xff] %v2092_v40  ;;  %3989 = vst [vmem:[#allocation30_spill] sm:$0xff] %v2096_v23  ;;  %v83_v30 = vld [vmem:[%s3958_s0 + $0x240] sm:$0xff]  ;;  %v2124_v23 = vmul.f32 %v1734_v16, %v1734_v16  ;;  %v2174_v6 = vsub.f32 %v75_v49, %v219_v14  ;;  %v2176_v8 = vsub.f32 %v76_v11, %v220_v18 }
  0x30   :  { %v84_v59 = vld [vmem:[%s3958_s0 + $0x248] sm:$0xff]  ;;  %v85_v17 = vld [vmem:[%s3958_s0 + $0x250] sm:$0xff]  ;;  %v222_v15 = vld [vmem:[%s3959_s1 + $0x218] sm:$0xff]  ;;  %3990 = vst [vmem:[#allocation31_spill] sm:$0xff] %v2118_v4  ;;  %v2172_v47 = vsub.f32 %v74_v0, %v218_v27 }
  0x31   :  { %v221_v7 = vld [vmem:[%s3959_s1 + $0x210] sm:$0xff]  ;;  %v223_v28 = vld [vmem:[%s3959_s1 + $0x220] sm:$0xff]  ;;  %3991 = vst [vmem:[#allocation32_spill] sm:$0xff] %v2120_v52  ;;  %3992 = vst [vmem:[#allocation33_spill] sm:$0xff] %v2124_v23  ;;  %v2152_v23 = vmul.f32 %v1756_v24, %v1756_v24  ;;  %v2202_v14 = vsub.f32 %v78_v50, %v222_v15 }
  0x32   :  { %v86_v40 = vld [vmem:[%s3958_s0 + $0x258] sm:$0xff]  ;;  %v87_v60 = vld [vmem:[%s3958_s0 + $0x260] sm:$0xff]  ;;  %v88_v61 = vld [vmem:[%s3958_s0 + $0x268] sm:$0xff]  ;;  %3993 = vst [vmem:[#allocation34_spill] sm:$0xff] %v2146_v5  ;;  %v2200_v27 = vsub.f32 %v77_v10, %v221_v7  ;;  %v2204_v18 = vsub.f32 %v79_v3, %v223_v28 }
  0x33   :  { %v224_v51 = vld [vmem:[%s3959_s1 + $0x228] sm:$0xff]  ;;  %v225_v16 = vld [vmem:[%s3959_s1 + $0x230] sm:$0xff]  ;;  %v226_v38 = vld [vmem:[%s3959_s1 + $0x238] sm:$0xff]  ;;  %3994 = vst [vmem:[#allocation35_spill] sm:$0xff] %v2148_v62 }
  0x34   :  { %3995 = vst [vmem:[#allocation36_spill] sm:$0xff] %v2152_v23  ;;  %v89_v52 = vld [vmem:[%s3958_s0 + $0x270] sm:$0xff]  ;;  %v90_v4 = vld [vmem:[%s3958_s0 + $0x278] sm:$0xff]  ;;  %v91_v54 = vld [vmem:[%s3958_s0 + $0x280] sm:$0xff]  ;;  %v2180_v23 = vmul.f32 %v1758_v25, %v1758_v25  ;;  %v2228_v7 = vsub.f32 %v80_v20, %v224_v51  ;;  %v2230_v15 = vsub.f32 %v81_v58, %v225_v16  ;;  %v2232_v28 = vsub.f32 %v82_v37, %v226_v38 }
  0x35   :  { %v227_v48 = vld [vmem:[%s3959_s1 + $0x240] sm:$0xff]  ;;  %v228_v24 = vld [vmem:[%s3959_s1 + $0x248] sm:$0xff]  ;;  %v229_v55 = vld [vmem:[%s3959_s1 + $0x250] sm:$0xff]  ;;  %3996 = vst [vmem:[#allocation37_spill] sm:$0xff] %v2174_v6 }
  0x36   :  { %3997 = vst [vmem:[#allocation38_spill] sm:$0xff] %v2176_v8  ;;  %3998 = vst [vmem:[#allocation39_spill] sm:$0xff] %v2180_v23  ;;  %v92_v62 = vld [vmem:[%s3958_s0 + $0x288] sm:$0xff]  ;;  %v93_v5 = vld [vmem:[%s3958_s0 + $0x290] sm:$0xff]  ;;  %v2208_v23 = vmul.f32 %v1760_v26, %v1760_v26  ;;  %v2256_v51 = vsub.f32 %v83_v30, %v227_v48  ;;  %v2258_v16 = vsub.f32 %v84_v59, %v228_v24 }
  0x37   :  { %v94_v0 = vld [vmem:[%s3958_s0 + $0x298] sm:$0xff]  ;;  %v231_v25 = vld [vmem:[%s3959_s1 + $0x260] sm:$0xff]  ;;  %v232_v11 = vld [vmem:[%s3959_s1 + $0x268] sm:$0xff]  ;;  %3999 = vst [vmem:[#allocation40_spill] sm:$0xff] %v2202_v14  ;;  %v2260_v38 = vsub.f32 %v85_v17, %v229_v55 }
  0x38   :  { %v230_v49 = vld [vmem:[%s3959_s1 + $0x258] sm:$0xff]  ;;  %4000 = vst [vmem:[#allocation41_spill] sm:$0xff] %v2204_v18  ;;  %4001 = vst [vmem:[#allocation42_spill] sm:$0xff] %v2208_v23  ;;  %v95_v8 = vld [vmem:[%s3958_s0 + $0x2a0] sm:$0xff]  ;;  %v2236_v23 = vmul.f32 %v1782_v34, %v1782_v34  ;;  %v2286_v24 = vsub.f32 %v87_v60, %v231_v25  ;;  %v2288_v55 = vsub.f32 %v88_v61, %v232_v11 }
  0x39   :  { %v96_v6 = vld [vmem:[%s3958_s0 + $0x2a8] sm:$0xff]  ;;  %v97_v10 = vld [vmem:[%s3958_s0 + $0x2b0] sm:$0xff]  ;;  %v234_v26 = vld [vmem:[%s3959_s1 + $0x278] sm:$0xff]  ;;  %4002 = vst [vmem:[#allocation43_spill] sm:$0xff] %v2230_v15  ;;  %v2284_v48 = vsub.f32 %v86_v40, %v230_v49 }
  0x3a   :  { %v233_v50 = vld [vmem:[%s3959_s1 + $0x270] sm:$0xff]  ;;  %v235_v3 = vld [vmem:[%s3959_s1 + $0x280] sm:$0xff]  ;;  %4003 = vst [vmem:[#allocation44_spill] sm:$0xff] %v2232_v28  ;;  %4004 = vst [vmem:[#allocation45_spill] sm:$0xff] %v2236_v23  ;;  %v2264_v23 = vmul.f32 %v1784_v35, %v1784_v35  ;;  %v2314_v25 = vsub.f32 %v90_v4, %v234_v26 }
  0x3b   :  { %v98_v18 = vld [vmem:[%s3958_s0 + $0x2b8] sm:$0xff]  ;;  %v99_v14 = vld [vmem:[%s3958_s0 + $0x2c0] sm:$0xff]  ;;  %v100_v20 = vld [vmem:[%s3958_s0 + $0x2c8] sm:$0xff]  ;;  %4005 = vst [vmem:[#allocation46_spill] sm:$0xff] %v2258_v16  ;;  %v2312_v49 = vsub.f32 %v89_v52, %v233_v50  ;;  %v2316_v11 = vsub.f32 %v91_v54, %v235_v3 }
  0x3c   :  { %v236_v58 = vld [vmem:[%s3959_s1 + $0x288] sm:$0xff]  ;;  %v237_v34 = vld [vmem:[%s3959_s1 + $0x290] sm:$0xff]  ;;  %v238_v37 = vld [vmem:[%s3959_s1 + $0x298] sm:$0xff]  ;;  %4006 = vst [vmem:[#allocation47_spill] sm:$0xff] %v2260_v38 }
  0x3d   :  { %4007 = vst [vmem:[#allocation48_spill] sm:$0xff] %v2264_v23  ;;  %v101_v28 = vld [vmem:[%s3958_s0 + $0x2d0] sm:$0xff]  ;;  %v102_v15 = vld [vmem:[%s3958_s0 + $0x2d8] sm:$0xff]  ;;  %v103_v30 = vld [vmem:[%s3958_s0 + $0x2e0] sm:$0xff]  ;;  %v2292_v23 = vmul.f32 %v1786_v36, %v1786_v36  ;;  %v2340_v50 = vsub.f32 %v92_v62, %v236_v58  ;;  %v2342_v26 = vsub.f32 %v93_v5, %v237_v34  ;;  %v2344_v3 = vsub.f32 %v94_v0, %v238_v37 }
  0x3e   :  { %v239_v59 = vld [vmem:[%s3959_s1 + $0x2a0] sm:$0xff]  ;;  %v240_v35 = vld [vmem:[%s3959_s1 + $0x2a8] sm:$0xff]  ;;  %v241_v17 = vld [vmem:[%s3959_s1 + $0x2b0] sm:$0xff]  ;;  %4008 = vst [vmem:[#allocation49_spill] sm:$0xff] %v2286_v24 }
  0x3f   :  { %4009 = vst [vmem:[#allocation50_spill] sm:$0xff] %v2288_v55  ;;  %4010 = vst [vmem:[#allocation51_spill] sm:$0xff] %v2292_v23  ;;  %v104_v38 = vld [vmem:[%s3958_s0 + $0x2e8] sm:$0xff]  ;;  %v105_v16 = vld [vmem:[%s3958_s0 + $0x2f0] sm:$0xff]  ;;  %v2320_v23 = vmul.f32 %v1808_v44, %v1808_v44  ;;  %v2368_v58 = vsub.f32 %v95_v8, %v239_v59  ;;  %v2370_v34 = vsub.f32 %v96_v6, %v240_v35 }
  0x40   :  { %v106_v40 = vld [vmem:[%s3958_s0 + $0x2f8] sm:$0xff]  ;;  %v243_v36 = vld [vmem:[%s3959_s1 + $0x2c0] sm:$0xff]  ;;  %v244_v61 = vld [vmem:[%s3959_s1 + $0x2c8] sm:$0xff]  ;;  %4011 = vst [vmem:[#allocation52_spill] sm:$0xff] %v2314_v25  ;;  %v2372_v37 = vsub.f32 %v97_v10, %v241_v17 }
  0x41   :  { %v242_v60 = vld [vmem:[%s3959_s1 + $0x2b8] sm:$0xff]  ;;  %4012 = vst [vmem:[#allocation53_spill] sm:$0xff] %v2316_v11  ;;  %4013 = vst [vmem:[#allocation54_spill] sm:$0xff] %v2320_v23  ;;  %v107_v55 = vld [vmem:[%s3958_s0 + $0x300] sm:$0xff]  ;;  %v2348_v23 = vmul.f32 %v1810_v45, %v1810_v45  ;;  %v2398_v35 = vsub.f32 %v99_v14, %v243_v36  ;;  %v2400_v17 = vsub.f32 %v100_v20, %v244_v61 }
  0x42   :  { %v108_v24 = vld [vmem:[%s3958_s0 + $0x308] sm:$0xff]  ;;  %v109_v52 = vld [vmem:[%s3958_s0 + $0x310] sm:$0xff]  ;;  %v246_v44 = vld [vmem:[%s3959_s1 + $0x2d8] sm:$0xff]  ;;  %4014 = vst [vmem:[#allocation55_spill] sm:$0xff] %v2342_v26  ;;  %v2396_v59 = vsub.f32 %v98_v18, %v242_v60 }
  0x43   :  { %v245_v4 = vld [vmem:[%s3959_s1 + $0x2d0] sm:$0xff]  ;;  %v247_v54 = vld [vmem:[%s3959_s1 + $0x2e0] sm:$0xff]  ;;  %4015 = vst [vmem:[#allocation56_spill] sm:$0xff] %v2344_v3  ;;  %4016 = vst [vmem:[#allocation57_spill] sm:$0xff] %v2348_v23  ;;  %v2376_v23 = vmul.f32 %v1812_v46, %v1812_v46  ;;  %v2426_v36 = vsub.f32 %v102_v15, %v246_v44 }
  0x44   :  { %v110_v11 = vld [vmem:[%s3958_s0 + $0x318] sm:$0xff]  ;;  %v111_v25 = vld [vmem:[%s3958_s0 + $0x320] sm:$0xff]  ;;  %v112_v62 = vld [vmem:[%s3958_s0 + $0x328] sm:$0xff]  ;;  %4017 = vst [vmem:[#allocation58_spill] sm:$0xff] %v2370_v34  ;;  %v2424_v60 = vsub.f32 %v101_v28, %v245_v4  ;;  %v2428_v61 = vsub.f32 %v103_v30, %v247_v54 }
  0x45   :  { %v248_v5 = vld [vmem:[%s3959_s1 + $0x2e8] sm:$0xff]  ;;  %v249_v45 = vld [vmem:[%s3959_s1 + $0x2f0] sm:$0xff]  ;;  %v250_v0 = vld [vmem:[%s3959_s1 + $0x2f8] sm:$0xff]  ;;  %4018 = vst [vmem:[#allocation59_spill] sm:$0xff] %v2372_v37 }
  0x46   :  { %4019 = vst [vmem:[#allocation60_spill] sm:$0xff] %v2376_v23  ;;  %v113_v3 = vld [vmem:[%s3958_s0 + $0x330] sm:$0xff]  ;;  %v114_v26 = vld [vmem:[%s3958_s0 + $0x338] sm:$0xff]  ;;  %v115_v8 = vld [vmem:[%s3958_s0 + $0x340] sm:$0xff]  ;;  %v2404_v23 = vmul.f32 %v1836_v57, %v1836_v57  ;;  %v2452_v4 = vsub.f32 %v104_v38, %v248_v5  ;;  %v2454_v44 = vsub.f32 %v105_v16, %v249_v45  ;;  %v2456_v54 = vsub.f32 %v106_v40, %v250_v0 }
  0x47   :  { %v251_v6 = vld [vmem:[%s3959_s1 + $0x300] sm:$0xff]  ;;  %v252_v46 = vld [vmem:[%s3959_s1 + $0x308] sm:$0xff]  ;;  %v253_v10 = vld [vmem:[%s3959_s1 + $0x310] sm:$0xff]  ;;  %4020 = vst [vmem:[#allocation61_spill] sm:$0xff] %v2398_v35 }
  0x48   :  { %4021 = vst [vmem:[#allocation62_spill] sm:$0xff] %v2400_v17  ;;  %4022 = vst [vmem:[#allocation63_spill] sm:$0xff] %v2404_v23  ;;  %v116_v37 = vld [vmem:[%s3958_s0 + $0x348] sm:$0xff]  ;;  %v117_v34 = vld [vmem:[%s3958_s0 + $0x350] sm:$0xff]  ;;  %v2432_v23 = vmul.f32 %v1838_v1, %v1838_v1  ;;  %v2480_v5 = vsub.f32 %v107_v55, %v251_v6  ;;  %v2482_v45 = vsub.f32 %v108_v24, %v252_v46 }
  0x49   :  { %v118_v18 = vld [vmem:[%s3958_s0 + $0x358] sm:$0xff]  ;;  %v255_v57 = vld [vmem:[%s3959_s1 + $0x320] sm:$0xff]  ;;  %v256_v20 = vld [vmem:[%s3959_s1 + $0x328] sm:$0xff]  ;;  %4023 = vst [vmem:[#allocation64_spill] sm:$0xff] %v2426_v36  ;;  %v2484_v0 = vsub.f32 %v109_v52, %v253_v10 }
  0x4a   :  { %v254_v14 = vld [vmem:[%s3959_s1 + $0x318] sm:$0xff]  ;;  %4024 = vst [vmem:[#allocation65_spill] sm:$0xff] %v2428_v61  ;;  %4025 = vst [vmem:[#allocation66_spill] sm:$0xff] %v2432_v23  ;;  %v119_v17 = vld [vmem:[%s3958_s0 + $0x360] sm:$0xff]  ;;  %v2460_v23 = vmul.f32 %v1840_v2, %v1840_v2  ;;  %v2510_v46 = vsub.f32 %v111_v25, %v255_v57  ;;  %v2512_v10 = vsub.f32 %v112_v62, %v256_v20 }
  0x4b   :  { %v120_v35 = vld [vmem:[%s3958_s0 + $0x368] sm:$0xff]  ;;  %v121_v28 = vld [vmem:[%s3958_s0 + $0x370] sm:$0xff]  ;;  %v258_v1 = vld [vmem:[%s3959_s1 + $0x338] sm:$0xff]  ;;  %4026 = vst [vmem:[#allocation67_spill] sm:$0xff] %v2454_v44  ;;  %v2508_v6 = vsub.f32 %v110_v11, %v254_v14 }
  0x4c   :  { %v257_v15 = vld [vmem:[%s3959_s1 + $0x330] sm:$0xff]  ;;  %v259_v30 = vld [vmem:[%s3959_s1 + $0x340] sm:$0xff]  ;;  %4027 = vst [vmem:[#allocation68_spill] sm:$0xff] %v2456_v54  ;;  %4028 = vst [vmem:[#allocation69_spill] sm:$0xff] %v2460_v23  ;;  %v2488_v23 = vmul.f32 %v1864_v13, %v1864_v13  ;;  %v2538_v57 = vsub.f32 %v114_v26, %v258_v1 }
  0x4d   :  { %v122_v61 = vld [vmem:[%s3958_s0 + $0x378] sm:$0xff]  ;;  %v123_v36 = vld [vmem:[%s3958_s0 + $0x380] sm:$0xff]  ;;  %v124_v38 = vld [vmem:[%s3958_s0 + $0x388] sm:$0xff]  ;;  %4029 = vst [vmem:[#allocation70_spill] sm:$0xff] %v2482_v45  ;;  %v2536_v14 = vsub.f32 %v113_v3, %v257_v15  ;;  %v2540_v20 = vsub.f32 %v115_v8, %v259_v30 }
  0x4e   :  { %v260_v16 = vld [vmem:[%s3959_s1 + $0x348] sm:$0xff]  ;;  %v261_v2 = vld [vmem:[%s3959_s1 + $0x350] sm:$0xff]  ;;  %v262_v40 = vld [vmem:[%s3959_s1 + $0x358] sm:$0xff]  ;;  %4030 = vst [vmem:[#allocation71_spill] sm:$0xff] %v2484_v0 }
  0x4f   :  { %4031 = vst [vmem:[#allocation72_spill] sm:$0xff] %v2488_v23  ;;  %v125_v54 = vld [vmem:[%s3958_s0 + $0x390] sm:$0xff]  ;;  %v126_v44 = vld [vmem:[%s3958_s0 + $0x398] sm:$0xff]  ;;  %v127_v55 = vld [vmem:[%s3958_s0 + $0x3a0] sm:$0xff]  ;;  %v2516_v23 = vmul.f32 %v1866_v21, %v1866_v21  ;;  %v2564_v15 = vsub.f32 %v116_v37, %v260_v16  ;;  %v2566_v1 = vsub.f32 %v117_v34, %v261_v2  ;;  %v2568_v30 = vsub.f32 %v118_v18, %v262_v40 }
  0x50   :  { %v263_v24 = vld [vmem:[%s3959_s1 + $0x360] sm:$0xff]  ;;  %v264_v13 = vld [vmem:[%s3959_s1 + $0x368] sm:$0xff]  ;;  %v265_v52 = vld [vmem:[%s3959_s1 + $0x370] sm:$0xff]  ;;  %4032 = vst [vmem:[#allocation73_spill] sm:$0xff] %v2510_v46 }
  0x51   :  { %4033 = vst [vmem:[#allocation74_spill] sm:$0xff] %v2512_v10  ;;  %4034 = vst [vmem:[#allocation75_spill] sm:$0xff] %v2516_v23  ;;  %v128_v0 = vld [vmem:[%s3958_s0 + $0x3a8] sm:$0xff]  ;;  %v129_v45 = vld [vmem:[%s3958_s0 + $0x3b0] sm:$0xff]  ;;  %v2544_v23 = vmul.f32 %v1868_v22, %v1868_v22  ;;  %v2592_v16 = vsub.f32 %v119_v17, %v263_v24  ;;  %v2594_v2 = vsub.f32 %v120_v35, %v264_v13 }
  0x52   :  { %v130_v11 = vld [vmem:[%s3958_s0 + $0x3b8] sm:$0xff]  ;;  %v267_v21 = vld [vmem:[%s3959_s1 + $0x380] sm:$0xff]  ;;  %v268_v62 = vld [vmem:[%s3959_s1 + $0x388] sm:$0xff]  ;;  %4035 = vst [vmem:[#allocation76_spill] sm:$0xff] %v2538_v57  ;;  %v2596_v40 = vsub.f32 %v121_v28, %v265_v52 }
  0x53   :  { %v266_v25 = vld [vmem:[%s3959_s1 + $0x378] sm:$0xff]  ;;  %4036 = vst [vmem:[#allocation77_spill] sm:$0xff] %v2540_v20  ;;  %4037 = vst [vmem:[#allocation78_spill] sm:$0xff] %v2544_v23  ;;  %v131_v10 = vld [vmem:[%s3958_s0 + $0x3c0] sm:$0xff]  ;;  %v2572_v23 = vmul.f32 %v1892_v31, %v1892_v31  ;;  %v2622_v13 = vsub.f32 %v123_v36, %v267_v21  ;;  %v2624_v52 = vsub.f32 %v124_v38, %v268_v62 }
  0x54   :  { %v132_v46 = vld [vmem:[%s3958_s0 + $0x3c8] sm:$0xff]  ;;  %v133_v3 = vld [vmem:[%s3958_s0 + $0x3d0] sm:$0xff]  ;;  %v270_v22 = vld [vmem:[%s3959_s1 + $0x398] sm:$0xff]  ;;  %4038 = vst [vmem:[#allocation79_spill] sm:$0xff] %v2566_v1  ;;  %v2620_v24 = vsub.f32 %v122_v61, %v266_v25 }
  0x55   :  { %v269_v26 = vld [vmem:[%s3959_s1 + $0x390] sm:$0xff]  ;;  %v271_v8 = vld [vmem:[%s3959_s1 + $0x3a0] sm:$0xff]  ;;  %4039 = vst [vmem:[#allocation80_spill] sm:$0xff] %v2568_v30  ;;  %4040 = vst [vmem:[#allocation81_spill] sm:$0xff] %v2572_v23  ;;  %v2600_v23 = vmul.f32 %v1894_v32, %v1894_v32  ;;  %v2650_v21 = vsub.f32 %v126_v44, %v270_v22 }
  0x56   :  { %v134_v20 = vld [vmem:[%s3958_s0 + $0x3d8] sm:$0xff]  ;;  %v135_v57 = vld [vmem:[%s3958_s0 + $0x3e0] sm:$0xff]  ;;  %v136_v37 = vld [vmem:[%s3958_s0 + $0x3e8] sm:$0xff]  ;;  %4041 = vst [vmem:[#allocation82_spill] sm:$0xff] %v2594_v2  ;;  %v2648_v25 = vsub.f32 %v125_v54, %v269_v26  ;;  %v2652_v62 = vsub.f32 %v127_v55, %v271_v8 }
  0x57   :  { %v272_v34 = vld [vmem:[%s3959_s1 + $0x3a8] sm:$0xff]  ;;  %v273_v31 = vld [vmem:[%s3959_s1 + $0x3b0] sm:$0xff]  ;;  %v274_v18 = vld [vmem:[%s3959_s1 + $0x3b8] sm:$0xff]  ;;  %4042 = vst [vmem:[#allocation83_spill] sm:$0xff] %v2596_v40 }
  0x58   :  { %4043 = vst [vmem:[#allocation84_spill] sm:$0xff] %v2600_v23  ;;  %v137_v30 = vld [vmem:[%s3958_s0 + $0x3f0] sm:$0xff]  ;;  %v138_v1 = vld [vmem:[%s3958_s0 + $0x3f8] sm:$0xff]  ;;  %v139_v17 = vld [vmem:[%s3958_s0 + $0x400] sm:$0xff]  ;;  %v2628_v23 = vmul.f32 %v1896_v33, %v1896_v33  ;;  %v2676_v26 = vsub.f32 %v128_v0, %v272_v34  ;;  %v2678_v22 = vsub.f32 %v129_v45, %v273_v31  ;;  %v2680_v8 = vsub.f32 %v130_v11, %v274_v18 }
  0x59   :  { %v275_v35 = vld [vmem:[%s3959_s1 + $0x3c0] sm:$0xff]  ;;  %v276_v32 = vld [vmem:[%s3959_s1 + $0x3c8] sm:$0xff]  ;;  %v277_v28 = vld [vmem:[%s3959_s1 + $0x3d0] sm:$0xff]  ;;  %4044 = vst [vmem:[#allocation85_spill] sm:$0xff] %v2622_v13 }
  0x5a   :  { %4045 = vst [vmem:[#allocation86_spill] sm:$0xff] %v2624_v52  ;;  %4046 = vst [vmem:[#allocation87_spill] sm:$0xff] %v2628_v23  ;;  %v140_v40 = vld [vmem:[%s3958_s0 + $0x408] sm:$0xff]  ;;  %v141_v2 = vld [vmem:[%s3958_s0 + $0x410] sm:$0xff]  ;;  %v2656_v23 = vmul.f32 %v1920_v42, %v1920_v42  ;;  %v2704_v34 = vsub.f32 %v131_v10, %v275_v35  ;;  %v2706_v31 = vsub.f32 %v132_v46, %v276_v32 }
  0x5b   :  { %v142_v61 = vld [vmem:[%s3958_s0 + $0x418] sm:$0xff]  ;;  %v279_v33 = vld [vmem:[%s3959_s1 + $0x3e0] sm:$0xff]  ;;  %v280_v38 = vld [vmem:[%s3959_s1 + $0x3e8] sm:$0xff]  ;;  %4047 = vst [vmem:[#allocation88_spill] sm:$0xff] %v2650_v21  ;;  %v2708_v18 = vsub.f32 %v133_v3, %v277_v28 }
  0x5c   :  { %v278_v36 = vld [vmem:[%s3959_s1 + $0x3d8] sm:$0xff]  ;;  %4048 = vst [vmem:[#allocation89_spill] sm:$0xff] %v2652_v62  ;;  %4049 = vst [vmem:[#allocation90_spill] sm:$0xff] %v2656_v23  ;;  %v143_v52 = vld [vmem:[%s3958_s0 + $0x420] sm:$0xff]  ;;  %v2684_v23 = vmul.f32 %v1922_v41, %v1922_v41  ;;  %v2734_v32 = vsub.f32 %v135_v57, %v279_v33  ;;  %v2736_v28 = vsub.f32 %v136_v37, %v280_v38 }
  0x5d   :  { %v144_v13 = vld [vmem:[%s3958_s0 + $0x428] sm:$0xff]  ;;  %v145_v54 = vld [vmem:[%s3958_s0 + $0x430] sm:$0xff]  ;;  %v282_v42 = vld [vmem:[%s3959_s1 + $0x3f8] sm:$0xff]  ;;  %4050 = vst [vmem:[#allocation91_spill] sm:$0xff] %v2678_v22  ;;  %v2732_v35 = vsub.f32 %v134_v20, %v278_v36 }
  0x5e   :  { %v281_v44 = vld [vmem:[%s3959_s1 + $0x3f0] sm:$0xff]  ;;  %v283_v55 = vld [vmem:[%s3959_s1 + $0x400] sm:$0xff]  ;;  %4051 = vst [vmem:[#allocation92_spill] sm:$0xff] %v2680_v8  ;;  %4052 = vst [vmem:[#allocation93_spill] sm:$0xff] %v2684_v23  ;;  %v2712_v23 = vmul.f32 %v1924_v43, %v1924_v43  ;;  %v2762_v33 = vsub.f32 %v138_v1, %v282_v42 }
  0x5f   :  { %v146_v62 = vld [vmem:[%s3958_s0 + $0x438] sm:$0xff]  ;;  %v147_v21 = vld [vmem:[%s3958_s0 + $0x440] sm:$0xff]  ;;  %v148_v0 = vld [vmem:[%s3958_s0 + $0x448] sm:$0xff]  ;;  %4053 = vst [vmem:[#allocation94_spill] sm:$0xff] %v2706_v31  ;;  %v2760_v36 = vsub.f32 %v137_v30, %v281_v44  ;;  %v2764_v38 = vsub.f32 %v139_v17, %v283_v55 }
  0x60   :  { %v284_v45 = vld [vmem:[%s3959_s1 + $0x408] sm:$0xff]  ;;  %v285_v41 = vld [vmem:[%s3959_s1 + $0x410] sm:$0xff]  ;;  %v286_v11 = vld [vmem:[%s3959_s1 + $0x418] sm:$0xff]  ;;  %4054 = vst [vmem:[#allocation95_spill] sm:$0xff] %v2708_v18 }
  0x61   :  { %4055 = vst [vmem:[#allocation96_spill] sm:$0xff] %v2712_v23  ;;  %v149_v8 = vld [vmem:[%s3958_s0 + $0x450] sm:$0xff]  ;;  %v150_v22 = vld [vmem:[%s3958_s0 + $0x458] sm:$0xff]  ;;  %v151_v10 = vld [vmem:[%s3958_s0 + $0x460] sm:$0xff]  ;;  %v2740_v23 = vmul.f32 %v1948_v53, %v1948_v53  ;;  %v2779_v1 = vsub.f32 %v140_v40, %v284_v45  ;;  %v2781_v17 = vsub.f32 %v141_v2, %v285_v41  ;;  %v2783_v44 = vsub.f32 %v142_v61, %v286_v11 }
  0x62   :  { %v287_v46 = vld [vmem:[%s3959_s1 + $0x420] sm:$0xff]  ;;  %v288_v43 = vld [vmem:[%s3959_s1 + $0x428] sm:$0xff]  ;;  %v289_v3 = vld [vmem:[%s3959_s1 + $0x430] sm:$0xff]  ;;  %4056 = vst [vmem:[#allocation97_spill] sm:$0xff] %v2732_v35  ;;  %v2806_v41 = vmul.f32 %v1976_v63, %v1976_v63 }
  0x63   :  { %4057 = vst [vmem:[#allocation98_spill] sm:$0xff] %v2734_v32  ;;  %4058 = vst [vmem:[#allocation99_spill] sm:$0xff] %v2736_v28  ;;  %v152_v18 = vld [vmem:[%s3958_s0 + $0x468] sm:$0xff]  ;;  %v153_v31 = vld [vmem:[%s3958_s0 + $0x470] sm:$0xff]  ;;  %v2798_v2 = vsub.f32 %v143_v52, %v287_v46  ;;  %v2800_v61 = vsub.f32 %v144_v13, %v288_v43  ;;  %v2802_v45 = vsub.f32 %v145_v54, %v289_v3 }
  0x64   :  { %4059 = vst [vmem:[#allocation100_spill] sm:$0xff] %v2740_v23  ;;  %v154_v20 = vld [vmem:[%s3958_s0 + $0x478] sm:$0xff]  ;;  %v291_v53 = vld [vmem:[%s3959_s1 + $0x440] sm:$0xff]  ;;  %v292_v37 = vld [vmem:[%s3959_s1 + $0x448] sm:$0xff]  ;;  %v2836_v43 = vmul.f32 %v2004_v9, %v2004_v9 }
  0x65   :  { %v290_v57 = vld [vmem:[%s3959_s1 + $0x438] sm:$0xff]  ;;  %4060 = vst [vmem:[#allocation101_spill] sm:$0xff] %v2764_v38  ;;  %v293_v32 = vld [vmem:[%s3959_s1 + $0x450] sm:$0xff]  ;;  %v295_v30 = vld [vmem:[%s3959_s1 + $0x460] sm:$0xff] }
  0x66   :  { %v4061_v23 = vld [vmem:[#allocation13_spill] sm:$0xff]  ;;  %4063 = vst [vmem:[#allocation102_spill] sm:$0xff] %v2781_v17  ;;  %4064 = vst [vmem:[#allocation103_spill] sm:$0xff] %v2783_v44  ;;  %v296_v55 = vld [vmem:[%s3959_s1 + $0x468] sm:$0xff]  ;;  %v2808_v11 = vsub.f32 %v146_v62, %v290_v57  ;;  %v2812_v44 = vsub.f32 %v148_v0, %v292_v37  ;;  %v2818_v52 = vsub.f32 %v149_v8, %v293_v32 }
  0x67   :  { %v2768_v28 = vmul.f32 %v4061_v23, %v4061_v23  ;;  %v294_v35 = vld [vmem:[%s3959_s1 + $0x458] sm:$0xff]  ;;  %4062 = vst [vmem:[#allocation13_spill] sm:$0xff] %v2779_v1  ;;  %v4065_v23 = vld [vmem:[#allocation14_spill] sm:$0xff]  ;;  %v297_v38 = vld [vmem:[%s3959_s1 + $0x470] sm:$0xff]  ;;  %v2822_v54 = vsub.f32 %v151_v10, %v295_v30  ;;  %v2828_v62 = vsub.f32 %v152_v18, %v296_v55  ;;  %v2848_v18 = vmul.f32 %v2032_v19, %v2032_v19 }
  0x68   :  { %v2787_v42 = vmul.f32 %v4065_v23, %v4065_v23  ;;  %v298_v40 = vld [vmem:[%s3959_s1 + $0x478] sm:$0xff]  ;;  %v2810_v23 = vsub.f32 %v147_v21, %v291_v53  ;;  %v4066_v17 = vld [vmem:[#allocation16_spill] sm:$0xff]  ;;  %v2820_v13 = vsub.f32 %v150_v22, %v294_v35  ;;  %v2830_v21 = vsub.f32 %v153_v31, %v297_v38  ;;  %v4068_v8 = vld [vmem:[#allocation19_spill] sm:$0xff] }
  0x69   :  { %v2816_v1 = vmul.f32 %v4066_v17, %v4066_v17  ;;  %v4067_v46 = vld [vmem:[#allocation17_spill] sm:$0xff]  ;;  %v2832_v0 = vsub.f32 %v154_v20, %v298_v40  ;;  %v2840_v22 = vmul.f32 %v4068_v8, %v4068_v8  ;;  %v4069_v10 = vld [vmem:[#allocation20_spill] sm:$0xff]  ;;  %v4070_v31 = vld [vmem:[#allocation22_spill] sm:$0xff]  ;;  %v2860_v20 = vmul.f32 %v2060_v29, %v2060_v29 }
  0x6a   :  { %v2826_v63 = vmul.f32 %v4067_v46, %v4067_v46  ;;  %v2844_v3 = vmul.f32 %v4069_v10, %v4069_v10  ;;  %v2852_v35 = vmul.f32 %v4070_v31, %v4070_v31  ;;  %v4071_v32 = vld [vmem:[#allocation23_spill] sm:$0xff]  ;;  %v4072_v57 = vld [vmem:[#allocation25_spill] sm:$0xff]  ;;  %v4074_v37 = vld [vmem:[#allocation26_spill] sm:$0xff]  ;;  %v2872_v38 = vmul.f32 %v2088_v39, %v2088_v39 }
  0x6b   :  { %v2856_v9 = vmul.f32 %v4071_v32, %v4071_v32  ;;  %v2864_v53 = vmul.f32 %v4072_v57, %v4072_v57  ;;  %v2868_v19 = vmul.f32 %v4074_v37, %v4074_v37  ;;  %v4077_v30 = vld [vmem:[#allocation28_spill] sm:$0xff]  ;;  %v4079_v55 = vld [vmem:[#allocation29_spill] sm:$0xff]  ;;  %v2884_v40 = vmul.f32 %v2116_v56, %v2116_v56  ;;  %v4082_v46 = vld [vmem:[#allocation31_spill] sm:$0xff] }
  0x6c   :  { %4076 = vst [vmem:[#allocation17_spill] sm:$0xff] %v2872_v38  ;;  %v2876_v17 = vmul.f32 %v4077_v30, %v4077_v30  ;;  %v2880_v29 = vmul.f32 %v4079_v55, %v4079_v55  ;;  %v2888_v8 = vmul.f32 %v4082_v46, %v4082_v46  ;;  %v4084_v10 = vld [vmem:[#allocation32_spill] sm:$0xff]  ;;  %v2896_v31 = vmul.f32 %v2144_v12, %v2144_v12  ;;  %v4087_v32 = vld [vmem:[#allocation34_spill] sm:$0xff]  ;;  %v4089_v37 = vld [vmem:[#allocation35_spill] sm:$0xff] }
  0x6d   :  { %4073 = vst [vmem:[#allocation14_spill] sm:$0xff] %v2864_v53  ;;  %4075 = vst [vmem:[#allocation16_spill] sm:$0xff] %v2868_v19  ;;  %v2892_v39 = vmul.f32 %v4084_v10, %v4084_v10  ;;  %v2900_v57 = vmul.f32 %v4087_v32, %v4087_v32  ;;  %v2904_v56 = vmul.f32 %v4089_v37, %v4089_v37  ;;  %v4092_v55 = vld [vmem:[#allocation37_spill] sm:$0xff]  ;;  %v4094_v10 = vld [vmem:[#allocation38_spill] sm:$0xff] }
  0x6e   :  { %4078 = vst [vmem:[#allocation19_spill] sm:$0xff] %v2876_v17  ;;  %4080 = vst [vmem:[#allocation20_spill] sm:$0xff] %v2880_v29  ;;  %v2908_v30 = vmul.f32 %v2172_v47, %v2172_v47  ;;  %v2912_v46 = vmul.f32 %v4092_v55, %v4092_v55  ;;  %v2916_v12 = vmul.f32 %v4094_v10, %v4094_v10  ;;  %v4121_v29 = vld [vmem:[#allocation62_spill] sm:$0xff]  ;;  %v4124_v17 = vld [vmem:[#allocation64_spill] sm:$0xff] }
  0x6f   :  { %4081 = vst [vmem:[#allocation22_spill] sm:$0xff] %v2884_v40  ;;  %4083 = vst [vmem:[#allocation23_spill] sm:$0xff] %v2888_v8  ;;  %v2920_v32 = vmul.f32 %v2200_v27, %v2200_v27  ;;  %v2932_v55 = vmul.f32 %v2228_v7, %v2228_v7  ;;  %v2952_v7 = vmul.f32 %v2284_v48, %v2284_v48  ;;  %v4116_v8 = vld [vmem:[#allocation59_spill] sm:$0xff]  ;;  %v4119_v40 = vld [vmem:[#allocation61_spill] sm:$0xff] }
  0x70   :  { %4085 = vst [vmem:[#allocation25_spill] sm:$0xff] %v2892_v39  ;;  %4086 = vst [vmem:[#allocation26_spill] sm:$0xff] %v2896_v31  ;;  %v4113_v31 = vld [vmem:[#allocation56_spill] sm:$0xff]  ;;  %v4114_v39 = vld [vmem:[#allocation58_spill] sm:$0xff] }
  0x71   :  { %4088 = vst [vmem:[#allocation28_spill] sm:$0xff] %v2900_v57  ;;  %4090 = vst [vmem:[#allocation29_spill] sm:$0xff] %v2904_v56  ;;  %v4097_v57 = vld [vmem:[#allocation40_spill] sm:$0xff]  ;;  %v4099_v56 = vld [vmem:[#allocation41_spill] sm:$0xff] }
  0x72   :  { %4091 = vst [vmem:[#allocation31_spill] sm:$0xff] %v2908_v30  ;;  %4093 = vst [vmem:[#allocation32_spill] sm:$0xff] %v2912_v46  ;;  %v2924_v37 = vmul.f32 %v4097_v57, %v4097_v57  ;;  %v2928_v47 = vmul.f32 %v4099_v56, %v4099_v56  ;;  %v4102_v46 = vld [vmem:[#allocation43_spill] sm:$0xff]  ;;  %v515_v57 = vmul.f32 %v2256_v51, %v2256_v51  ;;  %v4126_v38 = vld [vmem:[#allocation65_spill] sm:$0xff] }
  0x73   :  { %4095 = vst [vmem:[#allocation34_spill] sm:$0xff] %v2916_v12  ;;  %4096 = vst [vmem:[#allocation35_spill] sm:$0xff] %v2920_v32  ;;  %v2936_v10 = vmul.f32 %v4102_v46, %v4102_v46  ;;  %v4104_v12 = vld [vmem:[#allocation44_spill] sm:$0xff]  ;;  %v4107_v56 = vld [vmem:[#allocation47_spill] sm:$0xff]  ;;  %v2964_v51 = vmul.f32 %v2312_v49, %v2312_v49  ;;  %v2984_v49 = vmul.f32 %v4113_v31, %v4113_v31 }
  0x74   :  { %4098 = vst [vmem:[#allocation37_spill] sm:$0xff] %v2924_v37  ;;  %4100 = vst [vmem:[#allocation38_spill] sm:$0xff] %v2928_v47  ;;  %v2940_v27 = vmul.f32 %v4104_v12, %v4104_v12  ;;  %v4106_v37 = vld [vmem:[#allocation46_spill] sm:$0xff]  ;;  %v2948_v47 = vmul.f32 %v4107_v56, %v4107_v56  ;;  %v4108_v46 = vld [vmem:[#allocation49_spill] sm:$0xff]  ;;  %v3004_v31 = vmul.f32 %v4119_v40, %v4119_v40 }
  0x75   :  { %4101 = vst [vmem:[#allocation40_spill] sm:$0xff] %v2932_v55  ;;  %4103 = vst [vmem:[#allocation41_spill] sm:$0xff] %v2936_v10  ;;  %v516_v32 = vmul.f32 %v4106_v37, %v4106_v37  ;;  %v2956_v10 = vmul.f32 %v4108_v46, %v4108_v46  ;;  %v4109_v12 = vld [vmem:[#allocation50_spill] sm:$0xff]  ;;  %v4110_v37 = vld [vmem:[#allocation52_spill] sm:$0xff]  ;;  %v2976_v46 = vmul.f32 %v2340_v50, %v2340_v50 }
  0x76   :  { %4105 = vst [vmem:[#allocation43_spill] sm:$0xff] %v2940_v27  ;;  %v2960_v27 = vmul.f32 %v4109_v12, %v4109_v12  ;;  %v2968_v56 = vmul.f32 %v4110_v37, %v4110_v37  ;;  %v4111_v55 = vld [vmem:[#allocation53_spill] sm:$0xff]  ;;  %v4112_v30 = vld [vmem:[#allocation55_spill] sm:$0xff]  ;;  %v2988_v37 = vmul.f32 %v2368_v58, %v2368_v58  ;;  %v2996_v50 = vmul.f32 %v4116_v8, %v4116_v8  ;;  %v4172_v53 = vld [vmem:[#allocation98_spill] sm:$0xff] }
  0x77   :  { %v2972_v48 = vmul.f32 %v4111_v55, %v4111_v55  ;;  %v2980_v12 = vmul.f32 %v4112_v30, %v4112_v30  ;;  %v2992_v55 = vmul.f32 %v4114_v39, %v4114_v39  ;;  %v3000_v30 = vmul.f32 %v2396_v59, %v2396_v59  ;;  %4120 = vst [vmem:[#allocation49_spill] sm:$0xff] %v3004_v31  ;;  %v4129_v31 = vld [vmem:[#allocation67_spill] sm:$0xff]  ;;  %v4170_v19 = vld [vmem:[#allocation97_spill] sm:$0xff] }
  0x78   :  { %4117 = vst [vmem:[#allocation46_spill] sm:$0xff] %v2996_v50  ;;  %v3008_v58 = vmul.f32 %v4121_v29, %v4121_v29  ;;  %v3012_v39 = vmul.f32 %v2424_v60, %v2424_v60  ;;  %v3016_v8 = vmul.f32 %v4124_v17, %v4124_v17  ;;  %v3020_v59 = vmul.f32 %v4126_v38, %v4126_v38  ;;  %v4184_v50 = vld [vmem:[#allocation5_spill] sm:$0xff] }
  0x79   :  { %4115 = vst [vmem:[#allocation44_spill] sm:$0xff] %v2992_v55  ;;  %4118 = vst [vmem:[#allocation47_spill] sm:$0xff] %v3000_v30  ;;  %v3024_v40 = vmul.f32 %v2452_v4, %v2452_v4  ;;  %v3028_v29 = vmul.f32 %v4129_v31, %v4129_v31  ;;  %v3036_v17 = vmul.f32 %v2480_v5, %v2480_v5  ;;  %v4188_v55 = vld [vmem:[#allocation8_spill] sm:$0xff] }
  0x7a   :  { %4122 = vst [vmem:[#allocation50_spill] sm:$0xff] %v3008_v58  ;;  %4123 = vst [vmem:[#allocation52_spill] sm:$0xff] %v3012_v39  ;;  %v4131_v58 = vld [vmem:[#allocation68_spill] sm:$0xff]  ;;  %v3048_v31 = vmul.f32 %v2508_v6, %v2508_v6  ;;  %v4168_v39 = vld [vmem:[#allocation95_spill] sm:$0xff] }
  0x7b   :  { %4125 = vst [vmem:[#allocation53_spill] sm:$0xff] %v3016_v8  ;;  %4127 = vst [vmem:[#allocation55_spill] sm:$0xff] %v3020_v59  ;;  %v3032_v60 = vmul.f32 %v4131_v58, %v4131_v58  ;;  %v4134_v8 = vld [vmem:[#allocation70_spill] sm:$0xff]  ;;  %v4136_v59 = vld [vmem:[#allocation71_spill] sm:$0xff] }
  0x7c   :  { %4128 = vst [vmem:[#allocation56_spill] sm:$0xff] %v3024_v40  ;;  %4130 = vst [vmem:[#allocation58_spill] sm:$0xff] %v3028_v29  ;;  %v3040_v38 = vmul.f32 %v4134_v8, %v4134_v8  ;;  %v3044_v4 = vmul.f32 %v4136_v59, %v4136_v59  ;;  %v4139_v29 = vld [vmem:[#allocation73_spill] sm:$0xff]  ;;  %v3060_v8 = vmul.f32 %v2536_v14, %v2536_v14  ;;  %v4163_v40 = vld [vmem:[#allocation92_spill] sm:$0xff] }
  0x7d   :  { %4132 = vst [vmem:[#allocation59_spill] sm:$0xff] %v3032_v60  ;;  %4133 = vst [vmem:[#allocation61_spill] sm:$0xff] %v3036_v17  ;;  %v3052_v58 = vmul.f32 %v4139_v29, %v4139_v29  ;;  %v4141_v60 = vld [vmem:[#allocation74_spill] sm:$0xff]  ;;  %v3072_v29 = vmul.f32 %v2564_v15, %v2564_v15  ;;  %v554_v15 = vmul.f32 %v2620_v24, %v2620_v24  ;;  %v4158_v17 = vld [vmem:[#allocation89_spill] sm:$0xff] }
  0x7e   :  { %4135 = vst [vmem:[#allocation62_spill] sm:$0xff] %v3040_v38  ;;  %4137 = vst [vmem:[#allocation64_spill] sm:$0xff] %v3044_v4  ;;  %v3056_v5 = vmul.f32 %v4141_v60, %v4141_v60  ;;  %v4144_v38 = vld [vmem:[#allocation76_spill] sm:$0xff]  ;;  %v4146_v4 = vld [vmem:[#allocation77_spill] sm:$0xff] }
  0x7f   :  { %4138 = vst [vmem:[#allocation65_spill] sm:$0xff] %v3048_v31  ;;  %4140 = vst [vmem:[#allocation67_spill] sm:$0xff] %v3052_v58  ;;  %v3064_v59 = vmul.f32 %v4144_v38, %v4144_v38  ;;  %v3068_v6 = vmul.f32 %v4146_v4, %v4146_v4  ;;  %v4149_v58 = vld [vmem:[#allocation79_spill] sm:$0xff]  ;;  %v551_v38 = vmul.f32 %v2592_v16, %v2592_v16 }
  0x80   :  { %4142 = vst [vmem:[#allocation68_spill] sm:$0xff] %v3056_v5  ;;  %4143 = vst [vmem:[#allocation70_spill] sm:$0xff] %v3060_v8  ;;  %v3076_v60 = vmul.f32 %v4149_v58, %v4149_v58  ;;  %v4151_v5 = vld [vmem:[#allocation80_spill] sm:$0xff]  ;;  %v4154_v4 = vld [vmem:[#allocation83_spill] sm:$0xff] }
  0x81   :  { %4145 = vst [vmem:[#allocation71_spill] sm:$0xff] %v3064_v59  ;;  %4147 = vst [vmem:[#allocation73_spill] sm:$0xff] %v3068_v6  ;;  %v3080_v14 = vmul.f32 %v4151_v5, %v4151_v5  ;;  %v4153_v59 = vld [vmem:[#allocation82_spill] sm:$0xff]  ;;  %v553_v6 = vmul.f32 %v4154_v4, %v4154_v4  ;;  %v557_v5 = vmul.f32 %v2648_v25, %v2648_v25  ;;  %v4161_v24 = vld [vmem:[#allocation91_spill] sm:$0xff] }
  0x82   :  { %4148 = vst [vmem:[#allocation74_spill] sm:$0xff] %v3072_v29  ;;  %4150 = vst [vmem:[#allocation76_spill] sm:$0xff] %v3076_v60  ;;  %v552_v8 = vmul.f32 %v4153_v59, %v4153_v59  ;;  %v4155_v29 = vld [vmem:[#allocation85_spill] sm:$0xff]  ;;  %v4156_v60 = vld [vmem:[#allocation86_spill] sm:$0xff]  ;;  %v3100_v59 = vmul.f32 %v4158_v17, %v4158_v17  ;;  %v3104_v4 = vmul.f32 %v2676_v26, %v2676_v26 }
  0x83   :  { %4152 = vst [vmem:[#allocation77_spill] sm:$0xff] %v3080_v14  ;;  %v555_v58 = vmul.f32 %v4155_v29, %v4155_v29  ;;  %v556_v31 = vmul.f32 %v4156_v60, %v4156_v60  ;;  %v4157_v14 = vld [vmem:[#allocation88_spill] sm:$0xff]  ;;  %v3108_v29 = vmul.f32 %v4161_v24, %v4161_v24  ;;  %v3112_v60 = vmul.f32 %v4163_v40, %v4163_v40 }
  0x84   :  { %v558_v16 = vmul.f32 %v4157_v14, %v4157_v14  ;;  %4159 = vst [vmem:[#allocation79_spill] sm:$0xff] %v3100_v59  ;;  %4160 = vst [vmem:[#allocation80_spill] sm:$0xff] %v3104_v4  ;;  %v3116_v25 = vmul.f32 %v2704_v34, %v2704_v34  ;;  %v4166_v14 = vld [vmem:[#allocation94_spill] sm:$0xff]  ;;  %v3124_v26 = vmul.f32 %v4168_v39, %v4168_v39 }
  0x85   :  { %4162 = vst [vmem:[#allocation82_spill] sm:$0xff] %v3108_v29  ;;  %4164 = vst [vmem:[#allocation83_spill] sm:$0xff] %v3112_v60  ;;  %v3120_v17 = vmul.f32 %v4166_v14, %v4166_v14  ;;  %v3128_v24 = vmul.f32 %v4170_v19, %v4170_v19  ;;  %v3132_v40 = vmul.f32 %v4172_v53, %v4172_v53  ;;  %v4174_v60 = vld [vmem:[#allocation99_spill] sm:$0xff]  ;;  %v4182_v53 = vld [vmem:[#allocation4_spill] sm:$0xff] }
  0x86   :  { %4165 = vst [vmem:[#allocation85_spill] sm:$0xff] %v3116_v25  ;;  %4169 = vst [vmem:[#allocation88_spill] sm:$0xff] %v3124_v26  ;;  %v3136_v34 = vmul.f32 %v4174_v60, %v4174_v60  ;;  %v3140_v14 = vmul.f32 %v2760_v36, %v2760_v36  ;;  %v3144_v39 = vmul.f32 %v2762_v33, %v2762_v33  ;;  %v4178_v26 = vld [vmem:[#allocation2_spill] sm:$0xff]  ;;  %v4181_v25 = vld [vmem:[#allocation93_spill] sm:$0xff] }
  0x87   :  { %4167 = vst [vmem:[#allocation86_spill] sm:$0xff] %v3120_v17  ;;  %4171 = vst [vmem:[#allocation89_spill] sm:$0xff] %v3128_v24  ;;  %v4179_v17 = vld [vmem:[#allocation90_spill] sm:$0xff]  ;;  %v4180_v24 = vld [vmem:[#allocation3_spill] sm:$0xff] }
  0x88   :  { %4173 = vst [vmem:[#allocation91_spill] sm:$0xff] %v3132_v40  ;;  %4175 = vst [vmem:[#allocation92_spill] sm:$0xff] %v3136_v34  ;;  %v587_v19 = vadd.f32 %v4179_v17, %v4178_v26  ;;  %v596_v29 = vadd.f32 %v4181_v25, %v4180_v24  ;;  %v4183_v40 = vld [vmem:[#allocation96_spill] sm:$0xff]  ;;  %v4186_v4 = vld [vmem:[#allocation6_spill] sm:$0xff]  ;;  %v641_v17 = vadd.f32 %v2806_v41, %v4188_v55 }
  0x89   :  { %4176 = vst [vmem:[#allocation94_spill] sm:$0xff] %v3140_v14  ;;  %4177 = vst [vmem:[#allocation95_spill] sm:$0xff] %v3144_v39  ;;  %v605_v30 = vadd.f32 %v4183_v40, %v4182_v53  ;;  %v4185_v60 = vld [vmem:[#allocation100_spill] sm:$0xff]  ;;  %v623_v36 = vadd.f32 %v2768_v28, %v4186_v4  ;;  %v4187_v14 = vld [vmem:[#allocation7_spill] sm:$0xff] }
  0x8a   :  { %v614_v34 = vadd.f32 %v4185_v60, %v4184_v50  ;;  %v632_v59 = vadd.f32 %v2787_v42, %v4187_v14  ;;  %v588_v33 = vadd.f32 %v587_v19, %v515_v57  ;;  %v597_v39 = vadd.f32 %v596_v29, %v516_v32  ;;  %v4189_v26 = vld [vmem:[#allocation9_spill] sm:$0xff] }
  0x8b   :  { %v650_v25 = vadd.f32 %v2816_v1, %v4189_v26  ;;  %v606_v24 = vadd.f32 %v605_v30, %v2948_v47  ;;  %v624_v50 = vadd.f32 %v623_v36, %v2956_v10  ;;  %v642_v42 = vadd.f32 %v641_v17, %v2964_v51  ;;  %v4192_v36 = vld [vmem:[#allocation102_spill] sm:$0xff]  ;;  %v4193_v17 = vld [vmem:[#allocation103_spill] sm:$0xff] }
  0x8c   :  { %v615_v40 = vadd.f32 %v614_v34, %v2952_v7  ;;  %v633_v53 = vadd.f32 %v632_v59, %v2960_v27  ;;  %v589_v28 = vadd.f32 %v588_v33, %v551_v38  ;;  %v598_v4 = vadd.f32 %v597_v39, %v552_v8 }
  0x8d   :  { %v651_v32 = vadd.f32 %v650_v25, %v2968_v56  ;;  %v607_v57 = vadd.f32 %v606_v24, %v553_v6  ;;  %v625_v41 = vadd.f32 %v624_v50, %v555_v58  ;;  %v643_v19 = vadd.f32 %v642_v42, %v557_v5  ;;  %v4190_v6 = vld [vmem:[#allocation101_spill] sm:$0xff] }
  0x8e   :  { %v616_v29 = vadd.f32 %v615_v40, %v554_v15  ;;  %v634_v55 = vadd.f32 %v633_v53, %v556_v31  ;;  %v590_v14 = vrot.slane %v589_v28, 4  ;;  %v599_v1 = vrot.slane %v598_v4, 4  ;;  %v4191_v31 = vld [vmem:[#allocation13_spill] sm:$0xff] }
  0x8f   :  { %v652_v47 = vadd.f32 %v651_v32, %v558_v16  ;;  %v608_v30 = vrot.slane %v607_v57, 4  ;;  %v626_v34 = vrot.slane %v625_v41, 4  ;;  %v644_v38 = vrot.slane %v643_v19, 4 }
  0x90   :  { %v617_v7 = vrot.slane %v616_v29, 4  ;;  %v635_v10 = vrot.slane %v634_v55, 4  ;;  %v591_v60 = vadd.f32 %v590_v14, %v589_v28  ;;  %v600_v27 = vadd.f32 %v599_v1, %v598_v4 }
  0x91   :  { %v653_v8 = vrot.slane %v652_v47, 4  ;;  %v609_v59 = vadd.f32 %v608_v30, %v607_v57  ;;  %v627_v39 = vadd.f32 %v626_v34, %v625_v41  ;;  %v3170_v15 = vmul.f32 %v4190_v6, %v4190_v6  ;;  %v4195_v34 = vld [vmem:[#allocation11_spill] sm:$0xff] }
  0x92   :  { %v618_v51 = vadd.f32 %v617_v7, %v616_v29  ;;  %v636_v56 = vadd.f32 %v635_v10, %v634_v55  ;;  %v3174_v58 = vmul.f32 %v4191_v31, %v4191_v31  ;;  %v645_v5 = vadd.f32 %v644_v38, %v643_v19  ;;  %v4196_v10 = vld [vmem:[#allocation12_spill] sm:$0xff] }
  0x93   :  { %v654_v16 = vadd.f32 %v653_v8, %v652_v47  ;;  %v3178_v33 = vmul.f32 %v4192_v36, %v4192_v36  ;;  %v3182_v26 = vmul.f32 %v4193_v17, %v4193_v17  ;;  %v3186_v25 = vmul.f32 %v2798_v2, %v2798_v2  ;;  %v4198_v8 = vld [vmem:[#allocation18_spill] sm:$0xff]  ;;  %v4203_v17 = vld [vmem:[#allocation79_spill] sm:$0xff] }
  0x94   :  { %v3190_v24 = vmul.f32 %v2800_v61, %v2800_v61  ;;  %v3194_v40 = vmul.f32 %v2802_v45, %v2802_v45  ;;  %v3198_v50 = vmul.f32 %v2808_v11, %v2808_v11  ;;  %v592_v53 = vrot.slane %v591_v60, 2 }
  0x95   :  { %v601_v28 = vrot.slane %v600_v27, 2  ;;  %v610_v4 = vrot.slane %v609_v59, 2  ;;  %v619_v42 = vrot.slane %v618_v51, 2  ;;  %v628_v32 = vrot.slane %v627_v39, 2 }
  0x96   :  { %v637_v57 = vrot.slane %v636_v56, 2  ;;  %v3202_v2 = vmul.f32 %v2810_v23, %v2810_v23  ;;  %v3206_v61 = vmul.f32 %v2812_v44, %v2812_v44  ;;  %v646_v45 = vrot.slane %v645_v5, 2 }
  0x97   :  { %v655_v29 = vrot.slane %v654_v16, 2  ;;  %v3210_v11 = vmul.f32 %v2818_v52, %v2818_v52  ;;  %v3214_v41 = vmul.f32 %v2820_v13, %v2820_v13  ;;  %v3218_v55 = vmul.f32 %v2822_v54, %v2822_v54 }
  0x98   :  { %v3222_v23 = vmul.f32 %v2828_v62, %v2828_v62  ;;  %v3226_v44 = vmul.f32 %v2830_v21, %v2830_v21  ;;  %v3230_v52 = vmul.f32 %v2832_v0, %v2832_v0  ;;  %v593_v14 = vadd.f32 %v592_v53, %v591_v60  ;;  %v4194_v21 = vld [vmem:[#allocation10_spill] sm:$0xff]  ;;  %v4204_v53 = vld [vmem:[#allocation80_spill] sm:$0xff] }
  0x99   :  { %v602_v1 = vadd.f32 %v601_v28, %v600_v27  ;;  %v3232_v13 = vadd.f32 %v610_v4, %v609_v59  ;;  %v3234_v19 = vadd.f32 %v619_v42, %v618_v51  ;;  %v3236_v54 = vadd.f32 %v628_v32, %v627_v39  ;;  %v4197_v27 = vld [vmem:[#allocation15_spill] sm:$0xff]  ;;  %v4199_v51 = vld [vmem:[#allocation21_spill] sm:$0xff]  ;;  %v4205_v28 = vld [vmem:[#allocation46_spill] sm:$0xff] }
  0x9a   :  { %v3238_v47 = vadd.f32 %v637_v57, %v636_v56  ;;  %v3240_v62 = vadd.f32 %v646_v45, %v645_v5  ;;  %v3242_v30 = vadd.f32 %v655_v29, %v654_v16  ;;  %v659_v7 = vadd.f32 %v2826_v63, %v4194_v21  ;;  %v4200_v63 = vld [vmem:[#allocation24_spill] sm:$0xff]  ;;  %v4206_v4 = vld [vmem:[#allocation47_spill] sm:$0xff]  ;;  %v4209_v45 = vld [vmem:[#allocation85_spill] sm:$0xff] }
  0x9b   :  { %v668_v0 = vadd.f32 %v2836_v43, %v4195_v34  ;;  %v677_v60 = vadd.f32 %v2840_v22, %v4196_v10  ;;  %v686_v38 = vadd.f32 %v2844_v3, %v4197_v27  ;;  %v695_v59 = vadd.f32 %v2848_v18, %v4198_v8  ;;  %v4201_v43 = vld [vmem:[#allocation27_spill] sm:$0xff]  ;;  %v4202_v18 = vld [vmem:[#allocation44_spill] sm:$0xff]  ;;  %v4210_v29 = vld [vmem:[#allocation86_spill] sm:$0xff] }
  0x9c   :  { %v704_v39 = vadd.f32 %v2852_v35, %v4199_v51  ;;  %v660_v56 = vadd.f32 %v659_v7, %v2972_v48  ;;  %v713_v31 = vadd.f32 %v2856_v9, %v4200_v63  ;;  %v722_v5 = vadd.f32 %v2860_v20, %v4201_v43  ;;  %v4207_v9 = vld [vmem:[#allocation82_spill] sm:$0xff]  ;;  %v4208_v57 = vld [vmem:[#allocation83_spill] sm:$0xff]  ;;  %v4211_v7 = vld [vmem:[#allocation88_spill] sm:$0xff] }
  0x9d   :  { %v669_v6 = vadd.f32 %v668_v0, %v2976_v46  ;;  %v678_v22 = vadd.f32 %v677_v60, %v2980_v12  ;;  %v687_v3 = vadd.f32 %v686_v38, %v2984_v49  ;;  %v696_v16 = vadd.f32 %v695_v59, %v2988_v37  ;;  %v4212_v0 = vld [vmem:[#allocation89_spill] sm:$0xff] }
  0x9e   :  { %v705_v36 = vadd.f32 %v704_v39, %v4202_v18  ;;  %v661_v35 = vadd.f32 %v660_v56, %v4203_v17  ;;  %v714_v46 = vadd.f32 %v713_v31, %v4205_v28  ;;  %v723_v42 = vadd.f32 %v722_v5, %v4206_v4 }
  0x9f   :  { %v670_v48 = vadd.f32 %v669_v6, %v4204_v53  ;;  %v679_v32 = vadd.f32 %v678_v22, %v4207_v9  ;;  %v688_v20 = vadd.f32 %v687_v3, %v4208_v57  ;;  %v697_v12 = vadd.f32 %v696_v16, %v4209_v45 }
  0xa0   :  { %v706_v49 = vadd.f32 %v705_v36, %v4210_v29  ;;  %v662_v21 = vrot.slane %v661_v35, 4  ;;  %v715_v34 = vadd.f32 %v714_v46, %v4211_v7  ;;  %v724_v10 = vadd.f32 %v723_v42, %v4212_v0 }
  0xa1   :  { %v671_v37 = vrot.slane %v670_v48, 4  ;;  %v680_v60 = vrot.slane %v679_v32, 4  ;;  %v689_v27 = vrot.slane %v688_v20, 4  ;;  %v698_v38 = vrot.slane %v697_v12, 4 }
  0xa2   :  { %v707_v8 = vrot.slane %v706_v49, 4  ;;  %v663_v59 = vadd.f32 %v662_v21, %v661_v35  ;;  %v716_v39 = vrot.slane %v715_v34, 4  ;;  %v725_v56 = vrot.slane %v724_v10, 4 }
  0xa3   :  { %v672_v51 = vadd.f32 %v671_v37, %v670_v48  ;;  %v681_v6 = vadd.f32 %v680_v60, %v679_v32  ;;  %v690_v63 = vadd.f32 %v689_v27, %v688_v20  ;;  %v699_v31 = vadd.f32 %v698_v38, %v697_v12  ;;  %v4213_v60 = vld [vmem:[#allocation30_spill] sm:$0xff]  ;;  %v4215_v38 = vld [vmem:[#allocation33_spill] sm:$0xff] }
  0xa4   :  { %v708_v43 = vadd.f32 %v707_v8, %v706_v49  ;;  %v594_v5 = vrot.slane %v593_v14, 1  ;;  %v603_v22 = vrot.slane %v602_v1, 1  ;;  %v717_v3 = vadd.f32 %v716_v39, %v715_v34 }
  0xa5   :  { %v726_v16 = vadd.f32 %v725_v56, %v724_v10  ;;  %v612_v18 = vrot.slane %v3232_v13, 1  ;;  %v621_v36 = vrot.slane %v3234_v19, 1  ;;  %v630_v17 = vrot.slane %v3236_v54, 1  ;;  %v4219_v56 = vld [vmem:[#allocation39_spill] sm:$0xff] }
  0xa6   :  { %v639_v53 = vrot.slane %v3238_v47, 1  ;;  %v648_v35 = vrot.slane %v3240_v62, 1  ;;  %v657_v48 = vrot.slane %v3242_v30, 1  ;;  %v664_v28 = vrot.slane %v663_v59, 2 }
  0xa7   :  { %v673_v46 = vrot.slane %v672_v51, 2  ;;  %v682_v4 = vrot.slane %v681_v6, 2  ;;  %v691_v42 = vrot.slane %v690_v63, 2  ;;  %v700_v9 = vrot.slane %v699_v31, 2 }
  0xa8   :  { %v709_v32 = vrot.slane %v708_v43, 2  ;;  %v3282_v57 = vadd.f32 %v594_v5, %v593_v14  ;;  %v3284_v20 = vadd.f32 %v603_v22, %v602_v1  ;;  %v718_v45 = vrot.slane %v717_v3, 2  ;;  %v4222_v5 = vld [vmem:[#allocation20_spill] sm:$0xff]  ;;  %v4223_v22 = vld [vmem:[#allocation45_spill] sm:$0xff] }
  0xa9   :  { %v727_v12 = vrot.slane %v726_v16, 2  ;;  %v3287_v29 = vadd.f32 %v612_v18, %v3232_v13  ;;  %v3290_v49 = vadd.f32 %v621_v36, %v3234_v19  ;;  %v3293_v21 = vadd.f32 %v630_v17, %v3236_v54  ;;  %v4226_v17 = vld [vmem:[#allocation50_spill] sm:$0xff] }
  0xaa   :  { %v3296_v37 = vadd.f32 %v639_v53, %v3238_v47  ;;  %v3299_v7 = vadd.f32 %v648_v35, %v3240_v62  ;;  %v3302_v14 = vadd.f32 %v657_v48, %v3242_v30  ;;  %v665_v1 = vadd.f32 %v664_v28, %v663_v59  ;;  %v4214_v62 = vld [vmem:[#allocation14_spill] sm:$0xff]  ;;  %v4216_v30 = vld [vmem:[#allocation16_spill] sm:$0xff]  ;;  %v4228_v48 = vld [vmem:[#allocation23_spill] sm:$0xff] }
  0xab   :  { %v674_v34 = vadd.f32 %v673_v46, %v672_v51  ;;  %v3304_v0 = vadd.f32 %v682_v4, %v681_v6  ;;  %v3306_v13 = vadd.f32 %v691_v42, %v690_v63  ;;  %v3308_v19 = vadd.f32 %v700_v9, %v699_v31  ;;  %v4217_v59 = vld [vmem:[#allocation36_spill] sm:$0xff]  ;;  %v4218_v51 = vld [vmem:[#allocation17_spill] sm:$0xff]  ;;  %v4220_v6 = vld [vmem:[#allocation19_spill] sm:$0xff] }
  0xac   :  { %v3310_v10 = vadd.f32 %v709_v32, %v708_v43  ;;  %v3312_v54 = vadd.f32 %v718_v45, %v717_v3  ;;  %v3314_v47 = vadd.f32 %v727_v12, %v726_v16  ;;  %v731_v27 = vadd.f32 %v4214_v62, %v4213_v60  ;;  %v4221_v31 = vld [vmem:[#allocation42_spill] sm:$0xff]  ;;  %v4225_v16 = vld [vmem:[#allocation49_spill] sm:$0xff]  ;;  %v4227_v35 = vld [vmem:[#allocation48_spill] sm:$0xff] }
  0xad   :  { %v740_v8 = vadd.f32 %v4216_v30, %v4215_v38  ;;  %v749_v39 = vadd.f32 %v4218_v51, %v4217_v59  ;;  %v758_v63 = vadd.f32 %v4220_v6, %v4219_v56  ;;  %v767_v43 = vadd.f32 %v4222_v5, %v4221_v31  ;;  %v4224_v3 = vld [vmem:[#allocation22_spill] sm:$0xff]  ;;  %v4229_v46 = vld [vmem:[#allocation51_spill] sm:$0xff]  ;;  %v4230_v4 = vld [vmem:[#allocation25_spill] sm:$0xff] }
  0xae   :  { %v776_v18 = vadd.f32 %v4224_v3, %v4223_v22  ;;  %v732_v36 = vadd.f32 %v731_v27, %v4225_v16  ;;  %v785_v28 = vadd.f32 %v4228_v48, %v4227_v35  ;;  %v794_v42 = vadd.f32 %v4230_v4, %v4229_v46  ;;  %v4231_v9 = vld [vmem:[#allocation52_spill] sm:$0xff]  ;;  %v4232_v45 = vld [vmem:[#allocation53_spill] sm:$0xff]  ;;  %v4233_v60 = vld [vmem:[#allocation55_spill] sm:$0xff] }
  0xaf   :  { %v741_v53 = vadd.f32 %v740_v8, %v4226_v17  ;;  %v750_v32 = vadd.f32 %v749_v39, %v4231_v9  ;;  %v759_v12 = vadd.f32 %v758_v63, %v4232_v45  ;;  %v768_v62 = vadd.f32 %v767_v43, %v4233_v60  ;;  %v4234_v38 = vld [vmem:[#allocation56_spill] sm:$0xff]  ;;  %v4235_v59 = vld [vmem:[#allocation91_spill] sm:$0xff]  ;;  %v4237_v6 = vld [vmem:[#allocation58_spill] sm:$0xff] }
  0xb0   :  { %v777_v30 = vadd.f32 %v776_v18, %v4234_v38  ;;  %v733_v51 = vadd.f32 %v732_v36, %v4235_v59  ;;  %v4236_v56 = vld [vmem:[#allocation92_spill] sm:$0xff]  ;;  %v786_v8 = vadd.f32 %v785_v28, %v4237_v6  ;;  %v4238_v31 = vld [vmem:[#allocation59_spill] sm:$0xff]  ;;  %v4239_v22 = vld [vmem:[#allocation94_spill] sm:$0xff]  ;;  %v702_v59 = vrot.slane %v3308_v19, 1 }
  0xb1   :  { %v742_v27 = vadd.f32 %v741_v53, %v4236_v56  ;;  %v795_v5 = vadd.f32 %v794_v42, %v4238_v31  ;;  %v751_v3 = vadd.f32 %v750_v32, %v4239_v22  ;;  %v4240_v16 = vld [vmem:[#allocation95_spill] sm:$0xff]  ;;  %v769_v39 = vadd.f32 %v768_v62, %v3170_v15 }
  0xb2   :  { %v760_v17 = vadd.f32 %v759_v12, %v4240_v16  ;;  %v778_v63 = vadd.f32 %v777_v30, %v3174_v58  ;;  %v734_v35 = vrot.slane %v733_v51, 4  ;;  %v787_v18 = vadd.f32 %v786_v8, %v3178_v33 }
  0xb3   :  { %v743_v43 = vrot.slane %v742_v27, 4  ;;  %v796_v36 = vadd.f32 %v795_v5, %v3182_v26  ;;  %v752_v48 = vrot.slane %v751_v3, 4  ;;  %v770_v46 = vrot.slane %v769_v39, 4 }
  0xb4   :  { %v761_v53 = vrot.slane %v760_v17, 4  ;;  %v779_v28 = vrot.slane %v778_v63, 4  ;;  %v735_v4 = vadd.f32 %v734_v35, %v733_v51  ;;  %v788_v9 = vrot.slane %v787_v18, 4 }
  0xb5   :  { %v744_v42 = vadd.f32 %v743_v43, %v742_v27  ;;  %v797_v32 = vrot.slane %v796_v36, 4  ;;  %v753_v45 = vadd.f32 %v752_v48, %v751_v3  ;;  %v771_v60 = vadd.f32 %v770_v46, %v769_v39 }
  0xb6   :  { %v762_v12 = vadd.f32 %v761_v53, %v760_v17  ;;  %v780_v15 = vadd.f32 %v779_v28, %v778_v63  ;;  %v666_v62 = vrot.slane %v665_v1, 1  ;;  %v675_v58 = vrot.slane %v674_v34, 1 }
  0xb7   :  { %v789_v38 = vadd.f32 %v788_v9, %v787_v18  ;;  %v798_v30 = vadd.f32 %v797_v32, %v796_v36  ;;  %v684_v33 = vrot.slane %v3304_v0, 1  ;;  %v693_v26 = vrot.slane %v3306_v13, 1  ;;  %v4241_v9 = vld [vmem:[#allocation54_spill] sm:$0xff] }
  0xb8   :  { %v711_v56 = vrot.slane %v3310_v10, 1  ;;  %v720_v51 = vrot.slane %v3312_v54, 1  ;;  %v729_v27 = vrot.slane %v3314_v47, 1  ;;  %v736_v6 = vrot.slane %v735_v4, 2 }
  0xb9   :  { %v745_v8 = vrot.slane %v744_v42, 2  ;;  %v754_v31 = vrot.slane %v753_v45, 2  ;;  %v763_v5 = vrot.slane %v762_v12, 2  ;;  %v772_v22 = vrot.slane %v771_v60, 2 }
  0xba   :  { %v781_v3 = vrot.slane %v780_v15, 2  ;;  %v3354_v16 = vadd.f32 %v666_v62, %v665_v1  ;;  %v3356_v17 = vadd.f32 %v675_v58, %v674_v34  ;;  %v790_v39 = vrot.slane %v789_v38, 2  ;;  %v4243_v62 = vld [vmem:[#allocation57_spill] sm:$0xff] }
  0xbb   :  { %v799_v63 = vrot.slane %v798_v30, 2  ;;  %v3359_v35 = vadd.f32 %v684_v33, %v3304_v0  ;;  %v3362_v43 = vadd.f32 %v693_v26, %v3306_v13  ;;  %v3365_v18 = vadd.f32 %v702_v59, %v3308_v19  ;;  %v4247_v33 = vld [vmem:[#allocation63_spill] sm:$0xff]  ;;  %v4250_v59 = vld [vmem:[#allocation32_spill] sm:$0xff] }
  0xbc   :  { %v3368_v36 = vadd.f32 %v711_v56, %v3310_v10  ;;  %v3371_v48 = vadd.f32 %v720_v51, %v3312_v54  ;;  %v3374_v1 = vadd.f32 %v729_v27, %v3314_v47  ;;  %v737_v34 = vadd.f32 %v736_v6, %v735_v4  ;;  %v4242_v54 = vld [vmem:[#allocation26_spill] sm:$0xff]  ;;  %v4244_v47 = vld [vmem:[#allocation28_spill] sm:$0xff]  ;;  %v4251_v56 = vld [vmem:[#allocation69_spill] sm:$0xff] }
  0xbd   :  { %v746_v53 = vadd.f32 %v745_v8, %v744_v42  ;;  %v3376_v46 = vadd.f32 %v754_v31, %v753_v45  ;;  %v3378_v0 = vadd.f32 %v763_v5, %v762_v12  ;;  %v3380_v13 = vadd.f32 %v772_v22, %v771_v60  ;;  %v4245_v4 = vld [vmem:[#allocation60_spill] sm:$0xff]  ;;  %v4246_v42 = vld [vmem:[#allocation29_spill] sm:$0xff]  ;;  %v4248_v12 = vld [vmem:[#allocation31_spill] sm:$0xff] }
  0xbe   :  { %v3382_v28 = vadd.f32 %v781_v3, %v780_v15  ;;  %v3384_v19 = vadd.f32 %v790_v39, %v789_v38  ;;  %v3386_v10 = vadd.f32 %v799_v63, %v798_v30  ;;  %v803_v32 = vadd.f32 %v4242_v54, %v4241_v9  ;;  %v4249_v60 = vld [vmem:[#allocation66_spill] sm:$0xff]  ;;  %v4253_v30 = vld [vmem:[#allocation61_spill] sm:$0xff]  ;;  %v4255_v31 = vld [vmem:[#allocation72_spill] sm:$0xff] }
  0xbf   :  { %v812_v58 = vadd.f32 %v4244_v47, %v4243_v62  ;;  %v821_v45 = vadd.f32 %v4246_v42, %v4245_v4  ;;  %v830_v26 = vadd.f32 %v4248_v12, %v4247_v33  ;;  %v839_v15 = vadd.f32 %v4250_v59, %v4249_v60  ;;  %v4252_v38 = vld [vmem:[#allocation34_spill] sm:$0xff]  ;;  %v4256_v5 = vld [vmem:[#allocation35_spill] sm:$0xff]  ;;  %v4258_v39 = vld [vmem:[#allocation37_spill] sm:$0xff] }
  0xc0   :  { %v848_v51 = vadd.f32 %v4252_v38, %v4251_v56  ;;  %v804_v27 = vadd.f32 %v803_v32, %v4253_v30  ;;  %v4254_v6 = vld [vmem:[#allocation62_spill] sm:$0xff]  ;;  %v857_v22 = vadd.f32 %v4256_v5, %v4255_v31  ;;  %v4257_v3 = vld [vmem:[#allocation75_spill] sm:$0xff]  ;;  %v4259_v9 = vld [vmem:[#allocation64_spill] sm:$0xff]  ;;  %1438 = vrsqrt.f32 %v3282_v57 }
  0xc1   :  { %v813_v8 = vadd.f32 %v812_v58, %v4254_v6  ;;  %v866_v63 = vadd.f32 %v4258_v39, %v4257_v3  ;;  %v822_v54 = vadd.f32 %v821_v45, %v4259_v9  ;;  %v4260_v62 = vld [vmem:[#allocation65_spill] sm:$0xff]  ;;  %v4261_v4 = vld [vmem:[#allocation67_spill] sm:$0xff]  ;;  %v4262_v33 = vld [vmem:[#allocation68_spill] sm:$0xff]  ;;  %1440 = vrsqrt.f32 %v3284_v20 }
  0xc2   :  { %v831_v47 = vadd.f32 %v830_v26, %v4260_v62  ;;  %v840_v42 = vadd.f32 %v839_v15, %v4261_v4  ;;  %v849_v12 = vadd.f32 %v848_v51, %v4262_v33  ;;  %v805_v60 = vadd.f32 %v804_v27, %v3186_v25  ;;  %v4263_v59 = vld [vmem:[#allocation70_spill] sm:$0xff]  ;;  %v4264_v56 = vld [vmem:[#allocation71_spill] sm:$0xff] }
  0xc3   :  { %v814_v32 = vadd.f32 %v813_v8, %v3190_v24  ;;  %v858_v58 = vadd.f32 %v857_v22, %v4263_v59  ;;  %v867_v38 = vadd.f32 %v866_v63, %v4264_v56  ;;  %v823_v30 = vadd.f32 %v822_v54, %v3194_v40 }
  0xc4   :  { %v832_v6 = vadd.f32 %v831_v47, %v3198_v50  ;;  %v841_v45 = vadd.f32 %v840_v42, %v3202_v2  ;;  %v850_v26 = vadd.f32 %v849_v12, %v3206_v61  ;;  %v806_v31 = vrot.slane %v805_v60, 4 }
  0xc5   :  { %v815_v15 = vrot.slane %v814_v32, 4  ;;  %v859_v51 = vadd.f32 %v858_v58, %v3210_v11  ;;  %v868_v25 = vadd.f32 %v867_v38, %v3214_v41  ;;  %v824_v27 = vrot.slane %v823_v30, 4 }
  0xc6   :  { %v833_v24 = vrot.slane %v832_v6, 4  ;;  %v842_v8 = vrot.slane %v841_v45, 4  ;;  %v851_v5 = vrot.slane %v850_v26, 4  ;;  %v807_v22 = vadd.f32 %v806_v31, %v805_v60 }
  0xc7   :  { %v816_v3 = vadd.f32 %v815_v15, %v814_v32  ;;  %v860_v39 = vrot.slane %v859_v51, 4  ;;  %v869_v40 = vrot.slane %v868_v25, 4  ;;  %v825_v63 = vadd.f32 %v824_v27, %v823_v30 }
  0xc8   :  { %v834_v50 = vadd.f32 %v833_v24, %v832_v6  ;;  %v843_v9 = vadd.f32 %v842_v8, %v841_v45  ;;  %v852_v2 = vadd.f32 %v851_v5, %v850_v26  ;;  %v738_v54 = vrot.slane %v737_v34, 1 }
  0xc9   :  { %v747_v61 = vrot.slane %v746_v53, 1  ;;  %v808_v62 = vrot.slane %v807_v22, 2  ;;  %v817_v47 = vrot.slane %v816_v3, 2  ;;  %v756_v11 = vrot.slane %v3376_v46, 1 }
  0xca   :  { %v765_v41 = vrot.slane %v3378_v0, 1  ;;  %v774_v4 = vrot.slane %v3380_v13, 1  ;;  %v861_v42 = vadd.f32 %v860_v39, %v859_v51  ;;  %v783_v33 = vrot.slane %v3382_v28, 1  ;;  %v4265_v39 = vld [vmem:[#allocation78_spill] sm:$0xff] }
  0xcb   :  { %v792_v12 = vrot.slane %v3384_v19, 1  ;;  %v826_v60 = vrot.slane %v825_v63, 2  ;;  %v870_v32 = vadd.f32 %v869_v40, %v868_v25  ;;  %v801_v59 = vrot.slane %v3386_v10, 1 }
  0xcc   :  { %v835_v58 = vrot.slane %v834_v50, 2  ;;  %v844_v56 = vrot.slane %v843_v9, 2  ;;  %v853_v38 = vrot.slane %v852_v2, 2  ;;  %v3426_v30 = vadd.f32 %v738_v54, %v737_v34  ;;  %v4267_v54 = vld [vmem:[#allocation81_spill] sm:$0xff] }
  0xcd   :  { %v3428_v6 = vadd.f32 %v747_v61, %v746_v53  ;;  %v809_v45 = vadd.f32 %v808_v62, %v807_v22  ;;  %v818_v26 = vadd.f32 %v817_v47, %v816_v3  ;;  %v3431_v31 = vadd.f32 %v756_v11, %v3376_v46  ;;  %v4268_v61 = vld [vmem:[#allocation40_spill] sm:$0xff] }
  0xce   :  { %v3434_v15 = vadd.f32 %v765_v41, %v3378_v0  ;;  %v3437_v51 = vadd.f32 %v774_v4, %v3380_v13  ;;  %v862_v25 = vrot.slane %v861_v42, 2  ;;  %v3440_v27 = vadd.f32 %v783_v33, %v3382_v28  ;;  %v4266_v13 = vld [vmem:[#allocation38_spill] sm:$0xff]  ;;  %v4269_v47 = vld [vmem:[#allocation84_spill] sm:$0xff]  ;;  %v4272_v41 = vld [vmem:[#allocation43_spill] sm:$0xff] }
  0xcf   :  { %v3443_v34 = vadd.f32 %v792_v12, %v3384_v19  ;;  %v827_v53 = vadd.f32 %v826_v60, %v825_v63  ;;  %v871_v24 = vrot.slane %v870_v32, 2  ;;  %v3446_v8 = vadd.f32 %v801_v59, %v3386_v10  ;;  %v4270_v19 = vld [vmem:[#allocation41_spill] sm:$0xff]  ;;  %v4271_v63 = vld [vmem:[#allocation87_spill] sm:$0xff]  ;;  %v4274_v33 = vld [vmem:[#allocation74_spill] sm:$0xff] }
  0xd0   :  { %v836_v46 = vadd.f32 %v835_v58, %v834_v50  ;;  %v845_v5 = vadd.f32 %v844_v56, %v843_v9  ;;  %v854_v22 = vadd.f32 %v853_v38, %v852_v2  ;;  %v810_v0 = vrot.slane %v809_v45, 1  ;;  %v4273_v9 = vld [vmem:[#allocation73_spill] sm:$0xff]  ;;  %v4275_v59 = vld [vmem:[#allocation76_spill] sm:$0xff] }
  0xd1   :  { %v819_v3 = vrot.slane %v818_v26, 1  ;;  %v875_v40 = vadd.f32 %v4266_v13, %v4265_v39  ;;  %v884_v28 = vadd.f32 %v4268_v61, %v4267_v54  ;;  %v863_v62 = vadd.f32 %v862_v25, %v861_v42  ;;  %v4276_v56 = vld [vmem:[#allocation77_spill] sm:$0xff] }
  0xd2   :  { %v893_v11 = vadd.f32 %v4270_v19, %v4269_v47  ;;  %v902_v4 = vadd.f32 %v4272_v41, %v4271_v63  ;;  %v828_v10 = vrot.slane %v827_v53, 1  ;;  %v872_v50 = vadd.f32 %v871_v24, %v870_v32 }
  0xd3   :  { %v876_v2 = vadd.f32 %v875_v40, %v4273_v9  ;;  %v885_v12 = vadd.f32 %v884_v28, %v4274_v33  ;;  %v837_v60 = vrot.slane %v836_v46, 1  ;;  %v846_v42 = vrot.slane %v845_v5, 1 }
  0xd4   :  { %v894_v58 = vadd.f32 %v893_v11, %v4275_v59  ;;  %v903_v38 = vadd.f32 %v902_v4, %v4276_v56  ;;  %v855_v25 = vrot.slane %v854_v22, 1  ;;  %v3464_v54 = vadd.f32 %v810_v0, %v809_v45 }
  0xd5   :  { %v877_v39 = vadd.f32 %v876_v2, %v3218_v55  ;;  %v886_v13 = vadd.f32 %v885_v12, %v3222_v23  ;;  %1442 = vrsqrt.f32 %v3287_v29  ;;  %v3469_v40 = vadd.f32 %v819_v3, %v818_v26  ;;  %v1439_v2 = vpop.eup %1438 }
  0xd6   :  { %v895_v32 = vadd.f32 %v894_v58, %v3226_v44  ;;  %v904_v24 = vadd.f32 %v903_v38, %v3230_v52  ;;  %v864_v61 = vrot.slane %v863_v62, 1  ;;  %v873_v19 = vrot.slane %v872_v50, 1 }
  0xd7   :  { %v878_v28 = vrot.slane %v877_v39, 4  ;;  %v887_v47 = vrot.slane %v886_v13, 4  ;;  %1444 = vrsqrt.f32 %v3290_v49  ;;  %v3472_v55 = vadd.f32 %v828_v10, %v827_v53 }
  0xd8   :  { %v896_v11 = vrot.slane %v895_v32, 4  ;;  %v905_v63 = vrot.slane %v904_v24, 4  ;;  %v3474_v23 = vadd.f32 %v837_v60, %v836_v46  ;;  %v3476_v0 = vadd.f32 %v846_v42, %v845_v5 }
  0xd9   :  { %v879_v45 = vadd.f32 %v878_v28, %v877_v39  ;;  %v888_v44 = vadd.f32 %v887_v47, %v886_v13  ;;  %1446 = vrsqrt.f32 %v3293_v21  ;;  %v3479_v26 = vadd.f32 %v855_v25, %v854_v22  ;;  %v1441_v22 = vpop.eup %1440 }
  0xda   :  { %v897_v52 = vadd.f32 %v896_v11, %v895_v32  ;;  %v906_v41 = vadd.f32 %v905_v63, %v904_v24  ;;  %v3481_v3 = vadd.f32 %v864_v61, %v863_v62  ;;  %v3483_v33 = vadd.f32 %v873_v19, %v872_v50 }
  0xdb   :  { %v880_v4 = vrot.slane %v879_v45, 2  ;;  %v889_v9 = vrot.slane %v888_v44, 2  ;;  %1448 = vrsqrt.f32 %v3296_v37  ;;  %vm913_vm0 = vcmp.eq.f32.partialorder %v3282_v57, inf }
  0xdc   :  { %v898_v53 = vrot.slane %v897_v52, 2  ;;  %v907_v46 = vrot.slane %v906_v41, 2  ;;  %vm915_vm1 = vcmp.eq.f32.partialorder %v3282_v57, 0.0  ;;  %v916_v5 = vand.u32 2147483648, %v3282_v57 }
  0xdd   :  { %vm920_vm2 = vcmp.eq.f32.partialorder %v3284_v20, inf  ;;  %v881_v62 = vadd.f32 %v880_v4, %v879_v45  ;;  %v912_v10 = vmul.f32 %v1439_v2, %v3282_v57  ;;  %vm922_vm3 = vcmp.eq.f32.partialorder %v3284_v20, 0.0 }
  0xde   :  { %1450 = vrsqrt.f32 %v3299_v7  ;;  %v890_v50 = vadd.f32 %v889_v9, %v888_v44  ;;  %v899_v12 = vadd.f32 %v898_v53, %v897_v52  ;;  %v908_v60 = vadd.f32 %v907_v46, %v906_v41 }
  0xdf   :  { %v923_v59 = vand.u32 2147483648, %v3284_v20  ;;  %v1443_v58 = vpop.eup %1442  ;;  %vm927_vm4 = vcmp.eq.f32.partialorder %v3287_v29, inf  ;;  %vm929_vm5 = vcmp.eq.f32.partialorder %v3287_v29, 0.0  ;;  %v930_v56 = vand.u32 2147483648, %v3287_v29 }
  0xe0   :  { %vm934_vm6 = vcmp.eq.f32.partialorder %v3290_v49, inf  ;;  %v919_v38 = vmul.f32 %v1441_v22, %v3284_v20  ;;  %vm936_vm7 = vcmp.eq.f32.partialorder %v3290_v49, 0.0  ;;  %v937_v42 = vand.u32 2147483648, %v3290_v49 }
  0xe1   :  { %vm941_vm8 = vcmp.eq.f32.partialorder %v3293_v21, inf  ;;  %v1445_v25 = vpop.eup %1444  ;;  %v882_v39 = vrot.slane %v881_v62, 1  ;;  %v914_v13 = vsel %vm913_vm0, %v3282_v57, %v912_v10  ;;  %v926_v32 = vmul.f32 %v1443_v58, %v3287_v29 }
  0xe2   :  { %vm943_vm9 = vcmp.eq.f32.partialorder %v3293_v21, 0.0  ;;  %v891_v24 = vrot.slane %v890_v50, 1  ;;  %v900_v61 = vrot.slane %v899_v12, 1  ;;  %v909_v28 = vrot.slane %v908_v60, 1 }
  0xe3   :  { %1452 = vrsqrt.f32 %v3302_v14  ;;  %v1447_v47 = vpop.eup %1446  ;;  %v933_v19 = vmul.f32 %v1445_v25, %v3290_v49  ;;  %v944_v11 = vand.u32 2147483648, %v3293_v21  ;;  %vm948_vm10 = vcmp.eq.f32.partialorder %v3296_v37, inf }
  0xe4   :  { %vm950_vm11 = vcmp.eq.f32.partialorder %v3296_v37, 0.0  ;;  %v3514_v63 = vsel %vm915_vm1, %v916_v5, %v914_v13  ;;  %v921_v45 = vsel %vm920_vm2, %v3284_v20, %v919_v38  ;;  %v951_v44 = vand.u32 2147483648, %v3296_v37 }
  0xe5   :  { %1454 = vrsqrt.f32 %v3354_v16  ;;  %v1449_v52 = vpop.eup %1448  ;;  %v928_v41 = vsel %vm927_vm4, %v3287_v29, %v926_v32  ;;  %v940_v4 = vmul.f32 %v1447_v47, %v3293_v21  ;;  %vm955_vm12 = vcmp.eq.f32.partialorder %v3299_v7, inf }
  0xe6   :  { %1456 = vrsqrt.f32 %v3356_v17  ;;  %v3527_v57 = vadd.f32 %v882_v39, %v881_v62  ;;  %v3529_v9 = vadd.f32 %v891_v24, %v890_v50  ;;  %v3531_v2 = vadd.f32 %v900_v61, %v899_v12 }
  0xe7   :  { %v3533_v53 = vadd.f32 %v909_v28, %v908_v60  ;;  %v3537_v5 = vsel %vm922_vm3, %v923_v59, %v921_v45  ;;  %v935_v22 = vsel %vm934_vm6, %v3290_v49, %v933_v19  ;;  %v947_v10 = vmul.f32 %v1449_v52, %v3296_v37 }
  0xe8   :  { %v1451_v46 = vpop.eup %1450  ;;  %1458 = vrsqrt.f32 %v3359_v35  ;;  %v3546_v62 = vsel %vm929_vm5, %v930_v56, %v928_v41  ;;  %vm957_vm13 = vcmp.eq.f32.partialorder %v3299_v7, 0.0  ;;  %v958_v20 = vand.u32 2147483648, %v3299_v7 }
  0xe9   :  { %v954_v50 = vmul.f32 %v1451_v46, %v3299_v7  ;;  %v942_v12 = vsel %vm941_vm8, %v3293_v21, %v940_v4  ;;  %vm962_vm14 = vcmp.eq.f32.partialorder %v3302_v14, inf  ;;  %vm964_vm15 = vcmp.eq.f32.partialorder %v3302_v14, 0.0 }
  0xea   :  { %1460 = vrsqrt.f32 %v3362_v43  ;;  %v3559_v29 = vsel %vm936_vm7, %v937_v42, %v935_v22  ;;  %v965_v60 = vand.u32 2147483648, %v3302_v14  ;;  %vm969_vm0 = vcmp.eq.f32.partialorder %v3354_v16, inf }
  0xeb   :  { %1462 = vrsqrt.f32 %v3365_v18  ;;  %v949_v59 = vsel %vm948_vm10, %v3296_v37, %v947_v10  ;;  %vm971_vm1 = vcmp.eq.f32.partialorder %v3354_v16, 0.0  ;;  %v972_v58 = vand.u32 2147483648, %v3354_v16 }
  0xec   :  { %vm976_vm2 = vcmp.eq.f32.partialorder %v3356_v17, inf  ;;  %1464 = vrsqrt.f32 %v3368_v36  ;;  %v3573_v56 = vsel %vm943_vm9, %v944_v11, %v942_v12  ;;  %v956_v38 = vsel %vm955_vm12, %v3299_v7, %v954_v50 }
  0xed   :  { %v1453_v49 = vpop.eup %1452  ;;  %vm978_vm3 = vcmp.eq.f32.partialorder %v3356_v17, 0.0  ;;  %v979_v42 = vand.u32 2147483648, %v3356_v17  ;;  %1466 = vrsqrt.f32 %v3371_v48  ;;  %vm983_vm4 = vcmp.eq.f32.partialorder %v3359_v35, inf }
  0xee   :  { %v961_v25 = vmul.f32 %v1453_v49, %v3302_v14  ;;  %vm985_vm5 = vcmp.eq.f32.partialorder %v3359_v35, 0.0  ;;  %v986_v21 = vand.u32 2147483648, %v3359_v35  ;;  %v3587_v13 = vsel %vm950_vm11, %v951_v44, %v949_v59 }
  0xef   :  { %v1455_v39 = vpop.eup %1454  ;;  %vm990_vm6 = vcmp.eq.f32.partialorder %v3362_v43, inf  ;;  %v993_v32 = vand.u32 2147483648, %v3362_v43  ;;  %1468 = vrsqrt.f32 %v3374_v1  ;;  %v3594_v61 = vsel %vm957_vm13, %v958_v20, %v956_v38 }
  0xf0   :  { %v1457_v24 = vpop.eup %1456  ;;  %v968_v28 = vmul.f32 %v1455_v39, %v3354_v16  ;;  %vm992_vm7 = vcmp.eq.f32.partialorder %v3362_v43, 0.0  ;;  %vm997_vm8 = vcmp.eq.f32.partialorder %v3365_v18, inf  ;;  %1470 = vrsqrt.f32 %v3426_v30 }
  0xf1   :  { %v975_v37 = vmul.f32 %v1457_v24, %v3356_v17  ;;  %v1000_v47 = vand.u32 2147483648, %v3365_v18  ;;  %vm1004_vm10 = vcmp.eq.f32.partialorder %v3368_v36, inf  ;;  %v963_v7 = vsel %vm962_vm14, %v3302_v14, %v961_v25 }
  0xf2   :  { %v1459_v19 = vpop.eup %1458  ;;  %vm1006_vm11 = vcmp.eq.f32.partialorder %v3368_v36, 0.0  ;;  %v1007_v11 = vand.u32 2147483648, %v3368_v36  ;;  %vm1011_vm12 = vcmp.eq.f32.partialorder %v3371_v48, inf  ;;  %1472 = vrsqrt.f32 %v3428_v6 }
  0xf3   :  { %v982_v45 = vmul.f32 %v1459_v19, %v3359_v35  ;;  %v1014_v44 = vand.u32 2147483648, %v3371_v48  ;;  %vm1018_vm9 = vcmp.eq.f32.partialorder %v3374_v1, inf  ;;  %v970_v41 = vsel %vm969_vm0, %v3354_v16, %v968_v28 }
  0xf4   :  { %v1461_v52 = vpop.eup %1460  ;;  %v1021_v4 = vand.u32 2147483648, %v3374_v1  ;;  %vm1025_vm14 = vcmp.eq.f32.partialorder %v3426_v30, inf  ;;  %1474 = vrsqrt.f32 %v3431_v31  ;;  %v3623_v22 = vsel %vm964_vm15, %v965_v60, %v963_v7 }
  0xf5   :  { %v1463_v46 = vpop.eup %1462  ;;  %v977_v10 = vsel %vm976_vm2, %v3356_v17, %v975_v37  ;;  %v989_v50 = vmul.f32 %v1461_v52, %v3362_v43  ;;  %vm1020_vm13 = vcmp.eq.f32.partialorder %v3374_v1, 0.0  ;;  %1476 = vrsqrt.f32 %v3434_v15 }
  0xf6   :  { %v1465_v20 = vpop.eup %1464  ;;  %v984_v12 = vsel %vm983_vm4, %v3359_v35, %v982_v45  ;;  %v996_v59 = vmul.f32 %v1463_v46, %v3365_v18  ;;  %vm1027_vm15 = vcmp.eq.f32.partialorder %v3426_v30, 0.0  ;;  %v1028_v14 = vand.u32 2147483648, %v3426_v30 }
  0xf7   :  { %vm1032_vm0 = vcmp.eq.f32.partialorder %v3428_v6, inf  ;;  %v1467_v60 = vpop.eup %1466  ;;  %v3640_v49 = vsel %vm971_vm1, %v972_v58, %v970_v41  ;;  %v1003_v38 = vmul.f32 %v1465_v20, %v3368_v36  ;;  %v1035_v25 = vand.u32 2147483648, %v3428_v6 }
  0xf8   :  { %1478 = vrsqrt.f32 %v3437_v51  ;;  %v3647_v39 = vsel %vm978_vm3, %v979_v42, %v977_v10  ;;  %v991_v24 = vsel %vm990_vm6, %v3362_v43, %v989_v50  ;;  %v1010_v28 = vmul.f32 %v1467_v60, %v3371_v48 }
  0xf9   :  { %vm1034_vm2 = vcmp.eq.f32.partialorder %v3428_v6, 0.0  ;;  %vm1039_vm1 = vcmp.eq.f32.partialorder %v3431_v31, inf  ;;  %v1469_v16 = vpop.eup %1468  ;;  %v3657_v58 = vsel %vm985_vm5, %v986_v21, %v984_v12  ;;  %v998_v17 = vsel %vm997_vm8, %v3365_v18, %v996_v59 }
  0xfa   :  { %vm1041_vm3 = vcmp.eq.f32.partialorder %v3431_v31, 0.0  ;;  %v1042_v42 = vand.u32 2147483648, %v3431_v31  ;;  %vm1046_vm4 = vcmp.eq.f32.partialorder %v3434_v15, inf  ;;  %v1471_v37 = vpop.eup %1470  ;;  %v1005_v19 = vsel %vm1004_vm10, %v3368_v36, %v1003_v38 }
  0xfb   :  { %v1017_v7 = vmul.f32 %v1469_v16, %v3374_v1  ;;  %vm1048_vm5 = vcmp.eq.f32.partialorder %v3434_v15, 0.0  ;;  %1480 = vrsqrt.f32 %v3440_v27  ;;  %v3673_v35 = vsel %vm992_vm7, %v993_v32, %v991_v24 }
  0xfc   :  { %v1012_v21 = vsel %vm1011_vm12, %v3371_v48, %v1010_v28  ;;  %v1024_v45 = vmul.f32 %v1471_v37, %v3426_v30  ;;  %v1049_v52 = vand.u32 2147483648, %v3434_v15  ;;  %v1473_v41 = vpop.eup %1472  ;;  %vm4277_vm6 = vcmp.eq.f32.partialorder %v3365_v18, 0.0 }
  0xfd   :  { %v3682_v46 = vsel %vm4277_vm6, %v1000_v47, %v998_v17  ;;  %vm1053_vm8 = vcmp.eq.f32.partialorder %v3437_v51, inf  ;;  %vm1055_vm10 = vcmp.eq.f32.partialorder %v3437_v51, 0.0  ;;  %1482 = vrsqrt.f32 %v3443_v34 }
  0xfe   :  { %v3689_v43 = vsel %vm1006_vm11, %v1007_v11, %v1005_v19  ;;  %v1019_v32 = vsel %vm1018_vm9, %v3374_v1, %v1017_v7  ;;  %v1031_v10 = vmul.f32 %v1473_v41, %v3428_v6  ;;  %v1056_v18 = vand.u32 2147483648, %v3437_v51  ;;  %v1475_v47 = vpop.eup %1474 }
  0xff   :  { %vm4278_vm7 = vcmp.eq.f32.partialorder %v3371_v48, 0.0  ;;  %v1026_v20 = vsel %vm1025_vm14, %v3426_v30, %v1024_v45  ;;  %vm1060_vm11 = vcmp.eq.f32.partialorder %v3440_v27, inf  ;;  %1484 = vrsqrt.f32 %v3446_v8  ;;  %v1477_v36 = vpop.eup %1476 }
 0x100   :  { %v3698_v50 = vsel %vm4278_vm7, %v1014_v44, %v1012_v21  ;;  %v1038_v11 = vmul.f32 %v1475_v47, %v3431_v31  ;;  %vm1062_vm9 = vcmp.eq.f32.partialorder %v3440_v27, 0.0  ;;  %v1063_v12 = vand.u32 2147483648, %v3440_v27 }
 0x101   :  { %vm1067_vm12 = vcmp.eq.f32.partialorder %v3443_v34, inf  ;;  %v3711_v48 = vsel %vm1020_vm13, %v1021_v4, %v1019_v32  ;;  %v1033_v44 = vsel %vm1032_vm0, %v3428_v6, %v1031_v10  ;;  %v1045_v59 = vmul.f32 %v1477_v36, %v3434_v15 }
 0x102   :  { %1486 = vrsqrt.f32 %v3464_v54  ;;  %v1479_v60 = vpop.eup %1478  ;;  %v3720_v38 = vsel %vm1027_vm15, %v1028_v14, %v1026_v20  ;;  %v1040_v24 = vsel %vm1039_vm1, %v3431_v31, %v1038_v11  ;;  %vm1069_vm13 = vcmp.eq.f32.partialorder %v3443_v34, 0.0 }
 0x103   :  { %1488 = vrsqrt.f32 %v3469_v40  ;;  %v1047_v1 = vsel %vm1046_vm4, %v3434_v15, %v1045_v59  ;;  %v1052_v4 = vmul.f32 %v1479_v60, %v3437_v51  ;;  %v1070_v28 = vand.u32 2147483648, %v3443_v34 }
 0x104   :  { %vm1074_vm14 = vcmp.eq.f32.partialorder %v3446_v8, inf  ;;  %v3735_v30 = vsel %vm1034_vm2, %v1035_v25, %v1033_v44  ;;  %vm1076_vm15 = vcmp.eq.f32.partialorder %v3446_v8, 0.0  ;;  %v1077_v14 = vand.u32 2147483648, %v3446_v8 }
 0x105   :  { %vm1081_vm0 = vcmp.eq.f32.partialorder %v3464_v54, inf  ;;  %1490 = vrsqrt.f32 %v3472_v55  ;;  %v1481_v16 = vpop.eup %1480  ;;  %v3743_v17 = vsel %vm1041_vm3, %v1042_v42, %v1040_v24  ;;  %v1054_v37 = vsel %vm1053_vm8, %v3437_v51, %v1052_v4 }
 0x106   :  { %vm1083_vm2 = vcmp.eq.f32.partialorder %v3464_v54, 0.0  ;;  %v1084_v6 = vand.u32 2147483648, %v3464_v54  ;;  %v3752_v25 = vsel %vm1048_vm5, %v1049_v52, %v1047_v1  ;;  %v1059_v19 = vmul.f32 %v1481_v16, %v3440_v27 }
 0x107   :  { %vm1088_vm1 = vcmp.eq.f32.partialorder %v3469_v40, inf  ;;  %1492 = vrsqrt.f32 %v3474_v23  ;;  %v1483_v31 = vpop.eup %1482  ;;  %vm1090_vm3 = vcmp.eq.f32.partialorder %v3469_v40, 0.0  ;;  %v1091_v42 = vand.u32 2147483648, %v3469_v40 }
 0x108   :  { %vm1095_vm4 = vcmp.eq.f32.partialorder %v3472_v55, inf  ;;  %1494 = vrsqrt.f32 %v3476_v0  ;;  %v3763_v15 = vsel %vm1055_vm10, %v1056_v18, %v1054_v37  ;;  %v1061_v7 = vsel %vm1060_vm11, %v3440_v27, %v1059_v19 }
 0x109   :  { %v1066_v21 = vmul.f32 %v1483_v31, %v3443_v34  ;;  %vm1097_vm5 = vcmp.eq.f32.partialorder %v3472_v55, 0.0  ;;  %v1098_v45 = vand.u32 2147483648, %v3472_v55  ;;  %v1485_v52 = vpop.eup %1484  ;;  %vm1102_vm6 = vcmp.eq.f32.partialorder %v3474_v23, inf }
 0x10a   :  { %vm1104_vm8 = vcmp.eq.f32.partialorder %v3474_v23, 0.0  ;;  %v1105_v41 = vand.u32 2147483648, %v3474_v23  ;;  %1496 = vrsqrt.f32 %v3479_v26  ;;  %v1073_v32 = vmul.f32 %v1485_v52, %v3446_v8 }
 0x10b   :  { %v1068_v51 = vsel %vm1067_vm12, %v3443_v34, %v1066_v21  ;;  %vm1109_vm10 = vcmp.eq.f32.partialorder %v3476_v0, inf  ;;  %1498 = vrsqrt.f32 %v3481_v3  ;;  %v3783_v18 = vsel %vm1062_vm9, %v1063_v12, %v1061_v7 }
 0x10c   :  { %v1487_v10 = vpop.eup %1486  ;;  %vm1111_vm7 = vcmp.eq.f32.partialorder %v3476_v0, 0.0  ;;  %v1112_v47 = vand.u32 2147483648, %v3476_v0  ;;  %v1075_v36 = vsel %vm1074_vm14, %v3446_v8, %v1073_v32  ;;  %vm1118_vm12 = vcmp.eq.f32.partialorder %v3479_v26, 0.0 }
 0x10d   :  { %v1489_v20 = vpop.eup %1488  ;;  %v1080_v11 = vmul.f32 %v1487_v10, %v3464_v54  ;;  %v1119_v44 = vand.u32 2147483648, %v3479_v26  ;;  %1500 = vrsqrt.f32 %v3483_v33  ;;  %v3797_v27 = vsel %vm1069_vm13, %v1070_v28, %v1068_v51 }
 0x10e   :  { %v1087_v12 = vmul.f32 %v1489_v20, %v3469_v40  ;;  %vm1123_vm9 = vcmp.eq.f32.partialorder %v3481_v3, inf  ;;  %vm1125_vm11 = vcmp.eq.f32.partialorder %v3481_v3, 0.0  ;;  %v1126_v24 = vand.u32 2147483648, %v3481_v3 }
 0x10f   :  { %v1491_v59 = vpop.eup %1490  ;;  %v1082_v60 = vsel %vm1081_vm0, %v3464_v54, %v1080_v11  ;;  %vm1130_vm14 = vcmp.eq.f32.partialorder %v3483_v33, inf  ;;  %1502 = vrsqrt.f32 %v3527_v57  ;;  %v3810_v34 = vsel %vm1076_vm15, %v1077_v14, %v1075_v36 }
 0x110   :  { %v1089_v1 = vsel %vm1088_vm1, %v3469_v40, %v1087_v12  ;;  %v1094_v4 = vmul.f32 %v1491_v59, %v3472_v55  ;;  %vm1132_vm13 = vcmp.eq.f32.partialorder %v3483_v33, 0.0  ;;  %v3819_v16 = vsel %vm1083_vm2, %v1084_v6, %v1082_v60 }
 0x111   :  { %v1493_v28 = vpop.eup %1492  ;;  %v1133_v37 = vand.u32 2147483648, %v3483_v33  ;;  %vm1137_vm0 = vcmp.eq.f32.partialorder %v3527_v57, inf  ;;  %1504 = vrsqrt.f32 %v3529_v9  ;;  %vm1139_vm15 = vcmp.eq.f32.partialorder %v3527_v57, 0.0 }
 0x112   :  { %v1495_v8 = vpop.eup %1494  ;;  %v1096_v14 = vsel %vm1095_vm4, %v3472_v55, %v1094_v4  ;;  %v1101_v19 = vmul.f32 %v1493_v28, %v3474_v23  ;;  %v1140_v31 = vand.u32 2147483648, %v3527_v57  ;;  %1506 = vrsqrt.f32 %v3531_v2 }
 0x113   :  { %v3833_v54 = vsel %vm1090_vm3, %v1091_v42, %v1089_v1  ;;  %v1108_v6 = vmul.f32 %v1495_v8, %v3476_v0  ;;  %vm1144_vm2 = vcmp.eq.f32.partialorder %v3529_v9, inf  ;;  %v1147_v7 = vand.u32 2147483648, %v3529_v9 }
 0x114   :  { %v1497_v21 = vpop.eup %1496  ;;  %v3840_v52 = vsel %vm1097_vm5, %v1098_v45, %v1096_v14  ;;  %v1103_v51 = vsel %vm1102_vm6, %v3474_v23, %v1101_v19  ;;  %vm1146_vm1 = vcmp.eq.f32.partialorder %v3529_v9, 0.0  ;;  %vm1151_vm3 = vcmp.eq.f32.partialorder %v3531_v2, inf }
 0x115   :  { %1508 = vrsqrt.f32 %v3533_v53  ;;  %v1499_v40 = vpop.eup %1498  ;;  %v3850_v42 = vsel %vm1104_vm8, %v1105_v41, %v1103_v51  ;;  %v1110_v55 = vsel %vm1109_vm10, %v3476_v0, %v1108_v6  ;;  %v1115_v45 = vmul.f32 %v1497_v21, %v3479_v26 }
 0x116   :  { %vm1153_vm4 = vcmp.eq.f32.partialorder %v3531_v2, 0.0  ;;  %v1154_v32 = vand.u32 2147483648, %v3531_v2  ;;  %v3860_v10 = vsel %vm1111_vm7, %v1112_v47, %v1110_v55  ;;  %v1122_v20 = vmul.f32 %v1499_v40, %v3481_v3 }
 0x117   :  { %vm1158_vm5 = vcmp.eq.f32.partialorder %v3533_v53, inf  ;;  %v1161_v23 = vand.u32 2147483648, %v3533_v53  ;;  %v1199_v41 = vcombine.low %v3514_v63, %v3537_v5  ;;  %v1501_v36 = vpop.eup %1500  ;;  %vm4279_vm6 = vcmp.eq.f32.partialorder %v3479_v26, inf }
 0x118   :  { %v1117_v11 = vsel %vm4279_vm6, %v3479_v26, %v1115_v45  ;;  %vm1160_vm8 = vcmp.eq.f32.partialorder %v3533_v53, 0.0  ;;  %v1200_v0 = vcombine.low %v3546_v62, %v3559_v29  ;;  %v1201_v47 = vcombine.low %v3573_v56, %v3587_v13 }
 0x119   :  { %v1202_v12 = vcombine.low %v3594_v61, %v3623_v22  ;;  %v3879_v59 = vsel %vm1118_vm12, %v1119_v44, %v1117_v11  ;;  %v1124_v63 = vsel %vm1123_vm9, %v3481_v3, %v1122_v20  ;;  %v1129_v5 = vmul.f32 %v1501_v36, %v3483_v33  ;;  %v1503_v60 = vpop.eup %1502 }
 0x11a   :  { %v3887_v62 = vsel %vm1125_vm11, %v1126_v24, %v1124_v63  ;;  %v1510_v29 = vmov 1966171168   ;;  %v1206_v13 = vlaneseq  ;;  %v1248_v61 = vcombine.low %v3640_v49, %v3647_v39 }
 0x11b   :  { %v1204_v56 = vunpack.c.l.s4 %v1510_v29  ;;  %v1131_v26 = vsel %vm1130_vm14, %v3483_v33, %v1129_v5  ;;  %v1136_v22 = vmul.f32 %v1503_v60, %v3527_v57  ;;  %v1249_v44 = vcombine.low %v3657_v58, %v3673_v35  ;;  %v1505_v24 = vpop.eup %1504 }
 0x11c   :  { %v1250_v3 = vcombine.low %v3682_v46, %v3689_v43  ;;  %v1134_v1 = vsel %vm1132_vm13, %v1133_v37, %v1131_v26  ;;  %v1207_v28 = vshrl.u32 %v1206_v13, 7  ;;  %v1251_v49 = vcombine.low %v3698_v50, %v3711_v48  ;;  %v1507_v39 = vpop.eup %1506 }
 0x11d   :  { %v1205_v4 = vunpack.c.0.s8 %v1204_v56  ;;  %v1138_v8 = vsel %vm1137_vm0, %v3527_v57, %v1136_v22  ;;  %v1143_v58 = vmul.f32 %v1505_v24, %v3529_v9  ;;  %v1297_v35 = vcombine.low %v3720_v38, %v3735_v30 }
 0x11e   :  { %v1298_v33 = vcombine.low %v3743_v17, %v3752_v25  ;;  %v1141_v46 = vsel %vm1139_vm15, %v1140_v31, %v1138_v8  ;;  %v1150_v43 = vmul.f32 %v1507_v39, %v3531_v2  ;;  %v1299_v50 = vcombine.low %v3763_v15, %v3783_v18 }
 0x11f   :  { %v1208_v37 = vsub.s32 %v1205_v4, %v1207_v28  ;;  %v1509_v48 = vpop.eup %1508  ;;  %v1145_v14 = vsel %vm1144_vm2, %v3529_v9, %v1143_v58  ;;  %v1300_v38 = vcombine.low %v3797_v27, %v3810_v34  ;;  %v1346_v30 = vcombine.low %v3819_v16, %v3833_v54 }
 0x120   :  { %v1347_v57 = vcombine.low %v3840_v52, %v3850_v42  ;;  %v1148_v17 = vsel %vm1146_vm1, %v1147_v7, %v1145_v14  ;;  %v1152_v25 = vsel %vm1151_vm3, %v3531_v2, %v1150_v43  ;;  %v1157_v15 = vmul.f32 %v1509_v48, %v3533_v53 }
 0x121   :  { %v1209_v18 = vrot.slane %v1199_v41, %v1208_v37  ;;  %v1155_v19 = vsel %vm1153_vm4, %v1154_v32, %v1152_v25  ;;  %v1216_v27 = vrot.slane %v1200_v0, %v1208_v37  ;;  %v1223_v34 = vrot.slane %v1201_v47, %v1208_v37 }
 0x122   :  { %v1230_v31 = vrot.slane %v1202_v12, %v1208_v37  ;;  %v1159_v16 = vsel %vm1158_vm5, %v3533_v53, %v1157_v15  ;;  %v1258_v54 = vrot.slane %v1248_v61, %v1208_v37  ;;  %v1265_v9 = vrot.slane %v1249_v44, %v1208_v37 }
 0x123   :  { %v1272_v6 = vrot.slane %v1250_v3, %v1208_v37  ;;  %v1162_v7 = vsel %vm1160_vm8, %v1161_v23, %v1159_v16  ;;  %v1231_v21 = vcombine.low %v1209_v18, %v1216_v27  ;;  %v1279_v51 = vrot.slane %v1251_v49, %v1208_v37 }
 0x124   :  { %v1232_v52 = vcombine.low %v1223_v34, %v1230_v31  ;;  %v1280_v40 = vcombine.low %v1258_v54, %v1265_v9  ;;  %v1307_v42 = vrot.slane %v1297_v35, %v1208_v37  ;;  %v1314_v2 = vrot.slane %v1298_v33, %v1208_v37 }
 0x125   :  { %v1321_v55 = vrot.slane %v1299_v50, %v1208_v37  ;;  %v1239_v45 = vrot.slane %v1231_v21, %v1208_v37  ;;  %v1281_v20 = vcombine.low %v1272_v6, %v1279_v51  ;;  %v1328_v41 = vrot.slane %v1300_v38, %v1208_v37 }
 0x126   :  { %v1246_v32 = vrot.slane %v1232_v52, %v1208_v37  ;;  %v1288_v36 = vrot.slane %v1280_v40, %v1208_v37  ;;  %v1329_v11 = vcombine.low %v1307_v42, %v1314_v2  ;;  %v1348_v0 = vcombine.low %v3860_v10, %v3879_v59 }
 0x127   :  { %v1349_v47 = vcombine.low %v3887_v62, %v1134_v1  ;;  %v1295_v23 = vrot.slane %v1281_v20, %v1208_v37  ;;  %v1330_v12 = vcombine.low %v1321_v55, %v1328_v41  ;;  %v1356_v63 = vrot.slane %v1346_v30, %v1208_v37 }
 0x128   :  { %v1247_v53 = vcombine.low %v1239_v45, %v1246_v32  ;;  %v1337_v5 = vrot.slane %v1329_v11, %v1208_v37  ;;  %v1363_v60 = vrot.slane %v1347_v57, %v1208_v37  ;;  %v1370_v29 = vrot.slane %v1348_v0, %v1208_v37 }
 0x129   :  { %v1377_v56 = vrot.slane %v1349_v47, %v1208_v37  ;;  %v1296_v61 = vcombine.low %v1288_v36, %v1295_v23  ;;  %v1344_v26 = vrot.slane %v1330_v12, %v1208_v37  ;;  %v1395_v22 = vcombine.low %v1141_v46, %v1148_v17 }
 0x12a   :  { %v1396_v44 = vcombine.low %v1155_v19, %v1162_v7  ;;  %1424 = vst [vmem:[%s3960_s2] sm:$0xff] %v1247_v53  ;;  %v1378_v3 = vcombine.low %v1356_v63, %v1363_v60  ;;  %vm1430_vm10 = vcmp.lt.s32.totalorder %v1206_v13, 512 }
 0x12b   :  { %v1379_v10 = vcombine.low %v1370_v29, %v1377_v56  ;;  %v1345_v59 = vcombine.low %v1337_v5, %v1344_v26  ;;  %v1403_v62 = vrot.slane %v1395_v22, %v1208_v37  ;;  %1425 = vst [vmem:[%s3960_s2 + $0x8] sm:$0xff] %v1296_v61 }
 0x12c   :  { %v1410_v24 = vrot.slane %v1396_v44, %v1208_v37  ;;  %v1386_v1 = vrot.slane %v1378_v3, %v1208_v37 }
 0x12d   :  { %v1393_v4 = vrot.slane %v1379_v10, %v1208_v37  ;;  %1426 = vst [vmem:[%s3960_s2 + $0x10] sm:$0xff] %v1345_v59 }
 0x12e   :  { %v1411_v28 = vcombine.low %v1403_v62, %v1410_v24 }
 0x12f   :  { %v1394_v49 = vcombine.low %v1386_v1, %v1393_v4 }
 0x130   :  { %v1418_v39 = vrot.slane %v1411_v28, %v1208_v37 }
 0x131   :  { %1427 = vst [vmem:[%s3960_s2 + $0x18] sm:$0xff] %v1394_v49 }
 0x132   :  { %1432 = vst.msk [vmem:[%s3960_s2 + $0x20] sm:$0xf] %vm1430_vm10, %v1418_v39 }

// kernel: psgnet_lite_forward.3
= control target key start
LH: loop header
LB: loop body
LE: loop exit
PB: predicated region body
PF: predicated region fallthrough
CT: control target
= control target key end

     0   :  { %s7372_s0 = inlined_call_operand.vmem [shape: bf16[512,64], index: 0, kind: input, shape index: {}]   ;;  %s7373_s1 = inlined_call_operand.vmem [shape: bf16[64,256], index: 1, kind: input, shape index: {}]   ;;  %s7374_s2 = inlined_call_operand.vmem [shape: f32[1,256], index: 2, kind: input, shape index: {}]   ;;  %s7375_s3 = inlined_call_operand.vmem [shape: bf16[256,256], index: 3, kind: input, shape index: {}]   ;;  %s7376_s4 = inlined_call_operand.vmem [shape: f32[1,256], index: 4, kind: input, shape index: {}]   ;;  %s7377_s5 = inlined_call_operand.vmem [shape: bf16[256,256], index: 5, kind: input, shape index: {}]   ;;  %s7378_s6 = inlined_call_operand.vmem [shape: f32[1,256], index: 6, kind: input, shape index: {}]   ;;  %s7379_s7 = inlined_call_operand.vmem [shape: bf16[256,256], index: 7, kind: input, shape index: {}]   ;;  %s7380_s8 = inlined_call_operand.vmem [shape: f32[1,256], index: 8, kind: input, shape index: {}]   ;;  %s7381_s9 = inlined_call_operand.vmem [shape: bf16[256,256], index: 9, kind: input, shape index: {}]   ;;  %s7382_s10 = inlined_call_operand.vmem [shape: f32[1,256], index: 10, kind: input, shape index: {}]   ;;  %s7383_s11 = inlined_call_operand.vmem [shape: bf16[256,256], index: 11, kind: input, shape index: {}]   ;;  %s7384_s12 = inlined_call_operand.vmem [shape: f32[1,256], index: 12, kind: input, shape index: {}]   ;;  %s7385_s13 = inlined_call_operand.vmem [shape: bf16[256,256], index: 13, kind: input, shape index: {}]   ;;  %s7386_s14 = inlined_call_operand.vmem [shape: f32[1,256], index: 14, kind: input, shape index: {}]   ;;  %s7387_s15 = inlined_call_operand.vmem [shape: bf16[256,256], index: 15, kind: input, shape index: {}]   ;;  %s7388_s16 = inlined_call_operand.vmem [shape: f32[1,256], index: 16, kind: input, shape index: {}]   ;;  %s7389_s17 = inlined_call_operand.vmem [shape: bf16[256,128], index: 17, kind: input, shape index: {}]   ;;  %s7390_s18 = inlined_call_operand.vmem [shape: f32[1,128], index: 18, kind: input, shape index: {}]   ;;  %s7391_s19 = inlined_call_operand.vmem [shape: f32[512,128], index: 19, kind: output, shape index: {}]  }
   0x1   :  { %7394 = sst [smem:[#allocation2_spill]] %s7372_s0  ;;  %s5862_s0 = smov 0  }
   0x2   :  { %7395 = sst [smem:[#allocation3_spill]] %s7373_s1 }
   0x3   :  { %7396 = sst [smem:[#allocation4_spill]] %s7374_s2 }
   0x4   :  { %7397 = sst [smem:[#allocation5_spill]] %s7375_s3 }
   0x5 LB: > { %s4952_s30 = sadd.s32 4294967295, %s5759_s0   ;;  %p4956_p0 = scmp.ge.s32.totalorder %s5759_s0, 1  ;;  %s5759_s0 = sphi %s5862_s0, %s29_s0  }
   0x6   : > { %p538_p1 = scmp.lt.s32.totalorder %s5759_s0, 3 }
   0x8   : > { %p539_p2 = pnand %p4956_p0, %p538_p1 }
   0x9   : > { %s7398_s1 = sld [smem:[#allocation3_spill]] (!%p539_p2)  ;;  %s4957_s22 = sshll.u32 (!%p539_p2), %s4952_s30, 5  ;;  %v5761_v2 = vmov (!%p539_p2), 0   ;;  %vm779_vm0 = vcmask (!%p539_p2), 523264   ;;  %v649_v57 = vlaneseq (!%p539_p2) }
   0xa   : > { %542 = sbr.rel (%p539_p2) target bundleno = 2148 (0x864), region = 96  ;;  %860 = vmatprep.mubr.bf16.mxu0 (!%p539_p2), %v5761_v2  ;;  %p595_p3 = scmp.lt.s32.totalorder (!%p539_p2), %s4957_s22, 63  ;;  %940 = vmatprep.mubr.bf16.mxu1 (!%p539_p2), %v5761_v2 }
   0xb   : > { %s7399_s21 = sld [smem:[#allocation2_spill]] (!%p539_p2)  ;;  %s7400_s30 = sld [smem:[#allocation5_spill]] (!%p539_p2)  ;;  %v650_v58 = vshrl.u32 (!%p539_p2), %v649_v57, 7 }
   0xc   : > { %s7401_s24 = sld [smem:[#allocation4_spill]] (!%p539_p2) }
   0xd   : > { %v6046_v59 = vsub.s32 (!%p539_p2), 0, %v650_v58  ;;  %v6051_v61 = vsub.s32 (!%p539_p2), 1, %v650_v58 }
   0xf   : > { %v5373_v0 = vld [vmem:[%s7398_s1 + $0x4] ss:$8 sps:$4 sm:$0xff] (!%p539_p2)   ;;  %v5375_v1 = vld [vmem:[%s7398_s1] ss:$8 sps:$4 sm:$0xff] (!%p539_p2)   ;;  %v5376_v3 = vld [vmem:[%s7398_s1 + $0x14] ss:$8 sps:$4 sm:$0xff] (!%p539_p2)  }
  0x10   : > { %828 = vmatprep.subr.bf16.mxu0 (!%p539_p2), %v5373_v0  ;;  %5356 = vmatprep.subr.bf16.mxu1 (!%p539_p2), %v5373_v0  ;;  %v5378_v4 = vld [vmem:[%s7398_s1 + $0x10] ss:$8 sps:$4 sm:$0xff] (!%p539_p2)   ;;  %v5379_v5 = vld [vmem:[%s7398_s1 + $0x24] ss:$8 sps:$4 sm:$0xff] (!%p539_p2)   ;;  %v5381_v6 = vld [vmem:[%s7398_s1 + $0x20] ss:$8 sps:$4 sm:$0xff] (!%p539_p2)  }
  0x11   : > { %829 = vmatpush1.bf16.msra.mxu0 %v5375_v1  ;;  %s7403_s22 = smov (!%p595_p3, %s4957_s22), 63  ;;  %5360 = vmatpush1.bf16.msra.mxu1 %v5375_v1  ;;  %v5382_v7 = vld [vmem:[%s7398_s1 + $0x34] ss:$8 sps:$4 sm:$0xff]   ;;  %v5384_v8 = vld [vmem:[%s7398_s1 + $0x30] ss:$8 sps:$4 sm:$0xff]  }
  0x12   : > { %830 = vmatprep.subr.bf16.mxu0 %v5376_v3  ;;  %5357 = vmatprep.subr.bf16.mxu1 %v5376_v3  ;;  %s4958_s29 = sshll.u32 %s7403_s22, 2  ;;  %v5403_v9 = vld [vmem:[%s7400_s30 + $0x4] ss:$8 sps:$4 sm:$0xff]   ;;  %v5401_v12 = vld [vmem:[%s7400_s30] ss:$8 sps:$4 sm:$0xff]   ;;  %s4960_s3 = sshll.u32 %s7403_s22, 3 }
  0x13   : > { %s5893_s2 = scalar_lea.vmem %s7399_s21, %s4958_s29  ;;  %v5406_v15 = vld [vmem:[%s7400_s30 + $0x14] ss:$8 sps:$4 sm:$0xff]   ;;  %v5404_v16 = vld [vmem:[%s7400_s30 + $0x10] ss:$8 sps:$4 sm:$0xff]   ;;  %v5409_v17 = vld [vmem:[%s7400_s30 + $0x24] ss:$8 sps:$4 sm:$0xff]   ;;  %s7303_s29 = scalar_lea.vmem %s7391_s19, %s4960_s3 }
  0x14   : > { %v5385_v10 = vld [vmem:[%s5893_s2] sm:$0xff]   ;;  %v5386_v13 = vld [vmem:[%s5893_s2 + $0x8] sm:$0xff]   ;;  %v5412_v19 = vld [vmem:[%s7400_s30 + $0x34] ss:$8 sps:$4 sm:$0xff]  }
  0x15   : > { %831 = vmatpush1.bf16.msra.mxu0 %v5378_v4  ;;  %5361 = vmatpush1.bf16.msra.mxu1 %v5378_v4  ;;  %v5393_v11 = vld [vmem:[%s5893_s2 + $0x40] sm:$0xff]   ;;  %v5394_v14 = vld [vmem:[%s5893_s2 + $0x48] sm:$0xff]   ;;  %v5387_v20 = vld [vmem:[%s5893_s2 + $0x10] sm:$0xff]  }
  0x16   : > { %832 = vmatprep.subr.bf16.mxu0 %v5379_v5  ;;  %5358 = vmatprep.subr.bf16.mxu1 %v5379_v5  ;;  %v5407_v18 = vld [vmem:[%s7400_s30 + $0x20] ss:$8 sps:$4 sm:$0xff]   ;;  %v5395_v21 = vld [vmem:[%s5893_s2 + $0x50] sm:$0xff]   ;;  %v5415_v23 = vld [vmem:[%s7400_s30 + $0x44] ss:$8 sps:$4 sm:$0xff]  }
  0x17   : > { %v5410_v22 = vld [vmem:[%s7400_s30 + $0x30] ss:$8 sps:$4 sm:$0xff]   ;;  %v5413_v24 = vld [vmem:[%s7400_s30 + $0x40] ss:$8 sps:$4 sm:$0xff]   ;;  %v5418_v25 = vld [vmem:[%s7400_s30 + $0x54] ss:$8 sps:$4 sm:$0xff]  }
  0x18   : > { %v5388_v26 = vld [vmem:[%s5893_s2 + $0x18] sm:$0xff]   ;;  %v5421_v29 = vld [vmem:[%s7400_s30 + $0x64] ss:$8 sps:$4 sm:$0xff]   ;;  %v5419_v30 = vld [vmem:[%s7400_s30 + $0x60] ss:$8 sps:$4 sm:$0xff]  }
  0x19   : > { %833 = vmatpush1.bf16.msra.mxu0 %v5381_v6  ;;  %5362 = vmatpush1.bf16.msra.mxu1 %v5381_v6  ;;  %v5396_v27 = vld [vmem:[%s5893_s2 + $0x58] sm:$0xff]   ;;  %v5389_v32 = vld [vmem:[%s5893_s2 + $0x20] sm:$0xff]   ;;  %v5390_v38 = vld [vmem:[%s5893_s2 + $0x28] sm:$0xff]  }
  0x1a   : > { %834 = vmatprep.subr.bf16.mxu0 %v5382_v7  ;;  %5359 = vmatprep.subr.bf16.mxu1 %v5382_v7  ;;  %v5416_v28 = vld [vmem:[%s7400_s30 + $0x50] ss:$8 sps:$4 sm:$0xff]   ;;  %v5424_v31 = vld [vmem:[%s7400_s30 + $0x74] ss:$8 sps:$4 sm:$0xff]   ;;  %v5397_v33 = vld [vmem:[%s5893_s2 + $0x60] sm:$0xff]  }
  0x1b   : > { %v5422_v34 = vld [vmem:[%s7400_s30 + $0x70] ss:$8 sps:$4 sm:$0xff]   ;;  %v5427_v35 = vld [vmem:[%s7400_s30 + $0x84] ss:$8 sps:$4 sm:$0xff]   ;;  %v5425_v36 = vld [vmem:[%s7400_s30 + $0x80] ss:$8 sps:$4 sm:$0xff]  }
  0x1c   : > { %v5430_v37 = vld [vmem:[%s7400_s30 + $0x94] ss:$8 sps:$4 sm:$0xff]   ;;  %v5398_v39 = vld [vmem:[%s5893_s2 + $0x68] sm:$0xff]   ;;  %v5428_v40 = vld [vmem:[%s7400_s30 + $0x90] ss:$8 sps:$4 sm:$0xff]  }
  0x1d   : > { %835 = vmatpush1.bf16.msra.mxu0 %v5384_v8  ;;  %5363 = vmatpush1.bf16.msra.mxu1 %v5384_v8  ;;  %v5433_v41 = vld [vmem:[%s7400_s30 + $0xa4] ss:$8 sps:$4 sm:$0xff]   ;;  %v5431_v42 = vld [vmem:[%s7400_s30 + $0xa0] ss:$8 sps:$4 sm:$0xff]   ;;  %v5436_v43 = vld [vmem:[%s7400_s30 + $0xb4] ss:$8 sps:$4 sm:$0xff]  }
  0x1e   : > { %1321 = vmatprep.subr.bf16.mxu1 %v5403_v9  ;;  %v5391_v44 = vld [vmem:[%s5893_s2 + $0x30] sm:$0xff]   ;;  %v5439_v47 = vld [vmem:[%s7400_s30 + $0xc4] ss:$8 sps:$4 sm:$0xff]   ;;  %v5437_v48 = vld [vmem:[%s7400_s30 + $0xc0] ss:$8 sps:$4 sm:$0xff]  }
  0x1f   : > { %v5399_v45 = vld [vmem:[%s5893_s2 + $0x70] sm:$0xff]   ;;  %v5392_v50 = vld [vmem:[%s5893_s2 + $0x38] sm:$0xff]   ;;  %v5445_v53 = vld [vmem:[%s7400_s30 + $0xe4] ss:$8 sps:$4 sm:$0xff]  }
  0x20   : > { %4985 = vmatmul.mubr.msk.bf16.vlgmr.msra.gmra.mrb[0].mxu0 %vm779_vm0, %v5385_v10  ;;  %4993 = vmatmul.mubr.msk.bf16.vlgmr.msra.gmra.mrb[0].mxu1 %vm779_vm0, %v5393_v11  ;;  %v5434_v46 = vld [vmem:[%s7400_s30 + $0xb0] ss:$8 sps:$4 sm:$0xff]   ;;  %v5442_v49 = vld [vmem:[%s7400_s30 + $0xd4] ss:$8 sps:$4 sm:$0xff]   ;;  %v5443_v54 = vld [vmem:[%s7400_s30 + $0xe0] ss:$8 sps:$4 sm:$0xff]  }
  0x21   : > { %870 = vmatprep.mubr.bf16.mxu0 %v5761_v2  ;;  %950 = vmatprep.mubr.bf16.mxu1 %v5761_v2  ;;  %v5400_v51 = vld [vmem:[%s5893_s2 + $0x78] sm:$0xff]   ;;  %v647_v60 = vld [vmem:[%s7401_s24] sm:$0x3] }
  0x22   : > { %1322 = vmatpush1.bf16.msra.mxu1 %v5401_v12  ;;  %v5440_v52 = vld [vmem:[%s7400_s30 + $0xd0] ss:$8 sps:$4 sm:$0xff]   ;;  %v5448_v55 = vld [vmem:[%s7400_s30 + $0xf4] ss:$8 sps:$4 sm:$0xff]   ;;  %v6054_v62 = vrot.slane %v647_v60, %v6046_v59  ;;  %v6057_v63 = vrot.slane %v647_v60, %v6051_v61 }
  0x23   : > { %1323 = vmatprep.subr.bf16.mxu1 %v5406_v15  ;;  %v5446_v56 = vld [vmem:[%s7400_s30 + $0xf0] ss:$8 sps:$4 sm:$0xff]   ;;  %v5449_v15 = vld [vmem:[%s7377_s5] ss:$8 sps:$4 sm:$0xff]  }
  0x26   : > { %1324 = vmatpush1.bf16.msra.mxu1 %v5404_v16 }
  0x27   : > { %1325 = vmatprep.subr.bf16.mxu1 %v5409_v17 }
  0x28   : > { %4986 = vmatmul.mubr.msk.bf16.gmra.mrb[4].mxu0 %vm779_vm0, %v5386_v13  ;;  %4994 = vmatmul.mubr.msk.bf16.gmra.mrb[4].mxu1 %vm779_vm0, %v5394_v14 }
  0x29   : > { %880 = vmatprep.mubr.bf16.mxu0 %v5761_v2  ;;  %960 = vmatprep.mubr.bf16.mxu1 %v5761_v2 }
  0x2a   : > { %1326 = vmatpush1.bf16.msra.mxu1 %v5407_v18 }
  0x2b   : > { %1327 = vmatprep.subr.bf16.mxu1 %v5412_v19  ;;  %v5451_v19 = vld [vmem:[%s7377_s5 + $0x4] ss:$8 sps:$4 sm:$0xff]  }
  0x2c   : > { %1814 = vmatprep.subr.bf16.mxu0 %v5451_v19 }
  0x2d   : > { %1815 = vmatpush1.bf16.msra.mxu0 %v5449_v15 }
  0x2e   : > { %1328 = vmatpush1.bf16.msra.mxu1 %v5410_v22 }
  0x2f   : > { %1329 = vmatprep.subr.bf16.mxu1 %v5415_v23  ;;  %v5454_v23 = vld [vmem:[%s7377_s5 + $0x14] ss:$8 sps:$4 sm:$0xff]  }
  0x30   : > { %4987 = vmatmul.mubr.msk.bf16.gmra.mrb[8].mxu0 %vm779_vm0, %v5387_v20  ;;  %4995 = vmatmul.mubr.msk.bf16.gmra.mrb[8].mxu1 %vm779_vm0, %v5395_v21 }
  0x31   : > { %890 = vmatprep.mubr.bf16.mxu0 %v5761_v2  ;;  %970 = vmatprep.mubr.bf16.mxu1 %v5761_v2 }
  0x32   : > { %1330 = vmatpush1.bf16.msra.mxu1 %v5413_v24  ;;  %1816 = vmatprep.subr.bf16.mxu0 %v5454_v23 }
  0x33   : > { %1331 = vmatprep.subr.bf16.mxu1 %v5418_v25 }
  0x36   : > { %1332 = vmatpush1.bf16.msra.mxu1 %v5416_v28 }
  0x37   : > { %1333 = vmatprep.subr.bf16.mxu1 %v5421_v29  ;;  %v5452_v29 = vld [vmem:[%s7377_s5 + $0x10] ss:$8 sps:$4 sm:$0xff]  }
  0x38   : > { %4988 = vmatmul.mubr.msk.bf16.gmra.mrb[12].mxu0 %vm779_vm0, %v5388_v26  ;;  %4996 = vmatmul.mubr.msk.bf16.gmra.mrb[12].mxu1 %vm779_vm0, %v5396_v27 }
  0x39   : > { %900 = vmatprep.mubr.bf16.mxu0 %v5761_v2  ;;  %980 = vmatprep.mubr.bf16.mxu1 %v5761_v2 }
  0x3a   : > { %1334 = vmatpush1.bf16.msra.mxu1 %v5419_v30  ;;  %1817 = vmatpush1.bf16.msra.mxu0 %v5452_v29 }
  0x3b   : > { %1335 = vmatprep.subr.bf16.mxu1 %v5424_v31 }
  0x3e   : > { %1336 = vmatpush1.bf16.msra.mxu1 %v5422_v34  ;;  %v5457_v34 = vld [vmem:[%s7377_s5 + $0x24] ss:$8 sps:$4 sm:$0xff]  }
  0x3f   : > { %1337 = vmatprep.subr.bf16.mxu1 %v5427_v35  ;;  %1818 = vmatprep.subr.bf16.mxu0 %v5457_v34 }
  0x40   : > { %4989 = vmatmul.mubr.msk.bf16.gmra.mrb[16].mxu0 %vm779_vm0, %v5389_v32  ;;  %4997 = vmatmul.mubr.msk.bf16.gmra.mrb[16].mxu1 %vm779_vm0, %v5397_v33 }
  0x41   : > { %910 = vmatprep.mubr.bf16.mxu0 %v5761_v2  ;;  %990 = vmatprep.mubr.bf16.mxu1 %v5761_v2 }
  0x42   : > { %1338 = vmatpush1.bf16.msra.mxu1 %v5425_v36 }
  0x43   : > { %1339 = vmatprep.subr.bf16.mxu1 %v5430_v37 }
  0x46   : > { %1340 = vmatpush1.bf16.msra.mxu1 %v5428_v40 }
  0x47   : > { %1341 = vmatprep.subr.bf16.mxu1 %v5433_v41 }
  0x48   : > { %4990 = vmatmul.mubr.msk.bf16.gmra.mrb[20].mxu0 %vm779_vm0, %v5390_v38  ;;  %4998 = vmatmul.mubr.msk.bf16.gmra.mrb[20].mxu1 %vm779_vm0, %v5398_v39 }
  0x49   : > { %920 = vmatprep.mubr.bf16.mxu0 %v5761_v2  ;;  %1000 = vmatprep.mubr.bf16.mxu1 %v5761_v2 }
  0x4a   : > { %1342 = vmatpush1.bf16.msra.mxu1 %v5431_v42 }
  0x4b   : > { %1343 = vmatprep.subr.bf16.mxu1 %v5436_v43 }
  0x4e   : > { %1344 = vmatpush1.bf16.msra.mxu1 %v5434_v46 }
  0x4f   : > { %1345 = vmatprep.subr.bf16.mxu1 %v5439_v47 }
  0x50   : > { %4991 = vmatmul.mubr.msk.bf16.gmra.mrb[24].mxu0 %vm779_vm0, %v5391_v44  ;;  %4999 = vmatmul.mubr.msk.bf16.gmra.mrb[24].mxu1 %vm779_vm0, %v5399_v45 }
  0x51   : > { %930 = vmatprep.mubr.bf16.mxu0 %v5761_v2  ;;  %1010 = vmatprep.mubr.bf16.mxu1 %v5761_v2 }
  0x52   : > { %1346 = vmatpush1.bf16.msra.mxu1 %v5437_v48  ;;  %v5455_v48 = vld [vmem:[%s7377_s5 + $0x20] ss:$8 sps:$4 sm:$0xff]  }
  0x53   : > { %1347 = vmatprep.subr.bf16.mxu1 %v5442_v49  ;;  %1819 = vmatpush1.bf16.msra.mxu0 %v5455_v48 }
  0x56   : > { %1348 = vmatpush1.bf16.msra.mxu1 %v5440_v52  ;;  %v5460_v52 = vld [vmem:[%s7377_s5 + $0x34] ss:$8 sps:$4 sm:$0xff]  }
  0x57   : > { %1349 = vmatprep.subr.bf16.mxu1 %v5445_v53  ;;  %1820 = vmatprep.subr.bf16.mxu0 %v5460_v52 }
  0x58   : > { %4992 = vmatmul.mubr.msk.bf16.gmra.mrb[28].mxu0 %vm779_vm0, %v5392_v50  ;;  %5000 = vmatmul.mubr.msk.bf16.gmra.mrb[28].mxu1 %vm779_vm0, %v5400_v51 }
  0x5a   : > { %1350 = vmatpush1.bf16.msra.mxu1 %v5443_v54 }
  0x5b   : > { %1351 = vmatprep.subr.bf16.mxu1 %v5448_v55 }
  0x5e   : > { %1352 = vmatpush1.bf16.msra.mxu1 %v5446_v56 }
  0xf3   : > { %v862_v0 = vpop.f32.mrb[0].mxu0  ;;  %v942_v1 = vpop.f32.mrb[0].mxu1 }
  0xf4   : > { %v863_v2 = vadd.f32 %v862_v0, %v6054_v62  ;;  %v864_v3 = vpop.f32.mrb[1].mxu0  ;;  %v943_v4 = vadd.f32 %v942_v1, %v6054_v62  ;;  %v944_v5 = vpop.f32.mrb[1].mxu1  ;;  %v5458_v1 = vld [vmem:[%s7377_s5 + $0x30] ss:$8 sps:$4 sm:$0xff]  }
  0xf5   : > { %v865_v6 = vadd.f32 %v864_v3, %v6057_v63  ;;  %v866_v7 = vpop.f32.mrb[2].mxu0  ;;  %v945_v8 = vadd.f32 %v944_v5, %v6057_v63  ;;  %v946_v9 = vpop.f32.mrb[2].mxu1  ;;  %1821 = vmatpush1.bf16.msra.mxu0 %v5458_v1 }
  0xf6   : > { %v867_v10 = vadd.f32 %v866_v7, %v6054_v62  ;;  %v868_v11 = vpop.f32.mrb[3].mxu0  ;;  %v1053_v12 = vmax.f32 %v943_v4, 0.0  ;;  %v947_v13 = vadd.f32 %v946_v9, %v6054_v62  ;;  %v948_v14 = vpop.f32.mrb[3].mxu1  ;;  %v1021_v20 = vmax.f32 %v863_v2, 0.0 }
  0xf7   : > { %v869_v16 = vadd.f32 %v868_v11, %v6057_v63  ;;  %v1054_v17 = vmax.f32 %v945_v8, 0.0  ;;  %v949_v18 = vadd.f32 %v948_v14, %v6057_v63  ;;  %v1022_v24 = vmax.f32 %v865_v6, 0.0  ;;  %v5463_v6 = vld [vmem:[%s7377_s5 + $0x44] ss:$8 sps:$4 sm:$0xff]  }
  0xf8   : > { %v1023_v21 = vmax.f32 %v867_v10, 0.0  ;;  %v1055_v22 = vmax.f32 %v947_v13, 0.0  ;;  %1822 = vmatprep.subr.bf16.mxu0 %v5463_v6 }
  0xf9   : > { %v1024_v25 = vmax.f32 %v869_v16, 0.0  ;;  %v1056_v26 = vmax.f32 %v949_v18, 0.0 }
  0xfa   : > { %v1085_v27 = vpack.c.bf16 %v1023_v21, %v1021_v20  ;;  %v6076_v28 = vpack.c.bf16 %v1055_v22, %v1053_v12  ;;  %v5461_v20 = vld [vmem:[%s7377_s5 + $0x40] ss:$8 sps:$4 sm:$0xff]  }
  0xfb   : > { %v872_v30 = vpop.f32.mrb[4].mxu0  ;;  %v1086_v31 = vpack.c.bf16 %v1024_v25, %v1022_v24  ;;  %v952_v32 = vpop.f32.mrb[4].mxu1  ;;  %v6081_v33 = vpack.c.bf16 %v1056_v26, %v1054_v17  ;;  %v5466_v24 = vld [vmem:[%s7377_s5 + $0x54] ss:$8 sps:$4 sm:$0xff]   ;;  %1823 = vmatpush1.bf16.msra.mxu0 %v5461_v20 }
  0xfc   : > { %v873_v35 = vadd.f32 %v872_v30, %v6054_v62  ;;  %v874_v36 = vpop.f32.mrb[5].mxu0  ;;  %v953_v37 = vadd.f32 %v952_v32, %v6054_v62  ;;  %v954_v38 = vpop.f32.mrb[5].mxu1  ;;  %1824 = vmatprep.subr.bf16.mxu0 %v5466_v24 }
  0xfd   : > { %v875_v39 = vadd.f32 %v874_v36, %v6057_v63  ;;  %v876_v40 = vpop.f32.mrb[6].mxu0  ;;  %1353 = vmatprep.mubr.bf16.mxu1 %v1086_v31  ;;  %v955_v41 = vadd.f32 %v954_v38, %v6057_v63  ;;  %v956_v42 = vpop.f32.mrb[6].mxu1 }
  0xfe   : > { %v877_v43 = vadd.f32 %v876_v40, %v6054_v62  ;;  %v878_v44 = vpop.f32.mrb[7].mxu0  ;;  %1354 = vmatmul.mubr.bf16.vlgmr.msra.gmra.mrb[32].mxu1 %v1085_v27  ;;  %v1057_v45 = vmax.f32 %v953_v37, 0.0  ;;  %v957_v46 = vadd.f32 %v956_v42, %v6054_v62  ;;  %v958_v47 = vpop.f32.mrb[7].mxu1  ;;  %v1025_v53 = vmax.f32 %v873_v35, 0.0  ;;  %v5464_v35 = vld [vmem:[%s7377_s5 + $0x50] ss:$8 sps:$4 sm:$0xff]  }
  0xff   : > { %v879_v49 = vadd.f32 %v878_v44, %v6057_v63  ;;  %v1058_v50 = vmax.f32 %v955_v41, 0.0  ;;  %v959_v51 = vadd.f32 %v958_v47, %v6057_v63  ;;  %v1026_v56 = vmax.f32 %v875_v39, 0.0  ;;  %v5469_v40 = vld [vmem:[%s7377_s5 + $0x64] ss:$8 sps:$4 sm:$0xff]   ;;  %1825 = vmatpush1.bf16.msra.mxu0 %v5464_v35  ;;  %v5478_v35 = vld [vmem:[%s7377_s5 + $0x94] ss:$8 sps:$4 sm:$0xff]  }
 0x100   : > { %v1027_v54 = vmax.f32 %v877_v43, 0.0  ;;  %v1059_v55 = vmax.f32 %v957_v46, 0.0  ;;  %1826 = vmatprep.subr.bf16.mxu0 %v5469_v40 }
 0x101   : > { %v1028_v57 = vmax.f32 %v879_v49, 0.0  ;;  %v1060_v58 = vmax.f32 %v959_v51, 0.0 }
 0x102   : > { %v1087_v60 = vpack.c.bf16 %v1027_v54, %v1025_v53  ;;  %v6100_v0 = vpack.c.bf16 %v1059_v55, %v1057_v45  ;;  %v5467_v54 = vld [vmem:[%s7377_s5 + $0x60] ss:$8 sps:$4 sm:$0xff]  }
 0x103   : > { %v882_v2 = vpop.f32.mrb[8].mxu0  ;;  %v1088_v3 = vpack.c.bf16 %v1028_v57, %v1026_v56  ;;  %v962_v4 = vpop.f32.mrb[8].mxu1  ;;  %v6105_v5 = vpack.c.bf16 %v1060_v58, %v1058_v50  ;;  %v5472_v58 = vld [vmem:[%s7377_s5 + $0x74] ss:$8 sps:$4 sm:$0xff]   ;;  %1827 = vmatpush1.bf16.msra.mxu0 %v5467_v54 }
 0x104   : > { %v883_v7 = vadd.f32 %v882_v2, %v6054_v62  ;;  %v884_v8 = vpop.f32.mrb[9].mxu0  ;;  %v963_v9 = vadd.f32 %v962_v4, %v6054_v62  ;;  %v964_v10 = vpop.f32.mrb[9].mxu1  ;;  %1828 = vmatprep.subr.bf16.mxu0 %v5472_v58 }
 0x105   : > { %v885_v11 = vadd.f32 %v884_v8, %v6057_v63  ;;  %v886_v12 = vpop.f32.mrb[10].mxu0  ;;  %1363 = vmatprep.mubr.bf16.mxu1 %v1088_v3  ;;  %v965_v13 = vadd.f32 %v964_v10, %v6057_v63  ;;  %v966_v14 = vpop.f32.mrb[10].mxu1 }
 0x106   : > { %v887_v15 = vadd.f32 %v886_v12, %v6054_v62  ;;  %v888_v16 = vpop.f32.mrb[11].mxu0  ;;  %1364 = vmatmul.mubr.bf16.gmra.mrb[36].mxu1 %v1087_v60  ;;  %v1061_v17 = vmax.f32 %v963_v9, 0.0  ;;  %v967_v18 = vadd.f32 %v966_v14, %v6054_v62  ;;  %v968_v19 = vpop.f32.mrb[11].mxu1  ;;  %v1029_v25 = vmax.f32 %v883_v7, 0.0  ;;  %v5470_v9 = vld [vmem:[%s7377_s5 + $0x70] ss:$8 sps:$4 sm:$0xff]  }
 0x107   : > { %v889_v21 = vadd.f32 %v888_v16, %v6057_v63  ;;  %v1062_v22 = vmax.f32 %v965_v13, 0.0  ;;  %v969_v23 = vadd.f32 %v968_v19, %v6057_v63  ;;  %v1030_v29 = vmax.f32 %v885_v11, 0.0  ;;  %v5475_v14 = vld [vmem:[%s7377_s5 + $0x84] ss:$8 sps:$4 sm:$0xff]   ;;  %1829 = vmatpush1.bf16.msra.mxu0 %v5470_v9 }
 0x108   : > { %v1031_v26 = vmax.f32 %v887_v15, 0.0  ;;  %v1063_v27 = vmax.f32 %v967_v18, 0.0  ;;  %1830 = vmatprep.subr.bf16.mxu0 %v5475_v14 }
 0x109   : > { %v1032_v30 = vmax.f32 %v889_v21, 0.0  ;;  %v1064_v31 = vmax.f32 %v969_v23, 0.0 }
 0x10a   : > { %v1089_v32 = vpack.c.bf16 %v1031_v26, %v1029_v25  ;;  %v6124_v34 = vpack.c.bf16 %v1063_v27, %v1061_v17 }
 0x10b   : > { %v892_v36 = vpop.f32.mrb[12].mxu0  ;;  %v1090_v37 = vpack.c.bf16 %v1032_v30, %v1030_v29  ;;  %v972_v38 = vpop.f32.mrb[12].mxu1  ;;  %v6129_v39 = vpack.c.bf16 %v1064_v31, %v1062_v22  ;;  %v5473_v29 = vld [vmem:[%s7377_s5 + $0x80] ss:$8 sps:$4 sm:$0xff]  }
 0x10c   : > { %v893_v41 = vadd.f32 %v892_v36, %v6054_v62  ;;  %v894_v42 = vpop.f32.mrb[13].mxu0  ;;  %v973_v43 = vadd.f32 %v972_v38, %v6054_v62  ;;  %v974_v44 = vpop.f32.mrb[13].mxu1  ;;  %1831 = vmatpush1.bf16.msra.mxu0 %v5473_v29 }
 0x10d   : > { %v895_v45 = vadd.f32 %v894_v42, %v6057_v63  ;;  %v896_v46 = vpop.f32.mrb[14].mxu0  ;;  %1373 = vmatprep.mubr.bf16.mxu1 %v1090_v37  ;;  %v975_v47 = vadd.f32 %v974_v44, %v6057_v63  ;;  %v976_v48 = vpop.f32.mrb[14].mxu1  ;;  %1832 = vmatprep.subr.bf16.mxu0 %v5478_v35 }
 0x10e   : > { %v897_v49 = vadd.f32 %v896_v46, %v6054_v62  ;;  %v898_v50 = vpop.f32.mrb[15].mxu0  ;;  %1374 = vmatmul.mubr.bf16.gmra.mrb[40].mxu1 %v1089_v32  ;;  %v1065_v51 = vmax.f32 %v973_v43, 0.0  ;;  %v977_v52 = vadd.f32 %v976_v48, %v6054_v62  ;;  %v978_v53 = vpop.f32.mrb[15].mxu1  ;;  %v1033_v60 = vmax.f32 %v893_v41, 0.0 }
 0x10f   : > { %v899_v55 = vadd.f32 %v898_v50, %v6057_v63  ;;  %v1066_v56 = vmax.f32 %v975_v47, 0.0  ;;  %v979_v57 = vadd.f32 %v978_v53, %v6057_v63  ;;  %v1034_v3 = vmax.f32 %v895_v45, 0.0  ;;  %v5476_v45 = vld [vmem:[%s7377_s5 + $0x90] ss:$8 sps:$4 sm:$0xff]   ;;  %v5481_v50 = vld [vmem:[%s7377_s5 + $0xa4] ss:$8 sps:$4 sm:$0xff]  }
 0x110   : > { %v1035_v1 = vmax.f32 %v897_v49, 0.0  ;;  %v1067_v2 = vmax.f32 %v977_v52, 0.0  ;;  %1833 = vmatpush1.bf16.msra.mxu0 %v5476_v45  ;;  %v5485_v45 = vld [vmem:[%s7377_s5 + $0xc0] ss:$8 sps:$4 sm:$0xff]  }
 0x111   : > { %v1036_v4 = vmax.f32 %v899_v55, 0.0  ;;  %v1068_v6 = vmax.f32 %v979_v57, 0.0  ;;  %1834 = vmatprep.subr.bf16.mxu0 %v5481_v50  ;;  %v5490_v50 = vld [vmem:[%s7377_s5 + $0xd4] ss:$8 sps:$4 sm:$0xff]  }
 0x112   : > { %v1091_v7 = vpack.c.bf16 %v1035_v1, %v1033_v60  ;;  %v6148_v8 = vpack.c.bf16 %v1067_v2, %v1065_v51 }
 0x113   : > { %v902_v10 = vpop.f32.mrb[16].mxu0  ;;  %v1092_v11 = vpack.c.bf16 %v1036_v4, %v1034_v3  ;;  %v982_v12 = vpop.f32.mrb[16].mxu1  ;;  %v6153_v13 = vpack.c.bf16 %v1068_v6, %v1066_v56  ;;  %v5479_v6 = vld [vmem:[%s7377_s5 + $0xa0] ss:$8 sps:$4 sm:$0xff]  }
 0x114   : > { %v903_v15 = vadd.f32 %v902_v10, %v6054_v62  ;;  %v904_v16 = vpop.f32.mrb[17].mxu0  ;;  %v983_v17 = vadd.f32 %v982_v12, %v6054_v62  ;;  %v984_v18 = vpop.f32.mrb[17].mxu1  ;;  %1835 = vmatpush1.bf16.msra.mxu0 %v5479_v6 }
 0x115   : > { %v905_v19 = vadd.f32 %v904_v16, %v6057_v63  ;;  %v906_v20 = vpop.f32.mrb[18].mxu0  ;;  %1383 = vmatprep.mubr.bf16.mxu1 %v1092_v11  ;;  %v985_v21 = vadd.f32 %v984_v18, %v6057_v63  ;;  %v986_v22 = vpop.f32.mrb[18].mxu1  ;;  %v5484_v11 = vld [vmem:[%s7377_s5 + $0xb4] ss:$8 sps:$4 sm:$0xff]  }
 0x116   : > { %v907_v23 = vadd.f32 %v906_v20, %v6054_v62  ;;  %v908_v24 = vpop.f32.mrb[19].mxu0  ;;  %1384 = vmatmul.mubr.bf16.gmra.mrb[44].mxu1 %v1091_v7  ;;  %v1069_v25 = vmax.f32 %v983_v17, 0.0  ;;  %v987_v26 = vadd.f32 %v986_v22, %v6054_v62  ;;  %v988_v27 = vpop.f32.mrb[19].mxu1  ;;  %v1037_v36 = vmax.f32 %v903_v15, 0.0  ;;  %1836 = vmatprep.subr.bf16.mxu0 %v5484_v11 }
 0x117   : > { %v909_v30 = vadd.f32 %v908_v24, %v6057_v63  ;;  %v1070_v31 = vmax.f32 %v985_v21, 0.0  ;;  %v989_v32 = vadd.f32 %v988_v27, %v6057_v63  ;;  %v1038_v40 = vmax.f32 %v905_v19, 0.0  ;;  %v5482_v21 = vld [vmem:[%s7377_s5 + $0xb0] ss:$8 sps:$4 sm:$0xff]  }
 0x118   : > { %v1039_v37 = vmax.f32 %v907_v23, 0.0  ;;  %v1071_v38 = vmax.f32 %v987_v26, 0.0  ;;  %v5487_v26 = vld [vmem:[%s7377_s5 + $0xc4] ss:$8 sps:$4 sm:$0xff]   ;;  %1837 = vmatpush1.bf16.msra.mxu0 %v5482_v21 }
 0x119   : > { %v1040_v41 = vmax.f32 %v909_v30, 0.0  ;;  %v1072_v42 = vmax.f32 %v989_v32, 0.0  ;;  %1838 = vmatprep.subr.bf16.mxu0 %v5487_v26 }
 0x11a   : > { %v1093_v43 = vpack.c.bf16 %v1039_v37, %v1037_v36  ;;  %v6172_v44 = vpack.c.bf16 %v1071_v38, %v1069_v25 }
 0x11b   : > { %v912_v46 = vpop.f32.mrb[20].mxu0  ;;  %v1094_v47 = vpack.c.bf16 %v1040_v41, %v1038_v40  ;;  %v992_v48 = vpop.f32.mrb[20].mxu1  ;;  %v6177_v49 = vpack.c.bf16 %v1072_v42, %v1070_v31 }
 0x11c   : > { %v913_v51 = vadd.f32 %v912_v46, %v6054_v62  ;;  %v914_v52 = vpop.f32.mrb[21].mxu0  ;;  %v993_v53 = vadd.f32 %v992_v48, %v6054_v62  ;;  %v994_v54 = vpop.f32.mrb[21].mxu1  ;;  %1839 = vmatpush1.bf16.msra.mxu0 %v5485_v45 }
 0x11d   : > { %v915_v55 = vadd.f32 %v914_v52, %v6057_v63  ;;  %v916_v56 = vpop.f32.mrb[22].mxu0  ;;  %1393 = vmatprep.mubr.bf16.mxu1 %v1094_v47  ;;  %v995_v57 = vadd.f32 %v994_v54, %v6057_v63  ;;  %v996_v58 = vpop.f32.mrb[22].mxu1  ;;  %1840 = vmatprep.subr.bf16.mxu0 %v5490_v50  ;;  %v5509_v50 = vld [vmem:[%s7379_s7 + $0x40] ss:$8 sps:$4 sm:$0xff]  }
 0x11e   : > { %v917_v60 = vadd.f32 %v916_v56, %v6054_v62  ;;  %v918_v1 = vpop.f32.mrb[23].mxu0  ;;  %1394 = vmatmul.mubr.bf16.gmra.mrb[48].mxu1 %v1093_v43  ;;  %v1073_v2 = vmax.f32 %v993_v53, 0.0  ;;  %v997_v3 = vadd.f32 %v996_v58, %v6054_v62  ;;  %v998_v4 = vpop.f32.mrb[23].mxu1  ;;  %v1041_v12 = vmax.f32 %v913_v51, 0.0 }
 0x11f   : > { %v919_v7 = vadd.f32 %v918_v1, %v6057_v63  ;;  %v1074_v9 = vmax.f32 %v995_v57, 0.0  ;;  %v999_v10 = vadd.f32 %v998_v4, %v6057_v63  ;;  %v1042_v16 = vmax.f32 %v915_v55, 0.0 }
 0x120   : > { %v1043_v14 = vmax.f32 %v917_v60, 0.0  ;;  %v1075_v15 = vmax.f32 %v997_v3, 0.0  ;;  %v5488_v60 = vld [vmem:[%s7377_s5 + $0xd0] ss:$8 sps:$4 sm:$0xff]  }
 0x121   : > { %v1044_v17 = vmax.f32 %v919_v7, 0.0  ;;  %v1076_v18 = vmax.f32 %v999_v10, 0.0  ;;  %1841 = vmatpush1.bf16.msra.mxu0 %v5488_v60  ;;  %v5512_v60 = vld [vmem:[%s7379_s7 + $0x50] ss:$8 sps:$4 sm:$0xff]  }
 0x122   : > { %v1095_v19 = vpack.c.bf16 %v1043_v14, %v1041_v12  ;;  %v6196_v20 = vpack.c.bf16 %v1075_v15, %v1073_v2 }
 0x123   : > { %v922_v22 = vpop.f32.mrb[24].mxu0  ;;  %v1096_v23 = vpack.c.bf16 %v1044_v17, %v1042_v16  ;;  %v1002_v24 = vpop.f32.mrb[24].mxu1  ;;  %v6201_v25 = vpack.c.bf16 %v1076_v18, %v1074_v9 }
 0x124   : > { %v923_v27 = vadd.f32 %v922_v22, %v6054_v62  ;;  %v924_v29 = vpop.f32.mrb[25].mxu0  ;;  %v1003_v30 = vadd.f32 %v1002_v24, %v6054_v62  ;;  %v1004_v31 = vpop.f32.mrb[25].mxu1 }
 0x125   : > { %v925_v32 = vadd.f32 %v924_v29, %v6057_v63  ;;  %v926_v35 = vpop.f32.mrb[26].mxu0  ;;  %1403 = vmatprep.mubr.bf16.mxu1 %v1096_v23  ;;  %v1005_v36 = vadd.f32 %v1004_v31, %v6057_v63  ;;  %v1006_v37 = vpop.f32.mrb[26].mxu1 }
 0x126   : > { %v927_v38 = vadd.f32 %v926_v35, %v6054_v62  ;;  %v928_v40 = vpop.f32.mrb[27].mxu0  ;;  %1404 = vmatmul.mubr.bf16.gmra.mrb[52].mxu1 %v1095_v19  ;;  %v1077_v41 = vmax.f32 %v1003_v30, 0.0  ;;  %v1007_v42 = vadd.f32 %v1006_v37, %v6054_v62  ;;  %v1008_v43 = vpop.f32.mrb[27].mxu1  ;;  %v1045_v51 = vmax.f32 %v923_v27, 0.0 }
 0x127   : > { %v929_v46 = vadd.f32 %v928_v40, %v6057_v63  ;;  %v1078_v47 = vmax.f32 %v1005_v36, 0.0  ;;  %v1009_v48 = vadd.f32 %v1008_v43, %v6057_v63  ;;  %v1046_v54 = vmax.f32 %v925_v32, 0.0  ;;  %v5506_v40 = vld [vmem:[%s7379_s7 + $0x30] ss:$8 sps:$4 sm:$0xff]  }
 0x128   : > { %v1047_v52 = vmax.f32 %v927_v38, 0.0  ;;  %v1079_v53 = vmax.f32 %v1007_v42, 0.0 }
 0x129   : > { %v1048_v55 = vmax.f32 %v929_v46, 0.0  ;;  %v1080_v56 = vmax.f32 %v1009_v48, 0.0 }
 0x12a   : > { %v1097_v57 = vpack.c.bf16 %v1047_v52, %v1045_v51  ;;  %v1113_v58 = vpack.c.bf16 %v1079_v53, %v1077_v41  ;;  %v5508_v41 = vld [vmem:[%s7379_s7 + $0x34] ss:$8 sps:$4 sm:$0xff]   ;;  %v5511_v51 = vld [vmem:[%s7379_s7 + $0x44] ss:$8 sps:$4 sm:$0xff]  }
 0x12b   : > { %v932_v1 = vpop.f32.mrb[28].mxu0  ;;  %v1098_v2 = vpack.c.bf16 %v1048_v55, %v1046_v54  ;;  %v1012_v3 = vpop.f32.mrb[28].mxu1  ;;  %v1114_v4 = vpack.c.bf16 %v1080_v56, %v1078_v47  ;;  %v5514_v53 = vld [vmem:[%s7379_s7 + $0x54] ss:$8 sps:$4 sm:$0xff]  }
 0x12c   : > { %v933_v6 = vadd.f32 %v932_v1, %v6054_v62  ;;  %v934_v7 = vpop.f32.mrb[29].mxu0  ;;  %v1013_v9 = vadd.f32 %v1012_v3, %v6054_v62  ;;  %v1014_v10 = vpop.f32.mrb[29].mxu1  ;;  %v5517_v3 = vld [vmem:[%s7379_s7 + $0x64] ss:$8 sps:$4 sm:$0xff]  }
 0x12d   : > { %v935_v11 = vadd.f32 %v934_v7, %v6057_v63  ;;  %v936_v12 = vpop.f32.mrb[30].mxu0  ;;  %1413 = vmatprep.mubr.bf16.mxu1 %v1098_v2  ;;  %v1015_v14 = vadd.f32 %v1014_v10, %v6057_v63  ;;  %v1016_v15 = vpop.f32.mrb[30].mxu1 }
 0x12e   : > { %v937_v16 = vadd.f32 %v936_v12, %v6054_v62  ;;  %v938_v17 = vpop.f32.mrb[31].mxu0  ;;  %1414 = vmatmul.mubr.bf16.gmra.mrb[56].mxu1 %v1097_v57  ;;  %v1081_v18 = vmax.f32 %v1013_v9, 0.0  ;;  %v1017_v19 = vadd.f32 %v1016_v15, %v6054_v62  ;;  %v1018_v21 = vpop.f32.mrb[31].mxu1  ;;  %v1049_v26 = vmax.f32 %v933_v6, 0.0  ;;  %v5493_v62 = vld [vmem:[%s7377_s5 + $0xe4] ss:$8 sps:$4 sm:$0xff]  }
 0x12f   : > { %v939_v22 = vadd.f32 %v938_v17, %v6057_v63  ;;  %v1082_v23 = vmax.f32 %v1015_v14, 0.0  ;;  %v1019_v24 = vadd.f32 %v1018_v21, %v6057_v63  ;;  %v1050_v30 = vmax.f32 %v935_v11, 0.0  ;;  %v5491_v63 = vld [vmem:[%s7377_s5 + $0xe0] ss:$8 sps:$4 sm:$0xff]   ;;  %1842 = vmatprep.subr.bf16.mxu0 %v5493_v62  ;;  %v5520_v15 = vld [vmem:[%s7379_s7 + $0x74] ss:$8 sps:$4 sm:$0xff]  }
 0x130   : > { %v1051_v27 = vmax.f32 %v937_v16, 0.0  ;;  %v1083_v29 = vmax.f32 %v1017_v19, 0.0  ;;  %1843 = vmatpush1.bf16.msra.mxu0 %v5491_v63  ;;  %v5515_v12 = vld [vmem:[%s7379_s7 + $0x60] ss:$8 sps:$4 sm:$0xff]  }
 0x131   : > { %v1052_v31 = vmax.f32 %v939_v22, 0.0  ;;  %v1084_v32 = vmax.f32 %v1019_v24, 0.0  ;;  %v5518_v22 = vld [vmem:[%s7379_s7 + $0x70] ss:$8 sps:$4 sm:$0xff]  }
 0x132   : > { %v1099_v35 = vpack.c.bf16 %v1051_v27, %v1049_v26  ;;  %v1115_v36 = vpack.c.bf16 %v1083_v29, %v1081_v18  ;;  %v5523_v26 = vld [vmem:[%s7379_s7 + $0x84] ss:$8 sps:$4 sm:$0xff]  }
 0x133   : > { %v1100_v37 = vpack.c.bf16 %v1052_v31, %v1050_v30  ;;  %v1116_v38 = vpack.c.bf16 %v1084_v32, %v1082_v23 }
 0x135   : > { %1423 = vmatprep.mubr.bf16.mxu1 %v1100_v37 }
 0x136   : > { %1424 = vmatmul.mubr.bf16.gmra.mrb[60].mxu1 %v1099_v35 }
 0x137   : > { %1433 = vmatprep.mubr.bf16.mxu1 %v6081_v33  ;;  %v5494_v33 = vld [vmem:[%s7377_s5 + $0xf0] ss:$8 sps:$4 sm:$0xff]  }
 0x13e   : > { %1434 = vmatmul.mubr.bf16.gmra.mrb[64].mxu1 %v6076_v28  ;;  %v5496_v28 = vld [vmem:[%s7377_s5 + $0xf4] ss:$8 sps:$4 sm:$0xff]  }
 0x13f   : > { %1443 = vmatprep.mubr.bf16.mxu1 %v6105_v5  ;;  %1844 = vmatprep.subr.bf16.mxu0 %v5496_v28  ;;  %v5499_v5 = vld [vmem:[%s7379_s7 + $0x4] ss:$8 sps:$4 sm:$0xff]  }
 0x140   : > { %1845 = vmatpush1.bf16.msra.mxu0 %v5494_v33  ;;  %2307 = vmatprep.subr.bf16.mxu1 %v5499_v5  ;;  %v5524_v5 = vld [vmem:[%s7379_s7 + $0x90] ss:$8 sps:$4 sm:$0xff]  }
 0x146   : > { %1444 = vmatmul.mubr.bf16.gmra.mrb[68].mxu1 %v6100_v0  ;;  %v5497_v0 = vld [vmem:[%s7379_s7] ss:$8 sps:$4 sm:$0xff]  }
 0x147   : > { %1453 = vmatprep.mubr.bf16.mxu1 %v6129_v39  ;;  %2308 = vmatpush1.bf16.msra.mxu1 %v5497_v0  ;;  %v5502_v39 = vld [vmem:[%s7379_s7 + $0x14] ss:$8 sps:$4 sm:$0xff]  }
 0x148   : > { %2309 = vmatprep.subr.bf16.mxu1 %v5502_v39 }
 0x14e   : > { %1454 = vmatmul.mubr.bf16.gmra.mrb[72].mxu1 %v6124_v34  ;;  %v5500_v34 = vld [vmem:[%s7379_s7 + $0x10] ss:$8 sps:$4 sm:$0xff]  }
 0x14f   : > { %1463 = vmatprep.mubr.bf16.mxu1 %v6153_v13  ;;  %2310 = vmatpush1.bf16.msra.mxu1 %v5500_v34  ;;  %v5503_v13 = vld [vmem:[%s7379_s7 + $0x20] ss:$8 sps:$4 sm:$0xff]  }
 0x156   : > { %1464 = vmatmul.mubr.bf16.gmra.mrb[76].mxu1 %v6148_v8  ;;  %v1149_v8 = vld [vmem:[%s7376_s4] sm:$0x3] }
 0x157   : > { %1473 = vmatprep.mubr.bf16.mxu1 %v6177_v49  ;;  %v6277_v49 = vrot.slane %v1149_v8, %v6046_v59 }
 0x15e   : > { %1474 = vmatmul.mubr.bf16.gmra.mrb[80].mxu1 %v6172_v44  ;;  %v5505_v44 = vld [vmem:[%s7379_s7 + $0x24] ss:$8 sps:$4 sm:$0xff]  }
 0x15f   : > { %1483 = vmatprep.mubr.bf16.mxu1 %v6201_v25  ;;  %2311 = vmatprep.subr.bf16.mxu1 %v5505_v44 }
 0x160   : > { %2312 = vmatpush1.bf16.msra.mxu1 %v5503_v13 }
 0x161   : > { %2313 = vmatprep.subr.bf16.mxu1 %v5508_v41 }
 0x164   : > { %2314 = vmatpush1.bf16.msra.mxu1 %v5506_v40 }
 0x165   : > { %2315 = vmatprep.subr.bf16.mxu1 %v5511_v51 }
 0x166   : > { %1484 = vmatmul.mubr.bf16.gmra.mrb[84].mxu1 %v6196_v20  ;;  %v6280_v20 = vrot.slane %v1149_v8, %v6051_v61  ;;  %v5529_v8 = vld [vmem:[%s7379_s7 + $0xa4] ss:$8 sps:$4 sm:$0xff]  }
 0x167   : > { %1493 = vmatprep.mubr.bf16.mxu1 %v1114_v4 }
 0x168   : > { %2316 = vmatpush1.bf16.msra.mxu1 %v5509_v50 }
 0x169   : > { %2317 = vmatprep.subr.bf16.mxu1 %v5514_v53  ;;  %v5530_v53 = vld [vmem:[%s7379_s7 + $0xb0] ss:$8 sps:$4 sm:$0xff]  }
 0x16c   : > { %2318 = vmatpush1.bf16.msra.mxu1 %v5512_v60 }
 0x16d   : > { %2319 = vmatprep.subr.bf16.mxu1 %v5517_v3 }
 0x16e   : > { %1494 = vmatmul.mubr.bf16.gmra.mrb[88].mxu1 %v1113_v58 }
 0x16f   : > { %1503 = vmatprep.mubr.bf16.mxu1 %v1116_v38  ;;  %v5526_v38 = vld [vmem:[%s7379_s7 + $0x94] ss:$8 sps:$4 sm:$0xff]  }
 0x170   : > { %2320 = vmatpush1.bf16.msra.mxu1 %v5515_v12 }
 0x171   : > { %2321 = vmatprep.subr.bf16.mxu1 %v5520_v15  ;;  %v5536_v15 = vld [vmem:[%s7379_s7 + $0xd0] ss:$8 sps:$4 sm:$0xff]  }
 0x174   : > { %2322 = vmatpush1.bf16.msra.mxu1 %v5518_v22 }
 0x175   : > { %2323 = vmatprep.subr.bf16.mxu1 %v5523_v26 }
 0x176   : > { %1504 = vmatmul.mubr.bf16.gmra.mrb[92].mxu1 %v1115_v36  ;;  %v5521_v36 = vld [vmem:[%s7379_s7 + $0x80] ss:$8 sps:$4 sm:$0xff]  }
 0x178   : > { %2324 = vmatpush1.bf16.msra.mxu1 %v5521_v36 }
 0x179   : > { %2325 = vmatprep.subr.bf16.mxu1 %v5526_v38 }
 0x17c   : > { %2326 = vmatpush1.bf16.msra.mxu1 %v5524_v5 }
 0x17d   : > { %2327 = vmatprep.subr.bf16.mxu1 %v5529_v8 }
 0x1d1   : > { %v1355_v25 = vpop.f32.mrb[32].mxu1 }
 0x1d2   : > { %v1356_v42 = vadd.f32 %v1355_v25, %v6277_v49  ;;  %v1357_v43 = vpop.f32.mrb[33].mxu1 }
 0x1d3   : > { %v1358_v45 = vadd.f32 %v1357_v43, %v6280_v20  ;;  %v1359_v46 = vpop.f32.mrb[34].mxu1  ;;  %v5527_v43 = vld [vmem:[%s7379_s7 + $0xa0] ss:$8 sps:$4 sm:$0xff]  }
 0x1d4   : > { %v1360_v47 = vadd.f32 %v1359_v46, %v6277_v49  ;;  %v1361_v48 = vpop.f32.mrb[35].mxu1  ;;  %v1514_v54 = vmax.f32 %v1356_v42, 0.0  ;;  %v5532_v46 = vld [vmem:[%s7379_s7 + $0xb4] ss:$8 sps:$4 sm:$0xff]   ;;  %2328 = vmatpush1.bf16.msra.mxu1 %v5527_v43 }
 0x1d5   : > { %v1362_v52 = vadd.f32 %v1361_v48, %v6280_v20  ;;  %v1515_v56 = vmax.f32 %v1358_v45, 0.0  ;;  %2329 = vmatprep.subr.bf16.mxu1 %v5532_v46 }
 0x1d6   : > { %v1516_v55 = vmax.f32 %v1360_v47, 0.0 }
 0x1d7   : > { %v1517_v57 = vmax.f32 %v1362_v52, 0.0 }
 0x1d8   : > { %v1578_v58 = vpack.c.bf16 %v1516_v55, %v1514_v54  ;;  %2330 = vmatpush1.bf16.msra.mxu1 %v5530_v53 }
 0x1d9   : > { %v1579_v1 = vpack.c.bf16 %v1517_v57, %v1515_v56  ;;  %v1365_v2 = vpop.f32.mrb[36].mxu1  ;;  %v5535_v56 = vld [vmem:[%s7379_s7 + $0xc4] ss:$8 sps:$4 sm:$0xff]  }
 0x1da   : > { %v1366_v4 = vadd.f32 %v1365_v2, %v6277_v49  ;;  %v1367_v6 = vpop.f32.mrb[37].mxu1  ;;  %2331 = vmatprep.subr.bf16.mxu1 %v5535_v56 }
 0x1db   : > { %v1368_v7 = vadd.f32 %v1367_v6, %v6280_v20  ;;  %v1369_v9 = vpop.f32.mrb[38].mxu1  ;;  %1846 = vmatprep.mubr.bf16.mxu0 %v1579_v1 }
 0x1dc   : > { %v1370_v10 = vadd.f32 %v1369_v9, %v6277_v49  ;;  %v1371_v11 = vpop.f32.mrb[39].mxu1  ;;  %1847 = vmatmul.mubr.bf16.vlgmr.msra.gmra.mrb[32].mxu0 %v1578_v58  ;;  %v1518_v16 = vmax.f32 %v1366_v4, 0.0  ;;  %v5533_v4 = vld [vmem:[%s7379_s7 + $0xc0] ss:$8 sps:$4 sm:$0xff]  }
 0x1dd   : > { %v1372_v14 = vadd.f32 %v1371_v11, %v6280_v20  ;;  %v1519_v18 = vmax.f32 %v1368_v7, 0.0  ;;  %v5538_v7 = vld [vmem:[%s7379_s7 + $0xd4] ss:$8 sps:$4 sm:$0xff]   ;;  %2332 = vmatpush1.bf16.msra.mxu1 %v5533_v4 }
 0x1de   : > { %v1520_v17 = vmax.f32 %v1370_v10, 0.0  ;;  %2333 = vmatprep.subr.bf16.mxu1 %v5538_v7 }
 0x1df   : > { %v1521_v19 = vmax.f32 %v1372_v14, 0.0 }
 0x1e0   : > { %v1580_v21 = vpack.c.bf16 %v1520_v17, %v1518_v16 }
 0x1e1   : > { %v1581_v23 = vpack.c.bf16 %v1521_v19, %v1519_v18  ;;  %v1375_v24 = vpop.f32.mrb[40].mxu1  ;;  %v5541_v18 = vld [vmem:[%s7379_s7 + $0xe4] ss:$8 sps:$4 sm:$0xff]   ;;  %2334 = vmatpush1.bf16.msra.mxu1 %v5536_v15 }
 0x1e2   : > { %v1376_v27 = vadd.f32 %v1375_v24, %v6277_v49  ;;  %v1377_v29 = vpop.f32.mrb[41].mxu1  ;;  %2335 = vmatprep.subr.bf16.mxu1 %v5541_v18 }
 0x1e3   : > { %v1378_v30 = vadd.f32 %v1377_v29, %v6280_v20  ;;  %v1379_v31 = vpop.f32.mrb[42].mxu1  ;;  %1856 = vmatprep.mubr.bf16.mxu0 %v1581_v23 }
 0x1e4   : > { %v1380_v32 = vadd.f32 %v1379_v31, %v6277_v49  ;;  %v1381_v35 = vpop.f32.mrb[43].mxu1  ;;  %1857 = vmatmul.mubr.bf16.gmra.mrb[36].mxu0 %v1580_v21  ;;  %v1522_v62 = vmax.f32 %v1376_v27, 0.0  ;;  %v5539_v27 = vld [vmem:[%s7379_s7 + $0xe0] ss:$8 sps:$4 sm:$0xff]  }
 0x1e5   : > { %v1382_v37 = vadd.f32 %v1381_v35, %v6280_v20  ;;  %v1523_v28 = vmax.f32 %v1378_v30, 0.0  ;;  %2336 = vmatpush1.bf16.msra.mxu1 %v5539_v27 }
 0x1e6   : > { %v1524_v63 = vmax.f32 %v1380_v32, 0.0 }
 0x1e7   : > { %v1525_v33 = vmax.f32 %v1382_v37, 0.0 }
 0x1e8   : > { %v1582_v0 = vpack.c.bf16 %v1524_v63, %v1522_v62 }
 0x1e9   : > { %v1583_v34 = vpack.c.bf16 %v1525_v33, %v1523_v28  ;;  %v1385_v39 = vpop.f32.mrb[44].mxu1 }
 0x1ea   : > { %v1386_v13 = vadd.f32 %v1385_v39, %v6277_v49  ;;  %v1387_v44 = vpop.f32.mrb[45].mxu1 }
 0x1eb   : > { %v1388_v25 = vadd.f32 %v1387_v44, %v6280_v20  ;;  %v1389_v40 = vpop.f32.mrb[46].mxu1  ;;  %1866 = vmatprep.mubr.bf16.mxu0 %v1583_v34 }
 0x1ec   : > { %v1390_v41 = vadd.f32 %v1389_v40, %v6277_v49  ;;  %v1391_v42 = vpop.f32.mrb[47].mxu1  ;;  %1867 = vmatmul.mubr.bf16.gmra.mrb[40].mxu0 %v1582_v0  ;;  %v1526_v47 = vmax.f32 %v1386_v13, 0.0 }
 0x1ed   : > { %v1392_v45 = vadd.f32 %v1391_v42, %v6280_v20  ;;  %v1527_v50 = vmax.f32 %v1388_v25, 0.0 }
 0x1ee   : > { %v1528_v48 = vmax.f32 %v1390_v41, 0.0 }
 0x1ef   : > { %v1529_v51 = vmax.f32 %v1392_v45, 0.0 }
 0x1f0   : > { %v1584_v52 = vpack.c.bf16 %v1528_v48, %v1526_v47 }
 0x1f1   : > { %v1585_v54 = vpack.c.bf16 %v1529_v51, %v1527_v50  ;;  %v1395_v55 = vpop.f32.mrb[48].mxu1 }
 0x1f2   : > { %v1396_v57 = vadd.f32 %v1395_v55, %v6277_v49  ;;  %v1397_v58 = vpop.f32.mrb[49].mxu1 }
 0x1f3   : > { %v1398_v60 = vadd.f32 %v1397_v58, %v6280_v20  ;;  %v1399_v1 = vpop.f32.mrb[50].mxu1  ;;  %1876 = vmatprep.mubr.bf16.mxu0 %v1585_v54 }
 0x1f4   : > { %v1400_v2 = vadd.f32 %v1399_v1, %v6277_v49  ;;  %v1401_v3 = vpop.f32.mrb[51].mxu1  ;;  %1877 = vmatmul.mubr.bf16.gmra.mrb[44].mxu0 %v1584_v52  ;;  %v1530_v9 = vmax.f32 %v1396_v57, 0.0 }
 0x1f5   : > { %v1402_v6 = vadd.f32 %v1401_v3, %v6280_v20  ;;  %v1531_v11 = vmax.f32 %v1398_v60, 0.0 }
 0x1f6   : > { %v1532_v10 = vmax.f32 %v1400_v2, 0.0 }
 0x1f7   : > { %v1533_v12 = vmax.f32 %v1402_v6, 0.0 }
 0x1f8   : > { %v1586_v14 = vpack.c.bf16 %v1532_v10, %v1530_v9 }
 0x1f9   : > { %v1587_v16 = vpack.c.bf16 %v1533_v12, %v1531_v11  ;;  %v1405_v17 = vpop.f32.mrb[52].mxu1 }
 0x1fa   : > { %v1406_v19 = vadd.f32 %v1405_v17, %v6277_v49  ;;  %v1407_v21 = vpop.f32.mrb[53].mxu1 }
 0x1fb   : > { %v1408_v22 = vadd.f32 %v1407_v21, %v6280_v20  ;;  %v1409_v23 = vpop.f32.mrb[54].mxu1  ;;  %1886 = vmatprep.mubr.bf16.mxu0 %v1587_v16 }
 0x1fc   : > { %v1410_v24 = vadd.f32 %v1409_v23, %v6277_v49  ;;  %v1411_v26 = vpop.f32.mrb[55].mxu1  ;;  %1887 = vmatmul.mubr.bf16.gmra.mrb[48].mxu0 %v1586_v14  ;;  %v1534_v30 = vmax.f32 %v1406_v19, 0.0 }
 0x1fd   : > { %v1412_v29 = vadd.f32 %v1411_v26, %v6280_v20  ;;  %v1535_v32 = vmax.f32 %v1408_v22, 0.0 }
 0x1fe   : > { %v1536_v31 = vmax.f32 %v1410_v24, 0.0 }
 0x1ff   : > { %v1537_v35 = vmax.f32 %v1412_v29, 0.0 }
 0x200   : > { %v1588_v36 = vpack.c.bf16 %v1536_v31, %v1534_v30 }
 0x201   : > { %v1589_v37 = vpack.c.bf16 %v1537_v35, %v1535_v32  ;;  %v1415_v38 = vpop.f32.mrb[56].mxu1 }
 0x202   : > { %v1416_v62 = vadd.f32 %v1415_v38, %v6277_v49  ;;  %v1417_v63 = vpop.f32.mrb[57].mxu1 }
 0x203   : > { %v1418_v28 = vadd.f32 %v1417_v63, %v6280_v20  ;;  %v1419_v33 = vpop.f32.mrb[58].mxu1  ;;  %1896 = vmatprep.mubr.bf16.mxu0 %v1589_v37 }
 0x204   : > { %v1420_v0 = vadd.f32 %v1419_v33, %v6277_v49  ;;  %v1421_v5 = vpop.f32.mrb[59].mxu1  ;;  %1897 = vmatmul.mubr.bf16.gmra.mrb[52].mxu0 %v1588_v36  ;;  %v1538_v39 = vmax.f32 %v1416_v62, 0.0 }
 0x205   : > { %v1422_v34 = vadd.f32 %v1421_v5, %v6280_v20  ;;  %v1539_v13 = vmax.f32 %v1418_v28, 0.0 }
 0x206   : > { %v1540_v8 = vmax.f32 %v1420_v0, 0.0 }
 0x207   : > { %v1541_v44 = vmax.f32 %v1422_v34, 0.0 }
 0x208   : > { %v1590_v25 = vpack.c.bf16 %v1540_v8, %v1538_v39 }
 0x209   : > { %v1591_v40 = vpack.c.bf16 %v1541_v44, %v1539_v13  ;;  %v1425_v41 = vpop.f32.mrb[60].mxu1 }
 0x20a   : > { %v1426_v42 = vadd.f32 %v1425_v41, %v6277_v49  ;;  %v1427_v43 = vpop.f32.mrb[61].mxu1 }
 0x20b   : > { %v1428_v45 = vadd.f32 %v1427_v43, %v6280_v20  ;;  %v1429_v46 = vpop.f32.mrb[62].mxu1  ;;  %1906 = vmatprep.mubr.bf16.mxu0 %v1591_v40 }
 0x20c   : > { %v1430_v47 = vadd.f32 %v1429_v46, %v6277_v49  ;;  %v1431_v48 = vpop.f32.mrb[63].mxu1  ;;  %1907 = vmatmul.mubr.bf16.gmra.mrb[56].mxu0 %v1590_v25  ;;  %v1542_v51 = vmax.f32 %v1426_v42, 0.0 }
 0x20d   : > { %v1432_v50 = vadd.f32 %v1431_v48, %v6280_v20  ;;  %v1543_v53 = vmax.f32 %v1428_v45, 0.0 }
 0x20e   : > { %v1544_v52 = vmax.f32 %v1430_v47, 0.0 }
 0x20f   : > { %v1545_v54 = vmax.f32 %v1432_v50, 0.0 }
 0x210   : > { %v1592_v55 = vpack.c.bf16 %v1544_v52, %v1542_v51 }
 0x211   : > { %v1593_v56 = vpack.c.bf16 %v1545_v54, %v1543_v53  ;;  %v1435_v57 = vpop.f32.mrb[64].mxu1 }
 0x212   : > { %v1436_v58 = vadd.f32 %v1435_v57, %v6277_v49  ;;  %v1437_v60 = vpop.f32.mrb[65].mxu1 }
 0x213   : > { %v1438_v1 = vadd.f32 %v1437_v60, %v6280_v20  ;;  %v1439_v2 = vpop.f32.mrb[66].mxu1  ;;  %1916 = vmatprep.mubr.bf16.mxu0 %v1593_v56 }
 0x214   : > { %v1440_v3 = vadd.f32 %v1439_v2, %v6277_v49  ;;  %v1441_v4 = vpop.f32.mrb[67].mxu1  ;;  %1917 = vmatmul.mubr.bf16.gmra.mrb[60].mxu0 %v1592_v55  ;;  %v1546_v7 = vmax.f32 %v1436_v58, 0.0 }
 0x215   : > { %v1442_v6 = vadd.f32 %v1441_v4, %v6280_v20  ;;  %v1547_v10 = vmax.f32 %v1438_v1, 0.0  ;;  %v5544_v1 = vld [vmem:[%s7379_s7 + $0xf4] ss:$8 sps:$4 sm:$0xff]  }
 0x216   : > { %v1548_v9 = vmax.f32 %v1440_v3, 0.0  ;;  %v5542_v3 = vld [vmem:[%s7379_s7 + $0xf0] ss:$8 sps:$4 sm:$0xff]   ;;  %2337 = vmatprep.subr.bf16.mxu1 %v5544_v1  ;;  %v5556_v1 = vld [vmem:[%s7381_s9 + $0x34] ss:$8 sps:$4 sm:$0xff]  }
 0x217   : > { %v1549_v11 = vmax.f32 %v1442_v6, 0.0  ;;  %2338 = vmatpush1.bf16.msra.mxu1 %v5542_v3 }
 0x218   : > { %v1594_v12 = vpack.c.bf16 %v1548_v9, %v1546_v7 }
 0x219   : > { %v1595_v14 = vpack.c.bf16 %v1549_v11, %v1547_v10  ;;  %v1445_v15 = vpop.f32.mrb[68].mxu1 }
 0x21a   : > { %v1446_v16 = vadd.f32 %v1445_v15, %v6277_v49  ;;  %v1447_v17 = vpop.f32.mrb[69].mxu1 }
 0x21b   : > { %v1448_v18 = vadd.f32 %v1447_v17, %v6280_v20  ;;  %v1449_v19 = vpop.f32.mrb[70].mxu1  ;;  %1926 = vmatprep.mubr.bf16.mxu0 %v1595_v14 }
 0x21c   : > { %v1450_v21 = vadd.f32 %v1449_v19, %v6277_v49  ;;  %v1451_v22 = vpop.f32.mrb[71].mxu1  ;;  %1927 = vmatmul.mubr.bf16.gmra.mrb[64].mxu0 %v1594_v12  ;;  %v1550_v24 = vmax.f32 %v1446_v16, 0.0 }
 0x21d   : > { %v1452_v23 = vadd.f32 %v1451_v22, %v6280_v20  ;;  %v1551_v27 = vmax.f32 %v1448_v18, 0.0 }
 0x21e   : > { %v1552_v26 = vmax.f32 %v1450_v21, 0.0 }
 0x21f   : > { %v1553_v29 = vmax.f32 %v1452_v23, 0.0 }
 0x220   : > { %v1596_v30 = vpack.c.bf16 %v1552_v26, %v1550_v24 }
 0x221   : > { %v1597_v31 = vpack.c.bf16 %v1553_v29, %v1551_v27  ;;  %v1455_v32 = vpop.f32.mrb[72].mxu1 }
 0x222   : > { %v1456_v35 = vadd.f32 %v1455_v32, %v6277_v49  ;;  %v1457_v36 = vpop.f32.mrb[73].mxu1 }
 0x223   : > { %v1458_v37 = vadd.f32 %v1457_v36, %v6280_v20  ;;  %v1459_v38 = vpop.f32.mrb[74].mxu1  ;;  %1936 = vmatprep.mubr.bf16.mxu0 %v1597_v31 }
 0x224   : > { %v1460_v62 = vadd.f32 %v1459_v38, %v6277_v49  ;;  %v1461_v63 = vpop.f32.mrb[75].mxu1  ;;  %1937 = vmatmul.mubr.bf16.gmra.mrb[68].mxu0 %v1596_v30  ;;  %v1554_v33 = vmax.f32 %v1456_v35, 0.0 }
 0x225   : > { %v1462_v28 = vadd.f32 %v1461_v63, %v6280_v20  ;;  %v1555_v5 = vmax.f32 %v1458_v37, 0.0 }
 0x226   : > { %v1556_v0 = vmax.f32 %v1460_v62, 0.0 }
 0x227   : > { %v1557_v34 = vmax.f32 %v1462_v28, 0.0 }
 0x228   : > { %v1598_v39 = vpack.c.bf16 %v1556_v0, %v1554_v33 }
 0x229   : > { %v1599_v8 = vpack.c.bf16 %v1557_v34, %v1555_v5  ;;  %v1465_v13 = vpop.f32.mrb[76].mxu1 }
 0x22a   : > { %v1466_v44 = vadd.f32 %v1465_v13, %v6277_v49  ;;  %v1467_v25 = vpop.f32.mrb[77].mxu1 }
 0x22b   : > { %v1468_v40 = vadd.f32 %v1467_v25, %v6280_v20  ;;  %v1469_v41 = vpop.f32.mrb[78].mxu1  ;;  %1946 = vmatprep.mubr.bf16.mxu0 %v1599_v8 }
 0x22c   : > { %v1470_v42 = vadd.f32 %v1469_v41, %v6277_v49  ;;  %v1471_v43 = vpop.f32.mrb[79].mxu1  ;;  %1947 = vmatmul.mubr.bf16.gmra.mrb[72].mxu0 %v1598_v39  ;;  %v1558_v46 = vmax.f32 %v1466_v44, 0.0 }
 0x22d   : > { %v1472_v45 = vadd.f32 %v1471_v43, %v6280_v20  ;;  %v1559_v48 = vmax.f32 %v1468_v40, 0.0 }
 0x22e   : > { %v1560_v47 = vmax.f32 %v1470_v42, 0.0 }
 0x22f   : > { %v1561_v50 = vmax.f32 %v1472_v45, 0.0 }
 0x230   : > { %v1600_v51 = vpack.c.bf16 %v1560_v47, %v1558_v46 }
 0x231   : > { %v1601_v52 = vpack.c.bf16 %v1561_v50, %v1559_v48  ;;  %v1475_v53 = vpop.f32.mrb[80].mxu1 }
 0x232   : > { %v1476_v54 = vadd.f32 %v1475_v53, %v6277_v49  ;;  %v1477_v55 = vpop.f32.mrb[81].mxu1  ;;  %v1642_v53 = vld [vmem:[%s7378_s6] sm:$0x3] }
 0x233   : > { %v1478_v56 = vadd.f32 %v1477_v55, %v6280_v20  ;;  %v1479_v57 = vpop.f32.mrb[82].mxu1  ;;  %1956 = vmatprep.mubr.bf16.mxu0 %v1601_v52  ;;  %v5550_v52 = vld [vmem:[%s7381_s9 + $0x14] ss:$8 sps:$4 sm:$0xff]   ;;  %v5553_v55 = vld [vmem:[%s7381_s9 + $0x24] ss:$8 sps:$4 sm:$0xff]  }
 0x234   : > { %v1480_v58 = vadd.f32 %v1479_v57, %v6277_v49  ;;  %v1481_v60 = vpop.f32.mrb[83].mxu1  ;;  %1957 = vmatmul.mubr.bf16.gmra.mrb[76].mxu0 %v1600_v51  ;;  %v1562_v4 = vmax.f32 %v1476_v54, 0.0  ;;  %v5545_v51 = vld [vmem:[%s7381_s9] ss:$8 sps:$4 sm:$0xff]   ;;  %v6449_v57 = vrot.slane %v1642_v53, %v6051_v61 }
 0x235   : > { %v1482_v2 = vadd.f32 %v1481_v60, %v6280_v20  ;;  %v1563_v7 = vmax.f32 %v1478_v56, 0.0  ;;  %v5551_v54 = vld [vmem:[%s7381_s9 + $0x20] ss:$8 sps:$4 sm:$0xff]   ;;  %v6446_v56 = vrot.slane %v1642_v53, %v6046_v59  ;;  %v5554_v60 = vld [vmem:[%s7381_s9 + $0x30] ss:$8 sps:$4 sm:$0xff]  }
 0x236   : > { %v1564_v6 = vmax.f32 %v1480_v58, 0.0  ;;  %v5577_v53 = vld [vmem:[%s7381_s9 + $0xa4] ss:$8 sps:$4 sm:$0xff]  }
 0x237   : > { %v1565_v9 = vmax.f32 %v1482_v2, 0.0 }
 0x238   : > { %v1602_v10 = vpack.c.bf16 %v1564_v6, %v1562_v4 }
 0x239   : > { %v1603_v11 = vpack.c.bf16 %v1565_v9, %v1563_v7  ;;  %v1485_v12 = vpop.f32.mrb[84].mxu1 }
 0x23a   : > { %v1486_v14 = vadd.f32 %v1485_v12, %v6277_v49  ;;  %v1487_v15 = vpop.f32.mrb[85].mxu1 }
 0x23b   : > { %v1488_v16 = vadd.f32 %v1487_v15, %v6280_v20  ;;  %v1489_v17 = vpop.f32.mrb[86].mxu1  ;;  %1966 = vmatprep.mubr.bf16.mxu0 %v1603_v11  ;;  %v5559_v11 = vld [vmem:[%s7381_s9 + $0x44] ss:$8 sps:$4 sm:$0xff]  }
 0x23c   : > { %v1490_v18 = vadd.f32 %v1489_v17, %v6277_v49  ;;  %v1491_v19 = vpop.f32.mrb[87].mxu1  ;;  %1967 = vmatmul.mubr.bf16.gmra.mrb[80].mxu0 %v1602_v10  ;;  %v1566_v22 = vmax.f32 %v1486_v14, 0.0  ;;  %v5557_v10 = vld [vmem:[%s7381_s9 + $0x40] ss:$8 sps:$4 sm:$0xff]   ;;  %v5562_v14 = vld [vmem:[%s7381_s9 + $0x54] ss:$8 sps:$4 sm:$0xff]  }
 0x23d   : > { %v1492_v21 = vadd.f32 %v1491_v19, %v6280_v20  ;;  %v1567_v24 = vmax.f32 %v1488_v16, 0.0 }
 0x23e   : > { %v1568_v23 = vmax.f32 %v1490_v18, 0.0 }
 0x23f   : > { %v1569_v26 = vmax.f32 %v1492_v21, 0.0  ;;  %v5560_v21 = vld [vmem:[%s7381_s9 + $0x50] ss:$8 sps:$4 sm:$0xff]  }
 0x240   : > { %v1604_v27 = vpack.c.bf16 %v1568_v23, %v1566_v22 }
 0x241   : > { %v1605_v29 = vpack.c.bf16 %v1569_v26, %v1567_v24  ;;  %v1495_v30 = vpop.f32.mrb[88].mxu1  ;;  %v5565_v24 = vld [vmem:[%s7381_s9 + $0x64] ss:$8 sps:$4 sm:$0xff]  }
 0x242   : > { %v1496_v31 = vadd.f32 %v1495_v30, %v6277_v49  ;;  %v1497_v32 = vpop.f32.mrb[89].mxu1 }
 0x243   : > { %v1498_v35 = vadd.f32 %v1497_v32, %v6280_v20  ;;  %v1499_v36 = vpop.f32.mrb[90].mxu1  ;;  %1976 = vmatprep.mubr.bf16.mxu0 %v1605_v29 }
 0x244   : > { %v1500_v37 = vadd.f32 %v1499_v36, %v6277_v49  ;;  %v1501_v38 = vpop.f32.mrb[91].mxu1  ;;  %1977 = vmatmul.mubr.bf16.gmra.mrb[84].mxu0 %v1604_v27  ;;  %v1570_v63 = vmax.f32 %v1496_v31, 0.0 }
 0x245   : > { %v1502_v62 = vadd.f32 %v1501_v38, %v6280_v20  ;;  %v1571_v33 = vmax.f32 %v1498_v35, 0.0  ;;  %v5563_v35 = vld [vmem:[%s7381_s9 + $0x60] ss:$8 sps:$4 sm:$0xff]  }
 0x246   : > { %v1572_v28 = vmax.f32 %v1500_v37, 0.0  ;;  %v5568_v37 = vld [vmem:[%s7381_s9 + $0x74] ss:$8 sps:$4 sm:$0xff]  }
 0x247   : > { %v1573_v0 = vmax.f32 %v1502_v62, 0.0 }
 0x248   : > { %v1606_v5 = vpack.c.bf16 %v1572_v28, %v1570_v63 }
 0x249   : > { %v1607_v34 = vpack.c.bf16 %v1573_v0, %v1571_v33  ;;  %v1505_v39 = vpop.f32.mrb[92].mxu1  ;;  %v5566_v0 = vld [vmem:[%s7381_s9 + $0x70] ss:$8 sps:$4 sm:$0xff]  }
 0x24a   : > { %v1506_v8 = vadd.f32 %v1505_v39, %v6277_v49  ;;  %v1507_v13 = vpop.f32.mrb[93].mxu1  ;;  %v5571_v39 = vld [vmem:[%s7381_s9 + $0x84] ss:$8 sps:$4 sm:$0xff]  }
 0x24b   : > { %v1508_v44 = vadd.f32 %v1507_v13, %v6280_v20  ;;  %v1509_v25 = vpop.f32.mrb[94].mxu1  ;;  %1986 = vmatprep.mubr.bf16.mxu0 %v1607_v34 }
 0x24c   : > { %v1510_v40 = vadd.f32 %v1509_v25, %v6277_v49  ;;  %v1511_v41 = vpop.f32.mrb[95].mxu1  ;;  %1987 = vmatmul.mubr.bf16.gmra.mrb[88].mxu0 %v1606_v5  ;;  %v1574_v43 = vmax.f32 %v1506_v8, 0.0  ;;  %v5547_v49 = vld [vmem:[%s7381_s9 + $0x4] ss:$8 sps:$4 sm:$0xff]  }
 0x24d   : > { %v1512_v42 = vadd.f32 %v1511_v41, %v6280_v20  ;;  %v1575_v46 = vmax.f32 %v1508_v44, 0.0  ;;  %2800 = vmatprep.subr.bf16.mxu0 %v5547_v49  ;;  %v5548_v20 = vld [vmem:[%s7381_s9 + $0x10] ss:$8 sps:$4 sm:$0xff]  }
 0x24e   : > { %v1576_v45 = vmax.f32 %v1510_v40, 0.0  ;;  %2801 = vmatpush1.bf16.msra.mxu0 %v5545_v51  ;;  %v5572_v49 = vld [vmem:[%s7381_s9 + $0x90] ss:$8 sps:$4 sm:$0xff]  }
 0x24f   : > { %v1577_v47 = vmax.f32 %v1512_v42, 0.0  ;;  %2802 = vmatprep.subr.bf16.mxu0 %v5550_v52  ;;  %v5569_v42 = vld [vmem:[%s7381_s9 + $0x80] ss:$8 sps:$4 sm:$0xff]  }
 0x250   : > { %v1608_v48 = vpack.c.bf16 %v1576_v45, %v1574_v43  ;;  %v5574_v45 = vld [vmem:[%s7381_s9 + $0x94] ss:$8 sps:$4 sm:$0xff]  }
 0x251   : > { %v1609_v50 = vpack.c.bf16 %v1577_v47, %v1575_v46 }
 0x252   : > { %2803 = vmatpush1.bf16.msra.mxu0 %v5548_v20 }
 0x253   : > { %1996 = vmatprep.mubr.bf16.mxu0 %v1609_v50  ;;  %2804 = vmatprep.subr.bf16.mxu0 %v5553_v55 }
 0x254   : > { %1997 = vmatmul.mubr.bf16.gmra.mrb[92].mxu0 %v1608_v48 }
 0x256   : > { %2805 = vmatpush1.bf16.msra.mxu0 %v5551_v54 }
 0x257   : > { %2806 = vmatprep.subr.bf16.mxu0 %v5556_v1 }
 0x25a   : > { %2807 = vmatpush1.bf16.msra.mxu0 %v5554_v60 }
 0x25b   : > { %2808 = vmatprep.subr.bf16.mxu0 %v5559_v11 }
 0x25e   : > { %2809 = vmatpush1.bf16.msra.mxu0 %v5557_v10 }
 0x25f   : > { %2810 = vmatprep.subr.bf16.mxu0 %v5562_v14  ;;  %v5578_v14 = vld [vmem:[%s7381_s9 + $0xb0] ss:$8 sps:$4 sm:$0xff]  }
 0x262   : > { %2811 = vmatpush1.bf16.msra.mxu0 %v5560_v21 }
 0x263   : > { %2812 = vmatprep.subr.bf16.mxu0 %v5565_v24 }
 0x266   : > { %2813 = vmatpush1.bf16.msra.mxu0 %v5563_v35 }
 0x267   : > { %2814 = vmatprep.subr.bf16.mxu0 %v5568_v37  ;;  %v5584_v37 = vld [vmem:[%s7381_s9 + $0xd0] ss:$8 sps:$4 sm:$0xff]  }
 0x26a   : > { %2815 = vmatpush1.bf16.msra.mxu0 %v5566_v0 }
 0x26b   : > { %2816 = vmatprep.subr.bf16.mxu0 %v5571_v39 }
 0x26e   : > { %2817 = vmatpush1.bf16.msra.mxu0 %v5569_v42 }
 0x26f   : > { %2818 = vmatprep.subr.bf16.mxu0 %v5574_v45 }
 0x272   : > { %2819 = vmatpush1.bf16.msra.mxu0 %v5572_v49 }
 0x273   : > { %2820 = vmatprep.subr.bf16.mxu0 %v5577_v53 }
 0x2af   : > { %v1848_v58 = vpop.f32.mrb[32].mxu0 }
 0x2b0   : > { %v1849_v2 = vadd.f32 %v1848_v58, %v6446_v56  ;;  %v1850_v3 = vpop.f32.mrb[33].mxu0 }
 0x2b1   : > { %v1851_v4 = vadd.f32 %v1850_v3, %v6449_v57  ;;  %v1852_v6 = vpop.f32.mrb[34].mxu0  ;;  %v5575_v3 = vld [vmem:[%s7381_s9 + $0xa0] ss:$8 sps:$4 sm:$0xff]  }
 0x2b2   : > { %v1853_v7 = vadd.f32 %v1852_v6, %v6446_v56  ;;  %v1854_v9 = vpop.f32.mrb[35].mxu0  ;;  %v2007_v15 = vmax.f32 %v1849_v2, 0.0  ;;  %v5580_v6 = vld [vmem:[%s7381_s9 + $0xb4] ss:$8 sps:$4 sm:$0xff]   ;;  %2821 = vmatpush1.bf16.msra.mxu0 %v5575_v3 }
 0x2b3   : > { %v1855_v12 = vadd.f32 %v1854_v9, %v6449_v57  ;;  %v2008_v17 = vmax.f32 %v1851_v4, 0.0  ;;  %2822 = vmatprep.subr.bf16.mxu0 %v5580_v6 }
 0x2b4   : > { %v2009_v16 = vmax.f32 %v1853_v7, 0.0 }
 0x2b5   : > { %v2010_v18 = vmax.f32 %v1855_v12, 0.0 }
 0x2b6   : > { %v2071_v19 = vpack.c.bf16 %v2009_v16, %v2007_v15  ;;  %2823 = vmatpush1.bf16.msra.mxu0 %v5578_v14 }
 0x2b7   : > { %v2072_v22 = vpack.c.bf16 %v2010_v18, %v2008_v17  ;;  %v1858_v23 = vpop.f32.mrb[36].mxu0  ;;  %v5583_v17 = vld [vmem:[%s7381_s9 + $0xc4] ss:$8 sps:$4 sm:$0xff]  }
 0x2b8   : > { %v1859_v26 = vadd.f32 %v1858_v23, %v6446_v56  ;;  %v1860_v27 = vpop.f32.mrb[37].mxu0  ;;  %2824 = vmatprep.subr.bf16.mxu0 %v5583_v17 }
 0x2b9   : > { %v1861_v29 = vadd.f32 %v1860_v27, %v6449_v57  ;;  %v1862_v30 = vpop.f32.mrb[38].mxu0  ;;  %2339 = vmatprep.mubr.bf16.mxu1 %v2072_v22 }
 0x2ba   : > { %v1863_v31 = vadd.f32 %v1862_v30, %v6446_v56  ;;  %v1864_v32 = vpop.f32.mrb[39].mxu0  ;;  %2340 = vmatmul.mubr.bf16.vlgmr.msra.gmra.mrb[96].mxu1 %v2071_v19  ;;  %v2011_v38 = vmax.f32 %v1859_v26, 0.0  ;;  %v5581_v26 = vld [vmem:[%s7381_s9 + $0xc0] ss:$8 sps:$4 sm:$0xff]  }
 0x2bb   : > { %v1865_v36 = vadd.f32 %v1864_v32, %v6449_v57  ;;  %v2012_v63 = vmax.f32 %v1861_v29, 0.0  ;;  %v5586_v29 = vld [vmem:[%s7381_s9 + $0xd4] ss:$8 sps:$4 sm:$0xff]   ;;  %2825 = vmatpush1.bf16.msra.mxu0 %v5581_v26 }
 0x2bc   : > { %v2013_v62 = vmax.f32 %v1863_v31, 0.0  ;;  %2826 = vmatprep.subr.bf16.mxu0 %v5586_v29 }
 0x2bd   : > { %v2014_v28 = vmax.f32 %v1865_v36, 0.0 }
 0x2be   : > { %v2073_v33 = vpack.c.bf16 %v2013_v62, %v2011_v38 }
 0x2bf   : > { %v2074_v5 = vpack.c.bf16 %v2014_v28, %v2012_v63  ;;  %v1868_v34 = vpop.f32.mrb[40].mxu0  ;;  %v5589_v63 = vld [vmem:[%s7381_s9 + $0xe4] ss:$8 sps:$4 sm:$0xff]   ;;  %2827 = vmatpush1.bf16.msra.mxu0 %v5584_v37 }
 0x2c0   : > { %v1869_v8 = vadd.f32 %v1868_v34, %v6446_v56  ;;  %v1870_v13 = vpop.f32.mrb[41].mxu0  ;;  %2828 = vmatprep.subr.bf16.mxu0 %v5589_v63 }
 0x2c1   : > { %v1871_v44 = vadd.f32 %v1870_v13, %v6449_v57  ;;  %v1872_v25 = vpop.f32.mrb[42].mxu0  ;;  %2349 = vmatprep.mubr.bf16.mxu1 %v2074_v5 }
 0x2c2   : > { %v1873_v40 = vadd.f32 %v1872_v25, %v6446_v56  ;;  %v1874_v41 = vpop.f32.mrb[43].mxu0  ;;  %2350 = vmatmul.mubr.bf16.gmra.mrb[100].mxu1 %v2073_v33  ;;  %v2015_v46 = vmax.f32 %v1869_v8, 0.0  ;;  %v5587_v8 = vld [vmem:[%s7381_s9 + $0xe0] ss:$8 sps:$4 sm:$0xff]  }
 0x2c3   : > { %v1875_v43 = vadd.f32 %v1874_v41, %v6449_v57  ;;  %v2016_v48 = vmax.f32 %v1871_v44, 0.0  ;;  %2829 = vmatpush1.bf16.msra.mxu0 %v5587_v8 }
 0x2c4   : > { %v2017_v47 = vmax.f32 %v1873_v40, 0.0 }
 0x2c5   : > { %v2018_v50 = vmax.f32 %v1875_v43, 0.0 }
 0x2c6   : > { %v2075_v51 = vpack.c.bf16 %v2017_v47, %v2015_v46 }
 0x2c7   : > { %v2076_v20 = vpack.c.bf16 %v2018_v50, %v2016_v48  ;;  %v1878_v52 = vpop.f32.mrb[44].mxu0 }
 0x2c8   : > { %v1879_v54 = vadd.f32 %v1878_v52, %v6446_v56  ;;  %v1880_v55 = vpop.f32.mrb[45].mxu0 }
 0x2c9   : > { %v1881_v58 = vadd.f32 %v1880_v55, %v6449_v57  ;;  %v1882_v60 = vpop.f32.mrb[46].mxu0  ;;  %2359 = vmatprep.mubr.bf16.mxu1 %v2076_v20 }
 0x2ca   : > { %v1883_v1 = vadd.f32 %v1882_v60, %v6446_v56  ;;  %v1884_v2 = vpop.f32.mrb[47].mxu0  ;;  %2360 = vmatmul.mubr.bf16.gmra.mrb[104].mxu1 %v2075_v51  ;;  %v2019_v7 = vmax.f32 %v1879_v54, 0.0 }
 0x2cb   : > { %v1885_v4 = vadd.f32 %v1884_v2, %v6449_v57  ;;  %v2020_v10 = vmax.f32 %v1881_v58, 0.0 }
 0x2cc   : > { %v2021_v9 = vmax.f32 %v1883_v1, 0.0 }
 0x2cd   : > { %v2022_v11 = vmax.f32 %v1885_v4, 0.0 }
 0x2ce   : > { %v2077_v12 = vpack.c.bf16 %v2021_v9, %v2019_v7 }
 0x2cf   : > { %v2078_v15 = vpack.c.bf16 %v2022_v11, %v2020_v10  ;;  %v1888_v16 = vpop.f32.mrb[48].mxu0 }
 0x2d0   : > { %v1889_v18 = vadd.f32 %v1888_v16, %v6446_v56  ;;  %v1890_v19 = vpop.f32.mrb[49].mxu0 }
 0x2d1   : > { %v1891_v21 = vadd.f32 %v1890_v19, %v6449_v57  ;;  %v1892_v22 = vpop.f32.mrb[50].mxu0  ;;  %2369 = vmatprep.mubr.bf16.mxu1 %v2078_v15 }
 0x2d2   : > { %v1893_v23 = vadd.f32 %v1892_v22, %v6446_v56  ;;  %v1894_v24 = vpop.f32.mrb[51].mxu0  ;;  %2370 = vmatmul.mubr.bf16.gmra.mrb[108].mxu1 %v2077_v12  ;;  %v2023_v30 = vmax.f32 %v1889_v18, 0.0 }
 0x2d3   : > { %v1895_v27 = vadd.f32 %v1894_v24, %v6449_v57  ;;  %v2024_v32 = vmax.f32 %v1891_v21, 0.0 }
 0x2d4   : > { %v2025_v31 = vmax.f32 %v1893_v23, 0.0 }
 0x2d5   : > { %v2026_v35 = vmax.f32 %v1895_v27, 0.0 }
 0x2d6   : > { %v2079_v36 = vpack.c.bf16 %v2025_v31, %v2023_v30 }
 0x2d7   : > { %v2080_v38 = vpack.c.bf16 %v2026_v35, %v2024_v32  ;;  %v1898_v62 = vpop.f32.mrb[52].mxu0 }
 0x2d8   : > { %v1899_v28 = vadd.f32 %v1898_v62, %v6446_v56  ;;  %v1900_v33 = vpop.f32.mrb[53].mxu0 }
 0x2d9   : > { %v1901_v0 = vadd.f32 %v1900_v33, %v6449_v57  ;;  %v1902_v5 = vpop.f32.mrb[54].mxu0  ;;  %2379 = vmatprep.mubr.bf16.mxu1 %v2080_v38 }
 0x2da   : > { %v1903_v34 = vadd.f32 %v1902_v5, %v6446_v56  ;;  %v1904_v39 = vpop.f32.mrb[55].mxu0  ;;  %2380 = vmatmul.mubr.bf16.gmra.mrb[112].mxu1 %v2079_v36  ;;  %v2027_v44 = vmax.f32 %v1899_v28, 0.0 }
 0x2db   : > { %v1905_v13 = vadd.f32 %v1904_v39, %v6449_v57  ;;  %v2028_v40 = vmax.f32 %v1901_v0, 0.0 }
 0x2dc   : > { %v2029_v25 = vmax.f32 %v1903_v34, 0.0 }
 0x2dd   : > { %v2030_v41 = vmax.f32 %v1905_v13, 0.0 }
 0x2de   : > { %v2081_v42 = vpack.c.bf16 %v2029_v25, %v2027_v44 }
 0x2df   : > { %v2082_v43 = vpack.c.bf16 %v2030_v41, %v2028_v40  ;;  %v1908_v45 = vpop.f32.mrb[56].mxu0 }
 0x2e0   : > { %v1909_v46 = vadd.f32 %v1908_v45, %v6446_v56  ;;  %v1910_v47 = vpop.f32.mrb[57].mxu0 }
 0x2e1   : > { %v1911_v48 = vadd.f32 %v1910_v47, %v6449_v57  ;;  %v1912_v50 = vpop.f32.mrb[58].mxu0  ;;  %2389 = vmatprep.mubr.bf16.mxu1 %v2082_v43 }
 0x2e2   : > { %v1913_v51 = vadd.f32 %v1912_v50, %v6446_v56  ;;  %v1914_v49 = vpop.f32.mrb[59].mxu0  ;;  %2390 = vmatmul.mubr.bf16.gmra.mrb[116].mxu1 %v2081_v42  ;;  %v2031_v52 = vmax.f32 %v1909_v46, 0.0 }
 0x2e3   : > { %v1915_v20 = vadd.f32 %v1914_v49, %v6449_v57  ;;  %v2032_v54 = vmax.f32 %v1911_v48, 0.0 }
 0x2e4   : > { %v2033_v53 = vmax.f32 %v1913_v51, 0.0 }
 0x2e5   : > { %v2034_v55 = vmax.f32 %v1915_v20, 0.0 }
 0x2e6   : > { %v2083_v58 = vpack.c.bf16 %v2033_v53, %v2031_v52 }
 0x2e7   : > { %v2084_v60 = vpack.c.bf16 %v2034_v55, %v2032_v54  ;;  %v1918_v1 = vpop.f32.mrb[60].mxu0 }
 0x2e8   : > { %v1919_v2 = vadd.f32 %v1918_v1, %v6446_v56  ;;  %v1920_v3 = vpop.f32.mrb[61].mxu0 }
 0x2e9   : > { %v1921_v4 = vadd.f32 %v1920_v3, %v6449_v57  ;;  %v1922_v6 = vpop.f32.mrb[62].mxu0  ;;  %2399 = vmatprep.mubr.bf16.mxu1 %v2084_v60 }
 0x2ea   : > { %v1923_v7 = vadd.f32 %v1922_v6, %v6446_v56  ;;  %v1924_v9 = vpop.f32.mrb[63].mxu0  ;;  %2400 = vmatmul.mubr.bf16.gmra.mrb[120].mxu1 %v2083_v58  ;;  %v2035_v11 = vmax.f32 %v1919_v2, 0.0 }
 0x2eb   : > { %v1925_v10 = vadd.f32 %v1924_v9, %v6449_v57  ;;  %v2036_v14 = vmax.f32 %v1921_v4, 0.0 }
 0x2ec   : > { %v2037_v12 = vmax.f32 %v1923_v7, 0.0 }
 0x2ed   : > { %v2038_v15 = vmax.f32 %v1925_v10, 0.0 }
 0x2ee   : > { %v2085_v16 = vpack.c.bf16 %v2037_v12, %v2035_v11 }
 0x2ef   : > { %v2086_v17 = vpack.c.bf16 %v2038_v15, %v2036_v14  ;;  %v1928_v18 = vpop.f32.mrb[64].mxu0 }
 0x2f0   : > { %v1929_v19 = vadd.f32 %v1928_v18, %v6446_v56  ;;  %v1930_v21 = vpop.f32.mrb[65].mxu0 }
 0x2f1   : > { %v1931_v22 = vadd.f32 %v1930_v21, %v6449_v57  ;;  %v1932_v23 = vpop.f32.mrb[66].mxu0  ;;  %2409 = vmatprep.mubr.bf16.mxu1 %v2086_v17 }
 0x2f2   : > { %v1933_v24 = vadd.f32 %v1932_v23, %v6446_v56  ;;  %v1934_v26 = vpop.f32.mrb[67].mxu0  ;;  %2410 = vmatmul.mubr.bf16.gmra.mrb[124].mxu1 %v2085_v16  ;;  %v2039_v29 = vmax.f32 %v1929_v19, 0.0 }
 0x2f3   : > { %v1935_v27 = vadd.f32 %v1934_v26, %v6449_v57  ;;  %v2040_v31 = vmax.f32 %v1931_v22, 0.0  ;;  %v5592_v22 = vld [vmem:[%s7381_s9 + $0xf4] ss:$8 sps:$4 sm:$0xff]  }
 0x2f4   : > { %v2041_v30 = vmax.f32 %v1933_v24, 0.0  ;;  %v5590_v24 = vld [vmem:[%s7381_s9 + $0xf0] ss:$8 sps:$4 sm:$0xff]   ;;  %2830 = vmatprep.subr.bf16.mxu0 %v5592_v22  ;;  %v5604_v22 = vld [vmem:[%s7383_s11 + $0x34] ss:$8 sps:$4 sm:$0xff]  }
 0x2f5   : > { %v2042_v32 = vmax.f32 %v1935_v27, 0.0  ;;  %2831 = vmatpush1.bf16.msra.mxu0 %v5590_v24 }
 0x2f6   : > { %v2087_v35 = vpack.c.bf16 %v2041_v30, %v2039_v29 }
 0x2f7   : > { %v2088_v36 = vpack.c.bf16 %v2042_v32, %v2040_v31  ;;  %v1938_v37 = vpop.f32.mrb[68].mxu0 }
 0x2f8   : > { %v1939_v38 = vadd.f32 %v1938_v37, %v6446_v56  ;;  %v1940_v62 = vpop.f32.mrb[69].mxu0 }
 0x2f9   : > { %v1941_v63 = vadd.f32 %v1940_v62, %v6449_v57  ;;  %v1942_v28 = vpop.f32.mrb[70].mxu0  ;;  %2419 = vmatprep.mubr.bf16.mxu1 %v2088_v36 }
 0x2fa   : > { %v1943_v33 = vadd.f32 %v1942_v28, %v6446_v56  ;;  %v1944_v0 = vpop.f32.mrb[71].mxu0  ;;  %2420 = vmatmul.mubr.bf16.gmra.mrb[128].mxu1 %v2087_v35  ;;  %v2043_v34 = vmax.f32 %v1939_v38, 0.0 }
 0x2fb   : > { %v1945_v5 = vadd.f32 %v1944_v0, %v6449_v57  ;;  %v2044_v8 = vmax.f32 %v1941_v63, 0.0 }
 0x2fc   : > { %v2045_v39 = vmax.f32 %v1943_v33, 0.0 }
 0x2fd   : > { %v2046_v13 = vmax.f32 %v1945_v5, 0.0 }
 0x2fe   : > { %v2089_v44 = vpack.c.bf16 %v2045_v39, %v2043_v34 }
 0x2ff   : > { %v2090_v25 = vpack.c.bf16 %v2046_v13, %v2044_v8  ;;  %v1948_v40 = vpop.f32.mrb[72].mxu0 }
 0x300   : > { %v1949_v41 = vadd.f32 %v1948_v40, %v6446_v56  ;;  %v1950_v42 = vpop.f32.mrb[73].mxu0 }
 0x301   : > { %v1951_v43 = vadd.f32 %v1950_v42, %v6449_v57  ;;  %v1952_v45 = vpop.f32.mrb[74].mxu0  ;;  %2429 = vmatprep.mubr.bf16.mxu1 %v2090_v25 }
 0x302   : > { %v1953_v46 = vadd.f32 %v1952_v45, %v6446_v56  ;;  %v1954_v47 = vpop.f32.mrb[75].mxu0  ;;  %2430 = vmatmul.mubr.bf16.gmra.mrb[132].mxu1 %v2089_v44  ;;  %v2047_v50 = vmax.f32 %v1949_v41, 0.0 }
 0x303   : > { %v1955_v48 = vadd.f32 %v1954_v47, %v6449_v57  ;;  %v2048_v49 = vmax.f32 %v1951_v43, 0.0 }
 0x304   : > { %v2049_v51 = vmax.f32 %v1953_v46, 0.0 }
 0x305   : > { %v2050_v20 = vmax.f32 %v1955_v48, 0.0 }
 0x306   : > { %v2091_v52 = vpack.c.bf16 %v2049_v51, %v2047_v50 }
 0x307   : > { %v2092_v53 = vpack.c.bf16 %v2050_v20, %v2048_v49  ;;  %v1958_v54 = vpop.f32.mrb[76].mxu0 }
 0x308   : > { %v1959_v55 = vadd.f32 %v1958_v54, %v6446_v56  ;;  %v1960_v58 = vpop.f32.mrb[77].mxu0 }
 0x309   : > { %v1961_v60 = vadd.f32 %v1960_v58, %v6449_v57  ;;  %v1962_v1 = vpop.f32.mrb[78].mxu0  ;;  %2439 = vmatprep.mubr.bf16.mxu1 %v2092_v53 }
 0x30a   : > { %v1963_v2 = vadd.f32 %v1962_v1, %v6446_v56  ;;  %v1964_v3 = vpop.f32.mrb[79].mxu0  ;;  %2440 = vmatmul.mubr.bf16.gmra.mrb[136].mxu1 %v2091_v52  ;;  %v2051_v6 = vmax.f32 %v1959_v55, 0.0 }
 0x30b   : > { %v1965_v4 = vadd.f32 %v1964_v3, %v6449_v57  ;;  %v2052_v9 = vmax.f32 %v1961_v60, 0.0 }
 0x30c   : > { %v2053_v7 = vmax.f32 %v1963_v2, 0.0 }
 0x30d   : > { %v2054_v10 = vmax.f32 %v1965_v4, 0.0 }
 0x30e   : > { %v2093_v11 = vpack.c.bf16 %v2053_v7, %v2051_v6 }
 0x30f   : > { %v2094_v12 = vpack.c.bf16 %v2054_v10, %v2052_v9  ;;  %v1968_v14 = vpop.f32.mrb[80].mxu0 }
 0x310   : > { %v1969_v15 = vadd.f32 %v1968_v14, %v6446_v56  ;;  %v1970_v16 = vpop.f32.mrb[81].mxu0  ;;  %v2135_v14 = vld [vmem:[%s7380_s8] sm:$0x3] }
 0x311   : > { %v1971_v17 = vadd.f32 %v1970_v16, %v6449_v57  ;;  %v1972_v18 = vpop.f32.mrb[82].mxu0  ;;  %2449 = vmatprep.mubr.bf16.mxu1 %v2094_v12  ;;  %v5598_v12 = vld [vmem:[%s7383_s11 + $0x14] ss:$8 sps:$4 sm:$0xff]   ;;  %v5601_v16 = vld [vmem:[%s7383_s11 + $0x24] ss:$8 sps:$4 sm:$0xff]  }
 0x312   : > { %v1973_v19 = vadd.f32 %v1972_v18, %v6446_v56  ;;  %v1974_v21 = vpop.f32.mrb[83].mxu0  ;;  %2450 = vmatmul.mubr.bf16.gmra.mrb[140].mxu1 %v2093_v11  ;;  %v2055_v26 = vmax.f32 %v1969_v15, 0.0  ;;  %v5593_v11 = vld [vmem:[%s7383_s11] ss:$8 sps:$4 sm:$0xff]   ;;  %v6618_v18 = vrot.slane %v2135_v14, %v6051_v61 }
 0x313   : > { %v1975_v23 = vadd.f32 %v1974_v21, %v6449_v57  ;;  %v2056_v29 = vmax.f32 %v1971_v17, 0.0  ;;  %v5599_v15 = vld [vmem:[%s7383_s11 + $0x20] ss:$8 sps:$4 sm:$0xff]   ;;  %v6615_v17 = vrot.slane %v2135_v14, %v6046_v59  ;;  %v5602_v21 = vld [vmem:[%s7383_s11 + $0x30] ss:$8 sps:$4 sm:$0xff]  }
 0x314   : > { %v2057_v27 = vmax.f32 %v1973_v19, 0.0  ;;  %v5625_v14 = vld [vmem:[%s7383_s11 + $0xa4] ss:$8 sps:$4 sm:$0xff]  }
 0x315   : > { %v2058_v30 = vmax.f32 %v1975_v23, 0.0 }
 0x316   : > { %v2095_v31 = vpack.c.bf16 %v2057_v27, %v2055_v26 }
 0x317   : > { %v2096_v32 = vpack.c.bf16 %v2058_v30, %v2056_v29  ;;  %v1978_v35 = vpop.f32.mrb[84].mxu0 }
 0x318   : > { %v1979_v36 = vadd.f32 %v1978_v35, %v6446_v56  ;;  %v1980_v37 = vpop.f32.mrb[85].mxu0 }
 0x319   : > { %v1981_v38 = vadd.f32 %v1980_v37, %v6449_v57  ;;  %v1982_v62 = vpop.f32.mrb[86].mxu0  ;;  %2459 = vmatprep.mubr.bf16.mxu1 %v2096_v32  ;;  %v5607_v32 = vld [vmem:[%s7383_s11 + $0x44] ss:$8 sps:$4 sm:$0xff]  }
 0x31a   : > { %v1983_v63 = vadd.f32 %v1982_v62, %v6446_v56  ;;  %v1984_v28 = vpop.f32.mrb[87].mxu0  ;;  %2460 = vmatmul.mubr.bf16.gmra.mrb[144].mxu1 %v2095_v31  ;;  %v2059_v0 = vmax.f32 %v1979_v36, 0.0  ;;  %v5605_v31 = vld [vmem:[%s7383_s11 + $0x40] ss:$8 sps:$4 sm:$0xff]   ;;  %v5610_v36 = vld [vmem:[%s7383_s11 + $0x54] ss:$8 sps:$4 sm:$0xff]  }
 0x31b   : > { %v1985_v33 = vadd.f32 %v1984_v28, %v6449_v57  ;;  %v2060_v34 = vmax.f32 %v1981_v38, 0.0 }
 0x31c   : > { %v2061_v5 = vmax.f32 %v1983_v63, 0.0 }
 0x31d   : > { %v2062_v39 = vmax.f32 %v1985_v33, 0.0  ;;  %v5608_v33 = vld [vmem:[%s7383_s11 + $0x50] ss:$8 sps:$4 sm:$0xff]  }
 0x31e   : > { %v2097_v8 = vpack.c.bf16 %v2061_v5, %v2059_v0 }
 0x31f   : > { %v2098_v13 = vpack.c.bf16 %v2062_v39, %v2060_v34  ;;  %v1988_v44 = vpop.f32.mrb[88].mxu0  ;;  %v5613_v34 = vld [vmem:[%s7383_s11 + $0x64] ss:$8 sps:$4 sm:$0xff]  }
 0x320   : > { %v1989_v25 = vadd.f32 %v1988_v44, %v6446_v56  ;;  %v1990_v40 = vpop.f32.mrb[89].mxu0 }
 0x321   : > { %v1991_v41 = vadd.f32 %v1990_v40, %v6449_v57  ;;  %v1992_v42 = vpop.f32.mrb[90].mxu0  ;;  %2469 = vmatprep.mubr.bf16.mxu1 %v2098_v13 }
 0x322   : > { %v1993_v43 = vadd.f32 %v1992_v42, %v6446_v56  ;;  %v1994_v45 = vpop.f32.mrb[91].mxu0  ;;  %2470 = vmatmul.mubr.bf16.gmra.mrb[148].mxu1 %v2097_v8  ;;  %v2063_v47 = vmax.f32 %v1989_v25, 0.0 }
 0x323   : > { %v1995_v46 = vadd.f32 %v1994_v45, %v6449_v57  ;;  %v2064_v50 = vmax.f32 %v1991_v41, 0.0  ;;  %v5611_v41 = vld [vmem:[%s7383_s11 + $0x60] ss:$8 sps:$4 sm:$0xff]  }
 0x324   : > { %v2065_v48 = vmax.f32 %v1993_v43, 0.0  ;;  %v5616_v43 = vld [vmem:[%s7383_s11 + $0x74] ss:$8 sps:$4 sm:$0xff]  }
 0x325   : > { %v2066_v51 = vmax.f32 %v1995_v46, 0.0 }
 0x326   : > { %v2099_v49 = vpack.c.bf16 %v2065_v48, %v2063_v47 }
 0x327   : > { %v2100_v20 = vpack.c.bf16 %v2066_v51, %v2064_v50  ;;  %v1998_v52 = vpop.f32.mrb[92].mxu0  ;;  %v5614_v51 = vld [vmem:[%s7383_s11 + $0x70] ss:$8 sps:$4 sm:$0xff]  }
 0x328   : > { %v1999_v53 = vadd.f32 %v1998_v52, %v6446_v56  ;;  %v2000_v54 = vpop.f32.mrb[93].mxu0  ;;  %v5619_v52 = vld [vmem:[%s7383_s11 + $0x84] ss:$8 sps:$4 sm:$0xff]  }
 0x329   : > { %v2001_v55 = vadd.f32 %v2000_v54, %v6449_v57  ;;  %v2002_v58 = vpop.f32.mrb[94].mxu0  ;;  %2479 = vmatprep.mubr.bf16.mxu1 %v2100_v20 }
 0x32a   : > { %v2003_v60 = vadd.f32 %v2002_v58, %v6446_v56  ;;  %v2004_v1 = vpop.f32.mrb[95].mxu0  ;;  %2480 = vmatmul.mubr.bf16.gmra.mrb[152].mxu1 %v2099_v49  ;;  %v2067_v3 = vmax.f32 %v1999_v53, 0.0  ;;  %v5595_v56 = vld [vmem:[%s7383_s11 + $0x4] ss:$8 sps:$4 sm:$0xff]  }
 0x32b   : > { %v2005_v2 = vadd.f32 %v2004_v1, %v6449_v57  ;;  %v2068_v6 = vmax.f32 %v2001_v55, 0.0  ;;  %3293 = vmatprep.subr.bf16.mxu1 %v5595_v56  ;;  %v5596_v57 = vld [vmem:[%s7383_s11 + $0x10] ss:$8 sps:$4 sm:$0xff]  }
 0x32c   : > { %v2069_v4 = vmax.f32 %v2003_v60, 0.0  ;;  %3294 = vmatpush1.bf16.msra.mxu1 %v5593_v11  ;;  %v5620_v56 = vld [vmem:[%s7383_s11 + $0x90] ss:$8 sps:$4 sm:$0xff]  }
 0x32d   : > { %v2070_v7 = vmax.f32 %v2005_v2, 0.0  ;;  %3295 = vmatprep.subr.bf16.mxu1 %v5598_v12  ;;  %v5617_v2 = vld [vmem:[%s7383_s11 + $0x80] ss:$8 sps:$4 sm:$0xff]  }
 0x32e   : > { %v2101_v9 = vpack.c.bf16 %v2069_v4, %v2067_v3  ;;  %v5622_v4 = vld [vmem:[%s7383_s11 + $0x94] ss:$8 sps:$4 sm:$0xff]  }
 0x32f   : > { %v2102_v10 = vpack.c.bf16 %v2070_v7, %v2068_v6 }
 0x330   : > { %3296 = vmatpush1.bf16.msra.mxu1 %v5596_v57 }
 0x331   : > { %2489 = vmatprep.mubr.bf16.mxu1 %v2102_v10  ;;  %3297 = vmatprep.subr.bf16.mxu1 %v5601_v16 }
 0x332   : > { %2490 = vmatmul.mubr.bf16.gmra.mrb[156].mxu1 %v2101_v9 }
 0x334   : > { %3298 = vmatpush1.bf16.msra.mxu1 %v5599_v15 }
 0x335   : > { %3299 = vmatprep.subr.bf16.mxu1 %v5604_v22 }
 0x338   : > { %3300 = vmatpush1.bf16.msra.mxu1 %v5602_v21 }
 0x339   : > { %3301 = vmatprep.subr.bf16.mxu1 %v5607_v32 }
 0x33c   : > { %3302 = vmatpush1.bf16.msra.mxu1 %v5605_v31 }
 0x33d   : > { %3303 = vmatprep.subr.bf16.mxu1 %v5610_v36  ;;  %v5626_v36 = vld [vmem:[%s7383_s11 + $0xb0] ss:$8 sps:$4 sm:$0xff]  }
 0x340   : > { %3304 = vmatpush1.bf16.msra.mxu1 %v5608_v33 }
 0x341   : > { %3305 = vmatprep.subr.bf16.mxu1 %v5613_v34 }
 0x344   : > { %3306 = vmatpush1.bf16.msra.mxu1 %v5611_v41 }
 0x345   : > { %3307 = vmatprep.subr.bf16.mxu1 %v5616_v43  ;;  %v5632_v43 = vld [vmem:[%s7383_s11 + $0xd0] ss:$8 sps:$4 sm:$0xff]  }
 0x348   : > { %3308 = vmatpush1.bf16.msra.mxu1 %v5614_v51 }
 0x349   : > { %3309 = vmatprep.subr.bf16.mxu1 %v5619_v52 }
 0x34c   : > { %3310 = vmatpush1.bf16.msra.mxu1 %v5617_v2 }
 0x34d   : > { %3311 = vmatprep.subr.bf16.mxu1 %v5622_v4 }
 0x350   : > { %3312 = vmatpush1.bf16.msra.mxu1 %v5620_v56 }
 0x351   : > { %3313 = vmatprep.subr.bf16.mxu1 %v5625_v14 }
 0x38d   : > { %v2341_v19 = vpop.f32.mrb[96].mxu1 }
 0x38e   : > { %v2342_v23 = vadd.f32 %v2341_v19, %v6615_v17  ;;  %v2343_v24 = vpop.f32.mrb[97].mxu1 }
 0x38f   : > { %v2344_v26 = vadd.f32 %v2343_v24, %v6618_v18  ;;  %v2345_v27 = vpop.f32.mrb[98].mxu1  ;;  %v5623_v24 = vld [vmem:[%s7383_s11 + $0xa0] ss:$8 sps:$4 sm:$0xff]  }
 0x390   : > { %v2346_v29 = vadd.f32 %v2345_v27, %v6615_v17  ;;  %v2347_v30 = vpop.f32.mrb[99].mxu1  ;;  %v2500_v37 = vmax.f32 %v2342_v23, 0.0  ;;  %v5628_v27 = vld [vmem:[%s7383_s11 + $0xb4] ss:$8 sps:$4 sm:$0xff]   ;;  %3314 = vmatpush1.bf16.msra.mxu1 %v5623_v24 }
 0x391   : > { %v2348_v35 = vadd.f32 %v2347_v30, %v6618_v18  ;;  %v2501_v62 = vmax.f32 %v2344_v26, 0.0  ;;  %3315 = vmatprep.subr.bf16.mxu1 %v5628_v27 }
 0x392   : > { %v2502_v38 = vmax.f32 %v2346_v29, 0.0 }
 0x393   : > { %v2503_v63 = vmax.f32 %v2348_v35, 0.0 }
 0x394   : > { %v2564_v28 = vpack.c.bf16 %v2502_v38, %v2500_v37  ;;  %3316 = vmatpush1.bf16.msra.mxu1 %v5626_v36 }
 0x395   : > { %v2565_v0 = vpack.c.bf16 %v2503_v63, %v2501_v62  ;;  %v2351_v5 = vpop.f32.mrb[100].mxu1  ;;  %v5631_v62 = vld [vmem:[%s7383_s11 + $0xc4] ss:$8 sps:$4 sm:$0xff]  }
 0x396   : > { %v2352_v39 = vadd.f32 %v2351_v5, %v6615_v17  ;;  %v2353_v8 = vpop.f32.mrb[101].mxu1  ;;  %3317 = vmatprep.subr.bf16.mxu1 %v5631_v62 }
 0x397   : > { %v2354_v13 = vadd.f32 %v2353_v8, %v6618_v18  ;;  %v2355_v44 = vpop.f32.mrb[102].mxu1  ;;  %2832 = vmatprep.mubr.bf16.mxu0 %v2565_v0 }
 0x398   : > { %v2356_v25 = vadd.f32 %v2355_v44, %v6615_v17  ;;  %v2357_v40 = vpop.f32.mrb[103].mxu1  ;;  %2833 = vmatmul.mubr.bf16.vlgmr.msra.gmra.mrb[96].mxu0 %v2564_v28  ;;  %v2504_v45 = vmax.f32 %v2352_v39, 0.0  ;;  %v5629_v39 = vld [vmem:[%s7383_s11 + $0xc0] ss:$8 sps:$4 sm:$0xff]  }
 0x399   : > { %v2358_v42 = vadd.f32 %v2357_v40, %v6618_v18  ;;  %v2505_v47 = vmax.f32 %v2354_v13, 0.0  ;;  %v5634_v13 = vld [vmem:[%s7383_s11 + $0xd4] ss:$8 sps:$4 sm:$0xff]   ;;  %3318 = vmatpush1.bf16.msra.mxu1 %v5629_v39 }
 0x39a   : > { %v2506_v46 = vmax.f32 %v2356_v25, 0.0  ;;  %3319 = vmatprep.subr.bf16.mxu1 %v5634_v13 }
 0x39b   : > { %v2507_v48 = vmax.f32 %v2358_v42, 0.0 }
 0x39c   : > { %v2566_v50 = vpack.c.bf16 %v2506_v46, %v2504_v45 }
 0x39d   : > { %v2567_v49 = vpack.c.bf16 %v2507_v48, %v2505_v47  ;;  %v2361_v20 = vpop.f32.mrb[104].mxu1  ;;  %v5637_v47 = vld [vmem:[%s7383_s11 + $0xe4] ss:$8 sps:$4 sm:$0xff]   ;;  %3320 = vmatpush1.bf16.msra.mxu1 %v5632_v43 }
 0x39e   : > { %v2362_v53 = vadd.f32 %v2361_v20, %v6615_v17  ;;  %v2363_v54 = vpop.f32.mrb[105].mxu1  ;;  %3321 = vmatprep.subr.bf16.mxu1 %v5637_v47 }
 0x39f   : > { %v2364_v55 = vadd.f32 %v2363_v54, %v6618_v18  ;;  %v2365_v58 = vpop.f32.mrb[106].mxu1  ;;  %2842 = vmatprep.mubr.bf16.mxu0 %v2567_v49 }
 0x3a0   : > { %v2366_v60 = vadd.f32 %v2365_v58, %v6615_v17  ;;  %v2367_v1 = vpop.f32.mrb[107].mxu1  ;;  %2843 = vmatmul.mubr.bf16.gmra.mrb[100].mxu0 %v2566_v50  ;;  %v2508_v6 = vmax.f32 %v2362_v53, 0.0  ;;  %v5635_v53 = vld [vmem:[%s7383_s11 + $0xe0] ss:$8 sps:$4 sm:$0xff]  }
 0x3a1   : > { %v2368_v3 = vadd.f32 %v2367_v1, %v6618_v18  ;;  %v2509_v9 = vmax.f32 %v2364_v55, 0.0  ;;  %3322 = vmatpush1.bf16.msra.mxu1 %v5635_v53 }
 0x3a2   : > { %v2510_v7 = vmax.f32 %v2366_v60, 0.0 }
 0x3a3   : > { %v2511_v10 = vmax.f32 %v2368_v3, 0.0 }
 0x3a4   : > { %v2568_v11 = vpack.c.bf16 %v2510_v7, %v2508_v6 }
 0x3a5   : > { %v2569_v57 = vpack.c.bf16 %v2511_v10, %v2509_v9  ;;  %v2371_v12 = vpop.f32.mrb[108].mxu1 }
 0x3a6   : > { %v2372_v15 = vadd.f32 %v2371_v12, %v6615_v17  ;;  %v2373_v16 = vpop.f32.mrb[109].mxu1 }
 0x3a7   : > { %v2374_v19 = vadd.f32 %v2373_v16, %v6618_v18  ;;  %v2375_v21 = vpop.f32.mrb[110].mxu1  ;;  %2852 = vmatprep.mubr.bf16.mxu0 %v2569_v57 }
 0x3a8   : > { %v2376_v22 = vadd.f32 %v2375_v21, %v6615_v17  ;;  %v2377_v23 = vpop.f32.mrb[111].mxu1  ;;  %2853 = vmatmul.mubr.bf16.gmra.mrb[104].mxu0 %v2568_v11  ;;  %v2512_v29 = vmax.f32 %v2372_v15, 0.0 }
 0x3a9   : > { %v2378_v26 = vadd.f32 %v2377_v23, %v6618_v18  ;;  %v2513_v31 = vmax.f32 %v2374_v19, 0.0 }
 0x3aa   : > { %v2514_v30 = vmax.f32 %v2376_v22, 0.0 }
 0x3ab   : > { %v2515_v32 = vmax.f32 %v2378_v26, 0.0 }
 0x3ac   : > { %v2570_v35 = vpack.c.bf16 %v2514_v30, %v2512_v29 }
 0x3ad   : > { %v2571_v37 = vpack.c.bf16 %v2515_v32, %v2513_v31  ;;  %v2381_v38 = vpop.f32.mrb[112].mxu1 }
 0x3ae   : > { %v2382_v63 = vadd.f32 %v2381_v38, %v6615_v17  ;;  %v2383_v28 = vpop.f32.mrb[113].mxu1 }
 0x3af   : > { %v2384_v33 = vadd.f32 %v2383_v28, %v6618_v18  ;;  %v2385_v0 = vpop.f32.mrb[114].mxu1  ;;  %2862 = vmatprep.mubr.bf16.mxu0 %v2571_v37 }
 0x3b0   : > { %v2386_v5 = vadd.f32 %v2385_v0, %v6615_v17  ;;  %v2387_v34 = vpop.f32.mrb[115].mxu1  ;;  %2863 = vmatmul.mubr.bf16.gmra.mrb[108].mxu0 %v2570_v35  ;;  %v2516_v44 = vmax.f32 %v2382_v63, 0.0 }
 0x3b1   : > { %v2388_v8 = vadd.f32 %v2387_v34, %v6618_v18  ;;  %v2517_v40 = vmax.f32 %v2384_v33, 0.0 }
 0x3b2   : > { %v2518_v25 = vmax.f32 %v2386_v5, 0.0 }
 0x3b3   : > { %v2519_v41 = vmax.f32 %v2388_v8, 0.0 }
 0x3b4   : > { %v2572_v42 = vpack.c.bf16 %v2518_v25, %v2516_v44 }
 0x3b5   : > { %v2573_v45 = vpack.c.bf16 %v2519_v41, %v2517_v40  ;;  %v2391_v46 = vpop.f32.mrb[116].mxu1 }
 0x3b6   : > { %v2392_v48 = vadd.f32 %v2391_v46, %v6615_v17  ;;  %v2393_v50 = vpop.f32.mrb[117].mxu1 }
 0x3b7   : > { %v2394_v51 = vadd.f32 %v2393_v50, %v6618_v18  ;;  %v2395_v49 = vpop.f32.mrb[118].mxu1  ;;  %2872 = vmatprep.mubr.bf16.mxu0 %v2573_v45 }
 0x3b8   : > { %v2396_v20 = vadd.f32 %v2395_v49, %v6615_v17  ;;  %v2397_v52 = vpop.f32.mrb[119].mxu1  ;;  %2873 = vmatmul.mubr.bf16.gmra.mrb[112].mxu0 %v2572_v42  ;;  %v2520_v55 = vmax.f32 %v2392_v48, 0.0 }
 0x3b9   : > { %v2398_v54 = vadd.f32 %v2397_v52, %v6618_v18  ;;  %v2521_v60 = vmax.f32 %v2394_v51, 0.0 }
 0x3ba   : > { %v2522_v58 = vmax.f32 %v2396_v20, 0.0 }
 0x3bb   : > { %v2523_v1 = vmax.f32 %v2398_v54, 0.0 }
 0x3bc   : > { %v2574_v2 = vpack.c.bf16 %v2522_v58, %v2520_v55 }
 0x3bd   : > { %v2575_v3 = vpack.c.bf16 %v2523_v1, %v2521_v60  ;;  %v2401_v4 = vpop.f32.mrb[120].mxu1 }
 0x3be   : > { %v2402_v6 = vadd.f32 %v2401_v4, %v6615_v17  ;;  %v2403_v7 = vpop.f32.mrb[121].mxu1 }
 0x3bf   : > { %v2404_v9 = vadd.f32 %v2403_v7, %v6618_v18  ;;  %v2405_v10 = vpop.f32.mrb[122].mxu1  ;;  %2882 = vmatprep.mubr.bf16.mxu0 %v2575_v3 }
 0x3c0   : > { %v2406_v11 = vadd.f32 %v2405_v10, %v6615_v17  ;;  %v2407_v56 = vpop.f32.mrb[123].mxu1  ;;  %2883 = vmatmul.mubr.bf16.gmra.mrb[116].mxu0 %v2574_v2  ;;  %v2524_v12 = vmax.f32 %v2402_v6, 0.0 }
 0x3c1   : > { %v2408_v57 = vadd.f32 %v2407_v56, %v6618_v18  ;;  %v2525_v15 = vmax.f32 %v2404_v9, 0.0 }
 0x3c2   : > { %v2526_v14 = vmax.f32 %v2406_v11, 0.0 }
 0x3c3   : > { %v2527_v16 = vmax.f32 %v2408_v57, 0.0 }
 0x3c4   : > { %v2576_v19 = vpack.c.bf16 %v2526_v14, %v2524_v12 }
 0x3c5   : > { %v2577_v21 = vpack.c.bf16 %v2527_v16, %v2525_v15  ;;  %v2411_v22 = vpop.f32.mrb[124].mxu1 }
 0x3c6   : > { %v2412_v23 = vadd.f32 %v2411_v22, %v6615_v17  ;;  %v2413_v24 = vpop.f32.mrb[125].mxu1 }
 0x3c7   : > { %v2414_v26 = vadd.f32 %v2413_v24, %v6618_v18  ;;  %v2415_v27 = vpop.f32.mrb[126].mxu1  ;;  %2892 = vmatprep.mubr.bf16.mxu0 %v2577_v21 }
 0x3c8   : > { %v2416_v29 = vadd.f32 %v2415_v27, %v6615_v17  ;;  %v2417_v30 = vpop.f32.mrb[127].mxu1  ;;  %2893 = vmatmul.mubr.bf16.gmra.mrb[120].mxu0 %v2576_v19  ;;  %v2528_v32 = vmax.f32 %v2412_v23, 0.0 }
 0x3c9   : > { %v2418_v31 = vadd.f32 %v2417_v30, %v6618_v18  ;;  %v2529_v36 = vmax.f32 %v2414_v26, 0.0 }
 0x3ca   : > { %v2530_v35 = vmax.f32 %v2416_v29, 0.0 }
 0x3cb   : > { %v2531_v37 = vmax.f32 %v2418_v31, 0.0 }
 0x3cc   : > { %v2578_v38 = vpack.c.bf16 %v2530_v35, %v2528_v32 }
 0x3cd   : > { %v2579_v62 = vpack.c.bf16 %v2531_v37, %v2529_v36  ;;  %v2421_v63 = vpop.f32.mrb[128].mxu1 }
 0x3ce   : > { %v2422_v28 = vadd.f32 %v2421_v63, %v6615_v17  ;;  %v2423_v33 = vpop.f32.mrb[129].mxu1 }
 0x3cf   : > { %v2424_v0 = vadd.f32 %v2423_v33, %v6618_v18  ;;  %v2425_v5 = vpop.f32.mrb[130].mxu1  ;;  %2902 = vmatprep.mubr.bf16.mxu0 %v2579_v62 }
 0x3d0   : > { %v2426_v34 = vadd.f32 %v2425_v5, %v6615_v17  ;;  %v2427_v39 = vpop.f32.mrb[131].mxu1  ;;  %2903 = vmatmul.mubr.bf16.gmra.mrb[124].mxu0 %v2578_v38  ;;  %v2532_v13 = vmax.f32 %v2422_v28, 0.0 }
 0x3d1   : > { %v2428_v8 = vadd.f32 %v2427_v39, %v6618_v18  ;;  %v2533_v25 = vmax.f32 %v2424_v0, 0.0  ;;  %v5640_v0 = vld [vmem:[%s7383_s11 + $0xf4] ss:$8 sps:$4 sm:$0xff]  }
 0x3d2   : > { %v2534_v44 = vmax.f32 %v2426_v34, 0.0  ;;  %v5638_v34 = vld [vmem:[%s7383_s11 + $0xf0] ss:$8 sps:$4 sm:$0xff]   ;;  %3323 = vmatprep.subr.bf16.mxu1 %v5640_v0  ;;  %v5652_v0 = vld [vmem:[%s7385_s13 + $0x34] ss:$8 sps:$4 sm:$0xff]  }
 0x3d3   : > { %v2535_v40 = vmax.f32 %v2428_v8, 0.0  ;;  %3324 = vmatpush1.bf16.msra.mxu1 %v5638_v34 }
 0x3d4   : > { %v2580_v41 = vpack.c.bf16 %v2534_v44, %v2532_v13 }
 0x3d5   : > { %v2581_v42 = vpack.c.bf16 %v2535_v40, %v2533_v25  ;;  %v2431_v43 = vpop.f32.mrb[132].mxu1 }
 0x3d6   : > { %v2432_v45 = vadd.f32 %v2431_v43, %v6615_v17  ;;  %v2433_v46 = vpop.f32.mrb[133].mxu1 }
 0x3d7   : > { %v2434_v47 = vadd.f32 %v2433_v46, %v6618_v18  ;;  %v2435_v48 = vpop.f32.mrb[134].mxu1  ;;  %2912 = vmatprep.mubr.bf16.mxu0 %v2581_v42 }
 0x3d8   : > { %v2436_v50 = vadd.f32 %v2435_v48, %v6615_v17  ;;  %v2437_v51 = vpop.f32.mrb[135].mxu1  ;;  %2913 = vmatmul.mubr.bf16.gmra.mrb[128].mxu0 %v2580_v41  ;;  %v2536_v20 = vmax.f32 %v2432_v45, 0.0 }
 0x3d9   : > { %v2438_v49 = vadd.f32 %v2437_v51, %v6618_v18  ;;  %v2537_v53 = vmax.f32 %v2434_v47, 0.0 }
 0x3da   : > { %v2538_v52 = vmax.f32 %v2436_v50, 0.0 }
 0x3db   : > { %v2539_v54 = vmax.f32 %v2438_v49, 0.0 }
 0x3dc   : > { %v2582_v55 = vpack.c.bf16 %v2538_v52, %v2536_v20 }
 0x3dd   : > { %v2583_v58 = vpack.c.bf16 %v2539_v54, %v2537_v53  ;;  %v2441_v60 = vpop.f32.mrb[136].mxu1 }
 0x3de   : > { %v2442_v1 = vadd.f32 %v2441_v60, %v6615_v17  ;;  %v2443_v2 = vpop.f32.mrb[137].mxu1 }
 0x3df   : > { %v2444_v3 = vadd.f32 %v2443_v2, %v6618_v18  ;;  %v2445_v4 = vpop.f32.mrb[138].mxu1  ;;  %2922 = vmatprep.mubr.bf16.mxu0 %v2583_v58 }
 0x3e0   : > { %v2446_v6 = vadd.f32 %v2445_v4, %v6615_v17  ;;  %v2447_v7 = vpop.f32.mrb[139].mxu1  ;;  %2923 = vmatmul.mubr.bf16.gmra.mrb[132].mxu0 %v2582_v55  ;;  %v2540_v10 = vmax.f32 %v2442_v1, 0.0 }
 0x3e1   : > { %v2448_v9 = vadd.f32 %v2447_v7, %v6618_v18  ;;  %v2541_v56 = vmax.f32 %v2444_v3, 0.0 }
 0x3e2   : > { %v2542_v11 = vmax.f32 %v2446_v6, 0.0 }
 0x3e3   : > { %v2543_v57 = vmax.f32 %v2448_v9, 0.0 }
 0x3e4   : > { %v2584_v12 = vpack.c.bf16 %v2542_v11, %v2540_v10 }
 0x3e5   : > { %v2585_v14 = vpack.c.bf16 %v2543_v57, %v2541_v56  ;;  %v2451_v15 = vpop.f32.mrb[140].mxu1 }
 0x3e6   : > { %v2452_v16 = vadd.f32 %v2451_v15, %v6615_v17  ;;  %v2453_v19 = vpop.f32.mrb[141].mxu1 }
 0x3e7   : > { %v2454_v21 = vadd.f32 %v2453_v19, %v6618_v18  ;;  %v2455_v22 = vpop.f32.mrb[142].mxu1  ;;  %2932 = vmatprep.mubr.bf16.mxu0 %v2585_v14 }
 0x3e8   : > { %v2456_v23 = vadd.f32 %v2455_v22, %v6615_v17  ;;  %v2457_v24 = vpop.f32.mrb[143].mxu1  ;;  %2933 = vmatmul.mubr.bf16.gmra.mrb[136].mxu0 %v2584_v12  ;;  %v2544_v27 = vmax.f32 %v2452_v16, 0.0 }
 0x3e9   : > { %v2458_v26 = vadd.f32 %v2457_v24, %v6618_v18  ;;  %v2545_v30 = vmax.f32 %v2454_v21, 0.0 }
 0x3ea   : > { %v2546_v29 = vmax.f32 %v2456_v23, 0.0 }
 0x3eb   : > { %v2547_v31 = vmax.f32 %v2458_v26, 0.0 }
 0x3ec   : > { %v2586_v32 = vpack.c.bf16 %v2546_v29, %v2544_v27 }
 0x3ed   : > { %v2587_v35 = vpack.c.bf16 %v2547_v31, %v2545_v30  ;;  %v2461_v36 = vpop.f32.mrb[144].mxu1 }
 0x3ee   : > { %v2462_v37 = vadd.f32 %v2461_v36, %v6615_v17  ;;  %v2463_v38 = vpop.f32.mrb[145].mxu1  ;;  %v2628_v36 = vld [vmem:[%s7382_s10] sm:$0x3] }
 0x3ef   : > { %v2464_v62 = vadd.f32 %v2463_v38, %v6618_v18  ;;  %v2465_v63 = vpop.f32.mrb[146].mxu1  ;;  %2942 = vmatprep.mubr.bf16.mxu0 %v2587_v35  ;;  %v5646_v35 = vld [vmem:[%s7385_s13 + $0x14] ss:$8 sps:$4 sm:$0xff]   ;;  %v5649_v38 = vld [vmem:[%s7385_s13 + $0x24] ss:$8 sps:$4 sm:$0xff]  }
 0x3f0   : > { %v2466_v28 = vadd.f32 %v2465_v63, %v6615_v17  ;;  %v2467_v33 = vpop.f32.mrb[147].mxu1  ;;  %2943 = vmatmul.mubr.bf16.gmra.mrb[140].mxu0 %v2586_v32  ;;  %v2548_v39 = vmax.f32 %v2462_v37, 0.0  ;;  %v5641_v32 = vld [vmem:[%s7385_s13] ss:$8 sps:$4 sm:$0xff]   ;;  %v6787_v63 = vrot.slane %v2628_v36, %v6051_v61 }
 0x3f1   : > { %v2468_v5 = vadd.f32 %v2467_v33, %v6618_v18  ;;  %v2549_v13 = vmax.f32 %v2464_v62, 0.0  ;;  %v5647_v37 = vld [vmem:[%s7385_s13 + $0x20] ss:$8 sps:$4 sm:$0xff]   ;;  %v6784_v62 = vrot.slane %v2628_v36, %v6046_v59  ;;  %v5650_v33 = vld [vmem:[%s7385_s13 + $0x30] ss:$8 sps:$4 sm:$0xff]  }
 0x3f2   : > { %v2550_v8 = vmax.f32 %v2466_v28, 0.0  ;;  %v5673_v36 = vld [vmem:[%s7385_s13 + $0xa4] ss:$8 sps:$4 sm:$0xff]  }
 0x3f3   : > { %v2551_v44 = vmax.f32 %v2468_v5, 0.0 }
 0x3f4   : > { %v2588_v25 = vpack.c.bf16 %v2550_v8, %v2548_v39 }
 0x3f5   : > { %v2589_v40 = vpack.c.bf16 %v2551_v44, %v2549_v13  ;;  %v2471_v41 = vpop.f32.mrb[148].mxu1 }
 0x3f6   : > { %v2472_v42 = vadd.f32 %v2471_v41, %v6615_v17  ;;  %v2473_v43 = vpop.f32.mrb[149].mxu1 }
 0x3f7   : > { %v2474_v45 = vadd.f32 %v2473_v43, %v6618_v18  ;;  %v2475_v46 = vpop.f32.mrb[150].mxu1  ;;  %2952 = vmatprep.mubr.bf16.mxu0 %v2589_v40  ;;  %v5655_v40 = vld [vmem:[%s7385_s13 + $0x44] ss:$8 sps:$4 sm:$0xff]  }
 0x3f8   : > { %v2476_v47 = vadd.f32 %v2475_v46, %v6615_v17  ;;  %v2477_v48 = vpop.f32.mrb[151].mxu1  ;;  %2953 = vmatmul.mubr.bf16.gmra.mrb[144].mxu0 %v2588_v25  ;;  %v2552_v51 = vmax.f32 %v2472_v42, 0.0  ;;  %v5653_v25 = vld [vmem:[%s7385_s13 + $0x40] ss:$8 sps:$4 sm:$0xff]   ;;  %v5658_v42 = vld [vmem:[%s7385_s13 + $0x54] ss:$8 sps:$4 sm:$0xff]  }
 0x3f9   : > { %v2478_v50 = vadd.f32 %v2477_v48, %v6618_v18  ;;  %v2553_v20 = vmax.f32 %v2474_v45, 0.0 }
 0x3fa   : > { %v2554_v49 = vmax.f32 %v2476_v47, 0.0 }
 0x3fb   : > { %v2555_v52 = vmax.f32 %v2478_v50, 0.0  ;;  %v5656_v50 = vld [vmem:[%s7385_s13 + $0x50] ss:$8 sps:$4 sm:$0xff]  }
 0x3fc   : > { %v2590_v53 = vpack.c.bf16 %v2554_v49, %v2552_v51 }
 0x3fd   : > { %v2591_v54 = vpack.c.bf16 %v2555_v52, %v2553_v20  ;;  %v2481_v55 = vpop.f32.mrb[152].mxu1  ;;  %v5661_v20 = vld [vmem:[%s7385_s13 + $0x64] ss:$8 sps:$4 sm:$0xff]  }
 0x3fe   : > { %v2482_v58 = vadd.f32 %v2481_v55, %v6615_v17  ;;  %v2483_v60 = vpop.f32.mrb[153].mxu1 }
 0x3ff   : > { %v2484_v1 = vadd.f32 %v2483_v60, %v6618_v18  ;;  %v2485_v2 = vpop.f32.mrb[154].mxu1  ;;  %2962 = vmatprep.mubr.bf16.mxu0 %v2591_v54 }
 0x400   : > { %v2486_v3 = vadd.f32 %v2485_v2, %v6615_v17  ;;  %v2487_v4 = vpop.f32.mrb[155].mxu1  ;;  %2963 = vmatmul.mubr.bf16.gmra.mrb[148].mxu0 %v2590_v53  ;;  %v2556_v7 = vmax.f32 %v2482_v58, 0.0 }
 0x401   : > { %v2488_v6 = vadd.f32 %v2487_v4, %v6618_v18  ;;  %v2557_v10 = vmax.f32 %v2484_v1, 0.0  ;;  %v5659_v1 = vld [vmem:[%s7385_s13 + $0x60] ss:$8 sps:$4 sm:$0xff]  }
 0x402   : > { %v2558_v9 = vmax.f32 %v2486_v3, 0.0  ;;  %v5664_v3 = vld [vmem:[%s7385_s13 + $0x74] ss:$8 sps:$4 sm:$0xff]  }
 0x403   : > { %v2559_v11 = vmax.f32 %v2488_v6, 0.0 }
 0x404   : > { %v2592_v56 = vpack.c.bf16 %v2558_v9, %v2556_v7 }
 0x405   : > { %v2593_v57 = vpack.c.bf16 %v2559_v11, %v2557_v10  ;;  %v2491_v12 = vpop.f32.mrb[156].mxu1  ;;  %v5662_v11 = vld [vmem:[%s7385_s13 + $0x70] ss:$8 sps:$4 sm:$0xff]  }
 0x406   : > { %v2492_v14 = vadd.f32 %v2491_v12, %v6615_v17  ;;  %v2493_v15 = vpop.f32.mrb[157].mxu1  ;;  %v5667_v12 = vld [vmem:[%s7385_s13 + $0x84] ss:$8 sps:$4 sm:$0xff]  }
 0x407   : > { %v2494_v16 = vadd.f32 %v2493_v15, %v6618_v18  ;;  %v2495_v19 = vpop.f32.mrb[158].mxu1  ;;  %2972 = vmatprep.mubr.bf16.mxu0 %v2593_v57 }
 0x408   : > { %v2496_v21 = vadd.f32 %v2495_v19, %v6615_v17  ;;  %v2497_v22 = vpop.f32.mrb[159].mxu1  ;;  %2973 = vmatmul.mubr.bf16.gmra.mrb[152].mxu0 %v2592_v56  ;;  %v2560_v24 = vmax.f32 %v2492_v14, 0.0  ;;  %v5643_v17 = vld [vmem:[%s7385_s13 + $0x4] ss:$8 sps:$4 sm:$0xff]  }
 0x409   : > { %v2498_v23 = vadd.f32 %v2497_v22, %v6618_v18  ;;  %v2561_v27 = vmax.f32 %v2494_v16, 0.0  ;;  %3786 = vmatprep.subr.bf16.mxu0 %v5643_v17  ;;  %v5644_v18 = vld [vmem:[%s7385_s13 + $0x10] ss:$8 sps:$4 sm:$0xff]  }
 0x40a   : > { %v2562_v26 = vmax.f32 %v2496_v21, 0.0  ;;  %3787 = vmatpush1.bf16.msra.mxu0 %v5641_v32  ;;  %v5668_v17 = vld [vmem:[%s7385_s13 + $0x90] ss:$8 sps:$4 sm:$0xff]  }
 0x40b   : > { %v2563_v29 = vmax.f32 %v2498_v23, 0.0  ;;  %3788 = vmatprep.subr.bf16.mxu0 %v5646_v35  ;;  %v5665_v23 = vld [vmem:[%s7385_s13 + $0x80] ss:$8 sps:$4 sm:$0xff]  }
 0x40c   : > { %v2594_v30 = vpack.c.bf16 %v2562_v26, %v2560_v24  ;;  %v5670_v26 = vld [vmem:[%s7385_s13 + $0x94] ss:$8 sps:$4 sm:$0xff]  }
 0x40d   : > { %v2595_v31 = vpack.c.bf16 %v2563_v29, %v2561_v27 }
 0x40e   : > { %3789 = vmatpush1.bf16.msra.mxu0 %v5644_v18 }
 0x40f   : > { %2982 = vmatprep.mubr.bf16.mxu0 %v2595_v31  ;;  %3790 = vmatprep.subr.bf16.mxu0 %v5649_v38 }
 0x410   : > { %2983 = vmatmul.mubr.bf16.gmra.mrb[156].mxu0 %v2594_v30 }
 0x412   : > { %3791 = vmatpush1.bf16.msra.mxu0 %v5647_v37 }
 0x413   : > { %3792 = vmatprep.subr.bf16.mxu0 %v5652_v0 }
 0x416   : > { %3793 = vmatpush1.bf16.msra.mxu0 %v5650_v33 }
 0x417   : > { %3794 = vmatprep.subr.bf16.mxu0 %v5655_v40 }
 0x41a   : > { %3795 = vmatpush1.bf16.msra.mxu0 %v5653_v25 }
 0x41b   : > { %3796 = vmatprep.subr.bf16.mxu0 %v5658_v42  ;;  %v5674_v42 = vld [vmem:[%s7385_s13 + $0xb0] ss:$8 sps:$4 sm:$0xff]  }
 0x41e   : > { %3797 = vmatpush1.bf16.msra.mxu0 %v5656_v50 }
 0x41f   : > { %3798 = vmatprep.subr.bf16.mxu0 %v5661_v20 }
 0x422   : > { %3799 = vmatpush1.bf16.msra.mxu0 %v5659_v1 }
 0x423   : > { %3800 = vmatprep.subr.bf16.mxu0 %v5664_v3  ;;  %v5680_v3 = vld [vmem:[%s7385_s13 + $0xd0] ss:$8 sps:$4 sm:$0xff]  }
 0x426   : > { %3801 = vmatpush1.bf16.msra.mxu0 %v5662_v11 }
 0x427   : > { %3802 = vmatprep.subr.bf16.mxu0 %v5667_v12 }
 0x42a   : > { %3803 = vmatpush1.bf16.msra.mxu0 %v5665_v23 }
 0x42b   : > { %3804 = vmatprep.subr.bf16.mxu0 %v5670_v26 }
 0x42e   : > { %3805 = vmatpush1.bf16.msra.mxu0 %v5668_v17 }
 0x42f   : > { %3806 = vmatprep.subr.bf16.mxu0 %v5673_v36 }
 0x46b   : > { %v2834_v28 = vpop.f32.mrb[96].mxu0 }
 0x46c   : > { %v2835_v5 = vadd.f32 %v2834_v28, %v6784_v62  ;;  %v2836_v34 = vpop.f32.mrb[97].mxu0 }
 0x46d   : > { %v2837_v39 = vadd.f32 %v2836_v34, %v6787_v63  ;;  %v2838_v8 = vpop.f32.mrb[98].mxu0  ;;  %v5671_v34 = vld [vmem:[%s7385_s13 + $0xa0] ss:$8 sps:$4 sm:$0xff]  }
 0x46e   : > { %v2839_v13 = vadd.f32 %v2838_v8, %v6784_v62  ;;  %v2840_v44 = vpop.f32.mrb[99].mxu0  ;;  %v2993_v43 = vmax.f32 %v2835_v5, 0.0  ;;  %v5676_v8 = vld [vmem:[%s7385_s13 + $0xb4] ss:$8 sps:$4 sm:$0xff]   ;;  %3807 = vmatpush1.bf16.msra.mxu0 %v5671_v34 }
 0x46f   : > { %v2841_v41 = vadd.f32 %v2840_v44, %v6787_v63  ;;  %v2994_v46 = vmax.f32 %v2837_v39, 0.0  ;;  %3808 = vmatprep.subr.bf16.mxu0 %v5676_v8 }
 0x470   : > { %v2995_v45 = vmax.f32 %v2839_v13, 0.0 }
 0x471   : > { %v2996_v47 = vmax.f32 %v2841_v41, 0.0 }
 0x472   : > { %v3057_v48 = vpack.c.bf16 %v2995_v45, %v2993_v43  ;;  %3809 = vmatpush1.bf16.msra.mxu0 %v5674_v42 }
 0x473   : > { %v3058_v51 = vpack.c.bf16 %v2996_v47, %v2994_v46  ;;  %v2844_v49 = vpop.f32.mrb[100].mxu0  ;;  %v5679_v46 = vld [vmem:[%s7385_s13 + $0xc4] ss:$8 sps:$4 sm:$0xff]  }
 0x474   : > { %v2845_v52 = vadd.f32 %v2844_v49, %v6784_v62  ;;  %v2846_v53 = vpop.f32.mrb[101].mxu0  ;;  %3810 = vmatprep.subr.bf16.mxu0 %v5679_v46 }
 0x475   : > { %v2847_v54 = vadd.f32 %v2846_v53, %v6787_v63  ;;  %v2848_v55 = vpop.f32.mrb[102].mxu0  ;;  %3325 = vmatprep.mubr.bf16.mxu1 %v3058_v51 }
 0x476   : > { %v2849_v58 = vadd.f32 %v2848_v55, %v6784_v62  ;;  %v2850_v60 = vpop.f32.mrb[103].mxu0  ;;  %3326 = vmatmul.mubr.bf16.vlgmr.msra.gmra.mrb[160].mxu1 %v3057_v48  ;;  %v2997_v4 = vmax.f32 %v2845_v52, 0.0  ;;  %v5677_v52 = vld [vmem:[%s7385_s13 + $0xc0] ss:$8 sps:$4 sm:$0xff]  }
 0x477   : > { %v2851_v2 = vadd.f32 %v2850_v60, %v6787_v63  ;;  %v2998_v7 = vmax.f32 %v2847_v54, 0.0  ;;  %v5682_v54 = vld [vmem:[%s7385_s13 + $0xd4] ss:$8 sps:$4 sm:$0xff]   ;;  %3811 = vmatpush1.bf16.msra.mxu0 %v5677_v52 }
 0x478   : > { %v2999_v6 = vmax.f32 %v2849_v58, 0.0  ;;  %3812 = vmatprep.subr.bf16.mxu0 %v5682_v54 }
 0x479   : > { %v3000_v9 = vmax.f32 %v2851_v2, 0.0 }
 0x47a   : > { %v3059_v10 = vpack.c.bf16 %v2999_v6, %v2997_v4 }
 0x47b   : > { %v3060_v56 = vpack.c.bf16 %v3000_v9, %v2998_v7  ;;  %v2854_v57 = vpop.f32.mrb[104].mxu0  ;;  %v5685_v7 = vld [vmem:[%s7385_s13 + $0xe4] ss:$8 sps:$4 sm:$0xff]   ;;  %3813 = vmatpush1.bf16.msra.mxu0 %v5680_v3 }
 0x47c   : > { %v2855_v14 = vadd.f32 %v2854_v57, %v6784_v62  ;;  %v2856_v15 = vpop.f32.mrb[105].mxu0  ;;  %3814 = vmatprep.subr.bf16.mxu0 %v5685_v7 }
 0x47d   : > { %v2857_v16 = vadd.f32 %v2856_v15, %v6787_v63  ;;  %v2858_v19 = vpop.f32.mrb[106].mxu0  ;;  %3335 = vmatprep.mubr.bf16.mxu1 %v3060_v56 }
 0x47e   : > { %v2859_v21 = vadd.f32 %v2858_v19, %v6784_v62  ;;  %v2860_v22 = vpop.f32.mrb[107].mxu0  ;;  %3336 = vmatmul.mubr.bf16.gmra.mrb[164].mxu1 %v3059_v10  ;;  %v3001_v27 = vmax.f32 %v2855_v14, 0.0  ;;  %v5683_v14 = vld [vmem:[%s7385_s13 + $0xe0] ss:$8 sps:$4 sm:$0xff]  }
 0x47f   : > { %v2861_v24 = vadd.f32 %v2860_v22, %v6787_v63  ;;  %v3002_v30 = vmax.f32 %v2857_v16, 0.0  ;;  %3815 = vmatpush1.bf16.msra.mxu0 %v5683_v14 }
 0x480   : > { %v3003_v29 = vmax.f32 %v2859_v21, 0.0 }
 0x481   : > { %v3004_v31 = vmax.f32 %v2861_v24, 0.0 }
 0x482   : > { %v3061_v32 = vpack.c.bf16 %v3003_v29, %v3001_v27 }
 0x483   : > { %v3062_v18 = vpack.c.bf16 %v3004_v31, %v3002_v30  ;;  %v2864_v35 = vpop.f32.mrb[108].mxu0 }
 0x484   : > { %v2865_v37 = vadd.f32 %v2864_v35, %v6784_v62  ;;  %v2866_v38 = vpop.f32.mrb[109].mxu0 }
 0x485   : > { %v2867_v28 = vadd.f32 %v2866_v38, %v6787_v63  ;;  %v2868_v33 = vpop.f32.mrb[110].mxu0  ;;  %3345 = vmatprep.mubr.bf16.mxu1 %v3062_v18 }
 0x486   : > { %v2869_v0 = vadd.f32 %v2868_v33, %v6784_v62  ;;  %v2870_v5 = vpop.f32.mrb[111].mxu0  ;;  %3346 = vmatmul.mubr.bf16.gmra.mrb[168].mxu1 %v3061_v32  ;;  %v3005_v13 = vmax.f32 %v2865_v37, 0.0 }
 0x487   : > { %v2871_v39 = vadd.f32 %v2870_v5, %v6787_v63  ;;  %v3006_v25 = vmax.f32 %v2867_v28, 0.0 }
 0x488   : > { %v3007_v44 = vmax.f32 %v2869_v0, 0.0 }
 0x489   : > { %v3008_v40 = vmax.f32 %v2871_v39, 0.0 }
 0x48a   : > { %v3063_v41 = vpack.c.bf16 %v3007_v44, %v3005_v13 }
 0x48b   : > { %v3064_v43 = vpack.c.bf16 %v3008_v40, %v3006_v25  ;;  %v2874_v45 = vpop.f32.mrb[112].mxu0 }
 0x48c   : > { %v2875_v47 = vadd.f32 %v2874_v45, %v6784_v62  ;;  %v2876_v48 = vpop.f32.mrb[113].mxu0 }
 0x48d   : > { %v2877_v50 = vadd.f32 %v2876_v48, %v6787_v63  ;;  %v2878_v51 = vpop.f32.mrb[114].mxu0  ;;  %3355 = vmatprep.mubr.bf16.mxu1 %v3064_v43 }
 0x48e   : > { %v2879_v49 = vadd.f32 %v2878_v51, %v6784_v62  ;;  %v2880_v20 = vpop.f32.mrb[115].mxu0  ;;  %3356 = vmatmul.mubr.bf16.gmra.mrb[172].mxu1 %v3063_v41  ;;  %v3009_v55 = vmax.f32 %v2875_v47, 0.0 }
 0x48f   : > { %v2881_v53 = vadd.f32 %v2880_v20, %v6787_v63  ;;  %v3010_v60 = vmax.f32 %v2877_v50, 0.0 }
 0x490   : > { %v3011_v58 = vmax.f32 %v2879_v49, 0.0 }
 0x491   : > { %v3012_v1 = vmax.f32 %v2881_v53, 0.0 }
 0x492   : > { %v3065_v2 = vpack.c.bf16 %v3011_v58, %v3009_v55 }
 0x493   : > { %v3066_v4 = vpack.c.bf16 %v3012_v1, %v3010_v60  ;;  %v2884_v6 = vpop.f32.mrb[116].mxu0 }
 0x494   : > { %v2885_v9 = vadd.f32 %v2884_v6, %v6784_v62  ;;  %v2886_v10 = vpop.f32.mrb[117].mxu0 }
 0x495   : > { %v2887_v11 = vadd.f32 %v2886_v10, %v6787_v63  ;;  %v2888_v56 = vpop.f32.mrb[118].mxu0  ;;  %3365 = vmatprep.mubr.bf16.mxu1 %v3066_v4 }
 0x496   : > { %v2889_v57 = vadd.f32 %v2888_v56, %v6784_v62  ;;  %v2890_v12 = vpop.f32.mrb[119].mxu0  ;;  %3366 = vmatmul.mubr.bf16.gmra.mrb[176].mxu1 %v3065_v2  ;;  %v3013_v16 = vmax.f32 %v2885_v9, 0.0 }
 0x497   : > { %v2891_v15 = vadd.f32 %v2890_v12, %v6787_v63  ;;  %v3014_v21 = vmax.f32 %v2887_v11, 0.0 }
 0x498   : > { %v3015_v19 = vmax.f32 %v2889_v57, 0.0 }
 0x499   : > { %v3016_v22 = vmax.f32 %v2891_v15, 0.0 }
 0x49a   : > { %v3067_v23 = vpack.c.bf16 %v3015_v19, %v3013_v16 }
 0x49b   : > { %v3068_v24 = vpack.c.bf16 %v3016_v22, %v3014_v21  ;;  %v2894_v26 = vpop.f32.mrb[120].mxu0 }
 0x49c   : > { %v2895_v27 = vadd.f32 %v2894_v26, %v6784_v62  ;;  %v2896_v29 = vpop.f32.mrb[121].mxu0 }
 0x49d   : > { %v2897_v30 = vadd.f32 %v2896_v29, %v6787_v63  ;;  %v2898_v31 = vpop.f32.mrb[122].mxu0  ;;  %3375 = vmatprep.mubr.bf16.mxu1 %v3068_v24 }
 0x49e   : > { %v2899_v32 = vadd.f32 %v2898_v31, %v6784_v62  ;;  %v2900_v17 = vpop.f32.mrb[123].mxu0  ;;  %3376 = vmatmul.mubr.bf16.gmra.mrb[180].mxu1 %v3067_v23  ;;  %v3017_v35 = vmax.f32 %v2895_v27, 0.0 }
 0x49f   : > { %v2901_v18 = vadd.f32 %v2900_v17, %v6787_v63  ;;  %v3018_v37 = vmax.f32 %v2897_v30, 0.0 }
 0x4a0   : > { %v3019_v36 = vmax.f32 %v2899_v32, 0.0 }
 0x4a1   : > { %v3020_v38 = vmax.f32 %v2901_v18, 0.0 }
 0x4a2   : > { %v3069_v28 = vpack.c.bf16 %v3019_v36, %v3017_v35 }
 0x4a3   : > { %v3070_v33 = vpack.c.bf16 %v3020_v38, %v3018_v37  ;;  %v2904_v0 = vpop.f32.mrb[124].mxu0 }
 0x4a4   : > { %v2905_v5 = vadd.f32 %v2904_v0, %v6784_v62  ;;  %v2906_v34 = vpop.f32.mrb[125].mxu0 }
 0x4a5   : > { %v2907_v39 = vadd.f32 %v2906_v34, %v6787_v63  ;;  %v2908_v8 = vpop.f32.mrb[126].mxu0  ;;  %3385 = vmatprep.mubr.bf16.mxu1 %v3070_v33 }
 0x4a6   : > { %v2909_v13 = vadd.f32 %v2908_v8, %v6784_v62  ;;  %v2910_v44 = vpop.f32.mrb[127].mxu0  ;;  %3386 = vmatmul.mubr.bf16.gmra.mrb[184].mxu1 %v3069_v28  ;;  %v3021_v40 = vmax.f32 %v2905_v5, 0.0 }
 0x4a7   : > { %v2911_v25 = vadd.f32 %v2910_v44, %v6787_v63  ;;  %v3022_v42 = vmax.f32 %v2907_v39, 0.0 }
 0x4a8   : > { %v3023_v41 = vmax.f32 %v2909_v13, 0.0 }
 0x4a9   : > { %v3024_v43 = vmax.f32 %v2911_v25, 0.0 }
 0x4aa   : > { %v3071_v45 = vpack.c.bf16 %v3023_v41, %v3021_v40 }
 0x4ab   : > { %v3072_v46 = vpack.c.bf16 %v3024_v43, %v3022_v42  ;;  %v2914_v47 = vpop.f32.mrb[128].mxu0 }
 0x4ac   : > { %v2915_v48 = vadd.f32 %v2914_v47, %v6784_v62  ;;  %v2916_v50 = vpop.f32.mrb[129].mxu0 }
 0x4ad   : > { %v2917_v51 = vadd.f32 %v2916_v50, %v6787_v63  ;;  %v2918_v49 = vpop.f32.mrb[130].mxu0  ;;  %3395 = vmatprep.mubr.bf16.mxu1 %v3072_v46 }
 0x4ae   : > { %v2919_v20 = vadd.f32 %v2918_v49, %v6784_v62  ;;  %v2920_v52 = vpop.f32.mrb[131].mxu0  ;;  %3396 = vmatmul.mubr.bf16.gmra.mrb[188].mxu1 %v3071_v45  ;;  %v3025_v54 = vmax.f32 %v2915_v48, 0.0 }
 0x4af   : > { %v2921_v53 = vadd.f32 %v2920_v52, %v6787_v63  ;;  %v3026_v58 = vmax.f32 %v2917_v51, 0.0  ;;  %v5688_v51 = vld [vmem:[%s7385_s13 + $0xf4] ss:$8 sps:$4 sm:$0xff]  }
 0x4b0   : > { %v3027_v55 = vmax.f32 %v2919_v20, 0.0  ;;  %v5686_v20 = vld [vmem:[%s7385_s13 + $0xf0] ss:$8 sps:$4 sm:$0xff]   ;;  %3816 = vmatprep.subr.bf16.mxu0 %v5688_v51  ;;  %v5700_v51 = vld [vmem:[%s7387_s15 + $0x34] ss:$8 sps:$4 sm:$0xff]  }
 0x4b1   : > { %v3028_v60 = vmax.f32 %v2921_v53, 0.0  ;;  %3817 = vmatpush1.bf16.msra.mxu0 %v5686_v20 }
 0x4b2   : > { %v3073_v1 = vpack.c.bf16 %v3027_v55, %v3025_v54 }
 0x4b3   : > { %v3074_v2 = vpack.c.bf16 %v3028_v60, %v3026_v58  ;;  %v2924_v3 = vpop.f32.mrb[132].mxu0 }
 0x4b4   : > { %v2925_v4 = vadd.f32 %v2924_v3, %v6784_v62  ;;  %v2926_v6 = vpop.f32.mrb[133].mxu0 }
 0x4b5   : > { %v2927_v7 = vadd.f32 %v2926_v6, %v6787_v63  ;;  %v2928_v9 = vpop.f32.mrb[134].mxu0  ;;  %3405 = vmatprep.mubr.bf16.mxu1 %v3074_v2 }
 0x4b6   : > { %v2929_v10 = vadd.f32 %v2928_v9, %v6784_v62  ;;  %v2930_v11 = vpop.f32.mrb[135].mxu0  ;;  %3406 = vmatmul.mubr.bf16.gmra.mrb[192].mxu1 %v3073_v1  ;;  %v3029_v57 = vmax.f32 %v2925_v4, 0.0 }
 0x4b7   : > { %v2931_v56 = vadd.f32 %v2930_v11, %v6787_v63  ;;  %v3030_v14 = vmax.f32 %v2927_v7, 0.0 }
 0x4b8   : > { %v3031_v12 = vmax.f32 %v2929_v10, 0.0 }
 0x4b9   : > { %v3032_v15 = vmax.f32 %v2931_v56, 0.0 }
 0x4ba   : > { %v3075_v16 = vpack.c.bf16 %v3031_v12, %v3029_v57 }
 0x4bb   : > { %v3076_v19 = vpack.c.bf16 %v3032_v15, %v3030_v14  ;;  %v2934_v21 = vpop.f32.mrb[136].mxu0 }
 0x4bc   : > { %v2935_v22 = vadd.f32 %v2934_v21, %v6784_v62  ;;  %v2936_v23 = vpop.f32.mrb[137].mxu0 }
 0x4bd   : > { %v2937_v24 = vadd.f32 %v2936_v23, %v6787_v63  ;;  %v2938_v26 = vpop.f32.mrb[138].mxu0  ;;  %3415 = vmatprep.mubr.bf16.mxu1 %v3076_v19 }
 0x4be   : > { %v2939_v27 = vadd.f32 %v2938_v26, %v6784_v62  ;;  %v2940_v29 = vpop.f32.mrb[139].mxu0  ;;  %3416 = vmatmul.mubr.bf16.gmra.mrb[196].mxu1 %v3075_v16  ;;  %v3033_v31 = vmax.f32 %v2935_v22, 0.0 }
 0x4bf   : > { %v2941_v30 = vadd.f32 %v2940_v29, %v6787_v63  ;;  %v3034_v17 = vmax.f32 %v2937_v24, 0.0 }
 0x4c0   : > { %v3035_v32 = vmax.f32 %v2939_v27, 0.0 }
 0x4c1   : > { %v3036_v18 = vmax.f32 %v2941_v30, 0.0 }
 0x4c2   : > { %v3077_v35 = vpack.c.bf16 %v3035_v32, %v3033_v31 }
 0x4c3   : > { %v3078_v36 = vpack.c.bf16 %v3036_v18, %v3034_v17  ;;  %v2944_v37 = vpop.f32.mrb[140].mxu0 }
 0x4c4   : > { %v2945_v38 = vadd.f32 %v2944_v37, %v6784_v62  ;;  %v2946_v28 = vpop.f32.mrb[141].mxu0 }
 0x4c5   : > { %v2947_v33 = vadd.f32 %v2946_v28, %v6787_v63  ;;  %v2948_v0 = vpop.f32.mrb[142].mxu0  ;;  %3425 = vmatprep.mubr.bf16.mxu1 %v3078_v36 }
 0x4c6   : > { %v2949_v5 = vadd.f32 %v2948_v0, %v6784_v62  ;;  %v2950_v34 = vpop.f32.mrb[143].mxu0  ;;  %3426 = vmatmul.mubr.bf16.gmra.mrb[200].mxu1 %v3077_v35  ;;  %v3037_v8 = vmax.f32 %v2945_v38, 0.0 }
 0x4c7   : > { %v2951_v39 = vadd.f32 %v2950_v34, %v6787_v63  ;;  %v3038_v44 = vmax.f32 %v2947_v33, 0.0 }
 0x4c8   : > { %v3039_v13 = vmax.f32 %v2949_v5, 0.0 }
 0x4c9   : > { %v3040_v25 = vmax.f32 %v2951_v39, 0.0 }
 0x4ca   : > { %v3079_v40 = vpack.c.bf16 %v3039_v13, %v3037_v8 }
 0x4cb   : > { %v3080_v41 = vpack.c.bf16 %v3040_v25, %v3038_v44  ;;  %v2954_v42 = vpop.f32.mrb[144].mxu0 }
 0x4cc   : > { %v2955_v43 = vadd.f32 %v2954_v42, %v6784_v62  ;;  %v2956_v45 = vpop.f32.mrb[145].mxu0  ;;  %v3121_v42 = vld [vmem:[%s7384_s12] sm:$0x3] }
 0x4cd   : > { %v2957_v46 = vadd.f32 %v2956_v45, %v6787_v63  ;;  %v2958_v47 = vpop.f32.mrb[146].mxu0  ;;  %3435 = vmatprep.mubr.bf16.mxu1 %v3080_v41  ;;  %v5694_v41 = vld [vmem:[%s7387_s15 + $0x14] ss:$8 sps:$4 sm:$0xff]   ;;  %v5697_v45 = vld [vmem:[%s7387_s15 + $0x24] ss:$8 sps:$4 sm:$0xff]  }
 0x4ce   : > { %v2959_v48 = vadd.f32 %v2958_v47, %v6784_v62  ;;  %v2960_v50 = vpop.f32.mrb[147].mxu0  ;;  %3436 = vmatmul.mubr.bf16.gmra.mrb[204].mxu1 %v3079_v40  ;;  %v3041_v52 = vmax.f32 %v2955_v43, 0.0  ;;  %v5689_v40 = vld [vmem:[%s7387_s15] ss:$8 sps:$4 sm:$0xff]   ;;  %v6956_v47 = vrot.slane %v3121_v42, %v6051_v61 }
 0x4cf   : > { %v2961_v49 = vadd.f32 %v2960_v50, %v6787_v63  ;;  %v3042_v54 = vmax.f32 %v2957_v46, 0.0  ;;  %v5695_v43 = vld [vmem:[%s7387_s15 + $0x20] ss:$8 sps:$4 sm:$0xff]   ;;  %v6953_v46 = vrot.slane %v3121_v42, %v6046_v59  ;;  %v5698_v50 = vld [vmem:[%s7387_s15 + $0x30] ss:$8 sps:$4 sm:$0xff]  }
 0x4d0   : > { %v3043_v53 = vmax.f32 %v2959_v48, 0.0  ;;  %v5721_v42 = vld [vmem:[%s7387_s15 + $0xa4] ss:$8 sps:$4 sm:$0xff]  }
 0x4d1   : > { %v3044_v55 = vmax.f32 %v2961_v49, 0.0 }
 0x4d2   : > { %v3081_v58 = vpack.c.bf16 %v3043_v53, %v3041_v52 }
 0x4d3   : > { %v3082_v60 = vpack.c.bf16 %v3044_v55, %v3042_v54  ;;  %v2964_v1 = vpop.f32.mrb[148].mxu0 }
 0x4d4   : > { %v2965_v2 = vadd.f32 %v2964_v1, %v6784_v62  ;;  %v2966_v3 = vpop.f32.mrb[149].mxu0 }
 0x4d5   : > { %v2967_v4 = vadd.f32 %v2966_v3, %v6787_v63  ;;  %v2968_v6 = vpop.f32.mrb[150].mxu0  ;;  %3445 = vmatprep.mubr.bf16.mxu1 %v3082_v60  ;;  %v5703_v60 = vld [vmem:[%s7387_s15 + $0x44] ss:$8 sps:$4 sm:$0xff]  }
 0x4d6   : > { %v2969_v7 = vadd.f32 %v2968_v6, %v6784_v62  ;;  %v2970_v9 = vpop.f32.mrb[151].mxu0  ;;  %3446 = vmatmul.mubr.bf16.gmra.mrb[208].mxu1 %v3081_v58  ;;  %v3045_v11 = vmax.f32 %v2965_v2, 0.0  ;;  %v5701_v58 = vld [vmem:[%s7387_s15 + $0x40] ss:$8 sps:$4 sm:$0xff]   ;;  %v5706_v2 = vld [vmem:[%s7387_s15 + $0x54] ss:$8 sps:$4 sm:$0xff]  }
 0x4d7   : > { %v2971_v10 = vadd.f32 %v2970_v9, %v6787_v63  ;;  %v3046_v57 = vmax.f32 %v2967_v4, 0.0 }
 0x4d8   : > { %v3047_v56 = vmax.f32 %v2969_v7, 0.0 }
 0x4d9   : > { %v3048_v12 = vmax.f32 %v2971_v10, 0.0  ;;  %v5704_v10 = vld [vmem:[%s7387_s15 + $0x50] ss:$8 sps:$4 sm:$0xff]  }
 0x4da   : > { %v3083_v14 = vpack.c.bf16 %v3047_v56, %v3045_v11 }
 0x4db   : > { %v3084_v15 = vpack.c.bf16 %v3048_v12, %v3046_v57  ;;  %v2974_v16 = vpop.f32.mrb[152].mxu0  ;;  %v5709_v57 = vld [vmem:[%s7387_s15 + $0x64] ss:$8 sps:$4 sm:$0xff]  }
 0x4dc   : > { %v2975_v19 = vadd.f32 %v2974_v16, %v6784_v62  ;;  %v2976_v21 = vpop.f32.mrb[153].mxu0 }
 0x4dd   : > { %v2977_v22 = vadd.f32 %v2976_v21, %v6787_v63  ;;  %v2978_v23 = vpop.f32.mrb[154].mxu0  ;;  %3455 = vmatprep.mubr.bf16.mxu1 %v3084_v15 }
 0x4de   : > { %v2979_v24 = vadd.f32 %v2978_v23, %v6784_v62  ;;  %v2980_v26 = vpop.f32.mrb[155].mxu0  ;;  %3456 = vmatmul.mubr.bf16.gmra.mrb[212].mxu1 %v3083_v14  ;;  %v3049_v29 = vmax.f32 %v2975_v19, 0.0 }
 0x4df   : > { %v2981_v27 = vadd.f32 %v2980_v26, %v6787_v63  ;;  %v3050_v31 = vmax.f32 %v2977_v22, 0.0  ;;  %v5707_v22 = vld [vmem:[%s7387_s15 + $0x60] ss:$8 sps:$4 sm:$0xff]  }
 0x4e0   : > { %v3051_v30 = vmax.f32 %v2979_v24, 0.0  ;;  %v5712_v24 = vld [vmem:[%s7387_s15 + $0x74] ss:$8 sps:$4 sm:$0xff]  }
 0x4e1   : > { %v3052_v32 = vmax.f32 %v2981_v27, 0.0 }
 0x4e2   : > { %v3085_v17 = vpack.c.bf16 %v3051_v30, %v3049_v29 }
 0x4e3   : > { %v3086_v18 = vpack.c.bf16 %v3052_v32, %v3050_v31  ;;  %v2984_v35 = vpop.f32.mrb[156].mxu0  ;;  %v5710_v32 = vld [vmem:[%s7387_s15 + $0x70] ss:$8 sps:$4 sm:$0xff]  }
 0x4e4   : > { %v2985_v36 = vadd.f32 %v2984_v35, %v6784_v62  ;;  %v2986_v37 = vpop.f32.mrb[157].mxu0  ;;  %v5715_v35 = vld [vmem:[%s7387_s15 + $0x84] ss:$8 sps:$4 sm:$0xff]  }
 0x4e5   : > { %v2987_v38 = vadd.f32 %v2986_v37, %v6787_v63  ;;  %v2988_v28 = vpop.f32.mrb[158].mxu0  ;;  %3465 = vmatprep.mubr.bf16.mxu1 %v3086_v18 }
 0x4e6   : > { %v2989_v33 = vadd.f32 %v2988_v28, %v6784_v62  ;;  %v2990_v0 = vpop.f32.mrb[159].mxu0  ;;  %3466 = vmatmul.mubr.bf16.gmra.mrb[216].mxu1 %v3085_v17  ;;  %v3053_v34 = vmax.f32 %v2985_v36, 0.0  ;;  %v5691_v62 = vld [vmem:[%s7387_s15 + $0x4] ss:$8 sps:$4 sm:$0xff]  }
 0x4e7   : > { %v2991_v5 = vadd.f32 %v2990_v0, %v6787_v63  ;;  %v3054_v8 = vmax.f32 %v2987_v38, 0.0  ;;  %4279 = vmatprep.subr.bf16.mxu1 %v5691_v62  ;;  %v5692_v63 = vld [vmem:[%s7387_s15 + $0x10] ss:$8 sps:$4 sm:$0xff]  }
 0x4e8   : > { %v3055_v39 = vmax.f32 %v2989_v33, 0.0  ;;  %4280 = vmatpush1.bf16.msra.mxu1 %v5689_v40  ;;  %v5716_v62 = vld [vmem:[%s7387_s15 + $0x90] ss:$8 sps:$4 sm:$0xff]  }
 0x4e9   : > { %v3056_v13 = vmax.f32 %v2991_v5, 0.0  ;;  %4281 = vmatprep.subr.bf16.mxu1 %v5694_v41  ;;  %v5713_v5 = vld [vmem:[%s7387_s15 + $0x80] ss:$8 sps:$4 sm:$0xff]  }
 0x4ea   : > { %v3087_v44 = vpack.c.bf16 %v3055_v39, %v3053_v34  ;;  %v5718_v39 = vld [vmem:[%s7387_s15 + $0x94] ss:$8 sps:$4 sm:$0xff]  }
 0x4eb   : > { %v3088_v25 = vpack.c.bf16 %v3056_v13, %v3054_v8 }
 0x4ec   : > { %4282 = vmatpush1.bf16.msra.mxu1 %v5692_v63 }
 0x4ed   : > { %3475 = vmatprep.mubr.bf16.mxu1 %v3088_v25  ;;  %4283 = vmatprep.subr.bf16.mxu1 %v5697_v45 }
 0x4ee   : > { %3476 = vmatmul.mubr.bf16.gmra.mrb[220].mxu1 %v3087_v44 }
 0x4f0   : > { %4284 = vmatpush1.bf16.msra.mxu1 %v5695_v43 }
 0x4f1   : > { %4285 = vmatprep.subr.bf16.mxu1 %v5700_v51 }
 0x4f4   : > { %4286 = vmatpush1.bf16.msra.mxu1 %v5698_v50 }
 0x4f5   : > { %4287 = vmatprep.subr.bf16.mxu1 %v5703_v60 }
 0x4f8   : > { %4288 = vmatpush1.bf16.msra.mxu1 %v5701_v58 }
 0x4f9   : > { %4289 = vmatprep.subr.bf16.mxu1 %v5706_v2  ;;  %v5722_v2 = vld [vmem:[%s7387_s15 + $0xb0] ss:$8 sps:$4 sm:$0xff]  }
 0x4fc   : > { %4290 = vmatpush1.bf16.msra.mxu1 %v5704_v10 }
 0x4fd   : > { %4291 = vmatprep.subr.bf16.mxu1 %v5709_v57 }
 0x500   : > { %4292 = vmatpush1.bf16.msra.mxu1 %v5707_v22 }
 0x501   : > { %4293 = vmatprep.subr.bf16.mxu1 %v5712_v24  ;;  %v5728_v24 = vld [vmem:[%s7387_s15 + $0xd0] ss:$8 sps:$4 sm:$0xff]  }
 0x504   : > { %4294 = vmatpush1.bf16.msra.mxu1 %v5710_v32 }
 0x505   : > { %4295 = vmatprep.subr.bf16.mxu1 %v5715_v35 }
 0x508   : > { %4296 = vmatpush1.bf16.msra.mxu1 %v5713_v5 }
 0x509   : > { %4297 = vmatprep.subr.bf16.mxu1 %v5718_v39 }
 0x50c   : > { %4298 = vmatpush1.bf16.msra.mxu1 %v5716_v62 }
 0x50d   : > { %4299 = vmatprep.subr.bf16.mxu1 %v5721_v42 }
 0x549   : > { %v3327_v48 = vpop.f32.mrb[160].mxu1 }
 0x54a   : > { %v3328_v49 = vadd.f32 %v3327_v48, %v6953_v46  ;;  %v3329_v20 = vpop.f32.mrb[161].mxu1 }
 0x54b   : > { %v3330_v52 = vadd.f32 %v3329_v20, %v6956_v47  ;;  %v3331_v53 = vpop.f32.mrb[162].mxu1  ;;  %v5719_v20 = vld [vmem:[%s7387_s15 + $0xa0] ss:$8 sps:$4 sm:$0xff]  }
 0x54c   : > { %v3332_v54 = vadd.f32 %v3331_v53, %v6953_v46  ;;  %v3333_v55 = vpop.f32.mrb[163].mxu1  ;;  %v3486_v3 = vmax.f32 %v3328_v49, 0.0  ;;  %v5724_v53 = vld [vmem:[%s7387_s15 + $0xb4] ss:$8 sps:$4 sm:$0xff]   ;;  %4300 = vmatpush1.bf16.msra.mxu1 %v5719_v20 }
 0x54d   : > { %v3334_v1 = vadd.f32 %v3333_v55, %v6956_v47  ;;  %v3487_v6 = vmax.f32 %v3330_v52, 0.0  ;;  %4301 = vmatprep.subr.bf16.mxu1 %v5724_v53 }
 0x54e   : > { %v3488_v4 = vmax.f32 %v3332_v54, 0.0 }
 0x54f   : > { %v3489_v7 = vmax.f32 %v3334_v1, 0.0 }
 0x550   : > { %v3550_v9 = vpack.c.bf16 %v3488_v4, %v3486_v3  ;;  %4302 = vmatpush1.bf16.msra.mxu1 %v5722_v2 }
 0x551   : > { %v3551_v11 = vpack.c.bf16 %v3489_v7, %v3487_v6  ;;  %v3337_v56 = vpop.f32.mrb[164].mxu1  ;;  %v5727_v6 = vld [vmem:[%s7387_s15 + $0xc4] ss:$8 sps:$4 sm:$0xff]  }
 0x552   : > { %v3338_v12 = vadd.f32 %v3337_v56, %v6953_v46  ;;  %v3339_v14 = vpop.f32.mrb[165].mxu1  ;;  %4303 = vmatprep.subr.bf16.mxu1 %v5727_v6 }
 0x553   : > { %v3340_v15 = vadd.f32 %v3339_v14, %v6956_v47  ;;  %v3341_v16 = vpop.f32.mrb[166].mxu1  ;;  %3818 = vmatprep.mubr.bf16.mxu0 %v3551_v11 }
 0x554   : > { %v3342_v19 = vadd.f32 %v3341_v16, %v6953_v46  ;;  %v3343_v21 = vpop.f32.mrb[167].mxu1  ;;  %3819 = vmatmul.mubr.bf16.vlgmr.msra.gmra.mrb[160].mxu0 %v3550_v9  ;;  %v3490_v26 = vmax.f32 %v3338_v12, 0.0  ;;  %v5725_v12 = vld [vmem:[%s7387_s15 + $0xc0] ss:$8 sps:$4 sm:$0xff]  }
 0x555   : > { %v3344_v23 = vadd.f32 %v3343_v21, %v6956_v47  ;;  %v3491_v29 = vmax.f32 %v3340_v15, 0.0  ;;  %v5730_v15 = vld [vmem:[%s7387_s15 + $0xd4] ss:$8 sps:$4 sm:$0xff]   ;;  %4304 = vmatpush1.bf16.msra.mxu1 %v5725_v12 }
 0x556   : > { %v3492_v27 = vmax.f32 %v3342_v19, 0.0  ;;  %4305 = vmatprep.subr.bf16.mxu1 %v5730_v15 }
 0x557   : > { %v3493_v30 = vmax.f32 %v3344_v23, 0.0 }
 0x558   : > { %v3552_v31 = vpack.c.bf16 %v3492_v27, %v3490_v26 }
 0x559   : > { %v3553_v17 = vpack.c.bf16 %v3493_v30, %v3491_v29  ;;  %v3347_v18 = vpop.f32.mrb[168].mxu1  ;;  %v5733_v29 = vld [vmem:[%s7387_s15 + $0xe4] ss:$8 sps:$4 sm:$0xff]   ;;  %4306 = vmatpush1.bf16.msra.mxu1 %v5728_v24 }
 0x55a   : > { %v3348_v36 = vadd.f32 %v3347_v18, %v6953_v46  ;;  %v3349_v37 = vpop.f32.mrb[169].mxu1  ;;  %4307 = vmatprep.subr.bf16.mxu1 %v5733_v29 }
 0x55b   : > { %v3350_v38 = vadd.f32 %v3349_v37, %v6956_v47  ;;  %v3351_v28 = vpop.f32.mrb[170].mxu1  ;;  %3828 = vmatprep.mubr.bf16.mxu0 %v3553_v17 }
 0x55c   : > { %v3352_v33 = vadd.f32 %v3351_v28, %v6953_v46  ;;  %v3353_v0 = vpop.f32.mrb[171].mxu1  ;;  %3829 = vmatmul.mubr.bf16.gmra.mrb[164].mxu0 %v3552_v31  ;;  %v3494_v8 = vmax.f32 %v3348_v36, 0.0  ;;  %v5731_v36 = vld [vmem:[%s7387_s15 + $0xe0] ss:$8 sps:$4 sm:$0xff]  }
 0x55d   : > { %v3354_v34 = vadd.f32 %v3353_v0, %v6956_v47  ;;  %v3495_v44 = vmax.f32 %v3350_v38, 0.0  ;;  %4308 = vmatpush1.bf16.msra.mxu1 %v5731_v36 }
 0x55e   : > { %v3496_v13 = vmax.f32 %v3352_v33, 0.0 }
 0x55f   : > { %v3497_v25 = vmax.f32 %v3354_v34, 0.0 }
 0x560   : > { %v3554_v40 = vpack.c.bf16 %v3496_v13, %v3494_v8 }
 0x561   : > { %v3555_v63 = vpack.c.bf16 %v3497_v25, %v3495_v44  ;;  %v3357_v41 = vpop.f32.mrb[172].mxu1 }
 0x562   : > { %v3358_v43 = vadd.f32 %v3357_v41, %v6953_v46  ;;  %v3359_v45 = vpop.f32.mrb[173].mxu1 }
 0x563   : > { %v3360_v48 = vadd.f32 %v3359_v45, %v6956_v47  ;;  %v3361_v50 = vpop.f32.mrb[174].mxu1  ;;  %3838 = vmatprep.mubr.bf16.mxu0 %v3555_v63 }
 0x564   : > { %v3362_v51 = vadd.f32 %v3361_v50, %v6953_v46  ;;  %v3363_v49 = vpop.f32.mrb[175].mxu1  ;;  %3839 = vmatmul.mubr.bf16.gmra.mrb[168].mxu0 %v3554_v40  ;;  %v3498_v54 = vmax.f32 %v3358_v43, 0.0 }
 0x565   : > { %v3364_v52 = vadd.f32 %v3363_v49, %v6956_v47  ;;  %v3499_v58 = vmax.f32 %v3360_v48, 0.0 }
 0x566   : > { %v3500_v55 = vmax.f32 %v3362_v51, 0.0 }
 0x567   : > { %v3501_v60 = vmax.f32 %v3364_v52, 0.0 }
 0x568   : > { %v3556_v1 = vpack.c.bf16 %v3500_v55, %v3498_v54 }
 0x569   : > { %v3557_v3 = vpack.c.bf16 %v3501_v60, %v3499_v58  ;;  %v3367_v4 = vpop.f32.mrb[176].mxu1 }
 0x56a   : > { %v3368_v7 = vadd.f32 %v3367_v4, %v6953_v46  ;;  %v3369_v9 = vpop.f32.mrb[177].mxu1 }
 0x56b   : > { %v3370_v10 = vadd.f32 %v3369_v9, %v6956_v47  ;;  %v3371_v11 = vpop.f32.mrb[178].mxu1  ;;  %3848 = vmatprep.mubr.bf16.mxu0 %v3557_v3 }
 0x56c   : > { %v3372_v56 = vadd.f32 %v3371_v11, %v6953_v46  ;;  %v3373_v57 = vpop.f32.mrb[179].mxu1  ;;  %3849 = vmatmul.mubr.bf16.gmra.mrb[172].mxu0 %v3556_v1  ;;  %v3502_v16 = vmax.f32 %v3368_v7, 0.0 }
 0x56d   : > { %v3374_v14 = vadd.f32 %v3373_v57, %v6956_v47  ;;  %v3503_v21 = vmax.f32 %v3370_v10, 0.0 }
 0x56e   : > { %v3504_v19 = vmax.f32 %v3372_v56, 0.0 }
 0x56f   : > { %v3505_v22 = vmax.f32 %v3374_v14, 0.0 }
 0x570   : > { %v3558_v23 = vpack.c.bf16 %v3504_v19, %v3502_v16 }
 0x571   : > { %v3559_v26 = vpack.c.bf16 %v3505_v22, %v3503_v21  ;;  %v3377_v27 = vpop.f32.mrb[180].mxu1 }
 0x572   : > { %v3378_v30 = vadd.f32 %v3377_v27, %v6953_v46  ;;  %v3379_v31 = vpop.f32.mrb[181].mxu1 }
 0x573   : > { %v3380_v32 = vadd.f32 %v3379_v31, %v6956_v47  ;;  %v3381_v17 = vpop.f32.mrb[182].mxu1  ;;  %3858 = vmatprep.mubr.bf16.mxu0 %v3559_v26 }
 0x574   : > { %v3382_v18 = vadd.f32 %v3381_v17, %v6953_v46  ;;  %v3383_v35 = vpop.f32.mrb[183].mxu1  ;;  %3859 = vmatmul.mubr.bf16.gmra.mrb[176].mxu0 %v3558_v23  ;;  %v3506_v38 = vmax.f32 %v3378_v30, 0.0 }
 0x575   : > { %v3384_v37 = vadd.f32 %v3383_v35, %v6956_v47  ;;  %v3507_v33 = vmax.f32 %v3380_v32, 0.0 }
 0x576   : > { %v3508_v28 = vmax.f32 %v3382_v18, 0.0 }
 0x577   : > { %v3509_v0 = vmax.f32 %v3384_v37, 0.0 }
 0x578   : > { %v3560_v5 = vpack.c.bf16 %v3508_v28, %v3506_v38 }
 0x579   : > { %v3561_v34 = vpack.c.bf16 %v3509_v0, %v3507_v33  ;;  %v3387_v39 = vpop.f32.mrb[184].mxu1 }
 0x57a   : > { %v3388_v8 = vadd.f32 %v3387_v39, %v6953_v46  ;;  %v3389_v13 = vpop.f32.mrb[185].mxu1 }
 0x57b   : > { %v3390_v44 = vadd.f32 %v3389_v13, %v6956_v47  ;;  %v3391_v25 = vpop.f32.mrb[186].mxu1  ;;  %3868 = vmatprep.mubr.bf16.mxu0 %v3561_v34 }
 0x57c   : > { %v3392_v40 = vadd.f32 %v3391_v25, %v6953_v46  ;;  %v3393_v62 = vpop.f32.mrb[187].mxu1  ;;  %3869 = vmatmul.mubr.bf16.gmra.mrb[180].mxu0 %v3560_v5  ;;  %v3510_v41 = vmax.f32 %v3388_v8, 0.0 }
 0x57d   : > { %v3394_v63 = vadd.f32 %v3393_v62, %v6956_v47  ;;  %v3511_v43 = vmax.f32 %v3390_v44, 0.0 }
 0x57e   : > { %v3512_v42 = vmax.f32 %v3392_v40, 0.0 }
 0x57f   : > { %v3513_v45 = vmax.f32 %v3394_v63, 0.0 }
 0x580   : > { %v3562_v48 = vpack.c.bf16 %v3512_v42, %v3510_v41 }
 0x581   : > { %v3563_v50 = vpack.c.bf16 %v3513_v45, %v3511_v43  ;;  %v3397_v51 = vpop.f32.mrb[188].mxu1 }
 0x582   : > { %v3398_v49 = vadd.f32 %v3397_v51, %v6953_v46  ;;  %v3399_v20 = vpop.f32.mrb[189].mxu1 }
 0x583   : > { %v3400_v52 = vadd.f32 %v3399_v20, %v6956_v47  ;;  %v3401_v53 = vpop.f32.mrb[190].mxu1  ;;  %3878 = vmatprep.mubr.bf16.mxu0 %v3563_v50 }
 0x584   : > { %v3402_v54 = vadd.f32 %v3401_v53, %v6953_v46  ;;  %v3403_v55 = vpop.f32.mrb[191].mxu1  ;;  %3879 = vmatmul.mubr.bf16.gmra.mrb[184].mxu0 %v3562_v48  ;;  %v3514_v60 = vmax.f32 %v3398_v49, 0.0 }
 0x585   : > { %v3404_v58 = vadd.f32 %v3403_v55, %v6956_v47  ;;  %v3515_v2 = vmax.f32 %v3400_v52, 0.0 }
 0x586   : > { %v3516_v1 = vmax.f32 %v3402_v54, 0.0 }
 0x587   : > { %v3517_v3 = vmax.f32 %v3404_v58, 0.0 }
 0x588   : > { %v3564_v4 = vpack.c.bf16 %v3516_v1, %v3514_v60 }
 0x589   : > { %v3565_v6 = vpack.c.bf16 %v3517_v3, %v3515_v2  ;;  %v3407_v7 = vpop.f32.mrb[192].mxu1 }
 0x58a   : > { %v3408_v9 = vadd.f32 %v3407_v7, %v6953_v46  ;;  %v3409_v10 = vpop.f32.mrb[193].mxu1 }
 0x58b   : > { %v3410_v11 = vadd.f32 %v3409_v10, %v6956_v47  ;;  %v3411_v56 = vpop.f32.mrb[194].mxu1  ;;  %3888 = vmatprep.mubr.bf16.mxu0 %v3565_v6 }
 0x58c   : > { %v3412_v57 = vadd.f32 %v3411_v56, %v6953_v46  ;;  %v3413_v12 = vpop.f32.mrb[195].mxu1  ;;  %3889 = vmatmul.mubr.bf16.gmra.mrb[188].mxu0 %v3564_v4  ;;  %v3518_v15 = vmax.f32 %v3408_v9, 0.0 }
 0x58d   : > { %v3414_v14 = vadd.f32 %v3413_v12, %v6956_v47  ;;  %v3519_v19 = vmax.f32 %v3410_v11, 0.0  ;;  %v5736_v11 = vld [vmem:[%s7387_s15 + $0xf4] ss:$8 sps:$4 sm:$0xff]  }
 0x58e   : > { %v3520_v16 = vmax.f32 %v3412_v57, 0.0  ;;  %v5734_v57 = vld [vmem:[%s7387_s15 + $0xf0] ss:$8 sps:$4 sm:$0xff]   ;;  %4309 = vmatprep.subr.bf16.mxu1 %v5736_v11 }
 0x58f   : > { %v3521_v21 = vmax.f32 %v3414_v14, 0.0  ;;  %4310 = vmatpush1.bf16.msra.mxu1 %v5734_v57 }
 0x590   : > { %v3566_v22 = vpack.c.bf16 %v3520_v16, %v3518_v15 }
 0x591   : > { %v3567_v23 = vpack.c.bf16 %v3521_v21, %v3519_v19  ;;  %v3417_v24 = vpop.f32.mrb[196].mxu1 }
 0x592   : > { %v3418_v26 = vadd.f32 %v3417_v24, %v6953_v46  ;;  %v3419_v27 = vpop.f32.mrb[197].mxu1 }
 0x593   : > { %v3420_v29 = vadd.f32 %v3419_v27, %v6956_v47  ;;  %v3421_v30 = vpop.f32.mrb[198].mxu1  ;;  %3898 = vmatprep.mubr.bf16.mxu0 %v3567_v23 }
 0x594   : > { %v3422_v31 = vadd.f32 %v3421_v30, %v6953_v46  ;;  %v3423_v32 = vpop.f32.mrb[199].mxu1  ;;  %3899 = vmatmul.mubr.bf16.gmra.mrb[192].mxu0 %v3566_v22  ;;  %v3522_v18 = vmax.f32 %v3418_v26, 0.0 }
 0x595   : > { %v3424_v17 = vadd.f32 %v3423_v32, %v6956_v47  ;;  %v3523_v36 = vmax.f32 %v3420_v29, 0.0 }
 0x596   : > { %v3524_v35 = vmax.f32 %v3422_v31, 0.0 }
 0x597   : > { %v3525_v37 = vmax.f32 %v3424_v17, 0.0 }
 0x598   : > { %v3568_v38 = vpack.c.bf16 %v3524_v35, %v3522_v18 }
 0x599   : > { %v3569_v28 = vpack.c.bf16 %v3525_v37, %v3523_v36  ;;  %v3427_v33 = vpop.f32.mrb[200].mxu1 }
 0x59a   : > { %v3428_v0 = vadd.f32 %v3427_v33, %v6953_v46  ;;  %v3429_v5 = vpop.f32.mrb[201].mxu1 }
 0x59b   : > { %v3430_v34 = vadd.f32 %v3429_v5, %v6956_v47  ;;  %v3431_v39 = vpop.f32.mrb[202].mxu1  ;;  %3908 = vmatprep.mubr.bf16.mxu0 %v3569_v28 }
 0x59c   : > { %v3432_v8 = vadd.f32 %v3431_v39, %v6953_v46  ;;  %v3433_v13 = vpop.f32.mrb[203].mxu1  ;;  %3909 = vmatmul.mubr.bf16.gmra.mrb[196].mxu0 %v3568_v38  ;;  %v3526_v25 = vmax.f32 %v3428_v0, 0.0 }
 0x59d   : > { %v3434_v44 = vadd.f32 %v3433_v13, %v6956_v47  ;;  %v3527_v62 = vmax.f32 %v3430_v34, 0.0 }
 0x59e   : > { %v3528_v40 = vmax.f32 %v3432_v8, 0.0 }
 0x59f   : > { %v3529_v63 = vmax.f32 %v3434_v44, 0.0 }
 0x5a0   : > { %v3570_v41 = vpack.c.bf16 %v3528_v40, %v3526_v25 }
 0x5a1   : > { %v3571_v42 = vpack.c.bf16 %v3529_v63, %v3527_v62  ;;  %v3437_v43 = vpop.f32.mrb[204].mxu1 }
 0x5a2   : > { %v3438_v45 = vadd.f32 %v3437_v43, %v6953_v46  ;;  %v3439_v48 = vpop.f32.mrb[205].mxu1 }
 0x5a3   : > { %v3440_v50 = vadd.f32 %v3439_v48, %v6956_v47  ;;  %v3441_v51 = vpop.f32.mrb[206].mxu1  ;;  %3918 = vmatprep.mubr.bf16.mxu0 %v3571_v42 }
 0x5a4   : > { %v3442_v49 = vadd.f32 %v3441_v51, %v6953_v46  ;;  %v3443_v20 = vpop.f32.mrb[207].mxu1  ;;  %3919 = vmatmul.mubr.bf16.gmra.mrb[200].mxu0 %v3570_v41  ;;  %v3530_v53 = vmax.f32 %v3438_v45, 0.0 }
 0x5a5   : > { %v3444_v52 = vadd.f32 %v3443_v20, %v6956_v47  ;;  %v3531_v55 = vmax.f32 %v3440_v50, 0.0 }
 0x5a6   : > { %v3532_v54 = vmax.f32 %v3442_v49, 0.0 }
 0x5a7   : > { %v3533_v58 = vmax.f32 %v3444_v52, 0.0 }
 0x5a8   : > { %v3572_v60 = vpack.c.bf16 %v3532_v54, %v3530_v53 }
 0x5a9   : > { %v3573_v1 = vpack.c.bf16 %v3533_v58, %v3531_v55  ;;  %v3447_v2 = vpop.f32.mrb[208].mxu1 }
 0x5aa   : > { %v3448_v3 = vadd.f32 %v3447_v2, %v6953_v46  ;;  %v3449_v4 = vpop.f32.mrb[209].mxu1  ;;  %v5740_v2 = vld [vmem:[%s7389_s17 + $0x8] sm:$0xff]  }
 0x5ab   : > { %v3450_v6 = vadd.f32 %v3449_v4, %v6956_v47  ;;  %v3451_v7 = vpop.f32.mrb[210].mxu1  ;;  %3928 = vmatprep.mubr.bf16.mxu0 %v3573_v1  ;;  %v5739_v1 = vld [vmem:[%s7389_s17 + $0x48] sm:$0xff]  }
 0x5ac   : > { %v3452_v9 = vadd.f32 %v3451_v7, %v6953_v46  ;;  %v3453_v10 = vpop.f32.mrb[211].mxu1  ;;  %3929 = vmatmul.mubr.bf16.gmra.mrb[204].mxu0 %v3572_v60  ;;  %v3534_v12 = vmax.f32 %v3448_v3, 0.0  ;;  %v5737_v60 = vld [vmem:[%s7389_s17 + $0x40] sm:$0xff]  }
 0x5ad   : > { %v3454_v56 = vadd.f32 %v3453_v10, %v6956_v47  ;;  %v3535_v15 = vmax.f32 %v3450_v6, 0.0  ;;  %5244 = vmatprep.subr.bf16.mxu0 %v5737_v60 }
 0x5ae   : > { %v3536_v14 = vmax.f32 %v3452_v9, 0.0 }
 0x5af   : > { %v3537_v16 = vmax.f32 %v3454_v56, 0.0 }
 0x5b0   : > { %v3574_v19 = vpack.c.bf16 %v3536_v14, %v3534_v12  ;;  %v5741_v12 = vld [vmem:[%s7389_s17 + $0x50] sm:$0xff]  }
 0x5b1   : > { %v3575_v21 = vpack.c.bf16 %v3537_v16, %v3535_v15  ;;  %v3457_v22 = vpop.f32.mrb[212].mxu1  ;;  %v5742_v14 = vld [vmem:[%s7389_s17 + $0x10] sm:$0xff]   ;;  %v5743_v15 = vld [vmem:[%s7389_s17 + $0x58] sm:$0xff]  }
 0x5b2   : > { %v3458_v23 = vadd.f32 %v3457_v22, %v6953_v46  ;;  %v3459_v24 = vpop.f32.mrb[213].mxu1 }
 0x5b3   : > { %v3460_v26 = vadd.f32 %v3459_v24, %v6956_v47  ;;  %v3461_v27 = vpop.f32.mrb[214].mxu1  ;;  %3938 = vmatprep.mubr.bf16.mxu0 %v3575_v21  ;;  %v5744_v24 = vld [vmem:[%s7389_s17 + $0x18] sm:$0xff]  }
 0x5b4   : > { %v3462_v29 = vadd.f32 %v3461_v27, %v6953_v46  ;;  %v3463_v30 = vpop.f32.mrb[215].mxu1  ;;  %3939 = vmatmul.mubr.bf16.gmra.mrb[208].mxu0 %v3574_v19  ;;  %v3538_v32 = vmax.f32 %v3458_v23, 0.0  ;;  %v5745_v27 = vld [vmem:[%s7389_s17 + $0x60] sm:$0xff]  }
 0x5b5   : > { %v3464_v31 = vadd.f32 %v3463_v30, %v6956_v47  ;;  %v3539_v18 = vmax.f32 %v3460_v26, 0.0 }
 0x5b6   : > { %v3540_v17 = vmax.f32 %v3462_v29, 0.0 }
 0x5b7   : > { %v3541_v35 = vmax.f32 %v3464_v31, 0.0 }
 0x5b8   : > { %v3576_v36 = vpack.c.bf16 %v3540_v17, %v3538_v32 }
 0x5b9   : > { %v3577_v37 = vpack.c.bf16 %v3541_v35, %v3539_v18  ;;  %v3467_v38 = vpop.f32.mrb[216].mxu1  ;;  %v5746_v35 = vld [vmem:[%s7389_s17 + $0x20] sm:$0xff]  }
 0x5ba   : > { %v3468_v28 = vadd.f32 %v3467_v38, %v6953_v46  ;;  %v3469_v33 = vpop.f32.mrb[217].mxu1  ;;  %v5747_v38 = vld [vmem:[%s7389_s17 + $0x68] sm:$0xff]  }
 0x5bb   : > { %v3470_v0 = vadd.f32 %v3469_v33, %v6956_v47  ;;  %v3471_v5 = vpop.f32.mrb[218].mxu1  ;;  %3948 = vmatprep.mubr.bf16.mxu0 %v3577_v37 }
 0x5bc   : > { %v3472_v34 = vadd.f32 %v3471_v5, %v6953_v46  ;;  %v3473_v39 = vpop.f32.mrb[219].mxu1  ;;  %3949 = vmatmul.mubr.bf16.gmra.mrb[212].mxu0 %v3576_v36  ;;  %v3542_v13 = vmax.f32 %v3468_v28, 0.0 }
 0x5bd   : > { %v3474_v8 = vadd.f32 %v3473_v39, %v6956_v47  ;;  %v3543_v25 = vmax.f32 %v3470_v0, 0.0  ;;  %v5748_v39 = vld [vmem:[%s7389_s17 + $0x28] sm:$0xff]  }
 0x5be   : > { %v3544_v44 = vmax.f32 %v3472_v34, 0.0 }
 0x5bf   : > { %v3545_v40 = vmax.f32 %v3474_v8, 0.0 }
 0x5c0   : > { %v3578_v62 = vpack.c.bf16 %v3544_v44, %v3542_v13  ;;  %v5749_v13 = vld [vmem:[%s7389_s17 + $0x70] sm:$0xff]  }
 0x5c1   : > { %v3579_v63 = vpack.c.bf16 %v3545_v40, %v3543_v25  ;;  %v3477_v41 = vpop.f32.mrb[220].mxu1 }
 0x5c2   : > { %v3478_v42 = vadd.f32 %v3477_v41, %v6953_v46  ;;  %v3479_v43 = vpop.f32.mrb[221].mxu1 }
 0x5c3   : > { %v3480_v45 = vadd.f32 %v3479_v43, %v6956_v47  ;;  %v3481_v48 = vpop.f32.mrb[222].mxu1  ;;  %3958 = vmatprep.mubr.bf16.mxu0 %v3579_v63 }
 0x5c4   : > { %v3482_v50 = vadd.f32 %v3481_v48, %v6953_v46  ;;  %v3483_v51 = vpop.f32.mrb[223].mxu1  ;;  %3959 = vmatmul.mubr.bf16.gmra.mrb[216].mxu0 %v3578_v62  ;;  %v3546_v20 = vmax.f32 %v3478_v42, 0.0  ;;  %v5738_v46 = vld [vmem:[%s7389_s17] sm:$0xff]   ;;  %v5750_v42 = vld [vmem:[%s7389_s17 + $0x30] sm:$0xff]   ;;  %v5751_v48 = vld [vmem:[%s7389_s17 + $0x78] sm:$0xff]  }
 0x5c5   : > { %v3484_v49 = vadd.f32 %v3483_v51, %v6956_v47  ;;  %v3547_v53 = vmax.f32 %v3480_v45, 0.0  ;;  %5245 = vmatpush3.bf16.msra.mxu0 %v5738_v46  ;;  %v3614_v47 = vld [vmem:[%s7386_s14] sm:$0x3] }
 0x5c6   : > { %v3548_v52 = vmax.f32 %v3482_v50, 0.0  ;;  %v7116_v3 = vrot.slane %v3614_v47, %v6046_v59  ;;  %5246 = vmatprep.subr.bf16.mxu0 %v5739_v1  ;;  %v7119_v4 = vrot.slane %v3614_v47, %v6051_v61 }
 0x5c7   : > { %v3549_v54 = vmax.f32 %v3484_v49, 0.0 }
 0x5c8   : > { %v3580_v55 = vpack.c.bf16 %v3548_v52, %v3546_v20 }
 0x5c9   : > { %v3581_v58 = vpack.c.bf16 %v3549_v54, %v3547_v53  ;;  %5247 = vmatpush3.bf16.msra.mxu0 %v5740_v2  ;;  %v5752_v53 = vld [vmem:[%s7389_s17 + $0x38] sm:$0xff]  }
 0x5ca   : > { %5248 = vmatprep.subr.bf16.mxu0 %v5741_v12 }
 0x5cb   : > { %3968 = vmatprep.mubr.bf16.mxu0 %v3581_v58 }
 0x5cc   : > { %3969 = vmatmul.mubr.bf16.gmra.mrb[220].mxu0 %v3580_v55 }
 0x5cd   : > { %5249 = vmatpush3.bf16.msra.mxu0 %v5742_v14 }
 0x5ce   : > { %5250 = vmatprep.subr.bf16.mxu0 %v5743_v15 }
 0x5d1   : > { %5251 = vmatpush3.bf16.msra.mxu0 %v5744_v24 }
 0x5d2   : > { %5252 = vmatprep.subr.bf16.mxu0 %v5745_v27 }
 0x5d5   : > { %5253 = vmatpush3.bf16.msra.mxu0 %v5746_v35 }
 0x5d6   : > { %5254 = vmatprep.subr.bf16.mxu0 %v5747_v38 }
 0x5d9   : > { %5255 = vmatpush3.bf16.msra.mxu0 %v5748_v39 }
 0x5da   : > { %5256 = vmatprep.subr.bf16.mxu0 %v5749_v13 }
 0x5dd   : > { %5257 = vmatpush3.bf16.msra.mxu0 %v5750_v42 }
 0x5de   : > { %5258 = vmatprep.subr.bf16.mxu0 %v5751_v48 }
 0x5e1   : > { %5259 = vmatpush3.bf16.msra.mxu0 %v5752_v53 }
 0x627   : > { %v3820_v6 = vpop.f32.mrb[160].mxu0 }
 0x628   : > { %v3821_v7 = vadd.f32 %v3820_v6, %v7116_v3  ;;  %v3822_v9 = vpop.f32.mrb[161].mxu0 }
 0x629   : > { %v3823_v10 = vadd.f32 %v3822_v9, %v7119_v4  ;;  %v3824_v11 = vpop.f32.mrb[162].mxu0 }
 0x62a   : > { %v3825_v56 = vadd.f32 %v3824_v11, %v7116_v3  ;;  %v3826_v57 = vpop.f32.mrb[163].mxu0  ;;  %v3979_v19 = vmax.f32 %v3821_v7, 0.0 }
 0x62b   : > { %v3827_v16 = vadd.f32 %v3826_v57, %v7119_v4  ;;  %v3980_v22 = vmax.f32 %v3823_v10, 0.0 }
 0x62c   : > { %v3981_v21 = vmax.f32 %v3825_v56, 0.0 }
 0x62d   : > { %v3982_v23 = vmax.f32 %v3827_v16, 0.0 }
 0x62e   : > { %v4043_v26 = vpack.c.bf16 %v3981_v21, %v3979_v19 }
 0x62f   : > { %v4044_v29 = vpack.c.bf16 %v3982_v23, %v3980_v22  ;;  %v3830_v30 = vpop.f32.mrb[164].mxu0 }
 0x630   : > { %v3831_v31 = vadd.f32 %v3830_v30, %v7116_v3  ;;  %v3832_v32 = vpop.f32.mrb[165].mxu0 }
 0x631   : > { %v3833_v17 = vadd.f32 %v3832_v32, %v7119_v4  ;;  %v3834_v18 = vpop.f32.mrb[166].mxu0  ;;  %4311 = vmatprep.mubr.bf16.mxu1 %v4044_v29 }
 0x632   : > { %v3835_v36 = vadd.f32 %v3834_v18, %v7116_v3  ;;  %v3836_v37 = vpop.f32.mrb[167].mxu0  ;;  %4312 = vmatmul.mubr.bf16.vlgmr.msra.gmra.mrb[224].mxu1 %v4043_v26  ;;  %v3983_v33 = vmax.f32 %v3831_v31, 0.0 }
 0x633   : > { %v3837_v28 = vadd.f32 %v3836_v37, %v7119_v4  ;;  %v3984_v5 = vmax.f32 %v3833_v17, 0.0 }
 0x634   : > { %v3985_v0 = vmax.f32 %v3835_v36, 0.0 }
 0x635   : > { %v3986_v34 = vmax.f32 %v3837_v28, 0.0 }
 0x636   : > { %v4045_v8 = vpack.c.bf16 %v3985_v0, %v3983_v33 }
 0x637   : > { %v4046_v44 = vpack.c.bf16 %v3986_v34, %v3984_v5  ;;  %v3840_v25 = vpop.f32.mrb[168].mxu0 }
 0x638   : > { %v3841_v40 = vadd.f32 %v3840_v25, %v7116_v3  ;;  %v3842_v62 = vpop.f32.mrb[169].mxu0 }
 0x639   : > { %v3843_v63 = vadd.f32 %v3842_v62, %v7119_v4  ;;  %v3844_v41 = vpop.f32.mrb[170].mxu0  ;;  %4321 = vmatprep.mubr.bf16.mxu1 %v4046_v44 }
 0x63a   : > { %v3845_v43 = vadd.f32 %v3844_v41, %v7116_v3  ;;  %v3846_v45 = vpop.f32.mrb[171].mxu0  ;;  %4322 = vmatmul.mubr.bf16.gmra.mrb[228].mxu1 %v4045_v8  ;;  %v3987_v51 = vmax.f32 %v3841_v40, 0.0 }
 0x63b   : > { %v3847_v50 = vadd.f32 %v3846_v45, %v7119_v4  ;;  %v3988_v20 = vmax.f32 %v3843_v63, 0.0 }
 0x63c   : > { %v3989_v49 = vmax.f32 %v3845_v43, 0.0 }
 0x63d   : > { %v3990_v52 = vmax.f32 %v3847_v50, 0.0 }
 0x63e   : > { %v4047_v54 = vpack.c.bf16 %v3989_v49, %v3987_v51 }
 0x63f   : > { %v4048_v55 = vpack.c.bf16 %v3990_v52, %v3988_v20  ;;  %v3850_v58 = vpop.f32.mrb[172].mxu0 }
 0x640   : > { %v3851_v60 = vadd.f32 %v3850_v58, %v7116_v3  ;;  %v3852_v46 = vpop.f32.mrb[173].mxu0 }
 0x641   : > { %v3853_v47 = vadd.f32 %v3852_v46, %v7119_v4  ;;  %v3854_v1 = vpop.f32.mrb[174].mxu0  ;;  %4331 = vmatprep.mubr.bf16.mxu1 %v4048_v55 }
 0x642   : > { %v3855_v2 = vadd.f32 %v3854_v1, %v7116_v3  ;;  %v3856_v6 = vpop.f32.mrb[175].mxu0  ;;  %4332 = vmatmul.mubr.bf16.gmra.mrb[232].mxu1 %v4047_v54  ;;  %v3991_v9 = vmax.f32 %v3851_v60, 0.0 }
 0x643   : > { %v3857_v7 = vadd.f32 %v3856_v6, %v7119_v4  ;;  %v3992_v11 = vmax.f32 %v3853_v47, 0.0 }
 0x644   : > { %v3993_v10 = vmax.f32 %v3855_v2, 0.0 }
 0x645   : > { %v3994_v56 = vmax.f32 %v3857_v7, 0.0 }
 0x646   : > { %v4049_v57 = vpack.c.bf16 %v3993_v10, %v3991_v9 }
 0x647   : > { %v4050_v12 = vpack.c.bf16 %v3994_v56, %v3992_v11  ;;  %v3860_v14 = vpop.f32.mrb[176].mxu0 }
 0x648   : > { %v3861_v15 = vadd.f32 %v3860_v14, %v7116_v3  ;;  %v3862_v16 = vpop.f32.mrb[177].mxu0 }
 0x649   : > { %v3863_v19 = vadd.f32 %v3862_v16, %v7119_v4  ;;  %v3864_v21 = vpop.f32.mrb[178].mxu0  ;;  %4341 = vmatprep.mubr.bf16.mxu1 %v4050_v12 }
 0x64a   : > { %v3865_v22 = vadd.f32 %v3864_v21, %v7116_v3  ;;  %v3866_v23 = vpop.f32.mrb[179].mxu0  ;;  %4342 = vmatmul.mubr.bf16.gmra.mrb[236].mxu1 %v4049_v57  ;;  %v3995_v26 = vmax.f32 %v3861_v15, 0.0 }
 0x64b   : > { %v3867_v24 = vadd.f32 %v3866_v23, %v7119_v4  ;;  %v3996_v29 = vmax.f32 %v3863_v19, 0.0 }
 0x64c   : > { %v3997_v27 = vmax.f32 %v3865_v22, 0.0 }
 0x64d   : > { %v3998_v30 = vmax.f32 %v3867_v24, 0.0 }
 0x64e   : > { %v4051_v31 = vpack.c.bf16 %v3997_v27, %v3995_v26 }
 0x64f   : > { %v4052_v32 = vpack.c.bf16 %v3998_v30, %v3996_v29  ;;  %v3870_v17 = vpop.f32.mrb[180].mxu0 }
 0x650   : > { %v3871_v18 = vadd.f32 %v3870_v17, %v7116_v3  ;;  %v3872_v35 = vpop.f32.mrb[181].mxu0 }
 0x651   : > { %v3873_v36 = vadd.f32 %v3872_v35, %v7119_v4  ;;  %v3874_v37 = vpop.f32.mrb[182].mxu0  ;;  %4351 = vmatprep.mubr.bf16.mxu1 %v4052_v32 }
 0x652   : > { %v3875_v38 = vadd.f32 %v3874_v37, %v7116_v3  ;;  %v3876_v28 = vpop.f32.mrb[183].mxu0  ;;  %4352 = vmatmul.mubr.bf16.gmra.mrb[240].mxu1 %v4051_v31  ;;  %v3999_v0 = vmax.f32 %v3871_v18, 0.0 }
 0x653   : > { %v3877_v33 = vadd.f32 %v3876_v28, %v7119_v4  ;;  %v4000_v34 = vmax.f32 %v3873_v36, 0.0 }
 0x654   : > { %v4001_v5 = vmax.f32 %v3875_v38, 0.0 }
 0x655   : > { %v4002_v39 = vmax.f32 %v3877_v33, 0.0 }
 0x656   : > { %v4053_v8 = vpack.c.bf16 %v4001_v5, %v3999_v0 }
 0x657   : > { %v4054_v13 = vpack.c.bf16 %v4002_v39, %v4000_v34  ;;  %v3880_v44 = vpop.f32.mrb[184].mxu0 }
 0x658   : > { %v3881_v25 = vadd.f32 %v3880_v44, %v7116_v3  ;;  %v3882_v40 = vpop.f32.mrb[185].mxu0 }
 0x659   : > { %v3883_v62 = vadd.f32 %v3882_v40, %v7119_v4  ;;  %v3884_v63 = vpop.f32.mrb[186].mxu0  ;;  %4361 = vmatprep.mubr.bf16.mxu1 %v4054_v13 }
 0x65a   : > { %v3885_v41 = vadd.f32 %v3884_v63, %v7116_v3  ;;  %v3886_v42 = vpop.f32.mrb[187].mxu0  ;;  %4362 = vmatmul.mubr.bf16.gmra.mrb[244].mxu1 %v4053_v8  ;;  %v4003_v45 = vmax.f32 %v3881_v25, 0.0 }
 0x65b   : > { %v3887_v43 = vadd.f32 %v3886_v42, %v7119_v4  ;;  %v4004_v50 = vmax.f32 %v3883_v62, 0.0 }
 0x65c   : > { %v4005_v48 = vmax.f32 %v3885_v41, 0.0 }
 0x65d   : > { %v4006_v51 = vmax.f32 %v3887_v43, 0.0 }
 0x65e   : > { %v4055_v49 = vpack.c.bf16 %v4005_v48, %v4003_v45 }
 0x65f   : > { %v4056_v20 = vpack.c.bf16 %v4006_v51, %v4004_v50  ;;  %v3890_v52 = vpop.f32.mrb[188].mxu0 }
 0x660   : > { %v3891_v53 = vadd.f32 %v3890_v52, %v7116_v3  ;;  %v3892_v54 = vpop.f32.mrb[189].mxu0 }
 0x661   : > { %v3893_v55 = vadd.f32 %v3892_v54, %v7119_v4  ;;  %v3894_v58 = vpop.f32.mrb[190].mxu0  ;;  %4371 = vmatprep.mubr.bf16.mxu1 %v4056_v20 }
 0x662   : > { %v3895_v60 = vadd.f32 %v3894_v58, %v7116_v3  ;;  %v3896_v46 = vpop.f32.mrb[191].mxu0  ;;  %4372 = vmatmul.mubr.bf16.gmra.mrb[248].mxu1 %v4055_v49  ;;  %v4007_v1 = vmax.f32 %v3891_v53, 0.0 }
 0x663   : > { %v3897_v47 = vadd.f32 %v3896_v46, %v7119_v4  ;;  %v4008_v6 = vmax.f32 %v3893_v55, 0.0 }
 0x664   : > { %v4009_v2 = vmax.f32 %v3895_v60, 0.0 }
 0x665   : > { %v4010_v7 = vmax.f32 %v3897_v47, 0.0 }
 0x666   : > { %v4057_v9 = vpack.c.bf16 %v4009_v2, %v4007_v1 }
 0x667   : > { %v4058_v10 = vpack.c.bf16 %v4010_v7, %v4008_v6  ;;  %v3900_v11 = vpop.f32.mrb[192].mxu0 }
 0x668   : > { %v3901_v56 = vadd.f32 %v3900_v11, %v7116_v3  ;;  %v3902_v57 = vpop.f32.mrb[193].mxu0 }
 0x669   : > { %v3903_v12 = vadd.f32 %v3902_v57, %v7119_v4  ;;  %v3904_v14 = vpop.f32.mrb[194].mxu0  ;;  %4381 = vmatprep.mubr.bf16.mxu1 %v4058_v10 }
 0x66a   : > { %v3905_v15 = vadd.f32 %v3904_v14, %v7116_v3  ;;  %v3906_v16 = vpop.f32.mrb[195].mxu0  ;;  %4382 = vmatmul.mubr.bf16.gmra.mrb[252].mxu1 %v4057_v9  ;;  %v4011_v21 = vmax.f32 %v3901_v56, 0.0 }
 0x66b   : > { %v3907_v19 = vadd.f32 %v3906_v16, %v7119_v4  ;;  %v4012_v23 = vmax.f32 %v3903_v12, 0.0 }
 0x66c   : > { %v4013_v22 = vmax.f32 %v3905_v15, 0.0 }
 0x66d   : > { %v4014_v24 = vmax.f32 %v3907_v19, 0.0 }
 0x66e   : > { %v4059_v26 = vpack.c.bf16 %v4013_v22, %v4011_v21 }
 0x66f   : > { %v4060_v27 = vpack.c.bf16 %v4014_v24, %v4012_v23  ;;  %v3910_v29 = vpop.f32.mrb[196].mxu0 }
 0x670   : > { %v3911_v30 = vadd.f32 %v3910_v29, %v7116_v3  ;;  %v3912_v31 = vpop.f32.mrb[197].mxu0 }
 0x671   : > { %v3913_v32 = vadd.f32 %v3912_v31, %v7119_v4  ;;  %v3914_v17 = vpop.f32.mrb[198].mxu0  ;;  %4391 = vmatprep.mubr.bf16.mxu1 %v4060_v27 }
 0x672   : > { %v3915_v18 = vadd.f32 %v3914_v17, %v7116_v3  ;;  %v3916_v35 = vpop.f32.mrb[199].mxu0  ;;  %4392 = vmatmul.mubr.bf16.gmra.mrb[0].mxu1 %v4059_v26  ;;  %v4015_v37 = vmax.f32 %v3911_v30, 0.0 }
 0x673   : > { %v3917_v36 = vadd.f32 %v3916_v35, %v7119_v4  ;;  %v4016_v28 = vmax.f32 %v3913_v32, 0.0 }
 0x674   : > { %v4017_v38 = vmax.f32 %v3915_v18, 0.0 }
 0x675   : > { %v4018_v33 = vmax.f32 %v3917_v36, 0.0 }
 0x676   : > { %v4061_v0 = vpack.c.bf16 %v4017_v38, %v4015_v37 }
 0x677   : > { %v4062_v5 = vpack.c.bf16 %v4018_v33, %v4016_v28  ;;  %v3920_v34 = vpop.f32.mrb[200].mxu0 }
 0x678   : > { %v3921_v39 = vadd.f32 %v3920_v34, %v7116_v3  ;;  %v3922_v8 = vpop.f32.mrb[201].mxu0 }
 0x679   : > { %v3923_v13 = vadd.f32 %v3922_v8, %v7119_v4  ;;  %v3924_v44 = vpop.f32.mrb[202].mxu0  ;;  %4401 = vmatprep.mubr.bf16.mxu1 %v4062_v5 }
 0x67a   : > { %v3925_v25 = vadd.f32 %v3924_v44, %v7116_v3  ;;  %v3926_v40 = vpop.f32.mrb[203].mxu0  ;;  %4402 = vmatmul.mubr.bf16.gmra.mrb[4].mxu1 %v4061_v0  ;;  %v4019_v63 = vmax.f32 %v3921_v39, 0.0 }
 0x67b   : > { %v3927_v62 = vadd.f32 %v3926_v40, %v7119_v4  ;;  %v4020_v42 = vmax.f32 %v3923_v13, 0.0 }
 0x67c   : > { %v4021_v41 = vmax.f32 %v3925_v25, 0.0 }
 0x67d   : > { %v4022_v43 = vmax.f32 %v3927_v62, 0.0 }
 0x67e   : > { %v4063_v45 = vpack.c.bf16 %v4021_v41, %v4019_v63 }
 0x67f   : > { %v4064_v48 = vpack.c.bf16 %v4022_v43, %v4020_v42  ;;  %v3930_v50 = vpop.f32.mrb[204].mxu0 }
 0x680   : > { %v3931_v51 = vadd.f32 %v3930_v50, %v7116_v3  ;;  %v3932_v49 = vpop.f32.mrb[205].mxu0 }
 0x681   : > { %v3933_v20 = vadd.f32 %v3932_v49, %v7119_v4  ;;  %v3934_v52 = vpop.f32.mrb[206].mxu0  ;;  %4411 = vmatprep.mubr.bf16.mxu1 %v4064_v48 }
 0x682   : > { %v3935_v53 = vadd.f32 %v3934_v52, %v7116_v3  ;;  %v3936_v54 = vpop.f32.mrb[207].mxu0  ;;  %4412 = vmatmul.mubr.bf16.gmra.mrb[8].mxu1 %v4063_v45  ;;  %v4023_v58 = vmax.f32 %v3931_v51, 0.0 }
 0x683   : > { %v3937_v55 = vadd.f32 %v3936_v54, %v7119_v4  ;;  %v4024_v46 = vmax.f32 %v3933_v20, 0.0 }
 0x684   : > { %v4025_v60 = vmax.f32 %v3935_v53, 0.0 }
 0x685   : > { %v4026_v47 = vmax.f32 %v3937_v55, 0.0 }
 0x686   : > { %v4065_v1 = vpack.c.bf16 %v4025_v60, %v4023_v58 }
 0x687   : > { %v4066_v2 = vpack.c.bf16 %v4026_v47, %v4024_v46  ;;  %v3940_v6 = vpop.f32.mrb[208].mxu0  ;;  %v4107_v46 = vld [vmem:[%s7388_s16] sm:$0x3] }
 0x688   : > { %v3941_v7 = vadd.f32 %v3940_v6, %v7116_v3  ;;  %v3942_v9 = vpop.f32.mrb[209].mxu0  ;;  %v7225_v47 = vrot.slane %v4107_v46, %v6046_v59 }
 0x689   : > { %v3943_v10 = vadd.f32 %v3942_v9, %v7119_v4  ;;  %v3944_v11 = vpop.f32.mrb[210].mxu0  ;;  %4421 = vmatprep.mubr.bf16.mxu1 %v4066_v2 }
 0x68a   : > { %v3945_v56 = vadd.f32 %v3944_v11, %v7116_v3  ;;  %v3946_v57 = vpop.f32.mrb[211].mxu0  ;;  %4422 = vmatmul.mubr.bf16.gmra.mrb[12].mxu1 %v4065_v1  ;;  %v4027_v14 = vmax.f32 %v3941_v7, 0.0 }
 0x68b   : > { %v3947_v12 = vadd.f32 %v3946_v57, %v7119_v4  ;;  %v4028_v16 = vmax.f32 %v3943_v10, 0.0 }
 0x68c   : > { %v4029_v15 = vmax.f32 %v3945_v56, 0.0 }
 0x68d   : > { %v4030_v19 = vmax.f32 %v3947_v12, 0.0 }
 0x68e   : > { %v4067_v21 = vpack.c.bf16 %v4029_v15, %v4027_v14 }
 0x68f   : > { %v4068_v22 = vpack.c.bf16 %v4030_v19, %v4028_v16  ;;  %v3950_v23 = vpop.f32.mrb[212].mxu0 }
 0x690   : > { %v3951_v24 = vadd.f32 %v3950_v23, %v7116_v3  ;;  %v3952_v26 = vpop.f32.mrb[213].mxu0 }
 0x691   : > { %v3953_v27 = vadd.f32 %v3952_v26, %v7119_v4  ;;  %v3954_v29 = vpop.f32.mrb[214].mxu0  ;;  %4431 = vmatprep.mubr.bf16.mxu1 %v4068_v22 }
 0x692   : > { %v3955_v30 = vadd.f32 %v3954_v29, %v7116_v3  ;;  %v3956_v31 = vpop.f32.mrb[215].mxu0  ;;  %4432 = vmatmul.mubr.bf16.gmra.mrb[16].mxu1 %v4067_v21  ;;  %v4031_v17 = vmax.f32 %v3951_v24, 0.0 }
 0x693   : > { %v3957_v32 = vadd.f32 %v3956_v31, %v7119_v4  ;;  %v4032_v35 = vmax.f32 %v3953_v27, 0.0 }
 0x694   : > { %v4033_v18 = vmax.f32 %v3955_v30, 0.0 }
 0x695   : > { %v4034_v36 = vmax.f32 %v3957_v32, 0.0 }
 0x696   : > { %v4069_v37 = vpack.c.bf16 %v4033_v18, %v4031_v17 }
 0x697   : > { %v4070_v38 = vpack.c.bf16 %v4034_v36, %v4032_v35  ;;  %v3960_v28 = vpop.f32.mrb[216].mxu0 }
 0x698   : > { %v3961_v33 = vadd.f32 %v3960_v28, %v7116_v3  ;;  %v3962_v0 = vpop.f32.mrb[217].mxu0 }
 0x699   : > { %v3963_v5 = vadd.f32 %v3962_v0, %v7119_v4  ;;  %v3964_v34 = vpop.f32.mrb[218].mxu0  ;;  %4441 = vmatprep.mubr.bf16.mxu1 %v4070_v38 }
 0x69a   : > { %v3965_v39 = vadd.f32 %v3964_v34, %v7116_v3  ;;  %v3966_v8 = vpop.f32.mrb[219].mxu0  ;;  %4442 = vmatmul.mubr.bf16.gmra.mrb[20].mxu1 %v4069_v37  ;;  %v4035_v44 = vmax.f32 %v3961_v33, 0.0 }
 0x69b   : > { %v3967_v13 = vadd.f32 %v3966_v8, %v7119_v4  ;;  %v4036_v40 = vmax.f32 %v3963_v5, 0.0 }
 0x69c   : > { %v4037_v25 = vmax.f32 %v3965_v39, 0.0 }
 0x69d   : > { %v4038_v62 = vmax.f32 %v3967_v13, 0.0 }
 0x69e   : > { %v4071_v63 = vpack.c.bf16 %v4037_v25, %v4035_v44 }
 0x69f   : > { %v4072_v41 = vpack.c.bf16 %v4038_v62, %v4036_v40  ;;  %v3970_v42 = vpop.f32.mrb[220].mxu0 }
 0x6a0   : > { %v3971_v43 = vadd.f32 %v3970_v42, %v7116_v3  ;;  %v3972_v45 = vpop.f32.mrb[221].mxu0 }
 0x6a1   : > { %v3973_v48 = vadd.f32 %v3972_v45, %v7119_v4  ;;  %v3974_v50 = vpop.f32.mrb[222].mxu0  ;;  %4451 = vmatprep.mubr.bf16.mxu1 %v4072_v41 }
 0x6a2   : > { %v3975_v51 = vadd.f32 %v3974_v50, %v7116_v3  ;;  %v3976_v49 = vpop.f32.mrb[223].mxu0  ;;  %4452 = vmatmul.mubr.bf16.gmra.mrb[24].mxu1 %v4071_v63  ;;  %v4039_v52 = vmax.f32 %v3971_v43, 0.0  ;;  %v7228_v3 = vrot.slane %v4107_v46, %v6051_v61 }
 0x6a3   : > { %v3977_v20 = vadd.f32 %v3976_v49, %v7119_v4  ;;  %v4040_v54 = vmax.f32 %v3973_v48, 0.0 }
 0x6a4   : > { %v4041_v53 = vmax.f32 %v3975_v51, 0.0 }
 0x6a5   : > { %v4042_v55 = vmax.f32 %v3977_v20, 0.0 }
 0x6a6   : > { %v4073_v58 = vpack.c.bf16 %v4041_v53, %v4039_v52 }
 0x6a7   : > { %v4074_v60 = vpack.c.bf16 %v4042_v55, %v4040_v54 }
 0x6a9   : > { %4461 = vmatprep.mubr.bf16.mxu1 %v4074_v60 }
 0x6aa   : > { %4462 = vmatmul.mubr.bf16.gmra.mrb[28].mxu1 %v4073_v58 }
 0x705   : > { %v4313_v1 = vpop.f32.mrb[224].mxu1 }
 0x706   : > { %v4314_v4 = vadd.f32 %v4313_v1, %v7225_v47  ;;  %v4315_v2 = vpop.f32.mrb[225].mxu1 }
 0x707   : > { %v4316_v6 = vadd.f32 %v4315_v2, %v7228_v3  ;;  %v4317_v7 = vpop.f32.mrb[226].mxu1 }
 0x708   : > { %v4318_v9 = vadd.f32 %v4317_v7, %v7225_v47  ;;  %v4319_v10 = vpop.f32.mrb[227].mxu1  ;;  %v4472_v56 = vmax.f32 %v4314_v4, 0.0 }
 0x709   : > { %v4320_v11 = vadd.f32 %v4319_v10, %v7228_v3  ;;  %v4473_v12 = vmax.f32 %v4316_v6, 0.0 }
 0x70a   : > { %v4474_v57 = vmax.f32 %v4318_v9, 0.0 }
 0x70b   : > { %v4475_v59 = vmax.f32 %v4320_v11, 0.0 }
 0x70c   : > { %v4536_v14 = vpack.c.bf16 %v4474_v57, %v4472_v56 }
 0x70d   : > { %v4537_v15 = vpack.c.bf16 %v4475_v59, %v4473_v12  ;;  %v4323_v61 = vpop.f32.mrb[228].mxu1 }
 0x70e   : > { %v4324_v16 = vadd.f32 %v4323_v61, %v7225_v47  ;;  %v4325_v19 = vpop.f32.mrb[229].mxu1 }
 0x70f   : > { %v4326_v21 = vadd.f32 %v4325_v19, %v7228_v3  ;;  %v4327_v22 = vpop.f32.mrb[230].mxu1  ;;  %4735 = vmatprep.mubr.bf16.mxu0 %v4537_v15 }
 0x710   : > { %v4328_v23 = vadd.f32 %v4327_v22, %v7225_v47  ;;  %v4329_v24 = vpop.f32.mrb[231].mxu1  ;;  %4736 = vmatmul.mubr.bf16.vlgmr.msra.gmra.mrb[224].mxu0 %v4536_v14  ;;  %v4476_v27 = vmax.f32 %v4324_v16, 0.0 }
 0x711   : > { %v4330_v26 = vadd.f32 %v4329_v24, %v7228_v3  ;;  %v4477_v30 = vmax.f32 %v4326_v21, 0.0 }
 0x712   : > { %v4478_v29 = vmax.f32 %v4328_v23, 0.0 }
 0x713   : > { %v4479_v31 = vmax.f32 %v4330_v26, 0.0 }
 0x714   : > { %v4538_v32 = vpack.c.bf16 %v4478_v29, %v4476_v27 }
 0x715   : > { %v4539_v17 = vpack.c.bf16 %v4479_v31, %v4477_v30  ;;  %v4333_v18 = vpop.f32.mrb[232].mxu1 }
 0x716   : > { %v4334_v35 = vadd.f32 %v4333_v18, %v7225_v47  ;;  %v4335_v36 = vpop.f32.mrb[233].mxu1 }
 0x717   : > { %v4336_v37 = vadd.f32 %v4335_v36, %v7228_v3  ;;  %v4337_v38 = vpop.f32.mrb[234].mxu1  ;;  %4743 = vmatprep.mubr.bf16.mxu0 %v4539_v17 }
 0x718   : > { %v4338_v28 = vadd.f32 %v4337_v38, %v7225_v47  ;;  %v4339_v33 = vpop.f32.mrb[235].mxu1  ;;  %4744 = vmatmul.mubr.bf16.gmra.mrb[228].mxu0 %v4538_v32  ;;  %v4480_v5 = vmax.f32 %v4334_v35, 0.0 }
 0x719   : > { %v4340_v0 = vadd.f32 %v4339_v33, %v7228_v3  ;;  %v4481_v39 = vmax.f32 %v4336_v37, 0.0 }
 0x71a   : > { %v4482_v34 = vmax.f32 %v4338_v28, 0.0 }
 0x71b   : > { %v4483_v8 = vmax.f32 %v4340_v0, 0.0 }
 0x71c   : > { %v4540_v13 = vpack.c.bf16 %v4482_v34, %v4480_v5 }
 0x71d   : > { %v4541_v44 = vpack.c.bf16 %v4483_v8, %v4481_v39  ;;  %v4343_v25 = vpop.f32.mrb[236].mxu1 }
 0x71e   : > { %v4344_v40 = vadd.f32 %v4343_v25, %v7225_v47  ;;  %v4345_v62 = vpop.f32.mrb[237].mxu1 }
 0x71f   : > { %v4346_v63 = vadd.f32 %v4345_v62, %v7228_v3  ;;  %v4347_v41 = vpop.f32.mrb[238].mxu1  ;;  %4751 = vmatprep.mubr.bf16.mxu0 %v4541_v44 }
 0x720   : > { %v4348_v42 = vadd.f32 %v4347_v41, %v7225_v47  ;;  %v4349_v43 = vpop.f32.mrb[239].mxu1  ;;  %4752 = vmatmul.mubr.bf16.gmra.mrb[232].mxu0 %v4540_v13  ;;  %v4484_v48 = vmax.f32 %v4344_v40, 0.0 }
 0x721   : > { %v4350_v45 = vadd.f32 %v4349_v43, %v7228_v3  ;;  %v4485_v51 = vmax.f32 %v4346_v63, 0.0 }
 0x722   : > { %v4486_v50 = vmax.f32 %v4348_v42, 0.0 }
 0x723   : > { %v4487_v49 = vmax.f32 %v4350_v45, 0.0 }
 0x724   : > { %v4542_v20 = vpack.c.bf16 %v4486_v50, %v4484_v48 }
 0x725   : > { %v4543_v52 = vpack.c.bf16 %v4487_v49, %v4485_v51  ;;  %v4353_v53 = vpop.f32.mrb[240].mxu1 }
 0x726   : > { %v4354_v54 = vadd.f32 %v4353_v53, %v7225_v47  ;;  %v4355_v55 = vpop.f32.mrb[241].mxu1 }
 0x727   : > { %v4356_v58 = vadd.f32 %v4355_v55, %v7228_v3  ;;  %v4357_v60 = vpop.f32.mrb[242].mxu1  ;;  %4759 = vmatprep.mubr.bf16.mxu0 %v4543_v52 }
 0x728   : > { %v4358_v46 = vadd.f32 %v4357_v60, %v7225_v47  ;;  %v4359_v1 = vpop.f32.mrb[243].mxu1  ;;  %4760 = vmatmul.mubr.bf16.gmra.mrb[236].mxu0 %v4542_v20  ;;  %v4488_v2 = vmax.f32 %v4354_v54, 0.0 }
 0x729   : > { %v4360_v4 = vadd.f32 %v4359_v1, %v7228_v3  ;;  %v4489_v7 = vmax.f32 %v4356_v58, 0.0 }
 0x72a   : > { %v4490_v6 = vmax.f32 %v4358_v46, 0.0 }
 0x72b   : > { %v4491_v9 = vmax.f32 %v4360_v4, 0.0 }
 0x72c   : > { %v4544_v10 = vpack.c.bf16 %v4490_v6, %v4488_v2 }
 0x72d   : > { %v4545_v11 = vpack.c.bf16 %v4491_v9, %v4489_v7  ;;  %v4363_v56 = vpop.f32.mrb[244].mxu1 }
 0x72e   : > { %v4364_v57 = vadd.f32 %v4363_v56, %v7225_v47  ;;  %v4365_v12 = vpop.f32.mrb[245].mxu1 }
 0x72f   : > { %v4366_v59 = vadd.f32 %v4365_v12, %v7228_v3  ;;  %v4367_v14 = vpop.f32.mrb[246].mxu1  ;;  %4767 = vmatprep.mubr.bf16.mxu0 %v4545_v11 }
 0x730   : > { %v4368_v15 = vadd.f32 %v4367_v14, %v7225_v47  ;;  %v4369_v61 = vpop.f32.mrb[247].mxu1  ;;  %4768 = vmatmul.mubr.bf16.gmra.mrb[240].mxu0 %v4544_v10  ;;  %v4492_v19 = vmax.f32 %v4364_v57, 0.0 }
 0x731   : > { %v4370_v16 = vadd.f32 %v4369_v61, %v7228_v3  ;;  %v4493_v22 = vmax.f32 %v4366_v59, 0.0 }
 0x732   : > { %v4494_v21 = vmax.f32 %v4368_v15, 0.0 }
 0x733   : > { %v4495_v23 = vmax.f32 %v4370_v16, 0.0 }
 0x734   : > { %v4546_v24 = vpack.c.bf16 %v4494_v21, %v4492_v19 }
 0x735   : > { %v4547_v26 = vpack.c.bf16 %v4495_v23, %v4493_v22  ;;  %v4373_v27 = vpop.f32.mrb[248].mxu1 }
 0x736   : > { %v4374_v29 = vadd.f32 %v4373_v27, %v7225_v47  ;;  %v4375_v30 = vpop.f32.mrb[249].mxu1 }
 0x737   : > { %v4376_v31 = vadd.f32 %v4375_v30, %v7228_v3  ;;  %v4377_v32 = vpop.f32.mrb[250].mxu1  ;;  %4775 = vmatprep.mubr.bf16.mxu0 %v4547_v26 }
 0x738   : > { %v4378_v17 = vadd.f32 %v4377_v32, %v7225_v47  ;;  %v4379_v18 = vpop.f32.mrb[251].mxu1  ;;  %4776 = vmatmul.mubr.bf16.gmra.mrb[244].mxu0 %v4546_v24  ;;  %v4496_v36 = vmax.f32 %v4374_v29, 0.0 }
 0x739   : > { %v4380_v35 = vadd.f32 %v4379_v18, %v7228_v3  ;;  %v4497_v38 = vmax.f32 %v4376_v31, 0.0 }
 0x73a   : > { %v4498_v37 = vmax.f32 %v4378_v17, 0.0 }
 0x73b   : > { %v4499_v28 = vmax.f32 %v4380_v35, 0.0 }
 0x73c   : > { %v4548_v33 = vpack.c.bf16 %v4498_v37, %v4496_v36 }
 0x73d   : > { %v4549_v0 = vpack.c.bf16 %v4499_v28, %v4497_v38  ;;  %v4383_v5 = vpop.f32.mrb[252].mxu1 }
 0x73e   : > { %v4384_v34 = vadd.f32 %v4383_v5, %v7225_v47  ;;  %v4385_v39 = vpop.f32.mrb[253].mxu1 }
 0x73f   : > { %v4386_v8 = vadd.f32 %v4385_v39, %v7228_v3  ;;  %v4387_v13 = vpop.f32.mrb[254].mxu1  ;;  %4783 = vmatprep.mubr.bf16.mxu0 %v4549_v0 }
 0x740   : > { %v4388_v44 = vadd.f32 %v4387_v13, %v7225_v47  ;;  %v4389_v25 = vpop.f32.mrb[255].mxu1  ;;  %4784 = vmatmul.mubr.bf16.gmra.mrb[248].mxu0 %v4548_v33  ;;  %v4500_v62 = vmax.f32 %v4384_v34, 0.0 }
 0x741   : > { %v4390_v40 = vadd.f32 %v4389_v25, %v7228_v3  ;;  %v4501_v41 = vmax.f32 %v4386_v8, 0.0 }
 0x742   : > { %v4502_v63 = vmax.f32 %v4388_v44, 0.0 }
 0x743   : > { %v4503_v42 = vmax.f32 %v4390_v40, 0.0 }
 0x744   : > { %v4550_v43 = vpack.c.bf16 %v4502_v63, %v4500_v62 }
 0x745   : > { %v4551_v45 = vpack.c.bf16 %v4503_v42, %v4501_v41  ;;  %v4393_v48 = vpop.f32.mrb[0].mxu1 }
 0x746   : > { %v4394_v50 = vadd.f32 %v4393_v48, %v7225_v47  ;;  %v4395_v51 = vpop.f32.mrb[1].mxu1 }
 0x747   : > { %v4396_v49 = vadd.f32 %v4395_v51, %v7228_v3  ;;  %v4397_v20 = vpop.f32.mrb[2].mxu1  ;;  %4791 = vmatprep.mubr.bf16.mxu0 %v4551_v45 }
 0x748   : > { %v4398_v52 = vadd.f32 %v4397_v20, %v7225_v47  ;;  %v4399_v53 = vpop.f32.mrb[3].mxu1  ;;  %4792 = vmatmul.mubr.bf16.gmra.mrb[252].mxu0 %v4550_v43  ;;  %v4504_v55 = vmax.f32 %v4394_v50, 0.0 }
 0x749   : > { %v4400_v54 = vadd.f32 %v4399_v53, %v7228_v3  ;;  %v4505_v60 = vmax.f32 %v4396_v49, 0.0 }
 0x74a   : > { %v4506_v58 = vmax.f32 %v4398_v52, 0.0 }
 0x74b   : > { %v4507_v46 = vmax.f32 %v4400_v54, 0.0 }
 0x74c   : > { %v4552_v1 = vpack.c.bf16 %v4506_v58, %v4504_v55 }
 0x74d   : > { %v4553_v4 = vpack.c.bf16 %v4507_v46, %v4505_v60  ;;  %v4403_v2 = vpop.f32.mrb[4].mxu1 }
 0x74e   : > { %v4404_v6 = vadd.f32 %v4403_v2, %v7225_v47  ;;  %v4405_v7 = vpop.f32.mrb[5].mxu1 }
 0x74f   : > { %v4406_v9 = vadd.f32 %v4405_v7, %v7228_v3  ;;  %v4407_v10 = vpop.f32.mrb[6].mxu1  ;;  %4799 = vmatprep.mubr.bf16.mxu0 %v4553_v4 }
 0x750   : > { %v4408_v11 = vadd.f32 %v4407_v10, %v7225_v47  ;;  %v4409_v56 = vpop.f32.mrb[7].mxu1  ;;  %4800 = vmatmul.mubr.bf16.gmra.mrb[0].mxu0 %v4552_v1  ;;  %v4508_v12 = vmax.f32 %v4404_v6, 0.0 }
 0x751   : > { %v4410_v57 = vadd.f32 %v4409_v56, %v7228_v3  ;;  %v4509_v14 = vmax.f32 %v4406_v9, 0.0 }
 0x752   : > { %v4510_v59 = vmax.f32 %v4408_v11, 0.0 }
 0x753   : > { %v4511_v15 = vmax.f32 %v4410_v57, 0.0 }
 0x754   : > { %v4554_v61 = vpack.c.bf16 %v4510_v59, %v4508_v12 }
 0x755   : > { %v4555_v16 = vpack.c.bf16 %v4511_v15, %v4509_v14  ;;  %v4413_v19 = vpop.f32.mrb[8].mxu1 }
 0x756   : > { %v4414_v21 = vadd.f32 %v4413_v19, %v7225_v47  ;;  %v4415_v22 = vpop.f32.mrb[9].mxu1 }
 0x757   : > { %v4416_v23 = vadd.f32 %v4415_v22, %v7228_v3  ;;  %v4417_v24 = vpop.f32.mrb[10].mxu1  ;;  %4807 = vmatprep.mubr.bf16.mxu0 %v4555_v16 }
 0x758   : > { %v4418_v26 = vadd.f32 %v4417_v24, %v7225_v47  ;;  %v4419_v27 = vpop.f32.mrb[11].mxu1  ;;  %4808 = vmatmul.mubr.bf16.gmra.mrb[4].mxu0 %v4554_v61  ;;  %v4512_v30 = vmax.f32 %v4414_v21, 0.0 }
 0x759   : > { %v4420_v29 = vadd.f32 %v4419_v27, %v7228_v3  ;;  %v4513_v32 = vmax.f32 %v4416_v23, 0.0 }
 0x75a   : > { %v4514_v31 = vmax.f32 %v4418_v26, 0.0 }
 0x75b   : > { %v4515_v17 = vmax.f32 %v4420_v29, 0.0 }
 0x75c   : > { %v4556_v18 = vpack.c.bf16 %v4514_v31, %v4512_v30 }
 0x75d   : > { %v4557_v35 = vpack.c.bf16 %v4515_v17, %v4513_v32  ;;  %v4423_v36 = vpop.f32.mrb[12].mxu1 }
 0x75e   : > { %v4424_v37 = vadd.f32 %v4423_v36, %v7225_v47  ;;  %v4425_v38 = vpop.f32.mrb[13].mxu1 }
 0x75f   : > { %v4426_v28 = vadd.f32 %v4425_v38, %v7228_v3  ;;  %v4427_v33 = vpop.f32.mrb[14].mxu1  ;;  %4815 = vmatprep.mubr.bf16.mxu0 %v4557_v35 }
 0x760   : > { %v4428_v0 = vadd.f32 %v4427_v33, %v7225_v47  ;;  %v4429_v5 = vpop.f32.mrb[15].mxu1  ;;  %4816 = vmatmul.mubr.bf16.gmra.mrb[8].mxu0 %v4556_v18  ;;  %v4516_v39 = vmax.f32 %v4424_v37, 0.0 }
 0x761   : > { %v4430_v34 = vadd.f32 %v4429_v5, %v7228_v3  ;;  %v4517_v13 = vmax.f32 %v4426_v28, 0.0 }
 0x762   : > { %v4518_v8 = vmax.f32 %v4428_v0, 0.0 }
 0x763   : > { %v4519_v44 = vmax.f32 %v4430_v34, 0.0 }
 0x764   : > { %v4558_v25 = vpack.c.bf16 %v4518_v8, %v4516_v39  ;;  %v7298_v8 = vld [vmem:[%s7390_s18] ss:$0 sm:$0xff] }
 0x765   : > { %v4559_v40 = vpack.c.bf16 %v4519_v44, %v4517_v13  ;;  %v4433_v62 = vpop.f32.mrb[16].mxu1 }
 0x766   : > { %v4434_v63 = vadd.f32 %v4433_v62, %v7225_v47  ;;  %v4435_v41 = vpop.f32.mrb[17].mxu1 }
 0x767   : > { %v4436_v42 = vadd.f32 %v4435_v41, %v7228_v3  ;;  %v4437_v43 = vpop.f32.mrb[18].mxu1  ;;  %4823 = vmatprep.mubr.bf16.mxu0 %v4559_v40 }
 0x768   : > { %v4438_v45 = vadd.f32 %v4437_v43, %v7225_v47  ;;  %v4439_v48 = vpop.f32.mrb[19].mxu1  ;;  %4824 = vmatmul.mubr.bf16.gmra.mrb[12].mxu0 %v4558_v25  ;;  %v4520_v51 = vmax.f32 %v4434_v63, 0.0 }
 0x769   : > { %v4440_v50 = vadd.f32 %v4439_v48, %v7228_v3  ;;  %v4521_v20 = vmax.f32 %v4436_v42, 0.0 }
 0x76a   : > { %v4522_v49 = vmax.f32 %v4438_v45, 0.0 }
 0x76b   : > { %v4523_v52 = vmax.f32 %v4440_v50, 0.0 }
 0x76c   : > { %v4560_v53 = vpack.c.bf16 %v4522_v49, %v4520_v51 }
 0x76d   : > { %v4561_v54 = vpack.c.bf16 %v4523_v52, %v4521_v20  ;;  %v4443_v55 = vpop.f32.mrb[20].mxu1 }
 0x76e   : > { %v4444_v58 = vadd.f32 %v4443_v55, %v7225_v47  ;;  %v4445_v60 = vpop.f32.mrb[21].mxu1 }
 0x76f   : > { %v4446_v46 = vadd.f32 %v4445_v60, %v7228_v3  ;;  %v4447_v1 = vpop.f32.mrb[22].mxu1  ;;  %4831 = vmatprep.mubr.bf16.mxu0 %v4561_v54 }
 0x770   : > { %v4448_v4 = vadd.f32 %v4447_v1, %v7225_v47  ;;  %v4449_v2 = vpop.f32.mrb[23].mxu1  ;;  %4832 = vmatmul.mubr.bf16.gmra.mrb[16].mxu0 %v4560_v53  ;;  %v4524_v7 = vmax.f32 %v4444_v58, 0.0 }
 0x771   : > { %v4450_v6 = vadd.f32 %v4449_v2, %v7228_v3  ;;  %v4525_v10 = vmax.f32 %v4446_v46, 0.0 }
 0x772   : > { %v4526_v9 = vmax.f32 %v4448_v4, 0.0 }
 0x773   : > { %v4527_v11 = vmax.f32 %v4450_v6, 0.0 }
 0x774   : > { %v4562_v56 = vpack.c.bf16 %v4526_v9, %v4524_v7 }
 0x775   : > { %v4563_v57 = vpack.c.bf16 %v4527_v11, %v4525_v10  ;;  %v4453_v12 = vpop.f32.mrb[24].mxu1 }
 0x776   : > { %v4454_v59 = vadd.f32 %v4453_v12, %v7225_v47  ;;  %v4455_v14 = vpop.f32.mrb[25].mxu1 }
 0x777   : > { %v4456_v15 = vadd.f32 %v4455_v14, %v7228_v3  ;;  %v4457_v61 = vpop.f32.mrb[26].mxu1  ;;  %4839 = vmatprep.mubr.bf16.mxu0 %v4563_v57 }
 0x778   : > { %v4458_v16 = vadd.f32 %v4457_v61, %v7225_v47  ;;  %v4459_v19 = vpop.f32.mrb[27].mxu1  ;;  %4840 = vmatmul.mubr.bf16.gmra.mrb[20].mxu0 %v4562_v56  ;;  %v4528_v22 = vmax.f32 %v4454_v59, 0.0 }
 0x779   : > { %v4460_v21 = vadd.f32 %v4459_v19, %v7228_v3  ;;  %v4529_v24 = vmax.f32 %v4456_v15, 0.0 }
 0x77a   : > { %v4530_v23 = vmax.f32 %v4458_v16, 0.0 }
 0x77b   : > { %v4531_v26 = vmax.f32 %v4460_v21, 0.0 }
 0x77c   : > { %v4564_v27 = vpack.c.bf16 %v4530_v23, %v4528_v22 }
 0x77d   : > { %v4565_v29 = vpack.c.bf16 %v4531_v26, %v4529_v24  ;;  %v4463_v30 = vpop.f32.mrb[28].mxu1 }
 0x77e   : > { %v4464_v31 = vadd.f32 %v4463_v30, %v7225_v47  ;;  %v4465_v32 = vpop.f32.mrb[29].mxu1 }
 0x77f   : > { %v4466_v17 = vadd.f32 %v4465_v32, %v7228_v3  ;;  %v4467_v18 = vpop.f32.mrb[30].mxu1  ;;  %4847 = vmatprep.mubr.bf16.mxu0 %v4565_v29 }
 0x780   : > { %v4468_v35 = vadd.f32 %v4467_v18, %v7225_v47  ;;  %v4469_v36 = vpop.f32.mrb[31].mxu1  ;;  %4848 = vmatmul.mubr.bf16.gmra.mrb[24].mxu0 %v4564_v27  ;;  %v4532_v38 = vmax.f32 %v4464_v31, 0.0 }
 0x781   : > { %v4470_v37 = vadd.f32 %v4469_v36, %v7228_v3  ;;  %v4533_v33 = vmax.f32 %v4466_v17, 0.0 }
 0x782   : > { %v4534_v28 = vmax.f32 %v4468_v35, 0.0 }
 0x783   : > { %v4535_v0 = vmax.f32 %v4470_v37, 0.0 }
 0x784   : > { %v4566_v5 = vpack.c.bf16 %v4534_v28, %v4532_v38 }
 0x785   : > { %v4567_v34 = vpack.c.bf16 %v4535_v0, %v4533_v33 }
 0x787   : > { %4855 = vmatprep.mubr.bf16.mxu0 %v4567_v34 }
 0x788   : > { %4856 = vmatmul.mubr.bf16.gmra.mrb[28].mxu0 %v4566_v5 }
 0x7e3   : > { %v5260_v39 = vpop.f32.mrb[224].mxu0 }
 0x7e4   : > { %v5261_v47 = vpop.f32.mrb[225].mxu0 }
 0x7e5   : > { %v5262_v13 = vadd.f32 %v5261_v47, %v5260_v39  ;;  %v5263_v44 = vpop.f32.mrb[226].mxu0 }
 0x7e6   : > { %v5264_v3 = vpop.f32.mrb[227].mxu0 }
 0x7e7   : > { %v4738_v25 = vadd.f32 %v5262_v13, %v7298_v8  ;;  %v5265_v40 = vadd.f32 %v5264_v3, %v5263_v44 }
 0x7e9   : > { %4864 = vst [vmem:[%s7303_s29] sm:$0xff] %v4738_v25  ;;  %v4741_v62 = vadd.f32 %v5265_v40, %v7298_v8 }
 0x7eb   : > { %4865 = vst [vmem:[%s7303_s29 + $0x8] sm:$0xff] %v4741_v62  ;;  %v5266_v63 = vpop.f32.mrb[228].mxu0 }
 0x7ec   : > { %v5267_v41 = vpop.f32.mrb[229].mxu0 }
 0x7ed   : > { %v5268_v42 = vadd.f32 %v5267_v41, %v5266_v63  ;;  %v5269_v43 = vpop.f32.mrb[230].mxu0 }
 0x7ee   : > { %v5270_v45 = vpop.f32.mrb[231].mxu0 }
 0x7ef   : > { %v4746_v48 = vadd.f32 %v5268_v42, %v7298_v8  ;;  %v5271_v50 = vadd.f32 %v5270_v45, %v5269_v43 }
 0x7f1   : > { %4866 = vst [vmem:[%s7303_s29 + $0x10] sm:$0xff] %v4746_v48  ;;  %v4749_v51 = vadd.f32 %v5271_v50, %v7298_v8 }
 0x7f3   : > { %4867 = vst [vmem:[%s7303_s29 + $0x18] sm:$0xff] %v4749_v51  ;;  %v5272_v49 = vpop.f32.mrb[232].mxu0 }
 0x7f4   : > { %v5273_v20 = vpop.f32.mrb[233].mxu0 }
 0x7f5   : > { %v5274_v52 = vadd.f32 %v5273_v20, %v5272_v49  ;;  %v5275_v53 = vpop.f32.mrb[234].mxu0 }
 0x7f6   : > { %v5276_v54 = vpop.f32.mrb[235].mxu0 }
 0x7f7   : > { %v4754_v55 = vadd.f32 %v5274_v52, %v7298_v8  ;;  %v5277_v58 = vadd.f32 %v5276_v54, %v5275_v53 }
 0x7f9   : > { %4868 = vst [vmem:[%s7303_s29 + $0x20] sm:$0xff] %v4754_v55  ;;  %v4757_v60 = vadd.f32 %v5277_v58, %v7298_v8 }
 0x7fb   : > { %4869 = vst [vmem:[%s7303_s29 + $0x28] sm:$0xff] %v4757_v60  ;;  %v5278_v46 = vpop.f32.mrb[236].mxu0 }
 0x7fc   : > { %v5279_v1 = vpop.f32.mrb[237].mxu0 }
 0x7fd   : > { %v5280_v4 = vadd.f32 %v5279_v1, %v5278_v46  ;;  %v5281_v2 = vpop.f32.mrb[238].mxu0 }
 0x7fe   : > { %v5282_v6 = vpop.f32.mrb[239].mxu0 }
 0x7ff   : > { %v4762_v7 = vadd.f32 %v5280_v4, %v7298_v8  ;;  %v5283_v9 = vadd.f32 %v5282_v6, %v5281_v2 }
 0x801   : > { %4870 = vst [vmem:[%s7303_s29 + $0x30] sm:$0xff] %v4762_v7  ;;  %v4765_v10 = vadd.f32 %v5283_v9, %v7298_v8 }
 0x803   : > { %4871 = vst [vmem:[%s7303_s29 + $0x38] sm:$0xff] %v4765_v10  ;;  %v5284_v11 = vpop.f32.mrb[240].mxu0 }
 0x804   : > { %v5285_v56 = vpop.f32.mrb[241].mxu0 }
 0x805   : > { %v5286_v57 = vadd.f32 %v5285_v56, %v5284_v11  ;;  %v5287_v12 = vpop.f32.mrb[242].mxu0 }
 0x806   : > { %v5288_v59 = vpop.f32.mrb[243].mxu0 }
 0x807   : > { %v4770_v14 = vadd.f32 %v5286_v57, %v7298_v8  ;;  %v5289_v15 = vadd.f32 %v5288_v59, %v5287_v12 }
 0x809   : > { %4872 = vst [vmem:[%s7303_s29 + $0x40] sm:$0xff] %v4770_v14  ;;  %v4773_v61 = vadd.f32 %v5289_v15, %v7298_v8 }
 0x80b   : > { %4873 = vst [vmem:[%s7303_s29 + $0x48] sm:$0xff] %v4773_v61  ;;  %v5290_v16 = vpop.f32.mrb[244].mxu0 }
 0x80c   : > { %v5291_v19 = vpop.f32.mrb[245].mxu0 }
 0x80d   : > { %v5292_v21 = vadd.f32 %v5291_v19, %v5290_v16  ;;  %v5293_v22 = vpop.f32.mrb[246].mxu0 }
 0x80e   : > { %v5294_v23 = vpop.f32.mrb[247].mxu0 }
 0x80f   : > { %v4778_v24 = vadd.f32 %v5292_v21, %v7298_v8  ;;  %v5295_v26 = vadd.f32 %v5294_v23, %v5293_v22 }
 0x811   : > { %4874 = vst [vmem:[%s7303_s29 + $0x50] sm:$0xff] %v4778_v24  ;;  %v4781_v27 = vadd.f32 %v5295_v26, %v7298_v8 }
 0x813   : > { %4875 = vst [vmem:[%s7303_s29 + $0x58] sm:$0xff] %v4781_v27  ;;  %v5296_v29 = vpop.f32.mrb[248].mxu0 }
 0x814   : > { %v5297_v30 = vpop.f32.mrb[249].mxu0 }
 0x815   : > { %v5298_v31 = vadd.f32 %v5297_v30, %v5296_v29  ;;  %v5299_v32 = vpop.f32.mrb[250].mxu0 }
 0x816   : > { %v5300_v17 = vpop.f32.mrb[251].mxu0 }
 0x817   : > { %v4786_v18 = vadd.f32 %v5298_v31, %v7298_v8  ;;  %v5301_v35 = vadd.f32 %v5300_v17, %v5299_v32 }
 0x819   : > { %4876 = vst [vmem:[%s7303_s29 + $0x60] sm:$0xff] %v4786_v18  ;;  %v4789_v36 = vadd.f32 %v5301_v35, %v7298_v8 }
 0x81b   : > { %4877 = vst [vmem:[%s7303_s29 + $0x68] sm:$0xff] %v4789_v36  ;;  %v5302_v37 = vpop.f32.mrb[252].mxu0 }
 0x81c   : > { %v5303_v38 = vpop.f32.mrb[253].mxu0 }
 0x81d   : > { %v5304_v28 = vadd.f32 %v5303_v38, %v5302_v37  ;;  %v5305_v33 = vpop.f32.mrb[254].mxu0 }
 0x81e   : > { %v5306_v0 = vpop.f32.mrb[255].mxu0 }
 0x81f   : > { %v4794_v5 = vadd.f32 %v5304_v28, %v7298_v8  ;;  %v5307_v34 = vadd.f32 %v5306_v0, %v5305_v33 }
 0x821   : > { %4878 = vst [vmem:[%s7303_s29 + $0x70] sm:$0xff] %v4794_v5  ;;  %v4797_v39 = vadd.f32 %v5307_v34, %v7298_v8 }
 0x823   : > { %4879 = vst [vmem:[%s7303_s29 + $0x78] sm:$0xff] %v4797_v39  ;;  %v5308_v47 = vpop.f32.mrb[0].mxu0 }
 0x824   : > { %v5309_v13 = vpop.f32.mrb[1].mxu0 }
 0x825   : > { %v5310_v44 = vadd.f32 %v5309_v13, %v5308_v47  ;;  %v5311_v3 = vpop.f32.mrb[2].mxu0 }
 0x826   : > { %v5312_v25 = vpop.f32.mrb[3].mxu0 }
 0x827   : > { %v4802_v40 = vadd.f32 %v5310_v44, %v7298_v8  ;;  %v5313_v62 = vadd.f32 %v5312_v25, %v5311_v3 }
 0x829   : > { %4880 = vst [vmem:[%s7303_s29 + $0x80] sm:$0xff] %v4802_v40  ;;  %v4805_v63 = vadd.f32 %v5313_v62, %v7298_v8 }
 0x82b   : > { %4881 = vst [vmem:[%s7303_s29 + $0x88] sm:$0xff] %v4805_v63  ;;  %v5314_v41 = vpop.f32.mrb[4].mxu0 }
 0x82c   : > { %v5315_v42 = vpop.f32.mrb[5].mxu0 }
 0x82d   : > { %v5316_v43 = vadd.f32 %v5315_v42, %v5314_v41  ;;  %v5317_v45 = vpop.f32.mrb[6].mxu0 }
 0x82e   : > { %v5318_v48 = vpop.f32.mrb[7].mxu0 }
 0x82f   : > { %v4810_v50 = vadd.f32 %v5316_v43, %v7298_v8  ;;  %v5319_v51 = vadd.f32 %v5318_v48, %v5317_v45 }
 0x831   : > { %4882 = vst [vmem:[%s7303_s29 + $0x90] sm:$0xff] %v4810_v50  ;;  %v4813_v49 = vadd.f32 %v5319_v51, %v7298_v8 }
 0x833   : > { %4883 = vst [vmem:[%s7303_s29 + $0x98] sm:$0xff] %v4813_v49  ;;  %v5320_v20 = vpop.f32.mrb[8].mxu0 }
 0x834   : > { %v5321_v52 = vpop.f32.mrb[9].mxu0 }
 0x835   : > { %v5322_v53 = vadd.f32 %v5321_v52, %v5320_v20  ;;  %v5323_v54 = vpop.f32.mrb[10].mxu0 }
 0x836   : > { %v5324_v55 = vpop.f32.mrb[11].mxu0 }
 0x837   : > { %v4818_v58 = vadd.f32 %v5322_v53, %v7298_v8  ;;  %v5325_v60 = vadd.f32 %v5324_v55, %v5323_v54 }
 0x839   : > { %4884 = vst [vmem:[%s7303_s29 + $0xa0] sm:$0xff] %v4818_v58  ;;  %v4821_v46 = vadd.f32 %v5325_v60, %v7298_v8 }
 0x83b   : > { %4885 = vst [vmem:[%s7303_s29 + $0xa8] sm:$0xff] %v4821_v46  ;;  %v5326_v1 = vpop.f32.mrb[12].mxu0 }
 0x83c   : > { %v5327_v4 = vpop.f32.mrb[13].mxu0 }
 0x83d   : > { %v5328_v2 = vadd.f32 %v5327_v4, %v5326_v1  ;;  %v5329_v6 = vpop.f32.mrb[14].mxu0 }
 0x83e   : > { %v5330_v7 = vpop.f32.mrb[15].mxu0 }
 0x83f   : > { %v4826_v9 = vadd.f32 %v5328_v2, %v7298_v8  ;;  %v5331_v10 = vadd.f32 %v5330_v7, %v5329_v6 }
 0x841   : > { %4886 = vst [vmem:[%s7303_s29 + $0xb0] sm:$0xff] %v4826_v9  ;;  %v4829_v11 = vadd.f32 %v5331_v10, %v7298_v8 }
 0x843   : > { %4887 = vst [vmem:[%s7303_s29 + $0xb8] sm:$0xff] %v4829_v11  ;;  %v5332_v56 = vpop.f32.mrb[16].mxu0 }
 0x844   : > { %v5333_v57 = vpop.f32.mrb[17].mxu0 }
 0x845   : > { %v5334_v12 = vadd.f32 %v5333_v57, %v5332_v56  ;;  %v5335_v59 = vpop.f32.mrb[18].mxu0 }
 0x846   : > { %v5336_v14 = vpop.f32.mrb[19].mxu0 }
 0x847   : > { %v4834_v15 = vadd.f32 %v5334_v12, %v7298_v8  ;;  %v5337_v61 = vadd.f32 %v5336_v14, %v5335_v59 }
 0x849   : > { %4888 = vst [vmem:[%s7303_s29 + $0xc0] sm:$0xff] %v4834_v15  ;;  %v4837_v16 = vadd.f32 %v5337_v61, %v7298_v8 }
 0x84b   : > { %4889 = vst [vmem:[%s7303_s29 + $0xc8] sm:$0xff] %v4837_v16  ;;  %v5338_v19 = vpop.f32.mrb[20].mxu0 }
 0x84c   : > { %v5339_v21 = vpop.f32.mrb[21].mxu0 }
 0x84d   : > { %v5340_v22 = vadd.f32 %v5339_v21, %v5338_v19  ;;  %v5341_v23 = vpop.f32.mrb[22].mxu0 }
 0x84e   : > { %v5342_v24 = vpop.f32.mrb[23].mxu0 }
 0x84f   : > { %v4842_v26 = vadd.f32 %v5340_v22, %v7298_v8  ;;  %v5343_v27 = vadd.f32 %v5342_v24, %v5341_v23 }
 0x851   : > { %4890 = vst [vmem:[%s7303_s29 + $0xd0] sm:$0xff] %v4842_v26  ;;  %v4845_v29 = vadd.f32 %v5343_v27, %v7298_v8 }
 0x853   : > { %4891 = vst [vmem:[%s7303_s29 + $0xd8] sm:$0xff] %v4845_v29  ;;  %v5344_v30 = vpop.f32.mrb[24].mxu0 }
 0x854   : > { %v5345_v31 = vpop.f32.mrb[25].mxu0 }
 0x855   : > { %v5346_v32 = vadd.f32 %v5345_v31, %v5344_v30  ;;  %v5347_v17 = vpop.f32.mrb[26].mxu0 }
 0x856   : > { %v5348_v18 = vpop.f32.mrb[27].mxu0 }
 0x857   : > { %v4850_v35 = vadd.f32 %v5346_v32, %v7298_v8  ;;  %v5349_v36 = vadd.f32 %v5348_v18, %v5347_v17 }
 0x859   : > { %4892 = vst [vmem:[%s7303_s29 + $0xe0] sm:$0xff] %v4850_v35  ;;  %v4853_v37 = vadd.f32 %v5349_v36, %v7298_v8 }
 0x85b   : > { %4893 = vst [vmem:[%s7303_s29 + $0xe8] sm:$0xff] %v4853_v37  ;;  %v5350_v38 = vpop.f32.mrb[28].mxu0 }
 0x85c   : > { %v5351_v28 = vpop.f32.mrb[29].mxu0 }
 0x85d   : > { %v5352_v33 = vadd.f32 %v5351_v28, %v5350_v38  ;;  %v5353_v0 = vpop.f32.mrb[30].mxu0 }
 0x85e   : > { %v5354_v5 = vpop.f32.mrb[31].mxu0 }
 0x85f   : > { %v4858_v34 = vadd.f32 %v5352_v33, %v7298_v8  ;;  %v5355_v39 = vadd.f32 %v5354_v5, %v5353_v0 }
 0x861   : > { %4894 = vst [vmem:[%s7303_s29 + $0xf0] sm:$0xff] %v4858_v34  ;;  %v4861_v47 = vadd.f32 %v5355_v39, %v7298_v8 }
 0x863   : > { %4895 = vst [vmem:[%s7303_s29 + $0xf8] sm:$0xff] %v4861_v47 }
 0x864 PF: > { %s29_s0 = sadd.s32 1, %s5759_s0  }
 0x865   : > { %p26_p4 = scmp.ge.s32.totalorder %s29_s0, 4  }
 0x867   :  { %28 = sbr.rel (!%p26_p4) target bundleno = 5 (0x5), region = 126 }

</bundles_post_ra>
